<compile_context>
chip_gen: v5e
topology: v5e:2x2
jax: 0.10.0
libtpu: 0.0.40
codegen_flags: <defaults>
</compile_context>

<pallas_src>
import numpy as np
import jax
import jax.numpy as jnp
from jax import lax
from jax.experimental import pallas as pl
from jax.experimental.pallas import tpu as pltpu


# ---------------------------------------------------------------------------
# Pallas kernel: one full AttentionBlock stack (L layers) for one batch item.
# ---------------------------------------------------------------------------
def _attention_block_kernel(
        x_ref,
        w_sh1_ref, bn1b_ref, w_sh2_ref, bn2b_ref,
        w_v_ref, b_v_ref, w_aug_ref, b_aug_ref,
        w_fuse_ref, w_out_ref, gamma_ref,
        w_d1_ref, b_d1_ref, a_d1_ref,
        w_d2_ref, b_d2_ref, a_d2_ref,
        w_mf_ref,
        bcast_ref, p2_ref, p4_ref,
        o_ref):
    f32 = jnp.float32
    L = w_sh1_ref.shape[0]
    HW = x_ref.shape[2]
    W = bcast_ref.shape[0]
    H = HW // W
    C2 = w_d1_ref.shape[2]

    bcast = bcast_ref[...]                         # (W, HW): repeats a (., W) slab H times
    x = x_ref[0].astype(f32)                       # (C, HW) lane-dense slab

    for l in range(L):                             # static unroll over layers
        # ================= ScaleAwareStripAttention =================
        # Strip pools over H on the flat slab via a halving tree (flat index = h*W + w,
        # H power of two): each halving folds the top bit of h.
        mx_raw = x
        av_raw = x
        width = HW
        while width > W:
            half = width // 2
            mx_raw = jnp.maximum(mx_raw[:, :half], mx_raw[:, half:])
            av_raw = av_raw[:, :half] + av_raw[:, half:]
            width = half
        av_raw = av_raw * (1.0 / H)                # (C, W) avg-pool over H

        # BN scales are pre-folded into w_sh1 / w_sh2 in the wrapper.
        mxpool = jnp.dot(w_sh1_ref[l], mx_raw, preferred_element_type=f32) + bn1b_ref[l]
        v = jnp.dot(w_v_ref[l], av_raw, preferred_element_type=f32) + b_v_ref[l]
        avg_all = jnp.dot(w_sh2_ref[l], x, preferred_element_type=f32) + bn2b_ref[l]

        # att[w, h*W+w'] = sum_c mxpool[c, w] * avg_all[c, h*W+w']
        att = lax.dot_general(mxpool, avg_all,
                              dimension_numbers=(((0,), (0,)), ((), ())),
                              preferred_element_type=f32)           # (W, HW)
        att = jnp.exp(att - jnp.max(att, axis=0, keepdims=True))    # softmax over W axis
        att = att * pl.reciprocal(jnp.sum(att, axis=0, keepdims=True), approx=True)

        vat = jnp.dot(v, att, preferred_element_type=f32)           # (C, HW)
        aug = jnp.dot(w_aug_ref[l], vat, preferred_element_type=f32) + b_aug_ref[l]
        attt1 = aug[0:1, :]
        attt2 = aug[1:2, :]

        # fuse(attt1*avgpool + attt2*mxpool): w_fuse hoisted through the per-position
        # channel-broadcast; mxpool broadcast over H via a constant matmul.
        w_fuse = w_fuse_ref[l]
        fuse_avg = jnp.dot(w_fuse, avg_all, preferred_element_type=f32)   # (C, HW)
        fuse_mx = jnp.dot(w_fuse, mxpool, preferred_element_type=f32)     # (C, W)
        fuse_mx_b = jnp.dot(fuse_mx, bcast, preferred_element_type=f32)   # (C, HW)
        fused = attt1 * fuse_avg + attt2 * fuse_mx_b

        g = gamma_ref[l]
        pre = g * fused + (1.0 - g) * x
        attn = jnp.dot(w_out_ref[l], jnp.maximum(pre, 0.0),
                       preferred_element_type=f32)                  # (C, HW)
        y = x + attn                                                # residual 1

        # ================= Mlp (dilated 3x3 branches via shift matmuls) =================
        def dconv_branch(w_taps_ref, b_ref, a_ref, p_ref):
            acc = None
            for t in range(9):
                # channel projection first (C -> C/2), then spatial shift matmul
                proj = jnp.dot(w_taps_ref[l, t], y, preferred_element_type=f32)  # (C2, HW)
                if t == 4:                       # center tap: shift matrix is identity
                    sh = proj
                else:
                    sh = jnp.dot(proj, p_ref[t], preferred_element_type=f32)     # (C2, HW)
                acc = sh if acc is None else acc + sh
            acc = acc + b_ref[l]                 # BN shift (scale folded into tap weights)
            a = a_ref[l]                         # PReLU slope (per channel)
            return jnp.maximum(acc, 0.0) + a * jnp.minimum(acc, 0.0)

        d1 = dconv_branch(w_d1_ref, b_d1_ref, a_d1_ref, p2_ref)     # dilation 2
        d2 = dconv_branch(w_d2_ref, b_d2_ref, a_d2_ref, p4_ref)     # dilation 4

        # cat([d1, d2], channel) then 1x1 fuse conv (no bias), expressed without the concat.
        w_mf = w_mf_ref[l]
        m = (jnp.dot(w_mf[:, :C2], d1, preferred_element_type=f32) +
             jnp.dot(w_mf[:, C2:], d2, preferred_element_type=f32))
        m = 1.0 / (1.0 + jnp.exp(-m))            # sigmoid
        x = y + m                                # residual 2

    o_ref[0] = x.astype(o_ref.dtype)


# ---------------------------------------------------------------------------
# Constant shift matrices for a dilated 3x3 conv on the flattened (h*W + w) axis.
# P[t, m, n] = 1  iff  m = (h + i*d)*W + (w + j*d)  for n = h*W + w, in-bounds (zero pad).
# ---------------------------------------------------------------------------
def _shift_mats(H, W, dil):
    HW = H * W
    mats = np.zeros((9, HW, HW), np.float32)
    t = 0
    for i in (-1, 0, 1):
        for j in (-1, 0, 1):
            for h in range(H):
                hs = h + i * dil
                if 0 <= hs < H:
                    for w in range(W):
                        ws = w + j * dil
                        if 0 <= ws < W:
                            mats[t, hs * W + ws, h * W + w] = 1.0
            t += 1
    return jnp.asarray(mats)


# ---------------------------------------------------------------------------
# Wrapper: fold BN into weights, stack per-layer params, build constants, pallas_call.
# ---------------------------------------------------------------------------
def scale_aware_block(x, layers):
    B, C, H, W = x.shape
    HW = H * W
    L = len(layers)
    C2 = C // 2
    assert H & (H - 1) == 0, "H must be a power of two for the pooling halving tree"

    def stack(fn):
        return jnp.stack([fn(p) for p in layers], axis=0).astype(jnp.float32)

    # --- attention params (BN scale folded into the shared conv_sh weight) ---
    w_sh1 = stack(lambda p: p["bn1_s"][:, None] * p["w_sh"])
    bn1_b = stack(lambda p: p["bn1_b"][:, None])
    w_sh2 = stack(lambda p: p["bn2_s"][:, None] * p["w_sh"])
    bn2_b = stack(lambda p: p["bn2_b"][:, None])
    w_v = stack(lambda p: p["w_v"])
    b_v = stack(lambda p: p["b_v"][:, None])
    w_aug = stack(lambda p: p["w_aug"])
    b_aug = stack(lambda p: p["b_aug"][:, None])
    w_fuse = stack(lambda p: p["w_fuse"])
    w_out = stack(lambda p: p["w_out"])
    gamma = jnp.stack([p["gamma"] for p in layers]).astype(jnp.float32)      # (L,)

    # --- Mlp params: 3x3 weights reorganized to 9 per-tap (C2, C) matrices, BN folded ---
    def tap_fold(wk, sk):
        return stack(lambda p: (p[wk] * p[sk][:, None, None, None])
                     .transpose(2, 3, 0, 1).reshape(9, C2, C))
    w_d1 = tap_fold("w_d1", "bn_d1_s")
    b_d1 = stack(lambda p: p["bn_d1_b"][:, None])
    a_d1 = stack(lambda p: p["a_d1"][:, None])
    w_d2 = tap_fold("w_d2", "bn_d2_s")
    b_d2 = stack(lambda p: p["bn_d2_b"][:, None])
    a_d2 = stack(lambda p: p["a_d2"][:, None])
    w_mf = stack(lambda p: p["w_mf"])

    # --- shared constants ---
    bcast = jnp.tile(jnp.eye(W, dtype=jnp.float32), (1, H))                  # (W, HW)
    p2 = _shift_mats(H, W, 2)                                                # (9, HW, HW)
    p4 = _shift_mats(H, W, 4)
    x_flat = x.reshape(B, C, HW).astype(jnp.float32)

    def cs(shape):
        n = len(shape)
        return pl.BlockSpec(shape, lambda b, _n=n: (0,) * _n)

    in_specs = [
        pl.BlockSpec((1, C, HW), lambda b: (b, 0, 0)),                       # x (flat)
        cs((L, C, C)), cs((L, C, 1)), cs((L, C, C)), cs((L, C, 1)),          # w_sh1/2, bn shifts
        cs((L, C, C)), cs((L, C, 1)), cs((L, C, C)), cs((L, C, 1)),          # conv_v, augmment
        cs((L, C, C)), cs((L, C, C)),                                        # fuse, fuse_out
        pl.BlockSpec(memory_space=pltpu.MemorySpace.SMEM),                   # gamma (L,)
        cs((L, 9, C2, C)), cs((L, C2, 1)), cs((L, C2, 1)),                   # dconv1
        cs((L, 9, C2, C)), cs((L, C2, 1)), cs((L, C2, 1)),                   # dconv2
        cs((L, C, C)),                                                       # mlp fuse
        cs((W, HW)), cs((9, HW, HW)), cs((9, HW, HW)),                       # constants
    ]
    out_specs = pl.BlockSpec((1, C, HW), lambda b: (b, 0, 0))

    out_flat = pl.pallas_call(
        _attention_block_kernel,
        out_shape=jax.ShapeDtypeStruct((B, C, HW), jnp.float32),
        grid=(B,),
        in_specs=in_specs,
        out_specs=out_specs,
        compiler_params=pltpu.CompilerParams(dimension_semantics=("parallel",)),
    )(x_flat, w_sh1, bn1_b, w_sh2, bn2_b, w_v, b_v, w_aug, b_aug, w_fuse, w_out,
      gamma, w_d1, b_d1, a_d1, w_d2, b_d2, a_d2, w_mf, bcast, p2, p4)
    return out_flat.reshape(B, C, H, W)


# ---------------------------------------------------------------------------
# Pure-JAX reference mirroring the PyTorch forward (eval mode).
# ---------------------------------------------------------------------------
def _attn_ref(x, p):
    B, C, H, W = x.shape
    hp = lax.Precision.HIGHEST
    w_sh = p["w_sh"]
    mx = jnp.max(x, axis=2, keepdims=True)
    mx = jnp.einsum("oc,bchw->bohw", w_sh, mx, precision=hp)
    mx = mx * p["bn1_s"].reshape(1, C, 1, 1) + p["bn1_b"].reshape(1, C, 1, 1)
    avg = jnp.einsum("oc,bchw->bohw", w_sh, x, precision=hp)
    avg = avg * p["bn2_s"].reshape(1, C, 1, 1) + p["bn2_b"].reshape(1, C, 1, 1)
    mx_v = mx.reshape(B, C, W).transpose(0, 2, 1)
    avg_v = avg.reshape(B, C, H * W)
    att = jnp.einsum("bwc,bcn->bwn", mx_v, avg_v, precision=hp)
    att = jax.nn.softmax(att, axis=1)
    v = jnp.mean(x, axis=2, keepdims=True)
    v = jnp.einsum("oc,bchw->bohw", p["w_v"], v, precision=hp) + p["b_v"].reshape(1, C, 1, 1)
    v = v.reshape(B, C, W)
    att = jnp.einsum("bcw,bwn->bcn", v, att, precision=hp).reshape(B, C, H, W)
    att = jnp.einsum("oc,bchw->bohw", p["w_aug"], att, precision=hp) \
        + p["b_aug"].reshape(1, C, 1, 1)
    attt1 = att[:, 0:1]
    attt2 = att[:, 1:2]
    fusion = attt1 * avg + attt2 * mx
    out = jnp.einsum("oc,bchw->bohw", p["w_fuse"], fusion, precision=hp)
    g = p["gamma"]
    out = jax.nn.relu(g * out + (1.0 - g) * x)
    return jnp.einsum("oc,bchw->bohw", p["w_out"], out, precision=hp)


def _mlp_ref(x, p):
    hp = lax.Precision.HIGHEST

    def dconv(xx, w, d):
        return lax.conv_general_dilated(
            xx, w, window_strides=(1, 1), padding=((d, d), (d, d)),
            rhs_dilation=(d, d), dimension_numbers=("NCHW", "OIHW", "NCHW"),
            precision=hp)

    def bn_prelu(y, s, b, a):
        y = y * s.reshape(1, -1, 1, 1) + b.reshape(1, -1, 1, 1)
        return jnp.where(y >= 0, y, a.reshape(1, -1, 1, 1) * y)

    d1 = bn_prelu(dconv(x, p["w_d1"], 2), p["bn_d1_s"], p["bn_d1_b"], p["a_d1"])
    d2 = bn_prelu(dconv(x, p["w_d2"], 4), p["bn_d2_s"], p["bn_d2_b"], p["a_d2"])
    dd = jnp.concatenate([d1, d2], axis=1)
    m = jnp.einsum("oc,bchw->bohw", p["w_mf"], dd, precision=hp)
    return jax.nn.sigmoid(m)


def reference(x, layers):
    for p in layers:
        x = x + _attn_ref(x, p)
        x = x + _mlp_ref(x, p)
    return x


# ---------------------------------------------------------------------------
# Parameter construction for the demo (BN in eval mode folded to scale/shift).
# ---------------------------------------------------------------------------
def init_layer_params(key, C):
    C2 = C // 2
    ks = jax.random.split(key, 20)

    def nrm(k, shape, s=0.2):
        return s * jax.random.normal(k, shape, jnp.float32)

    def bn(k, c):
        kw, kb, km, kv = jax.random.split(k, 4)
        weight = 1.0 + 0.1 * jax.random.normal(kw, (c,), jnp.float32)
        bias = 0.1 * jax.random.normal(kb, (c,), jnp.float32)
        mean = 0.1 * jax.random.normal(km, (c,), jnp.float32)
        var = jnp.abs(1.0 + 0.1 * jax.random.normal(kv, (c,), jnp.float32))
        s = weight / jnp.sqrt(var + 1e-5)
        return s, bias - mean * s

    bn1_s, bn1_b = bn(ks[0], C)
    bn2_s, bn2_b = bn(ks[1], C)
    bn_d1_s, bn_d1_b = bn(ks[2], C2)
    bn_d2_s, bn_d2_b = bn(ks[3], C2)
    return dict(
        w_sh=nrm(ks[4], (C, C)),                       # conv_sh.weight (bias unused in fwd)
        bn1_s=bn1_s, bn1_b=bn1_b, bn2_s=bn2_s, bn2_b=bn2_b,
        w_v=nrm(ks[5], (C, C)), b_v=nrm(ks[6], (C,), 0.1),
        w_aug=nrm(ks[7], (C, C)), b_aug=nrm(ks[8], (C,), 0.1),
        w_fuse=nrm(ks[9], (C, C)),                     # fuse conv (bias=False)
        w_out=nrm(ks[10], (C, C)),                     # fuse_out conv (bias=False)
        gamma=jnp.float32(0.3) + nrm(ks[11], (), 0.1), # nonzero so attention path contributes
        w_d1=nrm(ks[12], (C2, C, 3, 3)), a_d1=0.25 + nrm(ks[13], (C2,), 0.05),
        bn_d1_s=bn_d1_s, bn_d1_b=bn_d1_b,
        w_d2=nrm(ks[14], (C2, C, 3, 3)), a_d2=0.25 + nrm(ks[15], (C2,), 0.05),
        bn_d2_s=bn_d2_s, bn_d2_b=bn_d2_b,
        w_mf=nrm(ks[16], (C, C)),                      # Mlp fuse conv (bias=False)
    )


if __name__ == "__main__":
    B, C, H, W, L = 2, 4, 16, 16, 2     # ScaleAwareBlock(dim=4, ..., num_layers=2)
    key = jax.random.PRNGKey(0)
    kx, *lkeys = jax.random.split(key, L + 1)
    x = jax.random.normal(kx, (B, C, H, W), jnp.float32)
    layers = [init_layer_params(k, C) for k in lkeys]

    out = scale_aware_block(x, layers)
    out = jax.block_until_ready(out)
    ref = reference(x, layers)

    assert out.shape == (B, C, H, W)
    np.testing.assert_allclose(np.asarray(out), np.asarray(ref), rtol=2e-2, atol=2e-2)
    print("KERNEL_OK")
</pallas_src>

<mosaic_0001>
module attributes {stable_mosaic.version = 11 : i64} {
  func.func @_attention_block_kernel(%arg0: i32, %arg1: memref<1x4x256xf32, #tpu.memory_space<vmem>>, %arg2: memref<2x4x4xf32, #tpu.memory_space<vmem>>, %arg3: memref<2x4x1xf32, #tpu.memory_space<vmem>>, %arg4: memref<2x4x4xf32, #tpu.memory_space<vmem>>, %arg5: memref<2x4x1xf32, #tpu.memory_space<vmem>>, %arg6: memref<2x4x4xf32, #tpu.memory_space<vmem>>, %arg7: memref<2x4x1xf32, #tpu.memory_space<vmem>>, %arg8: memref<2x4x4xf32, #tpu.memory_space<vmem>>, %arg9: memref<2x4x1xf32, #tpu.memory_space<vmem>>, %arg10: memref<2x4x4xf32, #tpu.memory_space<vmem>>, %arg11: memref<2x4x4xf32, #tpu.memory_space<vmem>>, %arg12: memref<2xf32, #tpu.memory_space<smem>>, %arg13: memref<2x9x2x4xf32, #tpu.memory_space<vmem>>, %arg14: memref<2x2x1xf32, #tpu.memory_space<vmem>>, %arg15: memref<2x2x1xf32, #tpu.memory_space<vmem>>, %arg16: memref<2x9x2x4xf32, #tpu.memory_space<vmem>>, %arg17: memref<2x2x1xf32, #tpu.memory_space<vmem>>, %arg18: memref<2x2x1xf32, #tpu.memory_space<vmem>>, %arg19: memref<2x4x4xf32, #tpu.memory_space<vmem>>, %arg20: memref<16x256xf32, #tpu.memory_space<vmem>>, %arg21: memref<9x256x256xf32, #tpu.memory_space<vmem>>, %arg22: memref<9x256x256xf32, #tpu.memory_space<vmem>>, %arg23: memref<1x4x256xf32, #tpu.memory_space<vmem>>) attributes {dimension_semantics = [#tpu.dimension_semantics<parallel>], iteration_bounds = array<i64: 2>, scalar_prefetch = 0 : i64, scratch_operands = 0 : i64, tpu.core_type = #tpu.core_type<tc>, window_params = [{transform_indices = @transform_0, window_bounds = array<i64: 1, 4, 256>}, {pipeline_mode = #tpu.pipeline_mode<synchronous>, transform_indices = @transform_1, window_bounds = array<i64: 2, 4, 4>}, {pipeline_mode = #tpu.pipeline_mode<synchronous>, transform_indices = @transform_2, window_bounds = array<i64: 2, 4, 1>}, {pipeline_mode = #tpu.pipeline_mode<synchronous>, transform_indices = @transform_3, window_bounds = array<i64: 2, 4, 4>}, {pipeline_mode = #tpu.pipeline_mode<synchronous>, transform_indices = @transform_4, window_bounds = array<i64: 2, 4, 1>}, {pipeline_mode = #tpu.pipeline_mode<synchronous>, transform_indices = @transform_5, window_bounds = array<i64: 2, 4, 4>}, {pipeline_mode = #tpu.pipeline_mode<synchronous>, transform_indices = @transform_6, window_bounds = array<i64: 2, 4, 1>}, {pipeline_mode = #tpu.pipeline_mode<synchronous>, transform_indices = @transform_7, window_bounds = array<i64: 2, 4, 4>}, {pipeline_mode = #tpu.pipeline_mode<synchronous>, transform_indices = @transform_8, window_bounds = array<i64: 2, 4, 1>}, {pipeline_mode = #tpu.pipeline_mode<synchronous>, transform_indices = @transform_9, window_bounds = array<i64: 2, 4, 4>}, {pipeline_mode = #tpu.pipeline_mode<synchronous>, transform_indices = @transform_10, window_bounds = array<i64: 2, 4, 4>}, {transform_indices = @transform_11, window_bounds = array<i64: 2>}, {pipeline_mode = #tpu.pipeline_mode<synchronous>, transform_indices = @transform_12, window_bounds = array<i64: 2, 9, 2, 4>}, {pipeline_mode = #tpu.pipeline_mode<synchronous>, transform_indices = @transform_13, window_bounds = array<i64: 2, 2, 1>}, {pipeline_mode = #tpu.pipeline_mode<synchronous>, transform_indices = @transform_14, window_bounds = array<i64: 2, 2, 1>}, {pipeline_mode = #tpu.pipeline_mode<synchronous>, transform_indices = @transform_15, window_bounds = array<i64: 2, 9, 2, 4>}, {pipeline_mode = #tpu.pipeline_mode<synchronous>, transform_indices = @transform_16, window_bounds = array<i64: 2, 2, 1>}, {pipeline_mode = #tpu.pipeline_mode<synchronous>, transform_indices = @transform_17, window_bounds = array<i64: 2, 2, 1>}, {pipeline_mode = #tpu.pipeline_mode<synchronous>, transform_indices = @transform_18, window_bounds = array<i64: 2, 4, 4>}, {pipeline_mode = #tpu.pipeline_mode<synchronous>, transform_indices = @transform_19, window_bounds = array<i64: 16, 256>}, {pipeline_mode = #tpu.pipeline_mode<synchronous>, transform_indices = @transform_20, window_bounds = array<i64: 9, 256, 256>}, {pipeline_mode = #tpu.pipeline_mode<synchronous>, transform_indices = @transform_21, window_bounds = array<i64: 9, 256, 256>}, {transform_indices = @transform_22, window_bounds = array<i64: 1, 4, 256>}]} {
    %c0 = arith.constant 0 : index
    %c0_0 = arith.constant 0 : index
    %0 = vector.load %arg20[%c0, %c0_0] : memref<16x256xf32, #tpu.memory_space<vmem>>, vector<16x256xf32>
    %c0_1 = arith.constant 0 : index
    %c0_2 = arith.constant 0 : index
    %c0_3 = arith.constant 0 : index
    %1 = vector.load %arg1[%c0_1, %c0_2, %c0_3] : memref<1x4x256xf32, #tpu.memory_space<vmem>>, vector<1x4x256xf32>
    %2 = vector.shape_cast %1 : vector<1x4x256xf32> to vector<4x256xf32>
    %3 = vector.extract_strided_slice %2 {offsets = [0, 0], sizes = [4, 128], strides = [1, 1]} : vector<4x256xf32> to vector<4x128xf32>
    %4 = vector.extract_strided_slice %2 {offsets = [0, 128], sizes = [4, 128], strides = [1, 1]} : vector<4x256xf32> to vector<4x128xf32>
    %5 = arith.maximumf %3, %4 : vector<4x128xf32>
    %6 = vector.extract_strided_slice %2 {offsets = [0, 0], sizes = [4, 128], strides = [1, 1]} : vector<4x256xf32> to vector<4x128xf32>
    %7 = vector.extract_strided_slice %2 {offsets = [0, 128], sizes = [4, 128], strides = [1, 1]} : vector<4x256xf32> to vector<4x128xf32>
    %8 = arith.addf %6, %7 : vector<4x128xf32>
    %9 = vector.extract_strided_slice %5 {offsets = [0, 0], sizes = [4, 64], strides = [1, 1]} : vector<4x128xf32> to vector<4x64xf32>
    %10 = vector.extract_strided_slice %5 {offsets = [0, 64], sizes = [4, 64], strides = [1, 1]} : vector<4x128xf32> to vector<4x64xf32>
    %11 = arith.maximumf %9, %10 : vector<4x64xf32>
    %12 = vector.extract_strided_slice %8 {offsets = [0, 0], sizes = [4, 64], strides = [1, 1]} : vector<4x128xf32> to vector<4x64xf32>
    %13 = vector.extract_strided_slice %8 {offsets = [0, 64], sizes = [4, 64], strides = [1, 1]} : vector<4x128xf32> to vector<4x64xf32>
    %14 = arith.addf %12, %13 : vector<4x64xf32>
    %15 = vector.extract_strided_slice %11 {offsets = [0, 0], sizes = [4, 32], strides = [1, 1]} : vector<4x64xf32> to vector<4x32xf32>
    %16 = vector.extract_strided_slice %11 {offsets = [0, 32], sizes = [4, 32], strides = [1, 1]} : vector<4x64xf32> to vector<4x32xf32>
    %17 = arith.maximumf %15, %16 : vector<4x32xf32>
    %18 = vector.extract_strided_slice %14 {offsets = [0, 0], sizes = [4, 32], strides = [1, 1]} : vector<4x64xf32> to vector<4x32xf32>
    %19 = vector.extract_strided_slice %14 {offsets = [0, 32], sizes = [4, 32], strides = [1, 1]} : vector<4x64xf32> to vector<4x32xf32>
    %20 = arith.addf %18, %19 : vector<4x32xf32>
    %21 = vector.extract_strided_slice %17 {offsets = [0, 0], sizes = [4, 16], strides = [1, 1]} : vector<4x32xf32> to vector<4x16xf32>
    %22 = vector.extract_strided_slice %17 {offsets = [0, 16], sizes = [4, 16], strides = [1, 1]} : vector<4x32xf32> to vector<4x16xf32>
    %23 = arith.maximumf %21, %22 : vector<4x16xf32>
    %24 = vector.extract_strided_slice %20 {offsets = [0, 0], sizes = [4, 16], strides = [1, 1]} : vector<4x32xf32> to vector<4x16xf32>
    %25 = vector.extract_strided_slice %20 {offsets = [0, 16], sizes = [4, 16], strides = [1, 1]} : vector<4x32xf32> to vector<4x16xf32>
    %26 = arith.addf %24, %25 : vector<4x16xf32>
    %cst = arith.constant 6.250000e-02 : f32
    %27 = vector.broadcast %cst : f32 to vector<4x16xf32>
    %28 = arith.mulf %26, %27 : vector<4x16xf32>
    %c0_4 = arith.constant 0 : index
    %c0_5 = arith.constant 0 : index
    %c0_6 = arith.constant 0 : index
    %29 = vector.load %arg2[%c0_4, %c0_5, %c0_6] : memref<2x4x4xf32, #tpu.memory_space<vmem>>, vector<1x4x4xf32>
    %30 = vector.shape_cast %29 : vector<1x4x4xf32> to vector<4x4xf32>
    %cst_7 = arith.constant dense<0.000000e+00> : vector<4x16xf32>
    %31 = tpu.matmul %30, %23, %cst_7 {dimension_numbers = #tpu.dot_dimension_numbers<[1], [0], [0], [1], [0, 0, 1, 1], [], []>} : vector<4x4xf32>, vector<4x16xf32>, vector<4x16xf32> -> vector<4x16xf32>
    %c0_8 = arith.constant 0 : index
    %c0_9 = arith.constant 0 : index
    %c0_10 = arith.constant 0 : index
    %32 = vector.load %arg3[%c0_8, %c0_9, %c0_10] : memref<2x4x1xf32, #tpu.memory_space<vmem>>, vector<1x4x1xf32>
    %33 = vector.shape_cast %32 : vector<1x4x1xf32> to vector<4x1xf32>
    %34 = vector.broadcast %33 : vector<4x1xf32> to vector<4x16xf32>
    %35 = arith.addf %31, %34 : vector<4x16xf32>
    %c0_11 = arith.constant 0 : index
    %c0_12 = arith.constant 0 : index
    %c0_13 = arith.constant 0 : index
    %36 = vector.load %arg6[%c0_11, %c0_12, %c0_13] : memref<2x4x4xf32, #tpu.memory_space<vmem>>, vector<1x4x4xf32>
    %37 = vector.shape_cast %36 : vector<1x4x4xf32> to vector<4x4xf32>
    %cst_14 = arith.constant dense<0.000000e+00> : vector<4x16xf32>
    %38 = tpu.matmul %37, %28, %cst_14 {dimension_numbers = #tpu.dot_dimension_numbers<[1], [0], [0], [1], [0, 0, 1, 1], [], []>} : vector<4x4xf32>, vector<4x16xf32>, vector<4x16xf32> -> vector<4x16xf32>
    %c0_15 = arith.constant 0 : index
    %c0_16 = arith.constant 0 : index
    %c0_17 = arith.constant 0 : index
    %39 = vector.load %arg7[%c0_15, %c0_16, %c0_17] : memref<2x4x1xf32, #tpu.memory_space<vmem>>, vector<1x4x1xf32>
    %40 = vector.shape_cast %39 : vector<1x4x1xf32> to vector<4x1xf32>
    %41 = vector.broadcast %40 : vector<4x1xf32> to vector<4x16xf32>
    %42 = arith.addf %38, %41 : vector<4x16xf32>
    %c0_18 = arith.constant 0 : index
    %c0_19 = arith.constant 0 : index
    %c0_20 = arith.constant 0 : index
    %43 = vector.load %arg4[%c0_18, %c0_19, %c0_20] : memref<2x4x4xf32, #tpu.memory_space<vmem>>, vector<1x4x4xf32>
    %44 = vector.shape_cast %43 : vector<1x4x4xf32> to vector<4x4xf32>
    %cst_21 = arith.constant dense<0.000000e+00> : vector<4x256xf32>
    %45 = tpu.matmul %44, %2, %cst_21 {dimension_numbers = #tpu.dot_dimension_numbers<[1], [0], [0], [1], [0, 0, 1, 1], [], []>} : vector<4x4xf32>, vector<4x256xf32>, vector<4x256xf32> -> vector<4x256xf32>
    %c0_22 = arith.constant 0 : index
    %c0_23 = arith.constant 0 : index
    %c0_24 = arith.constant 0 : index
    %46 = vector.load %arg5[%c0_22, %c0_23, %c0_24] : memref<2x4x1xf32, #tpu.memory_space<vmem>>, vector<1x4x1xf32>
    %47 = vector.shape_cast %46 : vector<1x4x1xf32> to vector<4x1xf32>
    %48 = vector.broadcast %47 : vector<4x1xf32> to vector<4x256xf32>
    %49 = arith.addf %45, %48 : vector<4x256xf32>
    %cst_25 = arith.constant dense<0.000000e+00> : vector<16x256xf32>
    %50 = tpu.matmul %35, %49, %cst_25 {dimension_numbers = #tpu.dot_dimension_numbers<[0], [0], [1], [1], [0, 1, 1, 1], [], []>} : vector<4x16xf32>, vector<4x256xf32>, vector<16x256xf32> -> vector<16x256xf32>
    %cst_26 = arith.constant dense<0xFF800000> : vector<256xf32>
    %51 = vector.multi_reduction <maximumf>, %50, %cst_26 [0] : vector<16x256xf32> to vector<256xf32>
    %52 = vector.shape_cast %51 : vector<256xf32> to vector<1x256xf32>
    %53 = vector.broadcast %52 : vector<1x256xf32> to vector<16x256xf32>
    %54 = arith.subf %50, %53 : vector<16x256xf32>
    %55 = math.exp %54 : vector<16x256xf32>
    %cst_27 = arith.constant dense<0.000000e+00> : vector<256xf32>
    %56 = vector.multi_reduction <add>, %55, %cst_27 [0] : vector<16x256xf32> to vector<256xf32>
    %57 = vector.shape_cast %56 : vector<256xf32> to vector<1x256xf32>
    %58 = tpu.reciprocal %57 {approx = true} : vector<1x256xf32> -> vector<1x256xf32>
    %59 = vector.broadcast %58 : vector<1x256xf32> to vector<16x256xf32>
    %60 = arith.mulf %55, %59 : vector<16x256xf32>
    %cst_28 = arith.constant dense<0.000000e+00> : vector<4x256xf32>
    %61 = tpu.matmul %42, %60, %cst_28 {dimension_numbers = #tpu.dot_dimension_numbers<[1], [0], [0], [1], [0, 0, 1, 1], [], []>} : vector<4x16xf32>, vector<16x256xf32>, vector<4x256xf32> -> vector<4x256xf32>
    %c0_29 = arith.constant 0 : index
    %c0_30 = arith.constant 0 : index
    %c0_31 = arith.constant 0 : index
    %62 = vector.load %arg8[%c0_29, %c0_30, %c0_31] : memref<2x4x4xf32, #tpu.memory_space<vmem>>, vector<1x4x4xf32>
    %63 = vector.shape_cast %62 : vector<1x4x4xf32> to vector<4x4xf32>
    %cst_32 = arith.constant dense<0.000000e+00> : vector<4x256xf32>
    %64 = tpu.matmul %63, %61, %cst_32 {dimension_numbers = #tpu.dot_dimension_numbers<[1], [0], [0], [1], [0, 0, 1, 1], [], []>} : vector<4x4xf32>, vector<4x256xf32>, vector<4x256xf32> -> vector<4x256xf32>
    %c0_33 = arith.constant 0 : index
    %c0_34 = arith.constant 0 : index
    %c0_35 = arith.constant 0 : index
    %65 = vector.load %arg9[%c0_33, %c0_34, %c0_35] : memref<2x4x1xf32, #tpu.memory_space<vmem>>, vector<1x4x1xf32>
    %66 = vector.shape_cast %65 : vector<1x4x1xf32> to vector<4x1xf32>
    %67 = vector.broadcast %66 : vector<4x1xf32> to vector<4x256xf32>
    %68 = arith.addf %64, %67 : vector<4x256xf32>
    %69 = vector.extract_strided_slice %68 {offsets = [0, 0], sizes = [1, 256], strides = [1, 1]} : vector<4x256xf32> to vector<1x256xf32>
    %70 = vector.extract_strided_slice %68 {offsets = [1, 0], sizes = [1, 256], strides = [1, 1]} : vector<4x256xf32> to vector<1x256xf32>
    %c0_36 = arith.constant 0 : index
    %c0_37 = arith.constant 0 : index
    %c0_38 = arith.constant 0 : index
    %71 = vector.load %arg10[%c0_36, %c0_37, %c0_38] : memref<2x4x4xf32, #tpu.memory_space<vmem>>, vector<1x4x4xf32>
    %72 = vector.shape_cast %71 : vector<1x4x4xf32> to vector<4x4xf32>
    %cst_39 = arith.constant dense<0.000000e+00> : vector<4x256xf32>
    %73 = tpu.matmul %72, %49, %cst_39 {dimension_numbers = #tpu.dot_dimension_numbers<[1], [0], [0], [1], [0, 0, 1, 1], [], []>} : vector<4x4xf32>, vector<4x256xf32>, vector<4x256xf32> -> vector<4x256xf32>
    %cst_40 = arith.constant dense<0.000000e+00> : vector<4x16xf32>
    %74 = tpu.matmul %72, %35, %cst_40 {dimension_numbers = #tpu.dot_dimension_numbers<[1], [0], [0], [1], [0, 0, 1, 1], [], []>} : vector<4x4xf32>, vector<4x16xf32>, vector<4x16xf32> -> vector<4x16xf32>
    %cst_41 = arith.constant dense<0.000000e+00> : vector<4x256xf32>
    %75 = tpu.matmul %74, %0, %cst_41 {dimension_numbers = #tpu.dot_dimension_numbers<[1], [0], [0], [1], [0, 0, 1, 1], [], []>} : vector<4x16xf32>, vector<16x256xf32>, vector<4x256xf32> -> vector<4x256xf32>
    %76 = vector.broadcast %69 : vector<1x256xf32> to vector<4x256xf32>
    %77 = arith.mulf %76, %73 : vector<4x256xf32>
    %78 = vector.broadcast %70 : vector<1x256xf32> to vector<4x256xf32>
    %79 = arith.mulf %78, %75 : vector<4x256xf32>
    %80 = arith.addf %77, %79 : vector<4x256xf32>
    %c0_42 = arith.constant 0 : index
    %81 = memref.load %arg12[%c0_42] : memref<2xf32, #tpu.memory_space<smem>>
    %82 = vector.broadcast %81 : f32 to vector<4x256xf32>
    %83 = arith.mulf %82, %80 : vector<4x256xf32>
    %cst_43 = arith.constant 1.000000e+00 : f32
    %84 = arith.subf %cst_43, %81 : f32
    %85 = vector.broadcast %84 : f32 to vector<4x256xf32>
    %86 = arith.mulf %85, %2 : vector<4x256xf32>
    %87 = arith.addf %83, %86 : vector<4x256xf32>
    %c0_44 = arith.constant 0 : index
    %c0_45 = arith.constant 0 : index
    %c0_46 = arith.constant 0 : index
    %88 = vector.load %arg11[%c0_44, %c0_45, %c0_46] : memref<2x4x4xf32, #tpu.memory_space<vmem>>, vector<1x4x4xf32>
    %89 = vector.shape_cast %88 : vector<1x4x4xf32> to vector<4x4xf32>
    %cst_47 = arith.constant 0.000000e+00 : f32
    %90 = vector.broadcast %cst_47 : f32 to vector<4x256xf32>
    %91 = arith.maximumf %87, %90 : vector<4x256xf32>
    %cst_48 = arith.constant dense<0.000000e+00> : vector<4x256xf32>
    %92 = tpu.matmul %89, %91, %cst_48 {dimension_numbers = #tpu.dot_dimension_numbers<[1], [0], [0], [1], [0, 0, 1, 1], [], []>} : vector<4x4xf32>, vector<4x256xf32>, vector<4x256xf32> -> vector<4x256xf32>
    %93 = arith.addf %2, %92 : vector<4x256xf32>
    %c0_49 = arith.constant 0 : index
    %c0_50 = arith.constant 0 : index
    %c0_51 = arith.constant 0 : index
    %c0_52 = arith.constant 0 : index
    %94 = vector.load %arg13[%c0_49, %c0_50, %c0_51, %c0_52] : memref<2x9x2x4xf32, #tpu.memory_space<vmem>>, vector<1x1x2x4xf32>
    %95 = vector.shape_cast %94 : vector<1x1x2x4xf32> to vector<2x4xf32>
    %cst_53 = arith.constant dense<0.000000e+00> : vector<2x256xf32>
    %96 = tpu.matmul %95, %93, %cst_53 {dimension_numbers = #tpu.dot_dimension_numbers<[1], [0], [0], [1], [0, 0, 1, 1], [], []>} : vector<2x4xf32>, vector<4x256xf32>, vector<2x256xf32> -> vector<2x256xf32>
    %c0_54 = arith.constant 0 : index
    %c0_55 = arith.constant 0 : index
    %c0_56 = arith.constant 0 : index
    %97 = vector.load %arg21[%c0_54, %c0_55, %c0_56] : memref<9x256x256xf32, #tpu.memory_space<vmem>>, vector<1x256x256xf32>
    %98 = vector.shape_cast %97 : vector<1x256x256xf32> to vector<256x256xf32>
    %cst_57 = arith.constant dense<0.000000e+00> : vector<2x256xf32>
    %99 = tpu.matmul %96, %98, %cst_57 {dimension_numbers = #tpu.dot_dimension_numbers<[1], [0], [0], [1], [0, 0, 1, 1], [], []>} : vector<2x256xf32>, vector<256x256xf32>, vector<2x256xf32> -> vector<2x256xf32>
    %c0_58 = arith.constant 0 : index
    %c1 = arith.constant 1 : index
    %c0_59 = arith.constant 0 : index
    %c0_60 = arith.constant 0 : index
    %100 = vector.load %arg13[%c0_58, %c1, %c0_59, %c0_60] : memref<2x9x2x4xf32, #tpu.memory_space<vmem>>, vector<1x1x2x4xf32>
    %101 = vector.shape_cast %100 : vector<1x1x2x4xf32> to vector<2x4xf32>
    %cst_61 = arith.constant dense<0.000000e+00> : vector<2x256xf32>
    %102 = tpu.matmul %101, %93, %cst_61 {dimension_numbers = #tpu.dot_dimension_numbers<[1], [0], [0], [1], [0, 0, 1, 1], [], []>} : vector<2x4xf32>, vector<4x256xf32>, vector<2x256xf32> -> vector<2x256xf32>
    %c1_62 = arith.constant 1 : index
    %c0_63 = arith.constant 0 : index
    %c0_64 = arith.constant 0 : index
    %103 = vector.load %arg21[%c1_62, %c0_63, %c0_64] : memref<9x256x256xf32, #tpu.memory_space<vmem>>, vector<1x256x256xf32>
    %104 = vector.shape_cast %103 : vector<1x256x256xf32> to vector<256x256xf32>
    %cst_65 = arith.constant dense<0.000000e+00> : vector<2x256xf32>
    %105 = tpu.matmul %102, %104, %cst_65 {dimension_numbers = #tpu.dot_dimension_numbers<[1], [0], [0], [1], [0, 0, 1, 1], [], []>} : vector<2x256xf32>, vector<256x256xf32>, vector<2x256xf32> -> vector<2x256xf32>
    %106 = arith.addf %99, %105 : vector<2x256xf32>
    %c0_66 = arith.constant 0 : index
    %c2 = arith.constant 2 : index
    %c0_67 = arith.constant 0 : index
    %c0_68 = arith.constant 0 : index
    %107 = vector.load %arg13[%c0_66, %c2, %c0_67, %c0_68] : memref<2x9x2x4xf32, #tpu.memory_space<vmem>>, vector<1x1x2x4xf32>
    %108 = vector.shape_cast %107 : vector<1x1x2x4xf32> to vector<2x4xf32>
    %cst_69 = arith.constant dense<0.000000e+00> : vector<2x256xf32>
    %109 = tpu.matmul %108, %93, %cst_69 {dimension_numbers = #tpu.dot_dimension_numbers<[1], [0], [0], [1], [0, 0, 1, 1], [], []>} : vector<2x4xf32>, vector<4x256xf32>, vector<2x256xf32> -> vector<2x256xf32>
    %c2_70 = arith.constant 2 : index
    %c0_71 = arith.constant 0 : index
    %c0_72 = arith.constant 0 : index
    %110 = vector.load %arg21[%c2_70, %c0_71, %c0_72] : memref<9x256x256xf32, #tpu.memory_space<vmem>>, vector<1x256x256xf32>
    %111 = vector.shape_cast %110 : vector<1x256x256xf32> to vector<256x256xf32>
    %cst_73 = arith.constant dense<0.000000e+00> : vector<2x256xf32>
    %112 = tpu.matmul %109, %111, %cst_73 {dimension_numbers = #tpu.dot_dimension_numbers<[1], [0], [0], [1], [0, 0, 1, 1], [], []>} : vector<2x256xf32>, vector<256x256xf32>, vector<2x256xf32> -> vector<2x256xf32>
    %113 = arith.addf %106, %112 : vector<2x256xf32>
    %c0_74 = arith.constant 0 : index
    %c3 = arith.constant 3 : index
    %c0_75 = arith.constant 0 : index
    %c0_76 = arith.constant 0 : index
    %114 = vector.load %arg13[%c0_74, %c3, %c0_75, %c0_76] : memref<2x9x2x4xf32, #tpu.memory_space<vmem>>, vector<1x1x2x4xf32>
    %115 = vector.shape_cast %114 : vector<1x1x2x4xf32> to vector<2x4xf32>
    %cst_77 = arith.constant dense<0.000000e+00> : vector<2x256xf32>
    %116 = tpu.matmul %115, %93, %cst_77 {dimension_numbers = #tpu.dot_dimension_numbers<[1], [0], [0], [1], [0, 0, 1, 1], [], []>} : vector<2x4xf32>, vector<4x256xf32>, vector<2x256xf32> -> vector<2x256xf32>
    %c3_78 = arith.constant 3 : index
    %c0_79 = arith.constant 0 : index
    %c0_80 = arith.constant 0 : index
    %117 = vector.load %arg21[%c3_78, %c0_79, %c0_80] : memref<9x256x256xf32, #tpu.memory_space<vmem>>, vector<1x256x256xf32>
    %118 = vector.shape_cast %117 : vector<1x256x256xf32> to vector<256x256xf32>
    %cst_81 = arith.constant dense<0.000000e+00> : vector<2x256xf32>
    %119 = tpu.matmul %116, %118, %cst_81 {dimension_numbers = #tpu.dot_dimension_numbers<[1], [0], [0], [1], [0, 0, 1, 1], [], []>} : vector<2x256xf32>, vector<256x256xf32>, vector<2x256xf32> -> vector<2x256xf32>
    %120 = arith.addf %113, %119 : vector<2x256xf32>
    %c0_82 = arith.constant 0 : index
    %c4 = arith.constant 4 : index
    %c0_83 = arith.constant 0 : index
    %c0_84 = arith.constant 0 : index
    %121 = vector.load %arg13[%c0_82, %c4, %c0_83, %c0_84] : memref<2x9x2x4xf32, #tpu.memory_space<vmem>>, vector<1x1x2x4xf32>
    %122 = vector.shape_cast %121 : vector<1x1x2x4xf32> to vector<2x4xf32>
    %cst_85 = arith.constant dense<0.000000e+00> : vector<2x256xf32>
    %123 = tpu.matmul %122, %93, %cst_85 {dimension_numbers = #tpu.dot_dimension_numbers<[1], [0], [0], [1], [0, 0, 1, 1], [], []>} : vector<2x4xf32>, vector<4x256xf32>, vector<2x256xf32> -> vector<2x256xf32>
    %124 = arith.addf %120, %123 : vector<2x256xf32>
    %c0_86 = arith.constant 0 : index
    %c5 = arith.constant 5 : index
    %c0_87 = arith.constant 0 : index
    %c0_88 = arith.constant 0 : index
    %125 = vector.load %arg13[%c0_86, %c5, %c0_87, %c0_88] : memref<2x9x2x4xf32, #tpu.memory_space<vmem>>, vector<1x1x2x4xf32>
    %126 = vector.shape_cast %125 : vector<1x1x2x4xf32> to vector<2x4xf32>
    %cst_89 = arith.constant dense<0.000000e+00> : vector<2x256xf32>
    %127 = tpu.matmul %126, %93, %cst_89 {dimension_numbers = #tpu.dot_dimension_numbers<[1], [0], [0], [1], [0, 0, 1, 1], [], []>} : vector<2x4xf32>, vector<4x256xf32>, vector<2x256xf32> -> vector<2x256xf32>
    %c5_90 = arith.constant 5 : index
    %c0_91 = arith.constant 0 : index
    %c0_92 = arith.constant 0 : index
    %128 = vector.load %arg21[%c5_90, %c0_91, %c0_92] : memref<9x256x256xf32, #tpu.memory_space<vmem>>, vector<1x256x256xf32>
    %129 = vector.shape_cast %128 : vector<1x256x256xf32> to vector<256x256xf32>
    %cst_93 = arith.constant dense<0.000000e+00> : vector<2x256xf32>
    %130 = tpu.matmul %127, %129, %cst_93 {dimension_numbers = #tpu.dot_dimension_numbers<[1], [0], [0], [1], [0, 0, 1, 1], [], []>} : vector<2x256xf32>, vector<256x256xf32>, vector<2x256xf32> -> vector<2x256xf32>
    %131 = arith.addf %124, %130 : vector<2x256xf32>
    %c0_94 = arith.constant 0 : index
    %c6 = arith.constant 6 : index
    %c0_95 = arith.constant 0 : index
    %c0_96 = arith.constant 0 : index
    %132 = vector.load %arg13[%c0_94, %c6, %c0_95, %c0_96] : memref<2x9x2x4xf32, #tpu.memory_space<vmem>>, vector<1x1x2x4xf32>
    %133 = vector.shape_cast %132 : vector<1x1x2x4xf32> to vector<2x4xf32>
    %cst_97 = arith.constant dense<0.000000e+00> : vector<2x256xf32>
    %134 = tpu.matmul %133, %93, %cst_97 {dimension_numbers = #tpu.dot_dimension_numbers<[1], [0], [0], [1], [0, 0, 1, 1], [], []>} : vector<2x4xf32>, vector<4x256xf32>, vector<2x256xf32> -> vector<2x256xf32>
    %c6_98 = arith.constant 6 : index
    %c0_99 = arith.constant 0 : index
    %c0_100 = arith.constant 0 : index
    %135 = vector.load %arg21[%c6_98, %c0_99, %c0_100] : memref<9x256x256xf32, #tpu.memory_space<vmem>>, vector<1x256x256xf32>
    %136 = vector.shape_cast %135 : vector<1x256x256xf32> to vector<256x256xf32>
    %cst_101 = arith.constant dense<0.000000e+00> : vector<2x256xf32>
    %137 = tpu.matmul %134, %136, %cst_101 {dimension_numbers = #tpu.dot_dimension_numbers<[1], [0], [0], [1], [0, 0, 1, 1], [], []>} : vector<2x256xf32>, vector<256x256xf32>, vector<2x256xf32> -> vector<2x256xf32>
    %138 = arith.addf %131, %137 : vector<2x256xf32>
    %c0_102 = arith.constant 0 : index
    %c7 = arith.constant 7 : index
    %c0_103 = arith.constant 0 : index
    %c0_104 = arith.constant 0 : index
    %139 = vector.load %arg13[%c0_102, %c7, %c0_103, %c0_104] : memref<2x9x2x4xf32, #tpu.memory_space<vmem>>, vector<1x1x2x4xf32>
    %140 = vector.shape_cast %139 : vector<1x1x2x4xf32> to vector<2x4xf32>
    %cst_105 = arith.constant dense<0.000000e+00> : vector<2x256xf32>
    %141 = tpu.matmul %140, %93, %cst_105 {dimension_numbers = #tpu.dot_dimension_numbers<[1], [0], [0], [1], [0, 0, 1, 1], [], []>} : vector<2x4xf32>, vector<4x256xf32>, vector<2x256xf32> -> vector<2x256xf32>
    %c7_106 = arith.constant 7 : index
    %c0_107 = arith.constant 0 : index
    %c0_108 = arith.constant 0 : index
    %142 = vector.load %arg21[%c7_106, %c0_107, %c0_108] : memref<9x256x256xf32, #tpu.memory_space<vmem>>, vector<1x256x256xf32>
    %143 = vector.shape_cast %142 : vector<1x256x256xf32> to vector<256x256xf32>
    %cst_109 = arith.constant dense<0.000000e+00> : vector<2x256xf32>
    %144 = tpu.matmul %141, %143, %cst_109 {dimension_numbers = #tpu.dot_dimension_numbers<[1], [0], [0], [1], [0, 0, 1, 1], [], []>} : vector<2x256xf32>, vector<256x256xf32>, vector<2x256xf32> -> vector<2x256xf32>
    %145 = arith.addf %138, %144 : vector<2x256xf32>
    %c0_110 = arith.constant 0 : index
    %c8 = arith.constant 8 : index
    %c0_111 = arith.constant 0 : index
    %c0_112 = arith.constant 0 : index
    %146 = vector.load %arg13[%c0_110, %c8, %c0_111, %c0_112] : memref<2x9x2x4xf32, #tpu.memory_space<vmem>>, vector<1x1x2x4xf32>
    %147 = vector.shape_cast %146 : vector<1x1x2x4xf32> to vector<2x4xf32>
    %cst_113 = arith.constant dense<0.000000e+00> : vector<2x256xf32>
    %148 = tpu.matmul %147, %93, %cst_113 {dimension_numbers = #tpu.dot_dimension_numbers<[1], [0], [0], [1], [0, 0, 1, 1], [], []>} : vector<2x4xf32>, vector<4x256xf32>, vector<2x256xf32> -> vector<2x256xf32>
    %c8_114 = arith.constant 8 : index
    %c0_115 = arith.constant 0 : index
    %c0_116 = arith.constant 0 : index
    %149 = vector.load %arg21[%c8_114, %c0_115, %c0_116] : memref<9x256x256xf32, #tpu.memory_space<vmem>>, vector<1x256x256xf32>
    %150 = vector.shape_cast %149 : vector<1x256x256xf32> to vector<256x256xf32>
    %cst_117 = arith.constant dense<0.000000e+00> : vector<2x256xf32>
    %151 = tpu.matmul %148, %150, %cst_117 {dimension_numbers = #tpu.dot_dimension_numbers<[1], [0], [0], [1], [0, 0, 1, 1], [], []>} : vector<2x256xf32>, vector<256x256xf32>, vector<2x256xf32> -> vector<2x256xf32>
    %152 = arith.addf %145, %151 : vector<2x256xf32>
    %c0_118 = arith.constant 0 : index
    %c0_119 = arith.constant 0 : index
    %c0_120 = arith.constant 0 : index
    %153 = vector.load %arg14[%c0_118, %c0_119, %c0_120] : memref<2x2x1xf32, #tpu.memory_space<vmem>>, vector<1x2x1xf32>
    %154 = vector.shape_cast %153 : vector<1x2x1xf32> to vector<2x1xf32>
    %155 = vector.broadcast %154 : vector<2x1xf32> to vector<2x256xf32>
    %156 = arith.addf %152, %155 : vector<2x256xf32>
    %c0_121 = arith.constant 0 : index
    %c0_122 = arith.constant 0 : index
    %c0_123 = arith.constant 0 : index
    %157 = vector.load %arg15[%c0_121, %c0_122, %c0_123] : memref<2x2x1xf32, #tpu.memory_space<vmem>>, vector<1x2x1xf32>
    %158 = vector.shape_cast %157 : vector<1x2x1xf32> to vector<2x1xf32>
    %cst_124 = arith.constant 0.000000e+00 : f32
    %159 = vector.broadcast %cst_124 : f32 to vector<2x256xf32>
    %160 = arith.maximumf %156, %159 : vector<2x256xf32>
    %cst_125 = arith.constant 0.000000e+00 : f32
    %161 = vector.broadcast %cst_125 : f32 to vector<2x256xf32>
    %162 = arith.minimumf %156, %161 : vector<2x256xf32>
    %163 = vector.broadcast %158 : vector<2x1xf32> to vector<2x256xf32>
    %164 = arith.mulf %163, %162 : vector<2x256xf32>
    %165 = arith.addf %160, %164 : vector<2x256xf32>
    %c0_126 = arith.constant 0 : index
    %c0_127 = arith.constant 0 : index
    %c0_128 = arith.constant 0 : index
    %c0_129 = arith.constant 0 : index
    %166 = vector.load %arg16[%c0_126, %c0_127, %c0_128, %c0_129] : memref<2x9x2x4xf32, #tpu.memory_space<vmem>>, vector<1x1x2x4xf32>
    %167 = vector.shape_cast %166 : vector<1x1x2x4xf32> to vector<2x4xf32>
    %cst_130 = arith.constant dense<0.000000e+00> : vector<2x256xf32>
    %168 = tpu.matmul %167, %93, %cst_130 {dimension_numbers = #tpu.dot_dimension_numbers<[1], [0], [0], [1], [0, 0, 1, 1], [], []>} : vector<2x4xf32>, vector<4x256xf32>, vector<2x256xf32> -> vector<2x256xf32>
    %c0_131 = arith.constant 0 : index
    %c0_132 = arith.constant 0 : index
    %c0_133 = arith.constant 0 : index
    %169 = vector.load %arg22[%c0_131, %c0_132, %c0_133] : memref<9x256x256xf32, #tpu.memory_space<vmem>>, vector<1x256x256xf32>
    %170 = vector.shape_cast %169 : vector<1x256x256xf32> to vector<256x256xf32>
    %cst_134 = arith.constant dense<0.000000e+00> : vector<2x256xf32>
    %171 = tpu.matmul %168, %170, %cst_134 {dimension_numbers = #tpu.dot_dimension_numbers<[1], [0], [0], [1], [0, 0, 1, 1], [], []>} : vector<2x256xf32>, vector<256x256xf32>, vector<2x256xf32> -> vector<2x256xf32>
    %c0_135 = arith.constant 0 : index
    %c1_136 = arith.constant 1 : index
    %c0_137 = arith.constant 0 : index
    %c0_138 = arith.constant 0 : index
    %172 = vector.load %arg16[%c0_135, %c1_136, %c0_137, %c0_138] : memref<2x9x2x4xf32, #tpu.memory_space<vmem>>, vector<1x1x2x4xf32>
    %173 = vector.shape_cast %172 : vector<1x1x2x4xf32> to vector<2x4xf32>
    %cst_139 = arith.constant dense<0.000000e+00> : vector<2x256xf32>
    %174 = tpu.matmul %173, %93, %cst_139 {dimension_numbers = #tpu.dot_dimension_numbers<[1], [0], [0], [1], [0, 0, 1, 1], [], []>} : vector<2x4xf32>, vector<4x256xf32>, vector<2x256xf32> -> vector<2x256xf32>
    %c1_140 = arith.constant 1 : index
    %c0_141 = arith.constant 0 : index
    %c0_142 = arith.constant 0 : index
    %175 = vector.load %arg22[%c1_140, %c0_141, %c0_142] : memref<9x256x256xf32, #tpu.memory_space<vmem>>, vector<1x256x256xf32>
    %176 = vector.shape_cast %175 : vector<1x256x256xf32> to vector<256x256xf32>
    %cst_143 = arith.constant dense<0.000000e+00> : vector<2x256xf32>
    %177 = tpu.matmul %174, %176, %cst_143 {dimension_numbers = #tpu.dot_dimension_numbers<[1], [0], [0], [1], [0, 0, 1, 1], [], []>} : vector<2x256xf32>, vector<256x256xf32>, vector<2x256xf32> -> vector<2x256xf32>
    %178 = arith.addf %171, %177 : vector<2x256xf32>
    %c0_144 = arith.constant 0 : index
    %c2_145 = arith.constant 2 : index
    %c0_146 = arith.constant 0 : index
    %c0_147 = arith.constant 0 : index
    %179 = vector.load %arg16[%c0_144, %c2_145, %c0_146, %c0_147] : memref<2x9x2x4xf32, #tpu.memory_space<vmem>>, vector<1x1x2x4xf32>
    %180 = vector.shape_cast %179 : vector<1x1x2x4xf32> to vector<2x4xf32>
    %cst_148 = arith.constant dense<0.000000e+00> : vector<2x256xf32>
    %181 = tpu.matmul %180, %93, %cst_148 {dimension_numbers = #tpu.dot_dimension_numbers<[1], [0], [0], [1], [0, 0, 1, 1], [], []>} : vector<2x4xf32>, vector<4x256xf32>, vector<2x256xf32> -> vector<2x256xf32>
    %c2_149 = arith.constant 2 : index
    %c0_150 = arith.constant 0 : index
    %c0_151 = arith.constant 0 : index
    %182 = vector.load %arg22[%c2_149, %c0_150, %c0_151] : memref<9x256x256xf32, #tpu.memory_space<vmem>>, vector<1x256x256xf32>
    %183 = vector.shape_cast %182 : vector<1x256x256xf32> to vector<256x256xf32>
    %cst_152 = arith.constant dense<0.000000e+00> : vector<2x256xf32>
    %184 = tpu.matmul %181, %183, %cst_152 {dimension_numbers = #tpu.dot_dimension_numbers<[1], [0], [0], [1], [0, 0, 1, 1], [], []>} : vector<2x256xf32>, vector<256x256xf32>, vector<2x256xf32> -> vector<2x256xf32>
    %185 = arith.addf %178, %184 : vector<2x256xf32>
    %c0_153 = arith.constant 0 : index
    %c3_154 = arith.constant 3 : index
    %c0_155 = arith.constant 0 : index
    %c0_156 = arith.constant 0 : index
    %186 = vector.load %arg16[%c0_153, %c3_154, %c0_155, %c0_156] : memref<2x9x2x4xf32, #tpu.memory_space<vmem>>, vector<1x1x2x4xf32>
    %187 = vector.shape_cast %186 : vector<1x1x2x4xf32> to vector<2x4xf32>
    %cst_157 = arith.constant dense<0.000000e+00> : vector<2x256xf32>
    %188 = tpu.matmul %187, %93, %cst_157 {dimension_numbers = #tpu.dot_dimension_numbers<[1], [0], [0], [1], [0, 0, 1, 1], [], []>} : vector<2x4xf32>, vector<4x256xf32>, vector<2x256xf32> -> vector<2x256xf32>
    %c3_158 = arith.constant 3 : index
    %c0_159 = arith.constant 0 : index
    %c0_160 = arith.constant 0 : index
    %189 = vector.load %arg22[%c3_158, %c0_159, %c0_160] : memref<9x256x256xf32, #tpu.memory_space<vmem>>, vector<1x256x256xf32>
    %190 = vector.shape_cast %189 : vector<1x256x256xf32> to vector<256x256xf32>
    %cst_161 = arith.constant dense<0.000000e+00> : vector<2x256xf32>
    %191 = tpu.matmul %188, %190, %cst_161 {dimension_numbers = #tpu.dot_dimension_numbers<[1], [0], [0], [1], [0, 0, 1, 1], [], []>} : vector<2x256xf32>, vector<256x256xf32>, vector<2x256xf32> -> vector<2x256xf32>
    %192 = arith.addf %185, %191 : vector<2x256xf32>
    %c0_162 = arith.constant 0 : index
    %c4_163 = arith.constant 4 : index
    %c0_164 = arith.constant 0 : index
    %c0_165 = arith.constant 0 : index
    %193 = vector.load %arg16[%c0_162, %c4_163, %c0_164, %c0_165] : memref<2x9x2x4xf32, #tpu.memory_space<vmem>>, vector<1x1x2x4xf32>
    %194 = vector.shape_cast %193 : vector<1x1x2x4xf32> to vector<2x4xf32>
    %cst_166 = arith.constant dense<0.000000e+00> : vector<2x256xf32>
    %195 = tpu.matmul %194, %93, %cst_166 {dimension_numbers = #tpu.dot_dimension_numbers<[1], [0], [0], [1], [0, 0, 1, 1], [], []>} : vector<2x4xf32>, vector<4x256xf32>, vector<2x256xf32> -> vector<2x256xf32>
    %196 = arith.addf %192, %195 : vector<2x256xf32>
    %c0_167 = arith.constant 0 : index
    %c5_168 = arith.constant 5 : index
    %c0_169 = arith.constant 0 : index
    %c0_170 = arith.constant 0 : index
    %197 = vector.load %arg16[%c0_167, %c5_168, %c0_169, %c0_170] : memref<2x9x2x4xf32, #tpu.memory_space<vmem>>, vector<1x1x2x4xf32>
    %198 = vector.shape_cast %197 : vector<1x1x2x4xf32> to vector<2x4xf32>
    %cst_171 = arith.constant dense<0.000000e+00> : vector<2x256xf32>
    %199 = tpu.matmul %198, %93, %cst_171 {dimension_numbers = #tpu.dot_dimension_numbers<[1], [0], [0], [1], [0, 0, 1, 1], [], []>} : vector<2x4xf32>, vector<4x256xf32>, vector<2x256xf32> -> vector<2x256xf32>
    %c5_172 = arith.constant 5 : index
    %c0_173 = arith.constant 0 : index
    %c0_174 = arith.constant 0 : index
    %200 = vector.load %arg22[%c5_172, %c0_173, %c0_174] : memref<9x256x256xf32, #tpu.memory_space<vmem>>, vector<1x256x256xf32>
    %201 = vector.shape_cast %200 : vector<1x256x256xf32> to vector<256x256xf32>
    %cst_175 = arith.constant dense<0.000000e+00> : vector<2x256xf32>
    %202 = tpu.matmul %199, %201, %cst_175 {dimension_numbers = #tpu.dot_dimension_numbers<[1], [0], [0], [1], [0, 0, 1, 1], [], []>} : vector<2x256xf32>, vector<256x256xf32>, vector<2x256xf32> -> vector<2x256xf32>
    %203 = arith.addf %196, %202 : vector<2x256xf32>
    %c0_176 = arith.constant 0 : index
    %c6_177 = arith.constant 6 : index
    %c0_178 = arith.constant 0 : index
    %c0_179 = arith.constant 0 : index
    %204 = vector.load %arg16[%c0_176, %c6_177, %c0_178, %c0_179] : memref<2x9x2x4xf32, #tpu.memory_space<vmem>>, vector<1x1x2x4xf32>
    %205 = vector.shape_cast %204 : vector<1x1x2x4xf32> to vector<2x4xf32>
    %cst_180 = arith.constant dense<0.000000e+00> : vector<2x256xf32>
    %206 = tpu.matmul %205, %93, %cst_180 {dimension_numbers = #tpu.dot_dimension_numbers<[1], [0], [0], [1], [0, 0, 1, 1], [], []>} : vector<2x4xf32>, vector<4x256xf32>, vector<2x256xf32> -> vector<2x256xf32>
    %c6_181 = arith.constant 6 : index
    %c0_182 = arith.constant 0 : index
    %c0_183 = arith.constant 0 : index
    %207 = vector.load %arg22[%c6_181, %c0_182, %c0_183] : memref<9x256x256xf32, #tpu.memory_space<vmem>>, vector<1x256x256xf32>
    %208 = vector.shape_cast %207 : vector<1x256x256xf32> to vector<256x256xf32>
    %cst_184 = arith.constant dense<0.000000e+00> : vector<2x256xf32>
    %209 = tpu.matmul %206, %208, %cst_184 {dimension_numbers = #tpu.dot_dimension_numbers<[1], [0], [0], [1], [0, 0, 1, 1], [], []>} : vector<2x256xf32>, vector<256x256xf32>, vector<2x256xf32> -> vector<2x256xf32>
    %210 = arith.addf %203, %209 : vector<2x256xf32>
    %c0_185 = arith.constant 0 : index
    %c7_186 = arith.constant 7 : index
    %c0_187 = arith.constant 0 : index
    %c0_188 = arith.constant 0 : index
    %211 = vector.load %arg16[%c0_185, %c7_186, %c0_187, %c0_188] : memref<2x9x2x4xf32, #tpu.memory_space<vmem>>, vector<1x1x2x4xf32>
    %212 = vector.shape_cast %211 : vector<1x1x2x4xf32> to vector<2x4xf32>
    %cst_189 = arith.constant dense<0.000000e+00> : vector<2x256xf32>
    %213 = tpu.matmul %212, %93, %cst_189 {dimension_numbers = #tpu.dot_dimension_numbers<[1], [0], [0], [1], [0, 0, 1, 1], [], []>} : vector<2x4xf32>, vector<4x256xf32>, vector<2x256xf32> -> vector<2x256xf32>
    %c7_190 = arith.constant 7 : index
    %c0_191 = arith.constant 0 : index
    %c0_192 = arith.constant 0 : index
    %214 = vector.load %arg22[%c7_190, %c0_191, %c0_192] : memref<9x256x256xf32, #tpu.memory_space<vmem>>, vector<1x256x256xf32>
    %215 = vector.shape_cast %214 : vector<1x256x256xf32> to vector<256x256xf32>
    %cst_193 = arith.constant dense<0.000000e+00> : vector<2x256xf32>
    %216 = tpu.matmul %213, %215, %cst_193 {dimension_numbers = #tpu.dot_dimension_numbers<[1], [0], [0], [1], [0, 0, 1, 1], [], []>} : vector<2x256xf32>, vector<256x256xf32>, vector<2x256xf32> -> vector<2x256xf32>
    %217 = arith.addf %210, %216 : vector<2x256xf32>
    %c0_194 = arith.constant 0 : index
    %c8_195 = arith.constant 8 : index
    %c0_196 = arith.constant 0 : index
    %c0_197 = arith.constant 0 : index
    %218 = vector.load %arg16[%c0_194, %c8_195, %c0_196, %c0_197] : memref<2x9x2x4xf32, #tpu.memory_space<vmem>>, vector<1x1x2x4xf32>
    %219 = vector.shape_cast %218 : vector<1x1x2x4xf32> to vector<2x4xf32>
    %cst_198 = arith.constant dense<0.000000e+00> : vector<2x256xf32>
    %220 = tpu.matmul %219, %93, %cst_198 {dimension_numbers = #tpu.dot_dimension_numbers<[1], [0], [0], [1], [0, 0, 1, 1], [], []>} : vector<2x4xf32>, vector<4x256xf32>, vector<2x256xf32> -> vector<2x256xf32>
    %c8_199 = arith.constant 8 : index
    %c0_200 = arith.constant 0 : index
    %c0_201 = arith.constant 0 : index
    %221 = vector.load %arg22[%c8_199, %c0_200, %c0_201] : memref<9x256x256xf32, #tpu.memory_space<vmem>>, vector<1x256x256xf32>
    %222 = vector.shape_cast %221 : vector<1x256x256xf32> to vector<256x256xf32>
    %cst_202 = arith.constant dense<0.000000e+00> : vector<2x256xf32>
    %223 = tpu.matmul %220, %222, %cst_202 {dimension_numbers = #tpu.dot_dimension_numbers<[1], [0], [0], [1], [0, 0, 1, 1], [], []>} : vector<2x256xf32>, vector<256x256xf32>, vector<2x256xf32> -> vector<2x256xf32>
    %224 = arith.addf %217, %223 : vector<2x256xf32>
    %c0_203 = arith.constant 0 : index
    %c0_204 = arith.constant 0 : index
    %c0_205 = arith.constant 0 : index
    %225 = vector.load %arg17[%c0_203, %c0_204, %c0_205] : memref<2x2x1xf32, #tpu.memory_space<vmem>>, vector<1x2x1xf32>
    %226 = vector.shape_cast %225 : vector<1x2x1xf32> to vector<2x1xf32>
    %227 = vector.broadcast %226 : vector<2x1xf32> to vector<2x256xf32>
    %228 = arith.addf %224, %227 : vector<2x256xf32>
    %c0_206 = arith.constant 0 : index
    %c0_207 = arith.constant 0 : index
    %c0_208 = arith.constant 0 : index
    %229 = vector.load %arg18[%c0_206, %c0_207, %c0_208] : memref<2x2x1xf32, #tpu.memory_space<vmem>>, vector<1x2x1xf32>
    %230 = vector.shape_cast %229 : vector<1x2x1xf32> to vector<2x1xf32>
    %cst_209 = arith.constant 0.000000e+00 : f32
    %231 = vector.broadcast %cst_209 : f32 to vector<2x256xf32>
    %232 = arith.maximumf %228, %231 : vector<2x256xf32>
    %cst_210 = arith.constant 0.000000e+00 : f32
    %233 = vector.broadcast %cst_210 : f32 to vector<2x256xf32>
    %234 = arith.minimumf %228, %233 : vector<2x256xf32>
    %235 = vector.broadcast %230 : vector<2x1xf32> to vector<2x256xf32>
    %236 = arith.mulf %235, %234 : vector<2x256xf32>
    %237 = arith.addf %232, %236 : vector<2x256xf32>
    %c0_211 = arith.constant 0 : index
    %c0_212 = arith.constant 0 : index
    %c0_213 = arith.constant 0 : index
    %238 = vector.load %arg19[%c0_211, %c0_212, %c0_213] : memref<2x4x4xf32, #tpu.memory_space<vmem>>, vector<1x4x4xf32>
    %239 = vector.shape_cast %238 : vector<1x4x4xf32> to vector<4x4xf32>
    %240 = vector.extract_strided_slice %239 {offsets = [0, 0], sizes = [4, 2], strides = [1, 1]} : vector<4x4xf32> to vector<4x2xf32>
    %cst_214 = arith.constant dense<0.000000e+00> : vector<4x256xf32>
    %241 = tpu.matmul %240, %165, %cst_214 {dimension_numbers = #tpu.dot_dimension_numbers<[1], [0], [0], [1], [0, 0, 1, 1], [], []>} : vector<4x2xf32>, vector<2x256xf32>, vector<4x256xf32> -> vector<4x256xf32>
    %242 = vector.extract_strided_slice %239 {offsets = [0, 2], sizes = [4, 2], strides = [1, 1]} : vector<4x4xf32> to vector<4x2xf32>
    %cst_215 = arith.constant dense<0.000000e+00> : vector<4x256xf32>
    %243 = tpu.matmul %242, %237, %cst_215 {dimension_numbers = #tpu.dot_dimension_numbers<[1], [0], [0], [1], [0, 0, 1, 1], [], []>} : vector<4x2xf32>, vector<2x256xf32>, vector<4x256xf32> -> vector<4x256xf32>
    %244 = arith.addf %241, %243 : vector<4x256xf32>
    %cst_216 = arith.constant 0.000000e+00 : f32
    %245 = vector.broadcast %cst_216 : f32 to vector<4x256xf32>
    %246 = arith.subf %245, %244 : vector<4x256xf32>
    %247 = math.exp %246 : vector<4x256xf32>
    %cst_217 = arith.constant 1.000000e+00 : f32
    %248 = vector.broadcast %cst_217 : f32 to vector<4x256xf32>
    %249 = arith.addf %248, %247 : vector<4x256xf32>
    %cst_218 = arith.constant 1.000000e+00 : f32
    %250 = vector.broadcast %cst_218 : f32 to vector<4x256xf32>
    %251 = arith.divf %250, %249 : vector<4x256xf32>
    %252 = arith.addf %93, %251 : vector<4x256xf32>
    %253 = vector.extract_strided_slice %252 {offsets = [0, 0], sizes = [4, 128], strides = [1, 1]} : vector<4x256xf32> to vector<4x128xf32>
    %254 = vector.extract_strided_slice %252 {offsets = [0, 128], sizes = [4, 128], strides = [1, 1]} : vector<4x256xf32> to vector<4x128xf32>
    %255 = arith.maximumf %253, %254 : vector<4x128xf32>
    %256 = vector.extract_strided_slice %252 {offsets = [0, 0], sizes = [4, 128], strides = [1, 1]} : vector<4x256xf32> to vector<4x128xf32>
    %257 = vector.extract_strided_slice %252 {offsets = [0, 128], sizes = [4, 128], strides = [1, 1]} : vector<4x256xf32> to vector<4x128xf32>
    %258 = arith.addf %256, %257 : vector<4x128xf32>
    %259 = vector.extract_strided_slice %255 {offsets = [0, 0], sizes = [4, 64], strides = [1, 1]} : vector<4x128xf32> to vector<4x64xf32>
    %260 = vector.extract_strided_slice %255 {offsets = [0, 64], sizes = [4, 64], strides = [1, 1]} : vector<4x128xf32> to vector<4x64xf32>
    %261 = arith.maximumf %259, %260 : vector<4x64xf32>
    %262 = vector.extract_strided_slice %258 {offsets = [0, 0], sizes = [4, 64], strides = [1, 1]} : vector<4x128xf32> to vector<4x64xf32>
    %263 = vector.extract_strided_slice %258 {offsets = [0, 64], sizes = [4, 64], strides = [1, 1]} : vector<4x128xf32> to vector<4x64xf32>
    %264 = arith.addf %262, %263 : vector<4x64xf32>
    %265 = vector.extract_strided_slice %261 {offsets = [0, 0], sizes = [4, 32], strides = [1, 1]} : vector<4x64xf32> to vector<4x32xf32>
    %266 = vector.extract_strided_slice %261 {offsets = [0, 32], sizes = [4, 32], strides = [1, 1]} : vector<4x64xf32> to vector<4x32xf32>
    %267 = arith.maximumf %265, %266 : vector<4x32xf32>
    %268 = vector.extract_strided_slice %264 {offsets = [0, 0], sizes = [4, 32], strides = [1, 1]} : vector<4x64xf32> to vector<4x32xf32>
    %269 = vector.extract_strided_slice %264 {offsets = [0, 32], sizes = [4, 32], strides = [1, 1]} : vector<4x64xf32> to vector<4x32xf32>
    %270 = arith.addf %268, %269 : vector<4x32xf32>
    %271 = vector.extract_strided_slice %267 {offsets = [0, 0], sizes = [4, 16], strides = [1, 1]} : vector<4x32xf32> to vector<4x16xf32>
    %272 = vector.extract_strided_slice %267 {offsets = [0, 16], sizes = [4, 16], strides = [1, 1]} : vector<4x32xf32> to vector<4x16xf32>
    %273 = arith.maximumf %271, %272 : vector<4x16xf32>
    %274 = vector.extract_strided_slice %270 {offsets = [0, 0], sizes = [4, 16], strides = [1, 1]} : vector<4x32xf32> to vector<4x16xf32>
    %275 = vector.extract_strided_slice %270 {offsets = [0, 16], sizes = [4, 16], strides = [1, 1]} : vector<4x32xf32> to vector<4x16xf32>
    %276 = arith.addf %274, %275 : vector<4x16xf32>
    %cst_219 = arith.constant 6.250000e-02 : f32
    %277 = vector.broadcast %cst_219 : f32 to vector<4x16xf32>
    %278 = arith.mulf %276, %277 : vector<4x16xf32>
    %c1_220 = arith.constant 1 : index
    %c0_221 = arith.constant 0 : index
    %c0_222 = arith.constant 0 : index
    %279 = vector.load %arg2[%c1_220, %c0_221, %c0_222] : memref<2x4x4xf32, #tpu.memory_space<vmem>>, vector<1x4x4xf32>
    %280 = vector.shape_cast %279 : vector<1x4x4xf32> to vector<4x4xf32>
    %cst_223 = arith.constant dense<0.000000e+00> : vector<4x16xf32>
    %281 = tpu.matmul %280, %273, %cst_223 {dimension_numbers = #tpu.dot_dimension_numbers<[1], [0], [0], [1], [0, 0, 1, 1], [], []>} : vector<4x4xf32>, vector<4x16xf32>, vector<4x16xf32> -> vector<4x16xf32>
    %c1_224 = arith.constant 1 : index
    %c0_225 = arith.constant 0 : index
    %c0_226 = arith.constant 0 : index
    %282 = vector.load %arg3[%c1_224, %c0_225, %c0_226] : memref<2x4x1xf32, #tpu.memory_space<vmem>>, vector<1x4x1xf32>
    %283 = vector.shape_cast %282 : vector<1x4x1xf32> to vector<4x1xf32>
    %284 = vector.broadcast %283 : vector<4x1xf32> to vector<4x16xf32>
    %285 = arith.addf %281, %284 : vector<4x16xf32>
    %c1_227 = arith.constant 1 : index
    %c0_228 = arith.constant 0 : index
    %c0_229 = arith.constant 0 : index
    %286 = vector.load %arg6[%c1_227, %c0_228, %c0_229] : memref<2x4x4xf32, #tpu.memory_space<vmem>>, vector<1x4x4xf32>
    %287 = vector.shape_cast %286 : vector<1x4x4xf32> to vector<4x4xf32>
    %cst_230 = arith.constant dense<0.000000e+00> : vector<4x16xf32>
    %288 = tpu.matmul %287, %278, %cst_230 {dimension_numbers = #tpu.dot_dimension_numbers<[1], [0], [0], [1], [0, 0, 1, 1], [], []>} : vector<4x4xf32>, vector<4x16xf32>, vector<4x16xf32> -> vector<4x16xf32>
    %c1_231 = arith.constant 1 : index
    %c0_232 = arith.constant 0 : index
    %c0_233 = arith.constant 0 : index
    %289 = vector.load %arg7[%c1_231, %c0_232, %c0_233] : memref<2x4x1xf32, #tpu.memory_space<vmem>>, vector<1x4x1xf32>
    %290 = vector.shape_cast %289 : vector<1x4x1xf32> to vector<4x1xf32>
    %291 = vector.broadcast %290 : vector<4x1xf32> to vector<4x16xf32>
    %292 = arith.addf %288, %291 : vector<4x16xf32>
    %c1_234 = arith.constant 1 : index
    %c0_235 = arith.constant 0 : index
    %c0_236 = arith.constant 0 : index
    %293 = vector.load %arg4[%c1_234, %c0_235, %c0_236] : memref<2x4x4xf32, #tpu.memory_space<vmem>>, vector<1x4x4xf32>
    %294 = vector.shape_cast %293 : vector<1x4x4xf32> to vector<4x4xf32>
    %cst_237 = arith.constant dense<0.000000e+00> : vector<4x256xf32>
    %295 = tpu.matmul %294, %252, %cst_237 {dimension_numbers = #tpu.dot_dimension_numbers<[1], [0], [0], [1], [0, 0, 1, 1], [], []>} : vector<4x4xf32>, vector<4x256xf32>, vector<4x256xf32> -> vector<4x256xf32>
    %c1_238 = arith.constant 1 : index
    %c0_239 = arith.constant 0 : index
    %c0_240 = arith.constant 0 : index
    %296 = vector.load %arg5[%c1_238, %c0_239, %c0_240] : memref<2x4x1xf32, #tpu.memory_space<vmem>>, vector<1x4x1xf32>
    %297 = vector.shape_cast %296 : vector<1x4x1xf32> to vector<4x1xf32>
    %298 = vector.broadcast %297 : vector<4x1xf32> to vector<4x256xf32>
    %299 = arith.addf %295, %298 : vector<4x256xf32>
    %cst_241 = arith.constant dense<0.000000e+00> : vector<16x256xf32>
    %300 = tpu.matmul %285, %299, %cst_241 {dimension_numbers = #tpu.dot_dimension_numbers<[0], [0], [1], [1], [0, 1, 1, 1], [], []>} : vector<4x16xf32>, vector<4x256xf32>, vector<16x256xf32> -> vector<16x256xf32>
    %cst_242 = arith.constant dense<0xFF800000> : vector<256xf32>
    %301 = vector.multi_reduction <maximumf>, %300, %cst_242 [0] : vector<16x256xf32> to vector<256xf32>
    %302 = vector.shape_cast %301 : vector<256xf32> to vector<1x256xf32>
    %303 = vector.broadcast %302 : vector<1x256xf32> to vector<16x256xf32>
    %304 = arith.subf %300, %303 : vector<16x256xf32>
    %305 = math.exp %304 : vector<16x256xf32>
    %cst_243 = arith.constant dense<0.000000e+00> : vector<256xf32>
    %306 = vector.multi_reduction <add>, %305, %cst_243 [0] : vector<16x256xf32> to vector<256xf32>
    %307 = vector.shape_cast %306 : vector<256xf32> to vector<1x256xf32>
    %308 = tpu.reciprocal %307 {approx = true} : vector<1x256xf32> -> vector<1x256xf32>
    %309 = vector.broadcast %308 : vector<1x256xf32> to vector<16x256xf32>
    %310 = arith.mulf %305, %309 : vector<16x256xf32>
    %cst_244 = arith.constant dense<0.000000e+00> : vector<4x256xf32>
    %311 = tpu.matmul %292, %310, %cst_244 {dimension_numbers = #tpu.dot_dimension_numbers<[1], [0], [0], [1], [0, 0, 1, 1], [], []>} : vector<4x16xf32>, vector<16x256xf32>, vector<4x256xf32> -> vector<4x256xf32>
    %c1_245 = arith.constant 1 : index
    %c0_246 = arith.constant 0 : index
    %c0_247 = arith.constant 0 : index
    %312 = vector.load %arg8[%c1_245, %c0_246, %c0_247] : memref<2x4x4xf32, #tpu.memory_space<vmem>>, vector<1x4x4xf32>
    %313 = vector.shape_cast %312 : vector<1x4x4xf32> to vector<4x4xf32>
    %cst_248 = arith.constant dense<0.000000e+00> : vector<4x256xf32>
    %314 = tpu.matmul %313, %311, %cst_248 {dimension_numbers = #tpu.dot_dimension_numbers<[1], [0], [0], [1], [0, 0, 1, 1], [], []>} : vector<4x4xf32>, vector<4x256xf32>, vector<4x256xf32> -> vector<4x256xf32>
    %c1_249 = arith.constant 1 : index
    %c0_250 = arith.constant 0 : index
    %c0_251 = arith.constant 0 : index
    %315 = vector.load %arg9[%c1_249, %c0_250, %c0_251] : memref<2x4x1xf32, #tpu.memory_space<vmem>>, vector<1x4x1xf32>
    %316 = vector.shape_cast %315 : vector<1x4x1xf32> to vector<4x1xf32>
    %317 = vector.broadcast %316 : vector<4x1xf32> to vector<4x256xf32>
    %318 = arith.addf %314, %317 : vector<4x256xf32>
    %319 = vector.extract_strided_slice %318 {offsets = [0, 0], sizes = [1, 256], strides = [1, 1]} : vector<4x256xf32> to vector<1x256xf32>
    %320 = vector.extract_strided_slice %318 {offsets = [1, 0], sizes = [1, 256], strides = [1, 1]} : vector<4x256xf32> to vector<1x256xf32>
    %c1_252 = arith.constant 1 : index
    %c0_253 = arith.constant 0 : index
    %c0_254 = arith.constant 0 : index
    %321 = vector.load %arg10[%c1_252, %c0_253, %c0_254] : memref<2x4x4xf32, #tpu.memory_space<vmem>>, vector<1x4x4xf32>
    %322 = vector.shape_cast %321 : vector<1x4x4xf32> to vector<4x4xf32>
    %cst_255 = arith.constant dense<0.000000e+00> : vector<4x256xf32>
    %323 = tpu.matmul %322, %299, %cst_255 {dimension_numbers = #tpu.dot_dimension_numbers<[1], [0], [0], [1], [0, 0, 1, 1], [], []>} : vector<4x4xf32>, vector<4x256xf32>, vector<4x256xf32> -> vector<4x256xf32>
    %cst_256 = arith.constant dense<0.000000e+00> : vector<4x16xf32>
    %324 = tpu.matmul %322, %285, %cst_256 {dimension_numbers = #tpu.dot_dimension_numbers<[1], [0], [0], [1], [0, 0, 1, 1], [], []>} : vector<4x4xf32>, vector<4x16xf32>, vector<4x16xf32> -> vector<4x16xf32>
    %cst_257 = arith.constant dense<0.000000e+00> : vector<4x256xf32>
    %325 = tpu.matmul %324, %0, %cst_257 {dimension_numbers = #tpu.dot_dimension_numbers<[1], [0], [0], [1], [0, 0, 1, 1], [], []>} : vector<4x16xf32>, vector<16x256xf32>, vector<4x256xf32> -> vector<4x256xf32>
    %326 = vector.broadcast %319 : vector<1x256xf32> to vector<4x256xf32>
    %327 = arith.mulf %326, %323 : vector<4x256xf32>
    %328 = vector.broadcast %320 : vector<1x256xf32> to vector<4x256xf32>
    %329 = arith.mulf %328, %325 : vector<4x256xf32>
    %330 = arith.addf %327, %329 : vector<4x256xf32>
    %c1_258 = arith.constant 1 : index
    %331 = memref.load %arg12[%c1_258] : memref<2xf32, #tpu.memory_space<smem>>
    %332 = vector.broadcast %331 : f32 to vector<4x256xf32>
    %333 = arith.mulf %332, %330 : vector<4x256xf32>
    %cst_259 = arith.constant 1.000000e+00 : f32
    %334 = arith.subf %cst_259, %331 : f32
    %335 = vector.broadcast %334 : f32 to vector<4x256xf32>
    %336 = arith.mulf %335, %252 : vector<4x256xf32>
    %337 = arith.addf %333, %336 : vector<4x256xf32>
    %c1_260 = arith.constant 1 : index
    %c0_261 = arith.constant 0 : index
    %c0_262 = arith.constant 0 : index
    %338 = vector.load %arg11[%c1_260, %c0_261, %c0_262] : memref<2x4x4xf32, #tpu.memory_space<vmem>>, vector<1x4x4xf32>
    %339 = vector.shape_cast %338 : vector<1x4x4xf32> to vector<4x4xf32>
    %cst_263 = arith.constant 0.000000e+00 : f32
    %340 = vector.broadcast %cst_263 : f32 to vector<4x256xf32>
    %341 = arith.maximumf %337, %340 : vector<4x256xf32>
    %cst_264 = arith.constant dense<0.000000e+00> : vector<4x256xf32>
    %342 = tpu.matmul %339, %341, %cst_264 {dimension_numbers = #tpu.dot_dimension_numbers<[1], [0], [0], [1], [0, 0, 1, 1], [], []>} : vector<4x4xf32>, vector<4x256xf32>, vector<4x256xf32> -> vector<4x256xf32>
    %343 = arith.addf %252, %342 : vector<4x256xf32>
    %c1_265 = arith.constant 1 : index
    %c0_266 = arith.constant 0 : index
    %c0_267 = arith.constant 0 : index
    %c0_268 = arith.constant 0 : index
    %344 = vector.load %arg13[%c1_265, %c0_266, %c0_267, %c0_268] : memref<2x9x2x4xf32, #tpu.memory_space<vmem>>, vector<1x1x2x4xf32>
    %345 = vector.shape_cast %344 : vector<1x1x2x4xf32> to vector<2x4xf32>
    %cst_269 = arith.constant dense<0.000000e+00> : vector<2x256xf32>
    %346 = tpu.matmul %345, %343, %cst_269 {dimension_numbers = #tpu.dot_dimension_numbers<[1], [0], [0], [1], [0, 0, 1, 1], [], []>} : vector<2x4xf32>, vector<4x256xf32>, vector<2x256xf32> -> vector<2x256xf32>
    %c0_270 = arith.constant 0 : index
    %c0_271 = arith.constant 0 : index
    %c0_272 = arith.constant 0 : index
    %347 = vector.load %arg21[%c0_270, %c0_271, %c0_272] : memref<9x256x256xf32, #tpu.memory_space<vmem>>, vector<1x256x256xf32>
    %348 = vector.shape_cast %347 : vector<1x256x256xf32> to vector<256x256xf32>
    %cst_273 = arith.constant dense<0.000000e+00> : vector<2x256xf32>
    %349 = tpu.matmul %346, %348, %cst_273 {dimension_numbers = #tpu.dot_dimension_numbers<[1], [0], [0], [1], [0, 0, 1, 1], [], []>} : vector<2x256xf32>, vector<256x256xf32>, vector<2x256xf32> -> vector<2x256xf32>
    %c1_274 = arith.constant 1 : index
    %c1_275 = arith.constant 1 : index
    %c0_276 = arith.constant 0 : index
    %c0_277 = arith.constant 0 : index
    %350 = vector.load %arg13[%c1_274, %c1_275, %c0_276, %c0_277] : memref<2x9x2x4xf32, #tpu.memory_space<vmem>>, vector<1x1x2x4xf32>
    %351 = vector.shape_cast %350 : vector<1x1x2x4xf32> to vector<2x4xf32>
    %cst_278 = arith.constant dense<0.000000e+00> : vector<2x256xf32>
    %352 = tpu.matmul %351, %343, %cst_278 {dimension_numbers = #tpu.dot_dimension_numbers<[1], [0], [0], [1], [0, 0, 1, 1], [], []>} : vector<2x4xf32>, vector<4x256xf32>, vector<2x256xf32> -> vector<2x256xf32>
    %c1_279 = arith.constant 1 : index
    %c0_280 = arith.constant 0 : index
    %c0_281 = arith.constant 0 : index
    %353 = vector.load %arg21[%c1_279, %c0_280, %c0_281] : memref<9x256x256xf32, #tpu.memory_space<vmem>>, vector<1x256x256xf32>
    %354 = vector.shape_cast %353 : vector<1x256x256xf32> to vector<256x256xf32>
    %cst_282 = arith.constant dense<0.000000e+00> : vector<2x256xf32>
    %355 = tpu.matmul %352, %354, %cst_282 {dimension_numbers = #tpu.dot_dimension_numbers<[1], [0], [0], [1], [0, 0, 1, 1], [], []>} : vector<2x256xf32>, vector<256x256xf32>, vector<2x256xf32> -> vector<2x256xf32>
    %356 = arith.addf %349, %355 : vector<2x256xf32>
    %c1_283 = arith.constant 1 : index
    %c2_284 = arith.constant 2 : index
    %c0_285 = arith.constant 0 : index
    %c0_286 = arith.constant 0 : index
    %357 = vector.load %arg13[%c1_283, %c2_284, %c0_285, %c0_286] : memref<2x9x2x4xf32, #tpu.memory_space<vmem>>, vector<1x1x2x4xf32>
    %358 = vector.shape_cast %357 : vector<1x1x2x4xf32> to vector<2x4xf32>
    %cst_287 = arith.constant dense<0.000000e+00> : vector<2x256xf32>
    %359 = tpu.matmul %358, %343, %cst_287 {dimension_numbers = #tpu.dot_dimension_numbers<[1], [0], [0], [1], [0, 0, 1, 1], [], []>} : vector<2x4xf32>, vector<4x256xf32>, vector<2x256xf32> -> vector<2x256xf32>
    %c2_288 = arith.constant 2 : index
    %c0_289 = arith.constant 0 : index
    %c0_290 = arith.constant 0 : index
    %360 = vector.load %arg21[%c2_288, %c0_289, %c0_290] : memref<9x256x256xf32, #tpu.memory_space<vmem>>, vector<1x256x256xf32>
    %361 = vector.shape_cast %360 : vector<1x256x256xf32> to vector<256x256xf32>
    %cst_291 = arith.constant dense<0.000000e+00> : vector<2x256xf32>
    %362 = tpu.matmul %359, %361, %cst_291 {dimension_numbers = #tpu.dot_dimension_numbers<[1], [0], [0], [1], [0, 0, 1, 1], [], []>} : vector<2x256xf32>, vector<256x256xf32>, vector<2x256xf32> -> vector<2x256xf32>
    %363 = arith.addf %356, %362 : vector<2x256xf32>
    %c1_292 = arith.constant 1 : index
    %c3_293 = arith.constant 3 : index
    %c0_294 = arith.constant 0 : index
    %c0_295 = arith.constant 0 : index
    %364 = vector.load %arg13[%c1_292, %c3_293, %c0_294, %c0_295] : memref<2x9x2x4xf32, #tpu.memory_space<vmem>>, vector<1x1x2x4xf32>
    %365 = vector.shape_cast %364 : vector<1x1x2x4xf32> to vector<2x4xf32>
    %cst_296 = arith.constant dense<0.000000e+00> : vector<2x256xf32>
    %366 = tpu.matmul %365, %343, %cst_296 {dimension_numbers = #tpu.dot_dimension_numbers<[1], [0], [0], [1], [0, 0, 1, 1], [], []>} : vector<2x4xf32>, vector<4x256xf32>, vector<2x256xf32> -> vector<2x256xf32>
    %c3_297 = arith.constant 3 : index
    %c0_298 = arith.constant 0 : index
    %c0_299 = arith.constant 0 : index
    %367 = vector.load %arg21[%c3_297, %c0_298, %c0_299] : memref<9x256x256xf32, #tpu.memory_space<vmem>>, vector<1x256x256xf32>
    %368 = vector.shape_cast %367 : vector<1x256x256xf32> to vector<256x256xf32>
    %cst_300 = arith.constant dense<0.000000e+00> : vector<2x256xf32>
    %369 = tpu.matmul %366, %368, %cst_300 {dimension_numbers = #tpu.dot_dimension_numbers<[1], [0], [0], [1], [0, 0, 1, 1], [], []>} : vector<2x256xf32>, vector<256x256xf32>, vector<2x256xf32> -> vector<2x256xf32>
    %370 = arith.addf %363, %369 : vector<2x256xf32>
    %c1_301 = arith.constant 1 : index
    %c4_302 = arith.constant 4 : index
    %c0_303 = arith.constant 0 : index
    %c0_304 = arith.constant 0 : index
    %371 = vector.load %arg13[%c1_301, %c4_302, %c0_303, %c0_304] : memref<2x9x2x4xf32, #tpu.memory_space<vmem>>, vector<1x1x2x4xf32>
    %372 = vector.shape_cast %371 : vector<1x1x2x4xf32> to vector<2x4xf32>
    %cst_305 = arith.constant dense<0.000000e+00> : vector<2x256xf32>
    %373 = tpu.matmul %372, %343, %cst_305 {dimension_numbers = #tpu.dot_dimension_numbers<[1], [0], [0], [1], [0, 0, 1, 1], [], []>} : vector<2x4xf32>, vector<4x256xf32>, vector<2x256xf32> -> vector<2x256xf32>
    %374 = arith.addf %370, %373 : vector<2x256xf32>
    %c1_306 = arith.constant 1 : index
    %c5_307 = arith.constant 5 : index
    %c0_308 = arith.constant 0 : index
    %c0_309 = arith.constant 0 : index
    %375 = vector.load %arg13[%c1_306, %c5_307, %c0_308, %c0_309] : memref<2x9x2x4xf32, #tpu.memory_space<vmem>>, vector<1x1x2x4xf32>
    %376 = vector.shape_cast %375 : vector<1x1x2x4xf32> to vector<2x4xf32>
    %cst_310 = arith.constant dense<0.000000e+00> : vector<2x256xf32>
    %377 = tpu.matmul %376, %343, %cst_310 {dimension_numbers = #tpu.dot_dimension_numbers<[1], [0], [0], [1], [0, 0, 1, 1], [], []>} : vector<2x4xf32>, vector<4x256xf32>, vector<2x256xf32> -> vector<2x256xf32>
    %c5_311 = arith.constant 5 : index
    %c0_312 = arith.constant 0 : index
    %c0_313 = arith.constant 0 : index
    %378 = vector.load %arg21[%c5_311, %c0_312, %c0_313] : memref<9x256x256xf32, #tpu.memory_space<vmem>>, vector<1x256x256xf32>
    %379 = vector.shape_cast %378 : vector<1x256x256xf32> to vector<256x256xf32>
    %cst_314 = arith.constant dense<0.000000e+00> : vector<2x256xf32>
    %380 = tpu.matmul %377, %379, %cst_314 {dimension_numbers = #tpu.dot_dimension_numbers<[1], [0], [0], [1], [0, 0, 1, 1], [], []>} : vector<2x256xf32>, vector<256x256xf32>, vector<2x256xf32> -> vector<2x256xf32>
    %381 = arith.addf %374, %380 : vector<2x256xf32>
    %c1_315 = arith.constant 1 : index
    %c6_316 = arith.constant 6 : index
    %c0_317 = arith.constant 0 : index
    %c0_318 = arith.constant 0 : index
    %382 = vector.load %arg13[%c1_315, %c6_316, %c0_317, %c0_318] : memref<2x9x2x4xf32, #tpu.memory_space<vmem>>, vector<1x1x2x4xf32>
    %383 = vector.shape_cast %382 : vector<1x1x2x4xf32> to vector<2x4xf32>
    %cst_319 = arith.constant dense<0.000000e+00> : vector<2x256xf32>
    %384 = tpu.matmul %383, %343, %cst_319 {dimension_numbers = #tpu.dot_dimension_numbers<[1], [0], [0], [1], [0, 0, 1, 1], [], []>} : vector<2x4xf32>, vector<4x256xf32>, vector<2x256xf32> -> vector<2x256xf32>
    %c6_320 = arith.constant 6 : index
    %c0_321 = arith.constant 0 : index
    %c0_322 = arith.constant 0 : index
    %385 = vector.load %arg21[%c6_320, %c0_321, %c0_322] : memref<9x256x256xf32, #tpu.memory_space<vmem>>, vector<1x256x256xf32>
    %386 = vector.shape_cast %385 : vector<1x256x256xf32> to vector<256x256xf32>
    %cst_323 = arith.constant dense<0.000000e+00> : vector<2x256xf32>
    %387 = tpu.matmul %384, %386, %cst_323 {dimension_numbers = #tpu.dot_dimension_numbers<[1], [0], [0], [1], [0, 0, 1, 1], [], []>} : vector<2x256xf32>, vector<256x256xf32>, vector<2x256xf32> -> vector<2x256xf32>
    %388 = arith.addf %381, %387 : vector<2x256xf32>
    %c1_324 = arith.constant 1 : index
    %c7_325 = arith.constant 7 : index
    %c0_326 = arith.constant 0 : index
    %c0_327 = arith.constant 0 : index
    %389 = vector.load %arg13[%c1_324, %c7_325, %c0_326, %c0_327] : memref<2x9x2x4xf32, #tpu.memory_space<vmem>>, vector<1x1x2x4xf32>
    %390 = vector.shape_cast %389 : vector<1x1x2x4xf32> to vector<2x4xf32>
    %cst_328 = arith.constant dense<0.000000e+00> : vector<2x256xf32>
    %391 = tpu.matmul %390, %343, %cst_328 {dimension_numbers = #tpu.dot_dimension_numbers<[1], [0], [0], [1], [0, 0, 1, 1], [], []>} : vector<2x4xf32>, vector<4x256xf32>, vector<2x256xf32> -> vector<2x256xf32>
    %c7_329 = arith.constant 7 : index
    %c0_330 = arith.constant 0 : index
    %c0_331 = arith.constant 0 : index
    %392 = vector.load %arg21[%c7_329, %c0_330, %c0_331] : memref<9x256x256xf32, #tpu.memory_space<vmem>>, vector<1x256x256xf32>
    %393 = vector.shape_cast %392 : vector<1x256x256xf32> to vector<256x256xf32>
    %cst_332 = arith.constant dense<0.000000e+00> : vector<2x256xf32>
    %394 = tpu.matmul %391, %393, %cst_332 {dimension_numbers = #tpu.dot_dimension_numbers<[1], [0], [0], [1], [0, 0, 1, 1], [], []>} : vector<2x256xf32>, vector<256x256xf32>, vector<2x256xf32> -> vector<2x256xf32>
    %395 = arith.addf %388, %394 : vector<2x256xf32>
    %c1_333 = arith.constant 1 : index
    %c8_334 = arith.constant 8 : index
    %c0_335 = arith.constant 0 : index
    %c0_336 = arith.constant 0 : index
    %396 = vector.load %arg13[%c1_333, %c8_334, %c0_335, %c0_336] : memref<2x9x2x4xf32, #tpu.memory_space<vmem>>, vector<1x1x2x4xf32>
    %397 = vector.shape_cast %396 : vector<1x1x2x4xf32> to vector<2x4xf32>
    %cst_337 = arith.constant dense<0.000000e+00> : vector<2x256xf32>
    %398 = tpu.matmul %397, %343, %cst_337 {dimension_numbers = #tpu.dot_dimension_numbers<[1], [0], [0], [1], [0, 0, 1, 1], [], []>} : vector<2x4xf32>, vector<4x256xf32>, vector<2x256xf32> -> vector<2x256xf32>
    %c8_338 = arith.constant 8 : index
    %c0_339 = arith.constant 0 : index
    %c0_340 = arith.constant 0 : index
    %399 = vector.load %arg21[%c8_338, %c0_339, %c0_340] : memref<9x256x256xf32, #tpu.memory_space<vmem>>, vector<1x256x256xf32>
    %400 = vector.shape_cast %399 : vector<1x256x256xf32> to vector<256x256xf32>
    %cst_341 = arith.constant dense<0.000000e+00> : vector<2x256xf32>
    %401 = tpu.matmul %398, %400, %cst_341 {dimension_numbers = #tpu.dot_dimension_numbers<[1], [0], [0], [1], [0, 0, 1, 1], [], []>} : vector<2x256xf32>, vector<256x256xf32>, vector<2x256xf32> -> vector<2x256xf32>
    %402 = arith.addf %395, %401 : vector<2x256xf32>
    %c1_342 = arith.constant 1 : index
    %c0_343 = arith.constant 0 : index
    %c0_344 = arith.constant 0 : index
    %403 = vector.load %arg14[%c1_342, %c0_343, %c0_344] : memref<2x2x1xf32, #tpu.memory_space<vmem>>, vector<1x2x1xf32>
    %404 = vector.shape_cast %403 : vector<1x2x1xf32> to vector<2x1xf32>
    %405 = vector.broadcast %404 : vector<2x1xf32> to vector<2x256xf32>
    %406 = arith.addf %402, %405 : vector<2x256xf32>
    %c1_345 = arith.constant 1 : index
    %c0_346 = arith.constant 0 : index
    %c0_347 = arith.constant 0 : index
    %407 = vector.load %arg15[%c1_345, %c0_346, %c0_347] : memref<2x2x1xf32, #tpu.memory_space<vmem>>, vector<1x2x1xf32>
    %408 = vector.shape_cast %407 : vector<1x2x1xf32> to vector<2x1xf32>
    %cst_348 = arith.constant 0.000000e+00 : f32
    %409 = vector.broadcast %cst_348 : f32 to vector<2x256xf32>
    %410 = arith.maximumf %406, %409 : vector<2x256xf32>
    %cst_349 = arith.constant 0.000000e+00 : f32
    %411 = vector.broadcast %cst_349 : f32 to vector<2x256xf32>
    %412 = arith.minimumf %406, %411 : vector<2x256xf32>
    %413 = vector.broadcast %408 : vector<2x1xf32> to vector<2x256xf32>
    %414 = arith.mulf %413, %412 : vector<2x256xf32>
    %415 = arith.addf %410, %414 : vector<2x256xf32>
    %c1_350 = arith.constant 1 : index
    %c0_351 = arith.constant 0 : index
    %c0_352 = arith.constant 0 : index
    %c0_353 = arith.constant 0 : index
    %416 = vector.load %arg16[%c1_350, %c0_351, %c0_352, %c0_353] : memref<2x9x2x4xf32, #tpu.memory_space<vmem>>, vector<1x1x2x4xf32>
    %417 = vector.shape_cast %416 : vector<1x1x2x4xf32> to vector<2x4xf32>
    %cst_354 = arith.constant dense<0.000000e+00> : vector<2x256xf32>
    %418 = tpu.matmul %417, %343, %cst_354 {dimension_numbers = #tpu.dot_dimension_numbers<[1], [0], [0], [1], [0, 0, 1, 1], [], []>} : vector<2x4xf32>, vector<4x256xf32>, vector<2x256xf32> -> vector<2x256xf32>
    %c0_355 = arith.constant 0 : index
    %c0_356 = arith.constant 0 : index
    %c0_357 = arith.constant 0 : index
    %419 = vector.load %arg22[%c0_355, %c0_356, %c0_357] : memref<9x256x256xf32, #tpu.memory_space<vmem>>, vector<1x256x256xf32>
    %420 = vector.shape_cast %419 : vector<1x256x256xf32> to vector<256x256xf32>
    %cst_358 = arith.constant dense<0.000000e+00> : vector<2x256xf32>
    %421 = tpu.matmul %418, %420, %cst_358 {dimension_numbers = #tpu.dot_dimension_numbers<[1], [0], [0], [1], [0, 0, 1, 1], [], []>} : vector<2x256xf32>, vector<256x256xf32>, vector<2x256xf32> -> vector<2x256xf32>
    %c1_359 = arith.constant 1 : index
    %c1_360 = arith.constant 1 : index
    %c0_361 = arith.constant 0 : index
    %c0_362 = arith.constant 0 : index
    %422 = vector.load %arg16[%c1_359, %c1_360, %c0_361, %c0_362] : memref<2x9x2x4xf32, #tpu.memory_space<vmem>>, vector<1x1x2x4xf32>
    %423 = vector.shape_cast %422 : vector<1x1x2x4xf32> to vector<2x4xf32>
    %cst_363 = arith.constant dense<0.000000e+00> : vector<2x256xf32>
    %424 = tpu.matmul %423, %343, %cst_363 {dimension_numbers = #tpu.dot_dimension_numbers<[1], [0], [0], [1], [0, 0, 1, 1], [], []>} : vector<2x4xf32>, vector<4x256xf32>, vector<2x256xf32> -> vector<2x256xf32>
    %c1_364 = arith.constant 1 : index
    %c0_365 = arith.constant 0 : index
    %c0_366 = arith.constant 0 : index
    %425 = vector.load %arg22[%c1_364, %c0_365, %c0_366] : memref<9x256x256xf32, #tpu.memory_space<vmem>>, vector<1x256x256xf32>
    %426 = vector.shape_cast %425 : vector<1x256x256xf32> to vector<256x256xf32>
    %cst_367 = arith.constant dense<0.000000e+00> : vector<2x256xf32>
    %427 = tpu.matmul %424, %426, %cst_367 {dimension_numbers = #tpu.dot_dimension_numbers<[1], [0], [0], [1], [0, 0, 1, 1], [], []>} : vector<2x256xf32>, vector<256x256xf32>, vector<2x256xf32> -> vector<2x256xf32>
    %428 = arith.addf %421, %427 : vector<2x256xf32>
    %c1_368 = arith.constant 1 : index
    %c2_369 = arith.constant 2 : index
    %c0_370 = arith.constant 0 : index
    %c0_371 = arith.constant 0 : index
    %429 = vector.load %arg16[%c1_368, %c2_369, %c0_370, %c0_371] : memref<2x9x2x4xf32, #tpu.memory_space<vmem>>, vector<1x1x2x4xf32>
    %430 = vector.shape_cast %429 : vector<1x1x2x4xf32> to vector<2x4xf32>
    %cst_372 = arith.constant dense<0.000000e+00> : vector<2x256xf32>
    %431 = tpu.matmul %430, %343, %cst_372 {dimension_numbers = #tpu.dot_dimension_numbers<[1], [0], [0], [1], [0, 0, 1, 1], [], []>} : vector<2x4xf32>, vector<4x256xf32>, vector<2x256xf32> -> vector<2x256xf32>
    %c2_373 = arith.constant 2 : index
    %c0_374 = arith.constant 0 : index
    %c0_375 = arith.constant 0 : index
    %432 = vector.load %arg22[%c2_373, %c0_374, %c0_375] : memref<9x256x256xf32, #tpu.memory_space<vmem>>, vector<1x256x256xf32>
    %433 = vector.shape_cast %432 : vector<1x256x256xf32> to vector<256x256xf32>
    %cst_376 = arith.constant dense<0.000000e+00> : vector<2x256xf32>
    %434 = tpu.matmul %431, %433, %cst_376 {dimension_numbers = #tpu.dot_dimension_numbers<[1], [0], [0], [1], [0, 0, 1, 1], [], []>} : vector<2x256xf32>, vector<256x256xf32>, vector<2x256xf32> -> vector<2x256xf32>
    %435 = arith.addf %428, %434 : vector<2x256xf32>
    %c1_377 = arith.constant 1 : index
    %c3_378 = arith.constant 3 : index
    %c0_379 = arith.constant 0 : index
    %c0_380 = arith.constant 0 : index
    %436 = vector.load %arg16[%c1_377, %c3_378, %c0_379, %c0_380] : memref<2x9x2x4xf32, #tpu.memory_space<vmem>>, vector<1x1x2x4xf32>
    %437 = vector.shape_cast %436 : vector<1x1x2x4xf32> to vector<2x4xf32>
    %cst_381 = arith.constant dense<0.000000e+00> : vector<2x256xf32>
    %438 = tpu.matmul %437, %343, %cst_381 {dimension_numbers = #tpu.dot_dimension_numbers<[1], [0], [0], [1], [0, 0, 1, 1], [], []>} : vector<2x4xf32>, vector<4x256xf32>, vector<2x256xf32> -> vector<2x256xf32>
    %c3_382 = arith.constant 3 : index
    %c0_383 = arith.constant 0 : index
    %c0_384 = arith.constant 0 : index
    %439 = vector.load %arg22[%c3_382, %c0_383, %c0_384] : memref<9x256x256xf32, #tpu.memory_space<vmem>>, vector<1x256x256xf32>
    %440 = vector.shape_cast %439 : vector<1x256x256xf32> to vector<256x256xf32>
    %cst_385 = arith.constant dense<0.000000e+00> : vector<2x256xf32>
    %441 = tpu.matmul %438, %440, %cst_385 {dimension_numbers = #tpu.dot_dimension_numbers<[1], [0], [0], [1], [0, 0, 1, 1], [], []>} : vector<2x256xf32>, vector<256x256xf32>, vector<2x256xf32> -> vector<2x256xf32>
    %442 = arith.addf %435, %441 : vector<2x256xf32>
    %c1_386 = arith.constant 1 : index
    %c4_387 = arith.constant 4 : index
    %c0_388 = arith.constant 0 : index
    %c0_389 = arith.constant 0 : index
    %443 = vector.load %arg16[%c1_386, %c4_387, %c0_388, %c0_389] : memref<2x9x2x4xf32, #tpu.memory_space<vmem>>, vector<1x1x2x4xf32>
    %444 = vector.shape_cast %443 : vector<1x1x2x4xf32> to vector<2x4xf32>
    %cst_390 = arith.constant dense<0.000000e+00> : vector<2x256xf32>
    %445 = tpu.matmul %444, %343, %cst_390 {dimension_numbers = #tpu.dot_dimension_numbers<[1], [0], [0], [1], [0, 0, 1, 1], [], []>} : vector<2x4xf32>, vector<4x256xf32>, vector<2x256xf32> -> vector<2x256xf32>
    %446 = arith.addf %442, %445 : vector<2x256xf32>
    %c1_391 = arith.constant 1 : index
    %c5_392 = arith.constant 5 : index
    %c0_393 = arith.constant 0 : index
    %c0_394 = arith.constant 0 : index
    %447 = vector.load %arg16[%c1_391, %c5_392, %c0_393, %c0_394] : memref<2x9x2x4xf32, #tpu.memory_space<vmem>>, vector<1x1x2x4xf32>
    %448 = vector.shape_cast %447 : vector<1x1x2x4xf32> to vector<2x4xf32>
    %cst_395 = arith.constant dense<0.000000e+00> : vector<2x256xf32>
    %449 = tpu.matmul %448, %343, %cst_395 {dimension_numbers = #tpu.dot_dimension_numbers<[1], [0], [0], [1], [0, 0, 1, 1], [], []>} : vector<2x4xf32>, vector<4x256xf32>, vector<2x256xf32> -> vector<2x256xf32>
    %c5_396 = arith.constant 5 : index
    %c0_397 = arith.constant 0 : index
    %c0_398 = arith.constant 0 : index
    %450 = vector.load %arg22[%c5_396, %c0_397, %c0_398] : memref<9x256x256xf32, #tpu.memory_space<vmem>>, vector<1x256x256xf32>
    %451 = vector.shape_cast %450 : vector<1x256x256xf32> to vector<256x256xf32>
    %cst_399 = arith.constant dense<0.000000e+00> : vector<2x256xf32>
    %452 = tpu.matmul %449, %451, %cst_399 {dimension_numbers = #tpu.dot_dimension_numbers<[1], [0], [0], [1], [0, 0, 1, 1], [], []>} : vector<2x256xf32>, vector<256x256xf32>, vector<2x256xf32> -> vector<2x256xf32>
    %453 = arith.addf %446, %452 : vector<2x256xf32>
    %c1_400 = arith.constant 1 : index
    %c6_401 = arith.constant 6 : index
    %c0_402 = arith.constant 0 : index
    %c0_403 = arith.constant 0 : index
    %454 = vector.load %arg16[%c1_400, %c6_401, %c0_402, %c0_403] : memref<2x9x2x4xf32, #tpu.memory_space<vmem>>, vector<1x1x2x4xf32>
    %455 = vector.shape_cast %454 : vector<1x1x2x4xf32> to vector<2x4xf32>
    %cst_404 = arith.constant dense<0.000000e+00> : vector<2x256xf32>
    %456 = tpu.matmul %455, %343, %cst_404 {dimension_numbers = #tpu.dot_dimension_numbers<[1], [0], [0], [1], [0, 0, 1, 1], [], []>} : vector<2x4xf32>, vector<4x256xf32>, vector<2x256xf32> -> vector<2x256xf32>
    %c6_405 = arith.constant 6 : index
    %c0_406 = arith.constant 0 : index
    %c0_407 = arith.constant 0 : index
    %457 = vector.load %arg22[%c6_405, %c0_406, %c0_407] : memref<9x256x256xf32, #tpu.memory_space<vmem>>, vector<1x256x256xf32>
    %458 = vector.shape_cast %457 : vector<1x256x256xf32> to vector<256x256xf32>
    %cst_408 = arith.constant dense<0.000000e+00> : vector<2x256xf32>
    %459 = tpu.matmul %456, %458, %cst_408 {dimension_numbers = #tpu.dot_dimension_numbers<[1], [0], [0], [1], [0, 0, 1, 1], [], []>} : vector<2x256xf32>, vector<256x256xf32>, vector<2x256xf32> -> vector<2x256xf32>
    %460 = arith.addf %453, %459 : vector<2x256xf32>
    %c1_409 = arith.constant 1 : index
    %c7_410 = arith.constant 7 : index
    %c0_411 = arith.constant 0 : index
    %c0_412 = arith.constant 0 : index
    %461 = vector.load %arg16[%c1_409, %c7_410, %c0_411, %c0_412] : memref<2x9x2x4xf32, #tpu.memory_space<vmem>>, vector<1x1x2x4xf32>
    %462 = vector.shape_cast %461 : vector<1x1x2x4xf32> to vector<2x4xf32>
    %cst_413 = arith.constant dense<0.000000e+00> : vector<2x256xf32>
    %463 = tpu.matmul %462, %343, %cst_413 {dimension_numbers = #tpu.dot_dimension_numbers<[1], [0], [0], [1], [0, 0, 1, 1], [], []>} : vector<2x4xf32>, vector<4x256xf32>, vector<2x256xf32> -> vector<2x256xf32>
    %c7_414 = arith.constant 7 : index
    %c0_415 = arith.constant 0 : index
    %c0_416 = arith.constant 0 : index
    %464 = vector.load %arg22[%c7_414, %c0_415, %c0_416] : memref<9x256x256xf32, #tpu.memory_space<vmem>>, vector<1x256x256xf32>
    %465 = vector.shape_cast %464 : vector<1x256x256xf32> to vector<256x256xf32>
    %cst_417 = arith.constant dense<0.000000e+00> : vector<2x256xf32>
    %466 = tpu.matmul %463, %465, %cst_417 {dimension_numbers = #tpu.dot_dimension_numbers<[1], [0], [0], [1], [0, 0, 1, 1], [], []>} : vector<2x256xf32>, vector<256x256xf32>, vector<2x256xf32> -> vector<2x256xf32>
    %467 = arith.addf %460, %466 : vector<2x256xf32>
    %c1_418 = arith.constant 1 : index
    %c8_419 = arith.constant 8 : index
    %c0_420 = arith.constant 0 : index
    %c0_421 = arith.constant 0 : index
    %468 = vector.load %arg16[%c1_418, %c8_419, %c0_420, %c0_421] : memref<2x9x2x4xf32, #tpu.memory_space<vmem>>, vector<1x1x2x4xf32>
    %469 = vector.shape_cast %468 : vector<1x1x2x4xf32> to vector<2x4xf32>
    %cst_422 = arith.constant dense<0.000000e+00> : vector<2x256xf32>
    %470 = tpu.matmul %469, %343, %cst_422 {dimension_numbers = #tpu.dot_dimension_numbers<[1], [0], [0], [1], [0, 0, 1, 1], [], []>} : vector<2x4xf32>, vector<4x256xf32>, vector<2x256xf32> -> vector<2x256xf32>
    %c8_423 = arith.constant 8 : index
    %c0_424 = arith.constant 0 : index
    %c0_425 = arith.constant 0 : index
    %471 = vector.load %arg22[%c8_423, %c0_424, %c0_425] : memref<9x256x256xf32, #tpu.memory_space<vmem>>, vector<1x256x256xf32>
    %472 = vector.shape_cast %471 : vector<1x256x256xf32> to vector<256x256xf32>
    %cst_426 = arith.constant dense<0.000000e+00> : vector<2x256xf32>
    %473 = tpu.matmul %470, %472, %cst_426 {dimension_numbers = #tpu.dot_dimension_numbers<[1], [0], [0], [1], [0, 0, 1, 1], [], []>} : vector<2x256xf32>, vector<256x256xf32>, vector<2x256xf32> -> vector<2x256xf32>
    %474 = arith.addf %467, %473 : vector<2x256xf32>
    %c1_427 = arith.constant 1 : index
    %c0_428 = arith.constant 0 : index
    %c0_429 = arith.constant 0 : index
    %475 = vector.load %arg17[%c1_427, %c0_428, %c0_429] : memref<2x2x1xf32, #tpu.memory_space<vmem>>, vector<1x2x1xf32>
    %476 = vector.shape_cast %475 : vector<1x2x1xf32> to vector<2x1xf32>
    %477 = vector.broadcast %476 : vector<2x1xf32> to vector<2x256xf32>
    %478 = arith.addf %474, %477 : vector<2x256xf32>
    %c1_430 = arith.constant 1 : index
    %c0_431 = arith.constant 0 : index
    %c0_432 = arith.constant 0 : index
    %479 = vector.load %arg18[%c1_430, %c0_431, %c0_432] : memref<2x2x1xf32, #tpu.memory_space<vmem>>, vector<1x2x1xf32>
    %480 = vector.shape_cast %479 : vector<1x2x1xf32> to vector<2x1xf32>
    %cst_433 = arith.constant 0.000000e+00 : f32
    %481 = vector.broadcast %cst_433 : f32 to vector<2x256xf32>
    %482 = arith.maximumf %478, %481 : vector<2x256xf32>
    %cst_434 = arith.constant 0.000000e+00 : f32
    %483 = vector.broadcast %cst_434 : f32 to vector<2x256xf32>
    %484 = arith.minimumf %478, %483 : vector<2x256xf32>
    %485 = vector.broadcast %480 : vector<2x1xf32> to vector<2x256xf32>
    %486 = arith.mulf %485, %484 : vector<2x256xf32>
    %487 = arith.addf %482, %486 : vector<2x256xf32>
    %c1_435 = arith.constant 1 : index
    %c0_436 = arith.constant 0 : index
    %c0_437 = arith.constant 0 : index
    %488 = vector.load %arg19[%c1_435, %c0_436, %c0_437] : memref<2x4x4xf32, #tpu.memory_space<vmem>>, vector<1x4x4xf32>
    %489 = vector.shape_cast %488 : vector<1x4x4xf32> to vector<4x4xf32>
    %490 = vector.extract_strided_slice %489 {offsets = [0, 0], sizes = [4, 2], strides = [1, 1]} : vector<4x4xf32> to vector<4x2xf32>
    %cst_438 = arith.constant dense<0.000000e+00> : vector<4x256xf32>
    %491 = tpu.matmul %490, %415, %cst_438 {dimension_numbers = #tpu.dot_dimension_numbers<[1], [0], [0], [1], [0, 0, 1, 1], [], []>} : vector<4x2xf32>, vector<2x256xf32>, vector<4x256xf32> -> vector<4x256xf32>
    %492 = vector.extract_strided_slice %489 {offsets = [0, 2], sizes = [4, 2], strides = [1, 1]} : vector<4x4xf32> to vector<4x2xf32>
    %cst_439 = arith.constant dense<0.000000e+00> : vector<4x256xf32>
    %493 = tpu.matmul %492, %487, %cst_439 {dimension_numbers = #tpu.dot_dimension_numbers<[1], [0], [0], [1], [0, 0, 1, 1], [], []>} : vector<4x2xf32>, vector<2x256xf32>, vector<4x256xf32> -> vector<4x256xf32>
    %494 = arith.addf %491, %493 : vector<4x256xf32>
    %cst_440 = arith.constant 0.000000e+00 : f32
    %495 = vector.broadcast %cst_440 : f32 to vector<4x256xf32>
    %496 = arith.subf %495, %494 : vector<4x256xf32>
    %497 = math.exp %496 : vector<4x256xf32>
    %cst_441 = arith.constant 1.000000e+00 : f32
    %498 = vector.broadcast %cst_441 : f32 to vector<4x256xf32>
    %499 = arith.addf %498, %497 : vector<4x256xf32>
    %cst_442 = arith.constant 1.000000e+00 : f32
    %500 = vector.broadcast %cst_442 : f32 to vector<4x256xf32>
    %501 = arith.divf %500, %499 : vector<4x256xf32>
    %502 = arith.addf %343, %501 : vector<4x256xf32>
    %c0_443 = arith.constant 0 : index
    %c0_444 = arith.constant 0 : index
    %c0_445 = arith.constant 0 : index
    %503 = vector.load %arg23[%c0_443, %c0_444, %c0_445] : memref<1x4x256xf32, #tpu.memory_space<vmem>>, vector<1x4x256xf32>
    %504 = vector.shape_cast %503 : vector<1x4x256xf32> to vector<4x256xf32>
    %505 = vector.shape_cast %502 : vector<4x256xf32> to vector<1x4x256xf32>
    tpu.vector_store %arg23[%c0_443, %c0_444, %c0_445], %505 {strides = array<i32>} : memref<1x4x256xf32, #tpu.memory_space<vmem>>, vector<1x4x256xf32>,
    return
  }
  func.func @transform_0(%arg0: i32) -> (i32, i32, i32) {
    %c0_i32 = arith.constant 0 : i32
    %c0_i32_0 = arith.constant 0 : i32
    %c0_i32_1 = arith.constant 0 : i32
    return %arg0, %c0_i32, %c0_i32_0 : i32, i32, i32
  }
  func.func @transform_1(%arg0: i32) -> (i32, i32, i32) {
    %c0_i32 = arith.constant 0 : i32
    %c0_i32_0 = arith.constant 0 : i32
    %c0_i32_1 = arith.constant 0 : i32
    %c0_i32_2 = arith.constant 0 : i32
    return %c0_i32, %c0_i32_0, %c0_i32_1 : i32, i32, i32
  }
  func.func @transform_2(%arg0: i32) -> (i32, i32, i32) {
    %c0_i32 = arith.constant 0 : i32
    %c0_i32_0 = arith.constant 0 : i32
    %c0_i32_1 = arith.constant 0 : i32
    %c0_i32_2 = arith.constant 0 : i32
    return %c0_i32, %c0_i32_0, %c0_i32_1 : i32, i32, i32
  }
  func.func @transform_3(%arg0: i32) -> (i32, i32, i32) {
    %c0_i32 = arith.constant 0 : i32
    %c0_i32_0 = arith.constant 0 : i32
    %c0_i32_1 = arith.constant 0 : i32
    %c0_i32_2 = arith.constant 0 : i32
    return %c0_i32, %c0_i32_0, %c0_i32_1 : i32, i32, i32
  }
  func.func @transform_4(%arg0: i32) -> (i32, i32, i32) {
    %c0_i32 = arith.constant 0 : i32
    %c0_i32_0 = arith.constant 0 : i32
    %c0_i32_1 = arith.constant 0 : i32
    %c0_i32_2 = arith.constant 0 : i32
    return %c0_i32, %c0_i32_0, %c0_i32_1 : i32, i32, i32
  }
  func.func @transform_5(%arg0: i32) -> (i32, i32, i32) {
    %c0_i32 = arith.constant 0 : i32
    %c0_i32_0 = arith.constant 0 : i32
    %c0_i32_1 = arith.constant 0 : i32
    %c0_i32_2 = arith.constant 0 : i32
    return %c0_i32, %c0_i32_0, %c0_i32_1 : i32, i32, i32
  }
  func.func @transform_6(%arg0: i32) -> (i32, i32, i32) {
    %c0_i32 = arith.constant 0 : i32
    %c0_i32_0 = arith.constant 0 : i32
    %c0_i32_1 = arith.constant 0 : i32
    %c0_i32_2 = arith.constant 0 : i32
    return %c0_i32, %c0_i32_0, %c0_i32_1 : i32, i32, i32
  }
  func.func @transform_7(%arg0: i32) -> (i32, i32, i32) {
    %c0_i32 = arith.constant 0 : i32
    %c0_i32_0 = arith.constant 0 : i32
    %c0_i32_1 = arith.constant 0 : i32
    %c0_i32_2 = arith.constant 0 : i32
    return %c0_i32, %c0_i32_0, %c0_i32_1 : i32, i32, i32
  }
  func.func @transform_8(%arg0: i32) -> (i32, i32, i32) {
    %c0_i32 = arith.constant 0 : i32
    %c0_i32_0 = arith.constant 0 : i32
    %c0_i32_1 = arith.constant 0 : i32
    %c0_i32_2 = arith.constant 0 : i32
    return %c0_i32, %c0_i32_0, %c0_i32_1 : i32, i32, i32
  }
  func.func @transform_9(%arg0: i32) -> (i32, i32, i32) {
    %c0_i32 = arith.constant 0 : i32
    %c0_i32_0 = arith.constant 0 : i32
    %c0_i32_1 = arith.constant 0 : i32
    %c0_i32_2 = arith.constant 0 : i32
    return %c0_i32, %c0_i32_0, %c0_i32_1 : i32, i32, i32
  }
  func.func @transform_10(%arg0: i32) -> (i32, i32, i32) {
    %c0_i32 = arith.constant 0 : i32
    %c0_i32_0 = arith.constant 0 : i32
    %c0_i32_1 = arith.constant 0 : i32
    %c0_i32_2 = arith.constant 0 : i32
    return %c0_i32, %c0_i32_0, %c0_i32_1 : i32, i32, i32
  }
  func.func @transform_11(%arg0: i32) -> i32 {
    %c0_i32 = arith.constant 0 : i32
    %c0_i32_0 = arith.constant 0 : i32
    return %c0_i32 : i32
  }
  func.func @transform_12(%arg0: i32) -> (i32, i32, i32, i32) {
    %c0_i32 = arith.constant 0 : i32
    %c0_i32_0 = arith.constant 0 : i32
    %c0_i32_1 = arith.constant 0 : i32
    %c0_i32_2 = arith.constant 0 : i32
    %c0_i32_3 = arith.constant 0 : i32
    return %c0_i32, %c0_i32_0, %c0_i32_1, %c0_i32_2 : i32, i32, i32, i32
  }
  func.func @transform_13(%arg0: i32) -> (i32, i32, i32) {
    %c0_i32 = arith.constant 0 : i32
    %c0_i32_0 = arith.constant 0 : i32
    %c0_i32_1 = arith.constant 0 : i32
    %c0_i32_2 = arith.constant 0 : i32
    return %c0_i32, %c0_i32_0, %c0_i32_1 : i32, i32, i32
  }
  func.func @transform_14(%arg0: i32) -> (i32, i32, i32) {
    %c0_i32 = arith.constant 0 : i32
    %c0_i32_0 = arith.constant 0 : i32
    %c0_i32_1 = arith.constant 0 : i32
    %c0_i32_2 = arith.constant 0 : i32
    return %c0_i32, %c0_i32_0, %c0_i32_1 : i32, i32, i32
  }
  func.func @transform_15(%arg0: i32) -> (i32, i32, i32, i32) {
    %c0_i32 = arith.constant 0 : i32
    %c0_i32_0 = arith.constant 0 : i32
    %c0_i32_1 = arith.constant 0 : i32
    %c0_i32_2 = arith.constant 0 : i32
    %c0_i32_3 = arith.constant 0 : i32
    return %c0_i32, %c0_i32_0, %c0_i32_1, %c0_i32_2 : i32, i32, i32, i32
  }
  func.func @transform_16(%arg0: i32) -> (i32, i32, i32) {
    %c0_i32 = arith.constant 0 : i32
    %c0_i32_0 = arith.constant 0 : i32
    %c0_i32_1 = arith.constant 0 : i32
    %c0_i32_2 = arith.constant 0 : i32
    return %c0_i32, %c0_i32_0, %c0_i32_1 : i32, i32, i32
  }
  func.func @transform_17(%arg0: i32) -> (i32, i32, i32) {
    %c0_i32 = arith.constant 0 : i32
    %c0_i32_0 = arith.constant 0 : i32
    %c0_i32_1 = arith.constant 0 : i32
    %c0_i32_2 = arith.constant 0 : i32
    return %c0_i32, %c0_i32_0, %c0_i32_1 : i32, i32, i32
  }
  func.func @transform_18(%arg0: i32) -> (i32, i32, i32) {
    %c0_i32 = arith.constant 0 : i32
    %c0_i32_0 = arith.constant 0 : i32
    %c0_i32_1 = arith.constant 0 : i32
    %c0_i32_2 = arith.constant 0 : i32
    return %c0_i32, %c0_i32_0, %c0_i32_1 : i32, i32, i32
  }
  func.func @transform_19(%arg0: i32) -> (i32, i32) {
    %c0_i32 = arith.constant 0 : i32
    %c0_i32_0 = arith.constant 0 : i32
    %c0_i32_1 = arith.constant 0 : i32
    return %c0_i32, %c0_i32_0 : i32, i32
  }
  func.func @transform_20(%arg0: i32) -> (i32, i32, i32) {
    %c0_i32 = arith.constant 0 : i32
    %c0_i32_0 = arith.constant 0 : i32
    %c0_i32_1 = arith.constant 0 : i32
    %c0_i32_2 = arith.constant 0 : i32
    return %c0_i32, %c0_i32_0, %c0_i32_1 : i32, i32, i32
  }
  func.func @transform_21(%arg0: i32) -> (i32, i32, i32) {
    %c0_i32 = arith.constant 0 : i32
    %c0_i32_0 = arith.constant 0 : i32
    %c0_i32_1 = arith.constant 0 : i32
    %c0_i32_2 = arith.constant 0 : i32
    return %c0_i32, %c0_i32_0, %c0_i32_1 : i32, i32, i32
  }
  func.func @transform_22(%arg0: i32) -> (i32, i32, i32) {
    %c0_i32 = arith.constant 0 : i32
    %c0_i32_0 = arith.constant 0 : i32
    %c0_i32_1 = arith.constant 0 : i32
    return %arg0, %c0_i32, %c0_i32_0 : i32, i32, i32
  }
}

</mosaic_0001>

<bundles_post_ra>
// kernel: tpu_custom_call.1
= control target key start
LH: loop header
LB: loop body
LE: loop exit
PB: predicated region body
PF: predicated region fallthrough
CT: control target
= control target key end

     0   :  { %s11469_s0 = inlined_call_operand.hbm [shape: f32[2,4,256], index: 0, kind: input, shape index: {}]   ;;  %s11470_s1 = inlined_call_operand.hbm [shape: f32[2,4,4], index: 1, kind: input, shape index: {}]   ;;  %s11471_s2 = inlined_call_operand.vmem [shape: f32[2,4,1], index: 2, kind: input, shape index: {}]   ;;  %s11472_s3 = inlined_call_operand.hbm [shape: f32[2,4,4], index: 3, kind: input, shape index: {}]   ;;  %s11473_s4 = inlined_call_operand.vmem [shape: f32[2,4,1], index: 4, kind: input, shape index: {}]   ;;  %s11474_s5 = inlined_call_operand.hbm [shape: f32[2,4,4], index: 5, kind: input, shape index: {}]   ;;  %s11475_s6 = inlined_call_operand.vmem [shape: f32[2,4,1], index: 6, kind: input, shape index: {}]   ;;  %s11476_s7 = inlined_call_operand.hbm [shape: f32[2,4,4], index: 7, kind: input, shape index: {}]   ;;  %s11477_s8 = inlined_call_operand.vmem [shape: f32[2,4,1], index: 8, kind: input, shape index: {}]   ;;  %s11478_s9 = inlined_call_operand.hbm [shape: f32[2,4,4], index: 9, kind: input, shape index: {}]   ;;  %s11479_s10 = inlined_call_operand.hbm [shape: f32[2,4,4], index: 10, kind: input, shape index: {}]   ;;  %s11480_s11 = inlined_call_operand.hbm [shape: f32[2], index: 11, kind: input, shape index: {}]   ;;  %s11481_s12 = inlined_call_operand.vmem [shape: f32[2,9,2,4], index: 12, kind: input, shape index: {}]   ;;  %s11482_s13 = inlined_call_operand.vmem [shape: f32[2,2,1], index: 13, kind: input, shape index: {}]   ;;  %s11483_s14 = inlined_call_operand.vmem [shape: f32[2,2,1], index: 14, kind: input, shape index: {}]   ;;  %s11484_s15 = inlined_call_operand.vmem [shape: f32[2,9,2,4], index: 15, kind: input, shape index: {}]   ;;  %s11485_s16 = inlined_call_operand.vmem [shape: f32[2,2,1], index: 16, kind: input, shape index: {}]   ;;  %s11486_s17 = inlined_call_operand.vmem [shape: f32[2,2,1], index: 17, kind: input, shape index: {}]   ;;  %s11487_s18 = inlined_call_operand.hbm [shape: f32[2,4,4], index: 18, kind: input, shape index: {}]   ;;  %s11488_s19 = inlined_call_operand.hbm [shape: f32[16,256], index: 19, kind: input, shape index: {}]   ;;  %s11489_s20 = inlined_call_operand.hbm [shape: f32[9,256,256], index: 20, kind: input, shape index: {}]   ;;  %s11490_s21 = inlined_call_operand.hbm [shape: f32[9,256,256], index: 21, kind: input, shape index: {}]   ;;  %s11491_s22 = inlined_call_operand.hbm [shape: f32[2,4,256], index: 22, kind: output, shape index: {}]  }
   0x1   :  { %11508 = sst [smem:[#allocation35_spill]] %s11469_s0 }
   0x2   :  { %11509 = sst [smem:[#allocation36_spill]] %s11470_s1 }
   0x3   :  { %11510 = sst [smem:[#allocation37_spill]] %s11471_s2 }
   0x4   :  { %11511 = sst [smem:[#allocation38_spill]] %s11472_s3 }
   0x5   :  { %11512 = sst [smem:[#allocation39_spill]] %s11473_s4 }
   0x6   :  { %11513 = sst [smem:[#allocation40_spill]] %s11474_s5 }
   0x7   :  { %11514 = sst [smem:[#allocation41_spill]] %s11475_s6 }
   0x8   :  { %11515 = sst [smem:[#allocation42_spill]] %s11476_s7 }
   0x9   :  { %11516 = sst [smem:[#allocation43_spill]] %s11477_s8 }
   0xa   :  { %11517 = sst [smem:[#allocation44_spill]] %s11478_s9 }
   0xb   :  { %11518 = sst [smem:[#allocation45_spill]] %s11479_s10 }
   0xc   :  { %11519 = sst [smem:[#allocation46_spill]] %s11480_s11 }
   0xd   :  { %11520 = sst [smem:[#allocation47_spill]] %s11481_s12 }
   0xe   :  { %11521 = sst [smem:[#allocation48_spill]] %s11484_s15 }
   0xf   :  { %11522 = sst [smem:[#allocation49_spill]] %s11485_s16 }
  0x10   :  { %11523 = sst [smem:[#allocation50_spill]] %s11486_s17 }
  0x11   :  { %11524 = sst [smem:[#allocation51_spill]] %s11487_s18 }
  0x12   :  { %11525 = sst [smem:[#allocation52_spill]] %s11488_s19 }
  0x13   :  { %11526 = sst [smem:[#allocation53_spill]] %s11491_s22 }
  0x14   :  { %27 = vsyncpa [#allocation3], 0 }
  0x15   :  { %29 = vsyncpa [#allocation3 + $0x1], 0 }
  0x16   :  { %30 = vsyncpa [#allocation7], 0 }
  0x17   :  { %31 = vsyncpa [#allocation10], 0 }
  0x18   :  { %32 = vsyncpa [#allocation13], 0 }
  0x19   :  { %33 = vsyncpa [#allocation5], 0 }
  0x1a   :  { %34 = vsyncpa [#allocation17], 0 }
  0x1b   :  { %35 = vsyncpa [#allocation20], 0 }
  0x1c   :  { %36 = vsyncpa [#allocation4], 0 }
  0x1d   :  { %38 = vsyncpa [#allocation4 + $0x1], 0  ;;  %s10293_s3 = smov 0   ;;  %s10295_s28 = smov 0  }
  0x1e   :  { %s10297_s29 = smov 0   ;;  %s10299_s30 = smov 0  }
  0x1f LB: > { %s11527_s23 = sld [smem:[#allocation36_spill]]  ;;  %s10317_s5 = sadd.s32 4294967295, %s10156_s30   ;;  %s10156_s30 = sphi %s10299_s30, %s11567_s30   ;;  %s10152_s29 = sphi %s10297_s29, %s11566_s29   ;;  %s10148_s28 = sphi %s10295_s28, %s11565_s28   ;;  %s10144_s3 = sphi %s10293_s3, %s11564_s3  }
  0x20   : > { %p8178_p0 = scmp.ge.s32.totalorder %s10156_s30, 1  ;;  %p65_p1 = scmp.eq.s32.totalorder %s10317_s5, 0 }
  0x21   : > { %p542_p2 = scmp.lt.s32.totalorder %s10156_s30, 3  ;;  %s10158_s6 = smov [#allocation6]  }
  0x22   : > { %s555_s25 = sshll.u32 %s10158_s6, 4  ;;  %s11529_s27 = sld [smem:[#allocation40_spill]]  ;;  %s556_s25 = int_to_ptr.vmem [resolvable:$true] %s555_s25 }
  0x23   : > { %p10322_p3 = pnand %p8178_p0, %p542_p2  ;;  %s11531_s9 = sld [smem:[#allocation44_spill]] }
  0x24   : > { %s10159_s15 = smov [#allocation9]   ;;  %s10160_s17 = smov 64  }
  0x25   : > { %s553_s1 = sshll.u32 %s11527_s23, 4  ;;  %p8530_p4 = pneg %p10322_p3  ;;  %s554_s1 = int_to_ptr.hbm [resolvable:$true] %s553_s1 }
  0x26   : > { %s589_s12 = sshll.u32 %s10159_s15, 4  ;;  %s10161_s16 = smov 4   ;;  %s590_s12 = int_to_ptr.vmem [resolvable:$true] %s589_s12 }
  0x27   : > { %p10334_p6 = pnand %p8530_p4, %p65_p1  ;;  %s11532_s18 = sld [smem:[#allocation51_spill]] }
  0x28   : > { %s587_s4 = sshll.u32 %s11529_s27, 4  ;;  %s10162_s15 = smov [#allocation12]   ;;  %s588_s4 = int_to_ptr.hbm [resolvable:$true] %s587_s4 }
  0x29   : > { %s621_s6 = sshll.u32 %s11531_s9, 4  ;;  %s623_s27 = sshll.u32 %s10162_s15, 4  ;;  %s622_s6 = int_to_ptr.hbm [resolvable:$true] %s621_s6  ;;  %s624_s27 = int_to_ptr.vmem [resolvable:$true] %s623_s27 }
  0x2a   : > { %8533 = dma.hbm_to_vmem [thread:$0]  (!%p10334_p6), %s554_s1, 128, %s556_s25, [#allocation7], %s10160_s17, %s10160_s17, %s10161_s16  }
  0x2b   : > { %8539 = dma.hbm_to_vmem [thread:$0]  (!%p10334_p6), %s588_s4, 128, %s590_s12, [#allocation10], %s10160_s17, %s10160_s17, %s10161_s16  }
  0x2c   : > { %8545 = dma.hbm_to_vmem [thread:$0]  (!%p10334_p6), %s622_s6, 128, %s624_s27, [#allocation13], %s10160_s17, %s10160_s17, %s10161_s16  }
  0x2d   : > { %s677_s2 = sshll.u32 %s11532_s18, 4  ;;  %s10163_s1 = smov [#allocation16]   ;;  %s678_s2 = int_to_ptr.hbm [resolvable:$true] %s677_s2 }
  0x2e   : > { %s679_s25 = sshll.u32 %s10163_s1, 4  ;;  %s705_s23 = sshll.u32 %s11489_s20, 4  ;;  %s680_s25 = int_to_ptr.vmem [resolvable:$true] %s679_s25  ;;  %s706_s23 = int_to_ptr.hbm [resolvable:$true] %s705_s23 }
  0x2f   : > { %8554 = dma.hbm_to_vmem [thread:$0]  (!%p10334_p6), %s678_s2, 128, %s680_s25, [#allocation17], %s10160_s17, %s10160_s17, %s10161_s16  }
  0x30   : > { %s10164_s26 = smov [#allocation19]   ;;  %s11533_s6 = sld [smem:[#allocation38_spill]] }
  0x31   : > { %s707_s22 = sshll.u32 %s10164_s26, 4  ;;  %s11501_s1 = smov 256   ;;  %s708_s22 = int_to_ptr.vmem [resolvable:$true] %s707_s22 }
  0x32   : > { %s10166_s18 = smov 16   ;;  %s10167_s2 = smov [#allocation8]  }
  0x33   : > { %8560 = dma.hbm_to_vmem [thread:$0]  (!%p10334_p6), %s706_s23, 73728, %s708_s22, [#allocation20], %s11501_s1, %s11501_s1, %s10166_s18  }
  0x34   : > { %s572_s25 = sshll.u32 %s10167_s2, 4  ;;  %s11534_s7 = sld [smem:[#allocation42_spill]]  ;;  %s573_s25 = int_to_ptr.vmem [resolvable:$true] %s572_s25 }
  0x35   : > { %s11535_s10 = sld [smem:[#allocation45_spill]]  ;;  %s10168_s22 = smov [#allocation11]  }
  0x36   : > { %s570_s27 = sshll.u32 %s11533_s6, 4  ;;  %s606_s6 = sshll.u32 %s10168_s22, 4  ;;  %s571_s27 = int_to_ptr.hbm [resolvable:$true] %s570_s27  ;;  %s607_s6 = int_to_ptr.vmem [resolvable:$true] %s606_s6 }
  0x37   : > { %8536 = dma.hbm_to_vmem [thread:$0]  (!%p10334_p6), %s571_s27, 128, %s573_s25, [#allocation7], %s10160_s17, %s10160_s17, %s10161_s16  }
  0x38   : > { %s10169_s2 = smov [#allocation14]   ;;  %s11536_s11 = sld [smem:[#allocation46_spill]] }
  0x39   : > { %s637_s12 = sshll.u32 %s10169_s2, 4  ;;  %s11537_s19 = sld [smem:[#allocation52_spill]]  ;;  %s638_s12 = int_to_ptr.vmem [resolvable:$true] %s637_s12 }
  0x3a   : > { %s604_s26 = sshll.u32 %s11534_s7, 4  ;;  %s10170_s15 = smov [#allocation15]   ;;  %s605_s26 = int_to_ptr.hbm [resolvable:$true] %s604_s26 }
  0x3b   : > { %s635_s23 = sshll.u32 %s11535_s10, 4  ;;  %s10171_s1 = smov [#allocation18]   ;;  %s636_s23 = int_to_ptr.hbm [resolvable:$true] %s635_s23 }
  0x3c   : > { %8542 = dma.hbm_to_vmem [thread:$0]  (!%p10334_p6), %s605_s26, 128, %s607_s6, [#allocation10], %s10160_s17, %s10160_s17, %s10161_s16  }
  0x3d   : > { %8548 = dma.hbm_to_vmem [thread:$0]  (!%p10334_p6), %s636_s23, 128, %s638_s12, [#allocation13], %s10160_s17, %s10160_s17, %s10161_s16  }
  0x3e   : > { %s650_s27 = sshll.u32 %s11536_s11, 4  ;;  %s693_s22 = sshll.u32 %s10171_s1, 4  ;;  %s651_s27 = int_to_ptr.hbm [resolvable:$true] %s650_s27  ;;  %s694_s22 = int_to_ptr.vmem [resolvable:$true] %s693_s22 }
  0x3f   : > { %s691_s26 = sshll.u32 %s11537_s19, 4  ;;  %s719_s16 = sshll.u32 %s11490_s21, 4  ;;  %s692_s26 = int_to_ptr.hbm [resolvable:$true] %s691_s26  ;;  %s720_s16 = int_to_ptr.hbm [resolvable:$true] %s719_s16 }
  0x40   : > { %8551 = dma.hbm_to_smem (!%p10334_p6), %s651_s27, 16, %s10170_s15, [#allocation5]  }
  0x41   : > { %s11538_s17 = smov 256   ;;  %s10172_s23 = smov [#allocation21]  }
  0x42   : > { %8557 = dma.hbm_to_vmem [thread:$0]  (!%p10334_p6), %s692_s26, 512, %s694_s22, [#allocation17], %s11538_s17, %s11538_s17, %s10166_s18  }
  0x43   : > { %s721_s12 = sshll.u32 %s10172_s23, 4  ;;  %s8177_s4 = sadd.s32 4294967294, %s10156_s30   ;;  %s722_s12 = int_to_ptr.vmem [resolvable:$true] %s721_s12 }
  0x44   : > { %8563 = dma.hbm_to_vmem [thread:$0]  (!%p10334_p6), %s720_s16, 73728, %s722_s12, [#allocation20], %s11538_s17, %s11538_s17, %s10166_s18  }
  0x45   : > { %s10419_s27 = sadd.s32 1, %s10156_s30   ;;  %s51_s25 = sadd.s32 1, %s10152_s29 }
  0x46   : > { %s48_s9 = ssub.s32 %s10156_s30, %s10419_s27  ;;  %p58_p7 = scmp.ne.s32.totalorder %s10152_s29, %s10148_s28 }
  0x47   : > { %p49_p8 = scmp.eq.s32.totalorder %s48_s9, 0  ;;  %p59_p9 = scmp.eq.s32.totalorder %s10156_s30, 0 }
  0x48   : > { %p64_p10 = scmp.ne.s32.totalorder %s10148_s28, %s10144_s3  ;;  %p529_p11 = scmp.eq.s32.totalorder %s10317_s5, 1 }
  0x49   : > { %s10431_s26 = scalar_select %p49_p8, %s10152_s29, %s51_s25  }
  0x4a   : > { %p10435_p12 = por %p65_p1, %p64_p10  ;;  %p10439_p13 = por %p529_p11, %p58_p7 }
  0x4b   : > { %p535_p0 = scmp.eq.s32.totalorder %s8177_s4, 1  ;;  %p60_p2 = por %p59_p9, %p58_p7 }
  0x4c   : > { %s735_s15 = sand.u32 1, %s10152_s29   ;;  %p8583_p6 = scmp.lt.s32.totalorder %s10156_s30, 2 }
  0x4d   : > { %p10444_p4 = por %p535_p0, %p64_p10  ;;  %s8191_s22 = sshll.u32 %s735_s15, 3 }
  0x4e   : > { %s8480_s6 = sshll.u32 %s10156_s30, 3  ;;  %s11542_s17 = sld [smem:[#allocation35_spill]] }
  0x4f   : > { %s739_s25 = scalar_lea.vmem [#allocation2], %s8191_s22  ;;  %p10453_p8 = pnand %p8583_p6, %p60_p2 }
  0x50   : > { %s748_s9 = sshll.u32 %s739_s25, 4  ;;  %s736_s7 = scalar_lea.sflag [#allocation3], %s735_s15  ;;  %s749_s9 = int_to_ptr.vmem [resolvable:$true] %s748_s9 }
  0x51   : > { %p10040_p9 = pneg %p10453_p8 }
  0x54   : > { %s744_s23 = scalar_lea.hbm %s11542_s17, %s8480_s6  ;;  %s10043_s22 = scalar_lea.hbm %s11542_s17, 16 }
  0x55   : > { %s746_s12 = sshll.u32 %s744_s23, 4  ;;  %s747_s12 = int_to_ptr.hbm [resolvable:$true] %s746_s12 }
  0x56   : > { %s10036_s10 = sshra.s32 %s747_s12, 4  ;;  %s10037_s10 = int_to_ptr.hbm [resolvable:$true] %s10036_s10 }
  0x57   : > { %s10038_s11 = scalar_lea.hbm %s10037_s10, 8  ;;  %p10044_p0 = scmp.lt.s32.totalorder %s10037_s10, %s11542_s17 }
  0x58   : > { %p10039_p7 = scmp.ne.s32.totalorder %s10037_s10, %s10038_s11  ;;  %p10045_p2 = scmp.lt.s32.totalorder %s10043_s22, %s10038_s11 }
  0x5a   : > { %p10041_p10 = pnand %p10040_p9, %p10039_p7  ;;  %p10046_p6 = por %p10045_p2, %p10044_p0 }
  0x5c   : > { %p10042_p11 = pneg %p10041_p10 }
  0x5e   : > { %p10047_p5 = pnand %p10046_p6, %p10042_p11 }
  0x60   : > { %10050 = shalt.err (!%p10047_p5)
}
  0x61   : > { %8567 = dma.hbm_to_vmem [thread:$0]  (!%p10453_p8), %s747_s12, 128, %s749_s9, %s736_s7  }
  0x62   : > { %757 = sbr.rel (%p10322_p3) target bundleno = 7387 (0x1cdb), region = 108 }
  0x67   : > { %s10470_s15 = sand.u32 1, %s10148_s28  }
  0x68   : > { %s11503_s25 = sshll.u32 %s10470_s15, 3  ;;  %s760_s6 = scalar_lea.sflag [#allocation3], %s10470_s15 }
  0x69   : > { %s763_s10 = scalar_lea.vmem [#allocation2], %s11503_s25 }
  0x6a   : > { %10111 = dma.done.wait (%p10435_p12), %s760_s6, 128  }
  0x6b   : > { %10113 = vsyncadd (%p10435_p12), %s760_s6, 4294967168 }
  0x6c   : > { %10115 = dma.done.wait (%p65_p1), [#allocation7], 256  }
  0x6d   : > { %10117 = vsyncadd (%p65_p1), [#allocation7], 4294967040 }
  0x6e   : > { %10119 = dma.done.wait (%p65_p1), [#allocation10], 256  }
  0x6f   : > { %10121 = vsyncadd (%p65_p1), [#allocation10], 4294967040 }
  0x70   : > { %10123 = dma.done.wait (%p65_p1), [#allocation13], 256  }
  0x71   : > { %10125 = vsyncadd (%p65_p1), [#allocation13], 4294967040 }
  0x72   : > { %10127 = dma.done.wait (%p65_p1), [#allocation5], 16  }
  0x73   : > { %10129 = vsyncadd (%p65_p1), [#allocation5], 4294967280 }
  0x74   : > { %10131 = dma.done.wait (%p65_p1), [#allocation17], 640  }
  0x75   : > { %10133 = vsyncadd (%p65_p1), [#allocation17], 4294966656 }
  0x76   : > { %10135 = dma.done.wait (%p65_p1), [#allocation20], 147456  }
  0x77   : > { %10137 = vsyncadd (%p65_p1), [#allocation20], 4294819840 }
  0x78   : > { %824 = sfence }
  0x79   : > { %v10504_v0 = vld [vmem:[%s763_s10] sm:$0xff]  ;;  %s10173_s7 = smov 64   ;;  %s10174_s11 = smov 96   ;;  %vm933_vm0 = vcmask 1043456   ;;  %vm929_vm1 = vcmask 31744   ;;  %v10176_v12 = vmov 0  }
  0x7a   : > { %v887_v1 = vrot.slane %v10504_v0, 4  ;;  %997 = vst [vmem:[#allocation1] ss:$2 sm:$0xff] %v10504_v0  ;;  %v990_v7 = vld [vmem:[#allocation8] sm:$0xf]  ;;  %s10175_s24 = smov 112   ;;  %8649 = vset.pattern.permute.xlu2 %v10176_v12  ;;  %8650 = vset.pattern.permute.xlu0 %v10176_v12 }
  0x7b   : > { %s11544_s9 = sld [smem:[#allocation37_spill]]  ;;  %v922_v16 = vld [vmem:[#allocation6] sm:$0xf]  ;;  %v3117_v28 = vld [vmem:[%s11482_s13] sm:$0x3]  ;;  %vm1183_vm2 = vcmask 130048  }
  0x7c   : > { %v889_v2 = vmax.f32 %v10504_v0, %v887_v1  ;;  %v890_v10 = vadd.f32 %v887_v1, %v10504_v0  ;;  %s11545_s22 = sld [smem:[#allocation39_spill]]  ;;  %v3125_v29 = vld [vmem:[%s11483_s14] sm:$0x3]  ;;  %v957_v35 = vld [vmem:[#allocation9] sm:$0xf]  ;;  %vm4808_vm3 = vcmask 1041408  }
  0x7d   : > { %s11546_s8 = sld [smem:[#allocation43_spill]]  ;;  %s11505_s6 = smov 126   ;;  %vm4805_vm4 = vcmask 15360  }
  0x7e   : > { %892 = vrot.lane.b32.xlu0 %v889_v2, %s10173_s7  ;;  %s11547_s16 = sld [smem:[#allocation41_spill]]  ;;  %s7984_s17 = scalar_lea.sflag [#allocation4], %s10470_s15 }
  0x7f   : > { %s11548_s10 = sld [smem:[#allocation49_spill]] }
  0x80   : > { %s11549_s25 = sld [smem:[#allocation50_spill]] }
  0x81   : > { %v998_v5 = vld.sshfl [vmem:[#allocation1] sm:$0xff pattern:$0x75316420]  ;;  %v999_v6 = vld.sshfl [vmem:[#allocation1 + $0x8] sm:$0xff pattern:$0x75316420] }
  0x82   : > { %8212 = vmatpush.msk.msra.mxu2 %vm933_vm0, %v998_v5  ;;  %8214 = vmatpush.msk.msra.mxu3 %vm933_vm0, %v999_v6  ;;  %v923_v11 = vld [vmem:[%s11544_s9] sm:$0xf]  ;;  %s1403_s4 = sld [smem:[#allocation15]] }
  0x83   : > { %8213 = vmatmul.msk.f32.vlgmr.msra.gmra.mxu2 %vm929_vm1, %v990_v7  ;;  %8215 = vmatmul.msk.f32.vlgmr.msra.gmra.mxu3 %vm929_vm1, %v990_v7  ;;  %v991_v13 = vld [vmem:[%s11545_s22] sm:$0xf]  ;;  %s11551_s0 = sld [smem:[#allocation47_spill]] }
  0x84   : > { %926 = vperm.xlu2 %8649, %v923_v11   ;;  %v1228_v27 = vld [vmem:[%s11546_s8] sm:$0xf]  ;;  %s11552_s23 = sld [smem:[#allocation48_spill]] }
  0x85   : > { %v958_v36 = vld [vmem:[%s11547_s16] sm:$0xf]  ;;  %s10998_s12 = sld [smem:[#allocation15 + $0x1]] }
  0x86   : > { %v4779_v37 = vld [vmem:[%s11548_s10] sm:$0x3] }
  0x87   : > { %v4787_v38 = vld [vmem:[%s11549_s25] sm:$0x3] }
  0x88   : > { %s1407_s2 = ssub.f32 1.0, %s1403_s4 }
  0x8c   : > { %994 = vperm.xlu2 %8649, %v991_v13  }
  0xde   : > { %v927_v19 = vpop.permute.xlu2 %926 }
  0xe6   : > { %v995_v20 = vpop.permute.xlu2 %994 }
  0xf0   : > { %v893_v3 = vpop.permute.xlu0 %892 }
  0xf1   : > { %v895_v4 = vmax.f32 %v889_v2, %v893_v3 }
  0xf3   : > { %902 = vrot.lane.b32.xlu0 %v895_v4, %s10174_s11 }
 0x106   : > { %v1024_v21 = vpop.f32.mrf.mxu2  ;;  %v1044_v31 = vpop.f32.mrf.mxu3 }
 0x107   : > { %v1025_v22 = vadd.f32 %v1024_v21, %v995_v20  ;;  %v1045_v34 = vadd.f32 %v1044_v31, %v995_v20 }
 0x165   : > { %v903_v8 = vpop.permute.xlu0 %902 }
 0x166   : > { %v905_v9 = vmax.f32 %v895_v4, %v903_v8 }
 0x168   : > { %912 = vrot.lane.b32.xlu1 %v905_v9, %s10175_s24 }
 0x170   : > { %897 = vrot.lane.b32.xlu1 %v890_v10, %s10173_s7 }
 0x1da   : > { %v913_v14 = vpop.permute.xlu1 %912 }
 0x1db   : > { %v915_v15 = vmax.f32 %v905_v9, %v913_v14 }
 0x1dd   : > { %8208 = vmatpush.msk.msra.mxu0 %vm933_vm0, %v915_v15 }
 0x1de   : > { %8209 = vmatmul.msk.f32.vlgmr.msra.gmra.mxu0 %vm929_vm1, %v922_v16 }
 0x1df   : > { %8216 = vmatpush.msk.msrb.mxu0 %vm933_vm0, %v1025_v22 }
 0x1e1   : > { %8228 = vmatpush.msk.msra.mxu0 %vm933_vm0, %v1025_v22 }
 0x1e2   : > { %v898_v17 = vpop.permute.xlu1 %897 }
 0x1e3   : > { %v900_v18 = vadd.f32 %v898_v17, %v890_v10 }
 0x1e5   : > { %907 = vrot.lane.b32.xlu0 %v900_v18, %s10174_s11 }
 0x1ed   : > { %961 = vperm.xlu0 %8650, %v958_v36   ;;  %v883_v36 = vld [vmem:[#allocation18 + $0x10] sm:$0xff] }
 0x1f5   : > { %4782 = vperm.xlu0 %8650, %v4779_v37   ;;  %v884_v37 = vld [vmem:[#allocation18 + $0x18] sm:$0xff] }
 0x1fd   : > { %4794 = vperm.xlu0 %8650, %v4787_v38   ;;  %v881_v38 = vld [vmem:[#allocation18] sm:$0xff] }
 0x257   : > { %v908_v23 = vpop.permute.xlu0 %907 }
 0x258   : > { %v910_v24 = vadd.f32 %v908_v23, %v900_v18 }
 0x25a   : > { %917 = vrot.lane.b32.xlu2 %v910_v24, %s10175_s24 }
 0x25b   : > { %v954_v25 = vpop.f32.mrf.mxu0 }
 0x25c   : > { %v10530_v26 = vadd.f32 %v954_v25, %v927_v19 }
 0x25e   : > { %1047 = vxpose.xlu1.b32.start.end [1/1] (short) (narrow) %v10530_v26, 16 }
 0x262   : > { %1231 = vperm.xlu2 %8649, %v1228_v27  }
 0x26a   : > { %3120 = vperm.xlu2 %8649, %v3117_v28  }
 0x272   : > { %3132 = vperm.xlu2 %8649, %v3125_v29  }
 0x2b1   : > { %8651 = vset.pattern.permute.xlu1 %v10176_v12 }
 0x2b4   : > { %v918_v30 = vpop.permute.xlu2 %917 }
 0x2b5   : > { %v920_v32 = vadd.f32 %v918_v30, %v910_v24  ;;  %v962_v24 = vpop.permute.xlu0 %961 }
 0x2b7   : > { %v921_v33 = vmul.f32 0.0625, %v920_v32  ;;  %v1283_v32 = vld [vmem:[#allocation12] sm:$0xf] }
 0x2b9   : > { %8210 = vmatpush.msk.msra.mxu1 %vm933_vm0, %v921_v33  ;;  %v1227_v33 = vld [vmem:[#allocation11] sm:$0xf] }
 0x2ba   : > { %8211 = vmatmul.msk.f32.vlgmr.msra.gmra.mxu1 %vm929_vm1, %v957_v35 }
 0x2bb   : > { %8219 = vmatpush.msk.msrb.mxu1 %vm933_vm0, %v1045_v34 }
 0x2bd   : > { %8230 = vmatpush.msk.msra.mxu1 %vm933_vm0, %v1045_v34 }
 0x302   : > { %v1063_v39 = vpop.trf.xlu1 }
 0x303   : > { %8217 = vmatmul.msk.f32.vlgmr.msrb.gmra.mxu0 %vm929_vm1, %v1063_v39  ;;  %8220 = vmatmul.msk.f32.vlgmr.msrb.gmra.mxu1 %vm929_vm1, %v1063_v39  ;;  %v882_v39 = vld [vmem:[#allocation18 + $0x8] sm:$0xff] }
 0x304   : > { %1387 = vmatpush.msrb.mxu0 %v884_v37  ;;  %v1667_v37 = vld [vmem:[#allocation19 + $0x2b0] sm:$0xff] }
 0x306   : > { %1388 = vmatpush.msrb.mxu0 %v882_v39  ;;  %v1701_v39 = vld [vmem:[#allocation19 + $0x3c0] sm:$0xff] }
 0x30a   : > { %v1064_v40 = vpop.trf.xlu1 }
 0x30b   : > { %8218 = vmatmul.msk.f32.gmra.mxu0 %vm929_vm1, %v1064_v40  ;;  %8221 = vmatmul.msk.f32.gmra.mxu1 %vm929_vm1, %v1064_v40 }
 0x313   : > { %8229 = vmatmul.msk.f32.vlgmr.msra.gmra.mxu0 %vm929_vm1, %v1283_v32  ;;  %8231 = vmatmul.msk.f32.vlgmr.msra.gmra.mxu1 %vm929_vm1, %v1283_v32 }
 0x337   : > { %v987_v41 = vpop.f32.mrf.mxu1 }
 0x338   : > { %v988_v28 = vadd.f32 %v987_v41, %v962_v24  ;;  %v1673_v24 = vld [vmem:[#allocation19 + $0x2e0] sm:$0xff] }
 0x380   : > { %v1108_v42 = vpop.f32.mrf.mxu0  ;;  %v1131_v43 = vpop.f32.mrf.mxu1 }
 0x388   : > { %v1111_v44 = vpop.f32.mrf.mxu0  ;;  %v1134_v45 = vpop.f32.mrf.mxu1 }
 0x389   : > { %v1137_v46 = vmax.f32 %v1108_v42, %v1111_v44  ;;  %v1144_v47 = vmax.f32 %v1131_v43, %v1134_v45 }
 0x38b   : > { %v1138_v48 = vrot.slane %v1137_v46, 4  ;;  %v1145_v49 = vrot.slane %v1144_v47, 4 }
 0x38d   : > { %v1139_v50 = vmax.f32 %v1137_v46, %v1138_v48  ;;  %v1146_v51 = vmax.f32 %v1144_v47, %v1145_v49 }
 0x38f   : > { %v1140_v52 = vrot.slane %v1139_v50, 2  ;;  %v1147_v53 = vrot.slane %v1146_v51, 2 }
 0x390   : > { %v1324_v48 = vpop.f32.mrf.mxu1 }
 0x391   : > { %v1141_v54 = vmax.f32 %v1139_v50, %v1140_v52  ;;  %v1148_v55 = vmax.f32 %v1146_v51, %v1147_v53 }
 0x393   : > { %v1142_v56 = vrot.slane %v1141_v54, 1  ;;  %v1149_v57 = vrot.slane %v1148_v55, 1 }
 0x395   : > { %v1143_v58 = vmax.f32 %v1141_v54, %v1142_v56  ;;  %v1150_v59 = vmax.f32 %v1148_v55, %v1149_v57  ;;  %v1404_v54 = vstv %s1403_s4  ;;  %s5474_s4 = ssub.f32 1.0, %s10998_s12 }
 0x397   : > { %v1151_v60 = vsub.f32 %v1108_v42, %v1143_v58  ;;  %v1153_v61 = vsub.f32 %v1111_v44, %v1143_v58  ;;  %v1152_v62 = vsub.f32 %v1131_v43, %v1150_v59  ;;  %v1154_v63 = vsub.f32 %v1134_v45, %v1150_v59  ;;  %v1232_v44 = vpop.permute.xlu2 %1231  ;;  %v1304_v45 = vpop.f32.mrf.mxu0 }
 0x399   : > { %v1155_v1 = vmul.f32 1.442695, %v1151_v60  ;;  %v1159_v2 = vmul.f32 1.442695, %v1153_v61  ;;  %v1157_v3 = vmul.f32 1.442695, %v1152_v62 }
 0x39a   : > { %v1161_v4 = vmul.f32 1.442695, %v1154_v63 }
 0x39b   : > { %8652 = vpow2.f32 %v1155_v1 }
 0x39c   : > { %8654 = vpow2.f32 %v1159_v2 }
 0x39d   : > { %8656 = vpow2.f32 %v1157_v3  ;;  %v1418_v3 = vld [vmem:[#allocation14] sm:$0xf] }
 0x39e   : > { %8658 = vpow2.f32 %v1161_v4 }
 0x3a1   : > { %v8653_v5 = vpop.eup %8652 }
 0x3a2   : > { %v8655_v6 = vpop.eup %8654 }
 0x3a3   : > { %v8657_v7 = vpop.eup %8656  ;;  %v1163_v8 = vadd.f32 %v8655_v6, %v8653_v5 }
 0x3a4   : > { %v8659_v9 = vpop.eup %8658 }
 0x3a5   : > { %v1164_v10 = vrot.slane %v1163_v8, 4  ;;  %v1170_v11 = vadd.f32 %v8659_v9, %v8657_v7 }
 0x3a7   : > { %v1171_v12 = vrot.slane %v1170_v11, 4  ;;  %v1165_v13 = vadd.f32 %v1164_v10, %v1163_v8 }
 0x3a9   : > { %v1166_v14 = vrot.slane %v1165_v13, 2  ;;  %v1172_v15 = vadd.f32 %v1171_v12, %v1170_v11 }
 0x3ab   : > { %v1167_v16 = vadd.f32 %v1166_v14, %v1165_v13  ;;  %v1173_v17 = vrot.slane %v1172_v15, 2  ;;  %v1476_v13 = vld [vmem:[%s11551_s0] sm:$0x3] }
 0x3ad   : > { %v1168_v18 = vrot.slane %v1167_v16, 1  ;;  %v1174_v19 = vadd.f32 %v1173_v17, %v1172_v15 }
 0x3af   : > { %v1169_v20 = vadd.f32 %v1168_v18, %v1167_v16  ;;  %v1175_v21 = vrot.slane %v1174_v19, 1 }
 0x3b1   : > { %8660 = vrcp.f32 %v1169_v20  ;;  %v1176_v22 = vadd.f32 %v1175_v21, %v1174_v19 }
 0x3b3   : > { %8662 = vrcp.f32 %v1176_v22  ;;  %v1675_v22 = vld [vmem:[#allocation19 + $0x2f0] sm:$0xff] }
 0x3b7   : > { %v8661_v23 = vpop.eup %8660 }
 0x3b8   : > { %v1181_v25 = vmul.f32 %v8661_v23, %v8655_v6  ;;  %v1179_v30 = vmul.f32 %v8661_v23, %v8653_v5  ;;  %v1676_v23 = vld [vmem:[#allocation19 + $0x2f8] sm:$0xff] }
 0x3b9   : > { %v8663_v27 = vpop.eup %8662 }
 0x3ba   : > { %1201 = vmatpush.msrb.mxu2 %v1181_v25  ;;  %v1182_v29 = vmul.f32 %v8663_v27, %v8659_v9  ;;  %v1180_v31 = vmul.f32 %v8663_v27, %v8657_v7  ;;  %v1674_v25 = vld [vmem:[#allocation19 + $0x2e8] sm:$0xff]  ;;  %v1671_v27 = vld [vmem:[#allocation19 + $0x2d0] sm:$0xff] }
 0x3bc   : > { %1221 = vmatpush.msrb.mxu3 %v1182_v29  ;;  %1202 = vmatpush.msrb.mxu2 %v1179_v30  ;;  %v1707_v29 = vld [vmem:[#allocation19 + $0x3f0] sm:$0xff]  ;;  %v1708_v30 = vld [vmem:[#allocation19 + $0x3f8] sm:$0xff] }
 0x3bd   : > { %8222 = vmatmul.msk.f32.vlgmr.msrb.gmra.mxu2 %vm1183_vm2, %v988_v28 }
 0x3be   : > { %1222 = vmatpush.msrb.mxu3 %v1180_v31  ;;  %v1705_v31 = vld [vmem:[#allocation19 + $0x3e0] sm:$0xff] }
 0x3bf   : > { %8223 = vmatmul.msk.f32.vlgmr.msrb.gmra.mxu3 %vm1183_vm2, %v988_v28  ;;  %v1672_v28 = vld [vmem:[#allocation19 + $0x2d8] sm:$0xff] }
 0x440   : > { %v1204_v34 = vpop.f32.mrf.mxu2 }
 0x441   : > { %8224 = vmatpush.msk.msra.mxu2 %vm933_vm0, %v1204_v34  ;;  %v1706_v34 = vld [vmem:[#allocation19 + $0x3e8] sm:$0xff] }
 0x442   : > { %v1224_v35 = vpop.f32.mrf.mxu3  ;;  %8225 = vmatmul.msk.f32.vlgmr.msra.gmra.mxu2 %vm929_vm1, %v1227_v33 }
 0x443   : > { %8226 = vmatpush.msk.msra.mxu3 %vm933_vm0, %v1224_v35  ;;  %8232 = vmatpush.msk.msrb.mxu2 %vm933_vm0, %v10530_v26  ;;  %v1408_v26 = vstv %s1407_s2  ;;  %v1703_v35 = vld [vmem:[#allocation19 + $0x3d0] sm:$0xff] }
 0x444   : > { %8227 = vmatmul.msk.f32.vlgmr.msra.gmra.mxu3 %vm929_vm1, %v1227_v33  ;;  %v1409_v42 = vmul.f32 %v1408_v26, %v10504_v0  ;;  %v1670_v33 = vld [vmem:[#allocation19 + $0x2c8] sm:$0xff]  ;;  %v1665_v26 = vld [vmem:[#allocation19 + $0x2a0] sm:$0xff] }
 0x445   : > { %1367 = vmatpush.msrb.mxu3 %v883_v36  ;;  %v1704_v36 = vld [vmem:[#allocation19 + $0x3d8] sm:$0xff] }
 0x446   : > { %1411 = vst [vmem:[#allocation1] ss:$2 sm:$0xff] %v1409_v42  ;;  %v1666_v42 = vld [vmem:[#allocation19 + $0x2a8] sm:$0xff] }
 0x447   : > { %1368 = vmatpush.msrb.mxu3 %v881_v38  ;;  %v1668_v38 = vld [vmem:[#allocation19 + $0x2b8] sm:$0xff] }
 0x44a   : > { %8233 = vmatmul.msk.f32.vlgmr.msrb.gmra.mxu2 %vm929_vm1, %v1283_v32  ;;  %v1669_v32 = vld [vmem:[#allocation19 + $0x2c0] sm:$0xff] }
 0x44d   : > { %v1413_v57 = vld.sshfl [vmem:[#allocation1 + $0x8] sm:$0xff pattern:$0x75316420]  ;;  %v1412_v4 = vld.sshfl [vmem:[#allocation1] sm:$0xff pattern:$0x75316420] }
 0x4c5   : > { %v1260_v40 = vpop.f32.mrf.mxu2 }
 0x4c6   : > { %v1261_v49 = vadd.f32 %v1260_v40, %v1232_v44 }
 0x4c7   : > { %v1280_v43 = vpop.f32.mrf.mxu3 }
 0x4c8   : > { %v1281_v46 = vadd.f32 %v1280_v43, %v1232_v44  ;;  %v1393_v55 = vperm.slane %v1261_v49, 0  ;;  %v1397_v59 = vperm.slane %v1261_v49, 1  ;;  %v1702_v43 = vld [vmem:[#allocation19 + $0x3c8] sm:$0xff]  ;;  %v1699_v44 = vld [vmem:[#allocation19 + $0x3b0] sm:$0xff] }
 0x4c9   : > { %v1698_v49 = vld [vmem:[#allocation19 + $0x3a8] sm:$0xff] }
 0x4ca   : > { %v1394_v47 = vperm.slane %v1281_v46, 0  ;;  %v1398_v50 = vperm.slane %v1281_v46, 1  ;;  %v1395_v61 = vmul.f32 %v1393_v55, %v1304_v45  ;;  %v1700_v45 = vld [vmem:[#allocation19 + $0x3b8] sm:$0xff]  ;;  %v1663_v46 = vld [vmem:[#allocation19 + $0x290] sm:$0xff] }
 0x4cb   : > { %v1660_v55 = vld [vmem:[#allocation19 + $0x278] sm:$0xff] }
 0x4cc   : > { %v1396_v52 = vmul.f32 %v1394_v47, %v1324_v48  ;;  %v1664_v47 = vld [vmem:[#allocation19 + $0x298] sm:$0xff]  ;;  %v1697_v48 = vld [vmem:[#allocation19 + $0x3a0] sm:$0xff] }
 0x4cd   : > { %v1347_v41 = vpop.f32.mrf.mxu2 }
 0x4ce   : > { %8234 = vmatmul.msk.f32.vlgmr.msrb.gmra.mxu3 %vm1183_vm2, %v1347_v41  ;;  %8235 = vmatmul.msk.f32.vlgmr.msrb.gmra.mxu0 %vm1183_vm2, %v1347_v41 }
 0x54b   : > { %v1390_v51 = vpop.f32.mrf.mxu0 }
 0x54c   : > { %v1400_v53 = vmul.f32 %v1398_v50, %v1390_v51  ;;  %v1661_v50 = vld [vmem:[#allocation19 + $0x280] sm:$0xff]  ;;  %v1662_v51 = vld [vmem:[#allocation19 + $0x288] sm:$0xff] }
 0x54e   : > { %v1402_v56 = vadd.f32 %v1400_v53, %v1396_v52  ;;  %v1659_v52 = vld [vmem:[#allocation19 + $0x270] sm:$0xff] }
 0x54f   : > { %v1695_v53 = vld [vmem:[#allocation19 + $0x390] sm:$0xff] }
 0x550   : > { %v1406_v58 = vmul.f32 %v1404_v54, %v1402_v56  ;;  %v1693_v56 = vld [vmem:[#allocation19 + $0x380] sm:$0xff] }
 0x551   : > { %v1370_v60 = vpop.f32.mrf.mxu3 }
 0x552   : > { %v1417_v62 = vadd.f32 %v1413_v57, %v1406_v58  ;;  %v1399_v63 = vmul.f32 %v1397_v59, %v1370_v60  ;;  %v1694_v57 = vld [vmem:[#allocation19 + $0x388] sm:$0xff]  ;;  %v1657_v60 = vld [vmem:[#allocation19 + $0x260] sm:$0xff] }
 0x554   : > { %v1420_v1 = vmax.f32 %v1417_v62, 0.0  ;;  %v1401_v2 = vadd.f32 %v1399_v63, %v1395_v61  ;;  %v1658_v61 = vld [vmem:[#allocation19 + $0x268] sm:$0xff]  ;;  %v1691_v62 = vld [vmem:[#allocation19 + $0x370] sm:$0xff]  ;;  %v1692_v63 = vld [vmem:[#allocation19 + $0x378] sm:$0xff] }
 0x556   : > { %v1405_v5 = vmul.f32 %v1404_v54, %v1401_v2  ;;  %8238 = vmatpush.msk.msra.mxu2 %vm933_vm0, %v1420_v1  ;;  %v1696_v54 = vld [vmem:[#allocation19 + $0x398] sm:$0xff]  ;;  %v1655_v1 = vld [vmem:[#allocation19 + $0x250] sm:$0xff] }
 0x557   : > { %8239 = vmatmul.msk.f32.vlgmr.msra.gmra.mxu2 %vm929_vm1, %v1418_v3  ;;  %v1656_v2 = vld [vmem:[#allocation19 + $0x258] sm:$0xff] }
 0x558   : > { %v1416_v6 = vadd.f32 %v1412_v4, %v1405_v5  ;;  %v1690_v4 = vld [vmem:[#allocation19 + $0x368] sm:$0xff]  ;;  %v1653_v5 = vld [vmem:[#allocation19 + $0x240] sm:$0xff] }
 0x55a   : > { %v1419_v7 = vmax.f32 %v1416_v6, 0.0  ;;  %v1654_v6 = vld [vmem:[#allocation19 + $0x248] sm:$0xff] }
 0x55c   : > { %8236 = vmatpush.msk.msrb.mxu1 %vm933_vm0, %v1419_v7  ;;  %v1651_v7 = vld [vmem:[#allocation19 + $0x230] sm:$0xff] }
 0x55d   : > { %8237 = vmatmul.msk.f32.vlgmr.msrb.gmra.mxu1 %vm929_vm1, %v1418_v3  ;;  %v1689_v3 = vld [vmem:[#allocation19 + $0x360] sm:$0xff] }
 0x5da   : > { %v1467_v8 = vpop.f32.mrf.mxu2  ;;  %v1447_v9 = vpop.f32.mrf.mxu1 }
 0x5db   : > { %v1472_v10 = vrot.slane %v1467_v8, 4  ;;  %v1687_v8 = vld [vmem:[#allocation19 + $0x350] sm:$0xff] }
 0x5dd   : > { %v1473_v11 = vsel %vm933_vm0, %v1447_v9, %v1472_v10  ;;  %v1688_v9 = vld [vmem:[#allocation19 + $0x358] sm:$0xff] }
 0x5de   : > { %v10579_v12 = vadd.f32 %v1473_v11, %v10504_v0  ;;  %v8244_v0 = vld [vmem:[%s11551_s0 + $0x2] sm:$0x3]  ;;  %v1652_v10 = vld [vmem:[#allocation19 + $0x238] sm:$0xff]  ;;  %v1685_v11 = vld [vmem:[#allocation19 + $0x340] sm:$0xff] }
 0x5e0   : > { %11550 = vst [vmem:[#allocation31_spill] sm:$0xff] %v10579_v12 }
 0x5e1   : > { %1478 = vst [vmem:[#allocation1] ss:$2 sm:$0xff] %v10579_v12 }
 0x5e8   : > { %v1479_v14 = vld.sshfl [vmem:[#allocation1] sm:$0xff pattern:$0x75316420]  ;;  %v1480_v15 = vld.sshfl [vmem:[#allocation1 + $0x8] sm:$0xff pattern:$0x75316420] }
 0x5e9   : > { %1594 = vst [vmem:[#allocation1] ss:$2 sm:$0xff] %v10579_v12  ;;  %8240 = vmatpush.msk.msra.mxu3 %vm933_vm0, %v1479_v14  ;;  %8242 = vmatpush.msk.msra.mxu0 %vm933_vm0, %v1480_v15 }
 0x5ea   : > { %8241 = vmatmul.msk.f32.vlgmr.msra.gmra.mxu3 %vm929_vm1, %v1476_v13  ;;  %8243 = vmatmul.msk.f32.vlgmr.msra.gmra.mxu0 %vm929_vm1, %v1476_v13  ;;  %v1686_v13 = vld [vmem:[#allocation19 + $0x348] sm:$0xff] }
 0x5eb   : > { %1709 = vmatpush.msrb.mxu3 %v1675_v22  ;;  %1729 = vmatpush.msrb.mxu0 %v1707_v29  ;;  %v1684_v22 = vld [vmem:[#allocation19 + $0x338] sm:$0xff]  ;;  %v1646_v29 = vld [vmem:[#allocation19 + $0x208] sm:$0xff] }
 0x5ed   : > { %1710 = vmatpush.msrb.mxu3 %v1673_v24  ;;  %1730 = vmatpush.msrb.mxu0 %v1705_v31  ;;  %v1648_v24 = vld [vmem:[#allocation19 + $0x218] sm:$0xff] }
 0x5ee   : > { %v1559_v31 = vld [vmem:[#allocation19 + $0xf8] sm:$0xff] }
 0x5ef   : > { %1711 = vmatpush.msrb.mxu3 %v1671_v27  ;;  %1731 = vmatpush.msrb.mxu0 %v1703_v35  ;;  %v1682_v27 = vld [vmem:[#allocation19 + $0x328] sm:$0xff]  ;;  %v1680_v35 = vld [vmem:[#allocation19 + $0x318] sm:$0xff] }
 0x5f0   : > { %v1595_v16 = vld.sshfl [vmem:[#allocation1] sm:$0xff pattern:$0x75316420]  ;;  %v1596_v17 = vld.sshfl [vmem:[#allocation1 + $0x8] sm:$0xff pattern:$0x75316420] }
 0x5f1   : > { %1871 = vst [vmem:[#allocation1] ss:$2 sm:$0xff] %v10579_v12  ;;  %8245 = vmatpush.msk.msra.mxu1 %vm933_vm0, %v1595_v16  ;;  %8247 = vmatpush.msk.msrb.mxu2 %vm933_vm0, %v1596_v17  ;;  %v1650_v16 = vld [vmem:[#allocation19 + $0x228] sm:$0xff]  ;;  %v1683_v17 = vld [vmem:[#allocation19 + $0x330] sm:$0xff] }
 0x5f2   : > { %8246 = vmatmul.msk.f32.vlgmr.msra.gmra.mxu1 %vm929_vm1, %v8244_v0  ;;  %8248 = vmatmul.msk.f32.vlgmr.msrb.gmra.mxu2 %vm929_vm1, %v8244_v0  ;;  %v1649_v0 = vld [vmem:[#allocation19 + $0x220] sm:$0xff] }
 0x5f3   : > { %1749 = vmatpush.msrb.mxu1 %v1676_v23  ;;  %1769 = vmatpush.msra.mxu2 %v1708_v30  ;;  %v1647_v23 = vld [vmem:[#allocation19 + $0x210] sm:$0xff] }
 0x5f4   : > { %1712 = vmatpush.msrb.mxu3 %v1669_v32  ;;  %1732 = vmatpush.msrb.mxu0 %v1701_v39  ;;  %v1558_v30 = vld [vmem:[#allocation19 + $0xf0] sm:$0xff]  ;;  %v1556_v32 = vld [vmem:[#allocation19 + $0xe0] sm:$0xff]  ;;  %v1678_v39 = vld [vmem:[#allocation19 + $0x308] sm:$0xff] }
 0x5f5   : > { %1750 = vmatpush.msrb.mxu1 %v1674_v25  ;;  %1770 = vmatpush.msra.mxu2 %v1706_v34  ;;  %v1681_v25 = vld [vmem:[#allocation19 + $0x320] sm:$0xff]  ;;  %v1679_v34 = vld [vmem:[#allocation19 + $0x310] sm:$0xff] }
 0x5f6   : > { %1713 = vmatpush.msrb.mxu3 %v1667_v37  ;;  %1733 = vmatpush.msrb.mxu0 %v1699_v44  ;;  %v1591_v44 = vld [vmem:[#allocation19 + $0x1f8] sm:$0xff] }
 0x5f7   : > { %1751 = vmatpush.msrb.mxu1 %v1672_v28  ;;  %1771 = vmatpush.msra.mxu2 %v1704_v36  ;;  %v1645_v28 = vld [vmem:[#allocation19 + $0x200] sm:$0xff] }
 0x5f8   : > { %v10598_v18 = vld.sshfl [vmem:[#allocation1] sm:$0xff pattern:$0x75316420]  ;;  %v10600_v19 = vld.sshfl [vmem:[#allocation1 + $0x8] sm:$0xff pattern:$0x75316420]  ;;  %1714 = vmatpush.msrb.mxu3 %v1665_v26  ;;  %1734 = vmatpush.msrb.mxu0 %v1697_v48 }
 0x5f9   : > { %2070 = vst [vmem:[#allocation1] ss:$2 sm:$0xff] %v10579_v12  ;;  %1752 = vmatpush.msrb.mxu1 %v1670_v33  ;;  %1772 = vmatpush.msra.mxu2 %v1702_v43  ;;  %v1557_v33 = vld [vmem:[#allocation19 + $0xe8] sm:$0xff]  ;;  %v1554_v26 = vld [vmem:[#allocation19 + $0xd0] sm:$0xff] }
 0x5fa   : > { %1715 = vmatpush.msrb.mxu3 %v1663_v46  ;;  %1735 = vmatpush.msrb.mxu0 %v1695_v53  ;;  %v1590_v43 = vld [vmem:[#allocation19 + $0x1f0] sm:$0xff]  ;;  %v1553_v46 = vld [vmem:[#allocation19 + $0xc8] sm:$0xff]  ;;  %v1548_v53 = vld [vmem:[#allocation19 + $0xa0] sm:$0xff] }
 0x5fb   : > { %1753 = vmatpush.msrb.mxu1 %v1668_v38  ;;  %1773 = vmatpush.msra.mxu2 %v1700_v45  ;;  %v1677_v38 = vld [vmem:[#allocation19 + $0x300] sm:$0xff]  ;;  %v1589_v48 = vld [vmem:[#allocation19 + $0x1e8] sm:$0xff] }
 0x5fc   : > { %1716 = vmatpush.msrb.mxu3 %v1661_v50  ;;  %1736 = vmatpush.msrb.mxu0 %v1693_v56  ;;  %v1552_v45 = vld [vmem:[#allocation19 + $0xc0] sm:$0xff]  ;;  %v1551_v50 = vld [vmem:[#allocation19 + $0xb8] sm:$0xff]  ;;  %v1585_v56 = vld [vmem:[#allocation19 + $0x1c8] sm:$0xff] }
 0x5fd   : > { %1754 = vmatpush.msrb.mxu1 %v1666_v42  ;;  %1774 = vmatpush.msra.mxu2 %v1698_v49  ;;  %v1555_v42 = vld [vmem:[#allocation19 + $0xd8] sm:$0xff]  ;;  %v1550_v49 = vld [vmem:[#allocation19 + $0xb0] sm:$0xff] }
 0x5fe   : > { %1717 = vmatpush.msrb.mxu3 %v1659_v52  ;;  %1737 = vmatpush.msrb.mxu0 %v1691_v62  ;;  %v1587_v52 = vld [vmem:[#allocation19 + $0x1d8] sm:$0xff] }
 0x5ff   : > { %1755 = vmatpush.msrb.mxu1 %v1664_v47  ;;  %1775 = vmatpush.msra.mxu2 %v1696_v54  ;;  %v1588_v47 = vld [vmem:[#allocation19 + $0x1e0] sm:$0xff]  ;;  %v1549_v54 = vld [vmem:[#allocation19 + $0xa8] sm:$0xff]  ;;  %v1583_v62 = vld [vmem:[#allocation19 + $0x1b8] sm:$0xff] }
 0x600   : > { %v10603_v20 = vld.sshfl [vmem:[#allocation1] sm:$0xff pattern:$0x75316420]  ;;  %v10605_v21 = vld.sshfl [vmem:[#allocation1 + $0x8] sm:$0xff pattern:$0x75316420]  ;;  %1718 = vmatpush.msrb.mxu3 %v1657_v60  ;;  %1738 = vmatpush.msrb.mxu0 %v1689_v3 }
 0x601   : > { %2269 = vst [vmem:[#allocation1] ss:$2 sm:$0xff] %v10579_v12  ;;  %1756 = vmatpush.msrb.mxu1 %v1662_v51  ;;  %1776 = vmatpush.msra.mxu2 %v1694_v57  ;;  %v1586_v51 = vld [vmem:[#allocation19 + $0x1d0] sm:$0xff]  ;;  %v1547_v60 = vld [vmem:[#allocation19 + $0x98] sm:$0xff]  ;;  %v1580_v3 = vld [vmem:[#allocation19 + $0x1a0] sm:$0xff] }
 0x602   : > { %1719 = vmatpush.msrb.mxu3 %v1655_v1  ;;  %1739 = vmatpush.msrb.mxu0 %v1687_v8  ;;  %v1546_v57 = vld [vmem:[#allocation19 + $0x90] sm:$0xff]  ;;  %v1545_v1 = vld [vmem:[#allocation19 + $0x88] sm:$0xff] }
 0x603   : > { %1757 = vmatpush.msrb.mxu1 %v1660_v55  ;;  %1777 = vmatpush.msra.mxu2 %v1692_v63  ;;  %v1584_v55 = vld [vmem:[#allocation19 + $0x1c0] sm:$0xff]  ;;  %v1578_v8 = vld [vmem:[#allocation19 + $0x190] sm:$0xff] }
 0x604   : > { %1720 = vmatpush.msrb.mxu3 %v1653_v5  ;;  %1740 = vmatpush.msrb.mxu0 %v1685_v11  ;;  %v1544_v63 = vld [vmem:[#allocation19 + $0x80] sm:$0xff]  ;;  %v1541_v11 = vld [vmem:[#allocation19 + $0x68] sm:$0xff] }
 0x605   : > { %1758 = vmatpush.msrb.mxu1 %v1658_v61  ;;  %1778 = vmatpush.msra.mxu2 %v1690_v4  ;;  %v1582_v61 = vld [vmem:[#allocation19 + $0x1b0] sm:$0xff]  ;;  %v1581_v4 = vld [vmem:[#allocation19 + $0x1a8] sm:$0xff] }
 0x606   : > { %1721 = vmatpush.msrb.mxu3 %v1651_v7  ;;  %1741 = vmatpush.msrb.mxu0 %v1683_v17  ;;  %v1543_v7 = vld [vmem:[#allocation19 + $0x78] sm:$0xff] }
 0x607   : > { %1759 = vmatpush.msrb.mxu1 %v1656_v2  ;;  %1779 = vmatpush.msra.mxu2 %v1688_v9  ;;  %v1579_v9 = vld [vmem:[#allocation19 + $0x198] sm:$0xff] }
 0x608   : > { %v10608_v40 = vld.sshfl [vmem:[#allocation1] sm:$0xff pattern:$0x75316420]  ;;  %v10610_v41 = vld.sshfl [vmem:[#allocation1 + $0x8] sm:$0xff pattern:$0x75316420]  ;;  %1722 = vmatpush.msrb.mxu3 %v1649_v0  ;;  %1742 = vmatpush.msrb.mxu0 %v1681_v25 }
 0x609   : > { %2323 = vst [vmem:[#allocation1] ss:$2 sm:$0xff] %v10579_v12  ;;  %1760 = vmatpush.msrb.mxu1 %v1654_v6  ;;  %1780 = vmatpush.msra.mxu2 %v1686_v13  ;;  %v1542_v6 = vld [vmem:[#allocation19 + $0x70] sm:$0xff]  ;;  %v1576_v13 = vld [vmem:[#allocation19 + $0x180] sm:$0xff]  ;;  %v1577_v0 = vld [vmem:[#allocation19 + $0x188] sm:$0xff] }
 0x60a   : > { %1723 = vmatpush.msrb.mxu3 %v1647_v23  ;;  %1743 = vmatpush.msrb.mxu0 %v1679_v34  ;;  %v1539_v17 = vld [vmem:[#allocation19 + $0x58] sm:$0xff]  ;;  %v1574_v23 = vld [vmem:[#allocation19 + $0x170] sm:$0xff]  ;;  %v1537_v25 = vld [vmem:[#allocation19 + $0x48] sm:$0xff] }
 0x60b   : > { %1761 = vmatpush.msrb.mxu1 %v1652_v10  ;;  %1781 = vmatpush.msra.mxu2 %v1684_v22  ;;  %v1540_v10 = vld [vmem:[#allocation19 + $0x60] sm:$0xff]  ;;  %v1571_v34 = vld [vmem:[#allocation19 + $0x158] sm:$0xff] }
 0x60c   : > { %1724 = vmatpush.msrb.mxu3 %v1645_v28  ;;  %1744 = vmatpush.msrb.mxu0 %v1677_v38  ;;  %v1536_v22 = vld [vmem:[#allocation19 + $0x40] sm:$0xff]  ;;  %v1573_v28 = vld [vmem:[#allocation19 + $0x168] sm:$0xff] }
 0x60d   : > { %1762 = vmatpush.msrb.mxu1 %v1650_v16  ;;  %1782 = vmatpush.msra.mxu2 %v1682_v27  ;;  %v1538_v16 = vld [vmem:[#allocation19 + $0x50] sm:$0xff]  ;;  %v1572_v27 = vld [vmem:[#allocation19 + $0x160] sm:$0xff]  ;;  %v1533_v38 = vld [vmem:[#allocation19 + $0x28] sm:$0xff] }
 0x60e   : > { %1789 = vmatpush.msra.mxu3 %v1558_v30  ;;  %1809 = vmatpush.msra.mxu0 %v1590_v43  ;;  %v1531_v43 = vld [vmem:[#allocation19 + $0x18] sm:$0xff] }
 0x60f   : > { %1763 = vmatpush.msrb.mxu1 %v1648_v24  ;;  %1783 = vmatpush.msra.mxu2 %v1680_v35  ;;  %v1575_v24 = vld [vmem:[#allocation19 + $0x178] sm:$0xff]  ;;  %v1532_v35 = vld [vmem:[#allocation19 + $0x20] sm:$0xff] }
 0x610   : > { %v10613_v58 = vld.sshfl [vmem:[#allocation1] sm:$0xff pattern:$0x75316420]  ;;  %v10615_v59 = vld.sshfl [vmem:[#allocation1 + $0x8] sm:$0xff pattern:$0x75316420]  ;;  %1790 = vmatpush.msra.mxu3 %v1556_v32  ;;  %1810 = vmatpush.msra.mxu0 %v1588_v47 }
 0x611   : > { %2522 = vst [vmem:[#allocation1] ss:$2 sm:$0xff] %v10579_v12  ;;  %1764 = vmatpush.msrb.mxu1 %v1646_v29  ;;  %1784 = vmatpush.msra.mxu2 %v1678_v39  ;;  %v1535_v32 = vld [vmem:[#allocation19 + $0x38] sm:$0xff]  ;;  %v1568_v39 = vld [vmem:[#allocation19 + $0x140] sm:$0xff] }
 0x612   : > { %1791 = vmatpush.msra.mxu3 %v1554_v26  ;;  %1811 = vmatpush.msra.mxu0 %v1586_v51  ;;  %v1569_v26 = vld [vmem:[#allocation19 + $0x148] sm:$0xff]  ;;  %v1566_v51 = vld [vmem:[#allocation19 + $0x130] sm:$0xff] }
 0x613   : > { %1829 = vmatpush.msra.mxu1 %v1559_v31  ;;  %1849 = vmatpush.msrb.mxu2 %v1591_v44  ;;  %v1534_v31 = vld [vmem:[#allocation19 + $0x30] sm:$0xff] }
 0x614   : > { %1792 = vmatpush.msra.mxu3 %v1552_v45  ;;  %1812 = vmatpush.msra.mxu0 %v1584_v55  ;;  %v1565_v55 = vld [vmem:[#allocation19 + $0x128] sm:$0xff] }
 0x615   : > { %1830 = vmatpush.msra.mxu1 %v1557_v33  ;;  %1850 = vmatpush.msrb.mxu2 %v1589_v48  ;;  %v1570_v33 = vld [vmem:[#allocation19 + $0x150] sm:$0xff] }
 0x616   : > { %1793 = vmatpush.msra.mxu3 %v1550_v49  ;;  %1813 = vmatpush.msra.mxu0 %v1582_v61  ;;  %v1561_v61 = vld [vmem:[#allocation19 + $0x108] sm:$0xff] }
 0x617   : > { %1831 = vmatpush.msra.mxu1 %v1555_v42  ;;  %1851 = vmatpush.msrb.mxu2 %v1587_v52  ;;  %v1530_v42 = vld [vmem:[#allocation19 + $0x10] sm:$0xff]  ;;  %v1529_v52 = vld [vmem:[#allocation19 + $0x8] sm:$0xff] }
 0x618   : > { %v10618_v14 = vld.sshfl [vmem:[#allocation1] sm:$0xff pattern:$0x75316420]  ;;  %v10620_v15 = vld.sshfl [vmem:[#allocation1 + $0x8] sm:$0xff pattern:$0x75316420]  ;;  %1794 = vmatpush.msra.mxu3 %v1548_v53  ;;  %1814 = vmatpush.msra.mxu0 %v1580_v3 }
 0x619   : > { %2721 = vst [vmem:[#allocation1] ss:$2 sm:$0xff] %v10579_v12  ;;  %1832 = vmatpush.msra.mxu1 %v1553_v46  ;;  %1852 = vmatpush.msrb.mxu2 %v1585_v56  ;;  %v1567_v53 = vld [vmem:[#allocation19 + $0x138] sm:$0xff]  ;;  %v1562_v56 = vld [vmem:[#allocation19 + $0x110] sm:$0xff] }
 0x61a   : > { %1795 = vmatpush.msra.mxu3 %v1546_v57  ;;  %1815 = vmatpush.msra.mxu0 %v1578_v8  ;;  %v1563_v57 = vld [vmem:[#allocation19 + $0x118] sm:$0xff] }
 0x61b   : > { %1833 = vmatpush.msra.mxu1 %v1551_v50  ;;  %1853 = vmatpush.msrb.mxu2 %v1583_v62  ;;  %v1528_v50 = vld [vmem:[#allocation19] sm:$0xff] }
 0x61c   : > { %1796 = vmatpush.msra.mxu3 %v1544_v63  ;;  %1816 = vmatpush.msra.mxu0 %v1576_v13  ;;  %v1948_v13 = vld [vmem:[#allocation19 + $0x4d0] sm:$0xff] }
 0x61d   : > { %1834 = vmatpush.msra.mxu1 %v1549_v54  ;;  %1854 = vmatpush.msrb.mxu2 %v1581_v4  ;;  %v1564_v54 = vld [vmem:[#allocation19 + $0x120] sm:$0xff] }
 0x61e   : > { %1797 = vmatpush.msra.mxu3 %v1542_v6  ;;  %1817 = vmatpush.msra.mxu0 %v1574_v23  ;;  %v1944_v23 = vld [vmem:[#allocation19 + $0x4b0] sm:$0xff] }
 0x61f   : > { %1835 = vmatpush.msra.mxu1 %v1547_v60  ;;  %1855 = vmatpush.msrb.mxu2 %v1579_v9  ;;  %v1560_v60 = vld [vmem:[#allocation19 + $0x100] sm:$0xff] }
 0x620   : > { %v10623_v36 = vld.sshfl [vmem:[#allocation1] sm:$0xff pattern:$0x75316420]  ;;  %v10625_v37 = vld.sshfl [vmem:[#allocation1 + $0x8] sm:$0xff pattern:$0x75316420]  ;;  %1798 = vmatpush.msra.mxu3 %v1540_v10  ;;  %1818 = vmatpush.msra.mxu0 %v1572_v27 }
 0x621   : > { %2920 = vst [vmem:[#allocation1] ss:$2 sm:$0xff] %v10579_v12  ;;  %1836 = vmatpush.msra.mxu1 %v1545_v1  ;;  %1856 = vmatpush.msrb.mxu2 %v1577_v0  ;;  %v1946_v0 = vld [vmem:[#allocation19 + $0x4c0] sm:$0xff] }
 0x622   : > { %1799 = vmatpush.msra.mxu3 %v1538_v16  ;;  %1819 = vmatpush.msra.mxu0 %v1570_v33  ;;  %v1942_v27 = vld [vmem:[#allocation19 + $0x4a0] sm:$0xff] }
 0x623   : > { %1837 = vmatpush.msra.mxu1 %v1543_v7  ;;  %1857 = vmatpush.msrb.mxu2 %v1575_v24  ;;  %v1952_v7 = vld [vmem:[#allocation19 + $0x4f0] sm:$0xff]  ;;  %v1982_v24 = vld [vmem:[#allocation19 + $0x5e0] sm:$0xff] }
 0x624   : > { %1800 = vmatpush.msra.mxu3 %v1536_v22  ;;  %1820 = vmatpush.msra.mxu0 %v1568_v39  ;;  %v1978_v33 = vld [vmem:[#allocation19 + $0x5c0] sm:$0xff]  ;;  %v1985_v39 = vld [vmem:[#allocation19 + $0x5f8] sm:$0xff] }
 0x625   : > { %1838 = vmatpush.msra.mxu1 %v1541_v11  ;;  %1858 = vmatpush.msrb.mxu2 %v1573_v28  ;;  %v1950_v11 = vld [vmem:[#allocation19 + $0x4e0] sm:$0xff]  ;;  %v1980_v28 = vld [vmem:[#allocation19 + $0x5d0] sm:$0xff] }
 0x626   : > { %1801 = vmatpush.msra.mxu3 %v1534_v31  ;;  %1821 = vmatpush.msra.mxu0 %v1566_v51  ;;  %v1949_v31 = vld [vmem:[#allocation19 + $0x4d8] sm:$0xff]  ;;  %v1934_v51 = vld [vmem:[#allocation19 + $0x460] sm:$0xff] }
 0x627   : > { %1839 = vmatpush.msra.mxu1 %v1539_v17  ;;  %1859 = vmatpush.msrb.mxu2 %v1571_v34  ;;  %v1984_v17 = vld [vmem:[#allocation19 + $0x5f0] sm:$0xff]  ;;  %v1938_v34 = vld [vmem:[#allocation19 + $0x480] sm:$0xff] }
 0x628   : > { %v10628_v2 = vld.sshfl [vmem:[#allocation1] sm:$0xff pattern:$0x75316420]  ;;  %v10630_v5 = vld.sshfl [vmem:[#allocation1 + $0x8] sm:$0xff pattern:$0x75316420]  ;;  %1802 = vmatpush.msra.mxu3 %v1532_v35  ;;  %1822 = vmatpush.msra.mxu0 %v1564_v54 }
 0x629   : > { %3140 = vst [vmem:[#allocation1] ss:$2 sm:$0xff] %v10579_v12  ;;  %1840 = vmatpush.msra.mxu1 %v1537_v25  ;;  %1860 = vmatpush.msrb.mxu2 %v1569_v26  ;;  %v1953_v25 = vld [vmem:[#allocation19 + $0x4f8] sm:$0xff]  ;;  %v1976_v35 = vld [vmem:[#allocation19 + $0x5b0] sm:$0xff] }
 0x62a   : > { %1803 = vmatpush.msra.mxu3 %v1530_v42  ;;  %1823 = vmatpush.msra.mxu0 %v1562_v56  ;;  %v1936_v26 = vld [vmem:[#allocation19 + $0x470] sm:$0xff]  ;;  %v1974_v42 = vld [vmem:[#allocation19 + $0x5a0] sm:$0xff]  ;;  %v1945_v54 = vld [vmem:[#allocation19 + $0x4b8] sm:$0xff] }
 0x62b   : > { %1841 = vmatpush.msra.mxu1 %v1535_v32  ;;  %1861 = vmatpush.msrb.mxu2 %v1567_v53  ;;  %v1940_v32 = vld [vmem:[#allocation19 + $0x490] sm:$0xff]  ;;  %v1981_v53 = vld [vmem:[#allocation19 + $0x5d8] sm:$0xff]  ;;  %v1970_v56 = vld [vmem:[#allocation19 + $0x580] sm:$0xff] }
 0x62c   : > { %1804 = vmatpush.msra.mxu3 %v1528_v50  ;;  %1824 = vmatpush.msra.mxu0 %v1560_v60  ;;  %v1947_v50 = vld [vmem:[#allocation19 + $0x4c8] sm:$0xff]  ;;  %v1930_v60 = vld [vmem:[#allocation19 + $0x440] sm:$0xff] }
 0x62d   : > { %1842 = vmatpush.msra.mxu1 %v1533_v38  ;;  %1862 = vmatpush.msrb.mxu2 %v1565_v55  ;;  %v8249_v38 = vld [vmem:[%s11551_s0 + $0x4] sm:$0x3] }
 0x62e   : > { %v1932_v55 = vld [vmem:[#allocation19 + $0x450] sm:$0xff] }
 0x62f   : > { %1843 = vmatpush.msra.mxu1 %v1531_v43  ;;  %1863 = vmatpush.msrb.mxu2 %v1563_v57  ;;  %v1983_v43 = vld [vmem:[#allocation19 + $0x5e8] sm:$0xff] }
 0x630   : > { %v10633_v29 = vld.sshfl [vmem:[#allocation1] sm:$0xff pattern:$0x75316420]  ;;  %v10635_v30 = vld.sshfl [vmem:[#allocation1 + $0x8] sm:$0xff pattern:$0x75316420] }
 0x631   : > { %3256 = vst [vmem:[#allocation1] ss:$2 sm:$0xff] %v10579_v12  ;;  %1844 = vmatpush.msra.mxu1 %v1529_v52  ;;  %1864 = vmatpush.msrb.mxu2 %v1561_v61  ;;  %v1972_v52 = vld [vmem:[#allocation19 + $0x590] sm:$0xff]  ;;  %v1943_v57 = vld [vmem:[#allocation19 + $0x4a8] sm:$0xff] }
 0x632   : > { %v1968_v61 = vld [vmem:[#allocation19 + $0x570] sm:$0xff] }
 0x638   : > { %v10638_v44 = vld.sshfl [vmem:[#allocation1] sm:$0xff pattern:$0x75316420]  ;;  %v10640_v45 = vld.sshfl [vmem:[#allocation1 + $0x8] sm:$0xff pattern:$0x75316420] }
 0x639   : > { %3533 = vst [vmem:[#allocation1] ss:$2 sm:$0xff] %v10579_v12 }
 0x640   : > { %v10643_v46 = vld.sshfl [vmem:[#allocation1] sm:$0xff pattern:$0x75316420]  ;;  %v10645_v47 = vld.sshfl [vmem:[#allocation1 + $0x8] sm:$0xff pattern:$0x75316420] }
 0x641   : > { %3732 = vst [vmem:[#allocation1] ss:$2 sm:$0xff] %v10579_v12 }
 0x648   : > { %v10648_v48 = vld.sshfl [vmem:[#allocation1] sm:$0xff pattern:$0x75316420]  ;;  %v10650_v49 = vld.sshfl [vmem:[#allocation1 + $0x8] sm:$0xff pattern:$0x75316420] }
 0x649   : > { %3931 = vst [vmem:[#allocation1] ss:$2 sm:$0xff] %v10579_v12 }
 0x650   : > { %v10653_v62 = vld.sshfl [vmem:[#allocation1] sm:$0xff pattern:$0x75316420]  ;;  %v10655_v63 = vld.sshfl [vmem:[#allocation1 + $0x8] sm:$0xff pattern:$0x75316420] }
 0x651   : > { %3985 = vst [vmem:[#allocation1] ss:$2 sm:$0xff] %v10579_v12 }
 0x658   : > { %v10658_v1 = vld.sshfl [vmem:[#allocation1] sm:$0xff pattern:$0x75316420]  ;;  %v10660_v3 = vld.sshfl [vmem:[#allocation1 + $0x8] sm:$0xff pattern:$0x75316420] }
 0x659   : > { %4184 = vst [vmem:[#allocation1] ss:$2 sm:$0xff] %v10579_v12 }
 0x660   : > { %v10663_v4 = vld.sshfl [vmem:[#allocation1] sm:$0xff pattern:$0x75316420]  ;;  %v10665_v6 = vld.sshfl [vmem:[#allocation1 + $0x8] sm:$0xff pattern:$0x75316420] }
 0x661   : > { %4383 = vst [vmem:[#allocation1] ss:$2 sm:$0xff] %v10579_v12 }
 0x668   : > { %v10668_v8 = vld.sshfl [vmem:[#allocation1 + $0x8] sm:$0xff pattern:$0x75316420]  ;;  %v10670_v10 = vld.sshfl [vmem:[#allocation1] sm:$0xff pattern:$0x75316420] }
 0x669   : > { %4582 = vst [vmem:[#allocation1] ss:$2 sm:$0xff] %v10579_v12  ;;  %v4057_v12 = vld [vmem:[#allocation21 + $0xaa8] sm:$0xff] }
 0x66d   : > { %v1505_v22 = vpop.f32.mrf.mxu3 }
 0x66f   : > { %v1621_v9 = vpop.f32.mrf.mxu1 }
 0x670   : > { %1725 = vmatmul.f32.vlgmr.msrb.gmra.mxu3 %v1621_v9  ;;  %1765 = vmatmul.f32.vlgmr.msrb.gmra.mxu1 %v1621_v9  ;;  %v1941_v9 = vld [vmem:[#allocation19 + $0x498] sm:$0xff] }
 0x671   : > { %8250 = vmatpush.msk.msrb.mxu3 %vm933_vm0, %v10598_v18  ;;  %1986 = vmatpush.msrb.mxu1 %v1952_v7  ;;  %v1951_v18 = vld [vmem:[#allocation19 + $0x4e8] sm:$0xff] }
 0x672   : > { %v1979_v7 = vld [vmem:[#allocation19 + $0x5c8] sm:$0xff] }
 0x673   : > { %1987 = vmatpush.msrb.mxu1 %v1950_v11  ;;  %v1928_v11 = vld [vmem:[#allocation19 + $0x430] sm:$0xff] }
 0x675   : > { %1988 = vmatpush.msrb.mxu1 %v1948_v13  ;;  %v1641_v16 = vpop.f32.mrf.mxu2  ;;  %v1966_v13 = vld [vmem:[#allocation19 + $0x560] sm:$0xff] }
 0x676   : > { %1745 = vmatmul.f32.vlgmr.msrb.gmra.mxu0 %v1641_v16  ;;  %1785 = vmatmul.f32.vlgmr.msra.gmra.mxu2 %v1641_v16  ;;  %v1939_v16 = vld [vmem:[#allocation19 + $0x488] sm:$0xff] }
 0x677   : > { %8252 = vmatpush.msk.msrb.mxu0 %vm933_vm0, %v10600_v19  ;;  %1989 = vmatpush.msrb.mxu1 %v1946_v0  ;;  %v1525_v19 = vpop.f32.mrf.mxu0  ;;  %v1977_v0 = vld [vmem:[#allocation19 + $0x5b8] sm:$0xff] }
 0x678   : > { %2006 = vmatpush.msra.mxu2 %v1984_v17  ;;  %1805 = vmatmul.f32.vlgmr.msra.gmra.mxu3 %v1505_v22  ;;  %v1926_v17 = vld [vmem:[#allocation19 + $0x420] sm:$0xff] }
 0x679   : > { %1845 = vmatmul.f32.vlgmr.msra.gmra.mxu1 %v1505_v22  ;;  %2026 = vmatpush.msra.mxu3 %v1953_v25  ;;  %v1964_v22 = vld [vmem:[#allocation19 + $0x550] sm:$0xff] }
 0x67a   : > { %1990 = vmatpush.msrb.mxu1 %v1944_v23  ;;  %2007 = vmatpush.msra.mxu2 %v1982_v24  ;;  %v1975_v23 = vld [vmem:[#allocation19 + $0x5a8] sm:$0xff]  ;;  %v1937_v24 = vld [vmem:[#allocation19 + $0x478] sm:$0xff]  ;;  %v1924_v25 = vld [vmem:[#allocation19 + $0x410] sm:$0xff] }
 0x67b   : > { %2027 = vmatpush.msra.mxu3 %v1951_v18  ;;  %v1962_v18 = vld [vmem:[#allocation19 + $0x540] sm:$0xff] }
 0x67c   : > { %1991 = vmatpush.msrb.mxu1 %v1942_v27  ;;  %2008 = vmatpush.msra.mxu2 %v1980_v28  ;;  %v1973_v27 = vld [vmem:[#allocation19 + $0x598] sm:$0xff]  ;;  %v1935_v28 = vld [vmem:[#allocation19 + $0x468] sm:$0xff] }
 0x67d   : > { %2028 = vmatpush.msra.mxu3 %v1949_v31  ;;  %v1922_v31 = vld [vmem:[#allocation19 + $0x400] sm:$0xff] }
 0x67e   : > { %1992 = vmatpush.msrb.mxu1 %v1940_v32  ;;  %2009 = vmatpush.msra.mxu2 %v1978_v33  ;;  %v1960_v32 = vld [vmem:[#allocation19 + $0x530] sm:$0xff]  ;;  %v1971_v33 = vld [vmem:[#allocation19 + $0x588] sm:$0xff] }
 0x67f   : > { %1825 = vmatmul.f32.vlgmr.msra.gmra.mxu0 %v1525_v19  ;;  %1865 = vmatmul.f32.vlgmr.msrb.gmra.mxu2 %v1525_v19  ;;  %v1958_v19 = vld [vmem:[#allocation19 + $0x520] sm:$0xff] }
 0x680   : > { %1993 = vmatpush.msrb.mxu1 %v1938_v34  ;;  %2010 = vmatpush.msra.mxu2 %v1976_v35  ;;  %v1933_v34 = vld [vmem:[#allocation19 + $0x458] sm:$0xff] }
 0x681   : > { %8251 = vmatmul.msk.f32.vlgmr.msrb.gmra.mxu3 %vm929_vm1, %v8249_v38  ;;  %2046 = vmatpush.msra.mxu0 %v1985_v39  ;;  %v1969_v35 = vld [vmem:[#allocation19 + $0x578] sm:$0xff]  ;;  %v1931_v39 = vld [vmem:[#allocation19 + $0x448] sm:$0xff] }
 0x682   : > { %1994 = vmatpush.msrb.mxu1 %v1936_v26  ;;  %2011 = vmatpush.msra.mxu2 %v1974_v42  ;;  %v1967_v26 = vld [vmem:[#allocation19 + $0x568] sm:$0xff]  ;;  %v1954_v42 = vld [vmem:[#allocation19 + $0x500] sm:$0xff] }
 0x683   : > { %2047 = vmatpush.msra.mxu0 %v1983_v43  ;;  %2029 = vmatpush.msra.mxu3 %v1947_v50  ;;  %v1929_v43 = vld [vmem:[#allocation19 + $0x438] sm:$0xff] }
 0x684   : > { %1995 = vmatpush.msrb.mxu1 %v1934_v51  ;;  %2012 = vmatpush.msra.mxu2 %v1972_v52  ;;  %v1965_v50 = vld [vmem:[#allocation19 + $0x558] sm:$0xff]  ;;  %v1927_v51 = vld [vmem:[#allocation19 + $0x428] sm:$0xff] }
 0x685   : > { %2048 = vmatpush.msra.mxu0 %v1981_v53  ;;  %2030 = vmatpush.msra.mxu3 %v1945_v54  ;;  %v1963_v52 = vld [vmem:[#allocation19 + $0x548] sm:$0xff]  ;;  %v1961_v53 = vld [vmem:[#allocation19 + $0x538] sm:$0xff] }
 0x686   : > { %1996 = vmatpush.msrb.mxu1 %v1932_v55  ;;  %2013 = vmatpush.msra.mxu2 %v1970_v56  ;;  %v1923_v54 = vld [vmem:[#allocation19 + $0x408] sm:$0xff]  ;;  %v2151_v56 = vld [vmem:[#allocation19 + $0x6f0] sm:$0xff] }
 0x687   : > { %8253 = vmatmul.msk.f32.vlgmr.msrb.gmra.mxu0 %vm929_vm1, %v8249_v38  ;;  %2031 = vmatpush.msra.mxu3 %v1943_v57  ;;  %v1956_v38 = vld [vmem:[#allocation19 + $0x510] sm:$0xff]  ;;  %v1959_v55 = vld [vmem:[#allocation19 + $0x528] sm:$0xff]  ;;  %v1957_v57 = vld [vmem:[#allocation19 + $0x518] sm:$0xff] }
 0x688   : > { %1997 = vmatpush.msrb.mxu1 %v1930_v60  ;;  %2014 = vmatpush.msra.mxu2 %v1968_v61  ;;  %v2149_v60 = vld [vmem:[#allocation19 + $0x6e0] sm:$0xff]  ;;  %v1955_v61 = vld [vmem:[#allocation19 + $0x508] sm:$0xff] }
 0x689   : > { %2049 = vmatpush.msra.mxu0 %v1979_v7  ;;  %2032 = vmatpush.msra.mxu3 %v1941_v9  ;;  %v2147_v7 = vld [vmem:[#allocation19 + $0x6d0] sm:$0xff] }
 0x68a   : > { %1998 = vmatpush.msrb.mxu1 %v1928_v11  ;;  %2015 = vmatpush.msra.mxu2 %v1966_v13  ;;  %v2183_v9 = vld [vmem:[#allocation19 + $0x7f0] sm:$0xff]  ;;  %v2181_v11 = vld [vmem:[#allocation19 + $0x7e0] sm:$0xff] }
 0x68b   : > { %2050 = vmatpush.msra.mxu0 %v1977_v0  ;;  %2033 = vmatpush.msra.mxu3 %v1939_v16  ;;  %v2179_v13 = vld [vmem:[#allocation19 + $0x7d0] sm:$0xff]  ;;  %v2177_v0 = vld [vmem:[#allocation19 + $0x7c0] sm:$0xff] }
 0x68c   : > { %1999 = vmatpush.msrb.mxu1 %v1926_v17  ;;  %2016 = vmatpush.msra.mxu2 %v1964_v22  ;;  %v2143_v16 = vld [vmem:[#allocation19 + $0x6b0] sm:$0xff]  ;;  %v2141_v22 = vld [vmem:[#allocation19 + $0x6a0] sm:$0xff] }
 0x68d   : > { %2051 = vmatpush.msra.mxu0 %v1975_v23  ;;  %2034 = vmatpush.msra.mxu3 %v1937_v24  ;;  %v2175_v17 = vld [vmem:[#allocation19 + $0x7b0] sm:$0xff]  ;;  %v2173_v23 = vld [vmem:[#allocation19 + $0x7a0] sm:$0xff] }
 0x68e   : > { %2000 = vmatpush.msrb.mxu1 %v1924_v25  ;;  %2017 = vmatpush.msra.mxu2 %v1962_v18  ;;  %v2139_v24 = vld [vmem:[#allocation19 + $0x690] sm:$0xff]  ;;  %v2137_v18 = vld [vmem:[#allocation19 + $0x680] sm:$0xff] }
 0x68f   : > { %2052 = vmatpush.msra.mxu0 %v1973_v27  ;;  %2035 = vmatpush.msra.mxu3 %v1935_v28  ;;  %v2171_v25 = vld [vmem:[#allocation19 + $0x790] sm:$0xff]  ;;  %v2169_v27 = vld [vmem:[#allocation19 + $0x780] sm:$0xff] }
 0x690   : > { %2001 = vmatpush.msrb.mxu1 %v1922_v31  ;;  %2018 = vmatpush.msra.mxu2 %v1960_v32  ;;  %v2135_v28 = vld [vmem:[#allocation19 + $0x670] sm:$0xff]  ;;  %v2133_v32 = vld [vmem:[#allocation19 + $0x660] sm:$0xff] }
 0x691   : > { %2053 = vmatpush.msra.mxu0 %v1971_v33  ;;  %2036 = vmatpush.msra.mxu3 %v1933_v34  ;;  %v2167_v31 = vld [vmem:[#allocation19 + $0x770] sm:$0xff]  ;;  %v2165_v33 = vld [vmem:[#allocation19 + $0x760] sm:$0xff] }
 0x692   : > { %8255 = vmatpush.msk.msra.mxu1 %vm933_vm0, %v10603_v20  ;;  %2019 = vmatpush.msra.mxu2 %v1958_v19  ;;  %v1925_v20 = vld [vmem:[#allocation19 + $0x418] sm:$0xff]  ;;  %v2131_v19 = vld [vmem:[#allocation19 + $0x650] sm:$0xff] }
 0x693   : > { %2054 = vmatpush.msra.mxu0 %v1969_v35  ;;  %2037 = vmatpush.msra.mxu3 %v1931_v39  ;;  %v2163_v34 = vld [vmem:[#allocation19 + $0x750] sm:$0xff]  ;;  %v2129_v35 = vld [vmem:[#allocation19 + $0x640] sm:$0xff] }
 0x694   : > { %2020 = vmatpush.msra.mxu2 %v1956_v38  ;;  %v2161_v38 = vld [vmem:[#allocation19 + $0x740] sm:$0xff]  ;;  %v2127_v39 = vld [vmem:[#allocation19 + $0x630] sm:$0xff] }
 0x695   : > { %2055 = vmatpush.msra.mxu0 %v1967_v26  ;;  %2038 = vmatpush.msra.mxu3 %v1929_v43  ;;  %v2159_v26 = vld [vmem:[#allocation19 + $0x730] sm:$0xff]  ;;  %v2157_v43 = vld [vmem:[#allocation19 + $0x720] sm:$0xff] }
 0x696   : > { %2021 = vmatpush.msra.mxu2 %v1954_v42  ;;  %v2125_v42 = vld [vmem:[#allocation19 + $0x620] sm:$0xff] }
 0x697   : > { %2056 = vmatpush.msra.mxu0 %v1965_v50  ;;  %2039 = vmatpush.msra.mxu3 %v1927_v51  ;;  %v2123_v50 = vld [vmem:[#allocation19 + $0x610] sm:$0xff] }
 0x698   : > { %8257 = vmatpush.msk.msrb.mxu2 %vm933_vm0, %v10605_v21  ;;  %v2145_v21 = vld [vmem:[#allocation19 + $0x6c0] sm:$0xff]  ;;  %v2155_v51 = vld [vmem:[#allocation19 + $0x710] sm:$0xff] }
 0x699   : > { %2057 = vmatpush.msra.mxu0 %v1963_v52  ;;  %2040 = vmatpush.msra.mxu3 %v1925_v20  ;;  %v2121_v52 = vld [vmem:[#allocation19 + $0x600] sm:$0xff] }
 0x69a   : > { %v2153_v20 = vld [vmem:[#allocation19 + $0x700] sm:$0xff] }
 0x69b   : > { %2058 = vmatpush.msra.mxu0 %v1961_v53  ;;  %2041 = vmatpush.msra.mxu3 %v1923_v54 }
 0x69d   : > { %2059 = vmatpush.msra.mxu0 %v1959_v55  ;;  %2185 = vmatpush.msrb.mxu3 %v2151_v56 }
 0x69f   : > { %2060 = vmatpush.msra.mxu0 %v1957_v57  ;;  %2186 = vmatpush.msrb.mxu3 %v2149_v60 }
 0x6a1   : > { %2061 = vmatpush.msra.mxu0 %v1955_v61  ;;  %2187 = vmatpush.msrb.mxu3 %v2147_v7  ;;  %v2152_v61 = vld [vmem:[#allocation19 + $0x6f8] sm:$0xff] }
 0x6a2   : > { %v2184_v7 = vld [vmem:[#allocation19 + $0x7f8] sm:$0xff] }
 0x6a3   : > { %2205 = vmatpush.msrb.mxu0 %v2183_v9  ;;  %2188 = vmatpush.msrb.mxu3 %v2145_v21  ;;  %v2150_v9 = vld [vmem:[#allocation19 + $0x6e8] sm:$0xff] }
 0x6a4   : > { %v2182_v21 = vld [vmem:[#allocation19 + $0x7e8] sm:$0xff] }
 0x6a5   : > { %2206 = vmatpush.msrb.mxu0 %v2181_v11  ;;  %2189 = vmatpush.msrb.mxu3 %v2143_v16  ;;  %v2148_v11 = vld [vmem:[#allocation19 + $0x6d8] sm:$0xff]  ;;  %v2178_v16 = vld [vmem:[#allocation19 + $0x7c8] sm:$0xff] }
 0x6a7   : > { %2207 = vmatpush.msrb.mxu0 %v2179_v13  ;;  %2190 = vmatpush.msrb.mxu3 %v2141_v22  ;;  %v2180_v13 = vld [vmem:[#allocation19 + $0x7d8] sm:$0xff] }
 0x6a8   : > { %v2144_v22 = vld [vmem:[#allocation19 + $0x6b8] sm:$0xff] }
 0x6a9   : > { %2208 = vmatpush.msrb.mxu0 %v2177_v0  ;;  %2191 = vmatpush.msrb.mxu3 %v2139_v24  ;;  %v2146_v0 = vld [vmem:[#allocation19 + $0x6c8] sm:$0xff]  ;;  %v2140_v24 = vld [vmem:[#allocation19 + $0x698] sm:$0xff] }
 0x6ab   : > { %2209 = vmatpush.msrb.mxu0 %v2175_v17  ;;  %2192 = vmatpush.msrb.mxu3 %v2137_v18  ;;  %v8254_v17 = vld [vmem:[%s11551_s0 + $0x6] sm:$0x3]  ;;  %v2138_v18 = vld [vmem:[#allocation19 + $0x688] sm:$0xff] }
 0x6ad   : > { %2210 = vmatpush.msrb.mxu0 %v2173_v23  ;;  %2193 = vmatpush.msrb.mxu3 %v2135_v28  ;;  %v2176_v23 = vld [vmem:[#allocation19 + $0x7b8] sm:$0xff] }
 0x6ae   : > { %v2136_v28 = vld [vmem:[#allocation19 + $0x678] sm:$0xff] }
 0x6af   : > { %2211 = vmatpush.msrb.mxu0 %v2171_v25  ;;  %2194 = vmatpush.msrb.mxu3 %v2133_v32  ;;  %v2172_v25 = vld [vmem:[#allocation19 + $0x798] sm:$0xff]  ;;  %v2134_v32 = vld [vmem:[#allocation19 + $0x668] sm:$0xff] }
 0x6b1   : > { %2212 = vmatpush.msrb.mxu0 %v2169_v27  ;;  %2195 = vmatpush.msrb.mxu3 %v2131_v19  ;;  %v2170_v27 = vld [vmem:[#allocation19 + $0x788] sm:$0xff]  ;;  %v2132_v19 = vld [vmem:[#allocation19 + $0x658] sm:$0xff] }
 0x6b3   : > { %2213 = vmatpush.msrb.mxu0 %v2167_v31  ;;  %2196 = vmatpush.msrb.mxu3 %v2129_v35  ;;  %v2168_v31 = vld [vmem:[#allocation19 + $0x778] sm:$0xff]  ;;  %v2130_v35 = vld [vmem:[#allocation19 + $0x648] sm:$0xff] }
 0x6b5   : > { %2214 = vmatpush.msrb.mxu0 %v2165_v33  ;;  %2197 = vmatpush.msrb.mxu3 %v2127_v39  ;;  %v2166_v33 = vld [vmem:[#allocation19 + $0x768] sm:$0xff]  ;;  %v2128_v39 = vld [vmem:[#allocation19 + $0x638] sm:$0xff] }
 0x6b7   : > { %2215 = vmatpush.msrb.mxu0 %v2163_v34  ;;  %2198 = vmatpush.msrb.mxu3 %v2125_v42  ;;  %v2164_v34 = vld [vmem:[#allocation19 + $0x758] sm:$0xff]  ;;  %v2126_v42 = vld [vmem:[#allocation19 + $0x628] sm:$0xff] }
 0x6b9   : > { %2216 = vmatpush.msrb.mxu0 %v2161_v38  ;;  %2199 = vmatpush.msrb.mxu3 %v2123_v50  ;;  %v2162_v38 = vld [vmem:[#allocation19 + $0x748] sm:$0xff]  ;;  %v2124_v50 = vld [vmem:[#allocation19 + $0x618] sm:$0xff] }
 0x6bb   : > { %2217 = vmatpush.msrb.mxu0 %v2159_v26  ;;  %2200 = vmatpush.msrb.mxu3 %v2121_v52  ;;  %v2160_v26 = vld [vmem:[#allocation19 + $0x738] sm:$0xff]  ;;  %v2122_v52 = vld [vmem:[#allocation19 + $0x608] sm:$0xff] }
 0x6bd   : > { %2218 = vmatpush.msrb.mxu0 %v2157_v43  ;;  %v2158_v43 = vld [vmem:[#allocation19 + $0x728] sm:$0xff] }
 0x6bf   : > { %2219 = vmatpush.msrb.mxu0 %v2155_v51  ;;  %v2156_v51 = vld [vmem:[#allocation19 + $0x718] sm:$0xff] }
 0x6c1   : > { %2220 = vmatpush.msrb.mxu0 %v2153_v20  ;;  %v2154_v20 = vld [vmem:[#allocation19 + $0x708] sm:$0xff] }
 0x6f3   : > { %v10686_v53 = vpop.f32.mrf.mxu3  ;;  %v10688_v54 = vpop.f32.mrf.mxu0 }
 0x6fb   : > { %v10690_v55 = vpop.f32.mrf.mxu3 }
 0x6fc   : > { %v10692_v56 = vpop.f32.mrf.mxu0 }
 0x704   : > { %v1898_v57 = vpop.f32.mrf.mxu3  ;;  %v1918_v60 = vpop.f32.mrf.mxu0 }
 0x705   : > { %2002 = vmatmul.f32.vlgmr.msrb.gmra.mxu1 %v1898_v57  ;;  %2022 = vmatmul.f32.vlgmr.msra.gmra.mxu2 %v1918_v60 }
 0x706   : > { %2042 = vmatmul.f32.vlgmr.msra.gmra.mxu3 %v1898_v57  ;;  %2062 = vmatmul.f32.vlgmr.msra.gmra.mxu0 %v1918_v60  ;;  %v10707_v57 = vpop.f32.mrf.mxu1  ;;  %v10709_v60 = vpop.f32.mrf.mxu2 }
 0x707   : > { %2225 = vmatpush.msrb.mxu1 %v2152_v61  ;;  %2245 = vmatpush.msra.mxu2 %v2184_v7 }
 0x708   : > { %8260 = vmatpush.msk.msra.mxu3 %vm933_vm0, %v10608_v40  ;;  %8262 = vmatpush.msk.msra.mxu0 %vm933_vm0, %v10610_v41  ;;  %v2142_v40 = vld [vmem:[#allocation19 + $0x6a8] sm:$0xff] }
 0x709   : > { %2226 = vmatpush.msrb.mxu1 %v2150_v9  ;;  %2246 = vmatpush.msra.mxu2 %v2182_v21  ;;  %v2174_v41 = vld [vmem:[#allocation19 + $0x7a8] sm:$0xff] }
 0x70b   : > { %2227 = vmatpush.msrb.mxu1 %v2148_v11  ;;  %2247 = vmatpush.msra.mxu2 %v2180_v13  ;;  %v2404_v11 = vld [vmem:[#allocation19 + $0xaf0] sm:$0xff] }
 0x70d   : > { %2228 = vmatpush.msrb.mxu1 %v2146_v0  ;;  %2248 = vmatpush.msra.mxu2 %v2178_v16  ;;  %v2400_v0 = vld [vmem:[#allocation19 + $0xad0] sm:$0xff] }
 0x70e   : > { %8256 = vmatmul.msk.f32.vlgmr.msra.gmra.mxu1 %vm929_vm1, %v8254_v17  ;;  %8258 = vmatmul.msk.f32.vlgmr.msrb.gmra.mxu2 %vm929_vm1, %v8254_v17  ;;  %v10711_v61 = vpop.f32.mrf.mxu1  ;;  %v10713_v7 = vpop.f32.mrf.mxu2  ;;  %v2436_v16 = vld [vmem:[#allocation19 + $0xbf0] sm:$0xff] }
 0x70f   : > { %2229 = vmatpush.msrb.mxu1 %v2144_v22  ;;  %2249 = vmatpush.msra.mxu2 %v2176_v23  ;;  %v8259_v22 = vld [vmem:[%s11551_s0 + $0x8] sm:$0x3]  ;;  %v8264_v23 = vld [vmem:[%s11551_s0 + $0xa] sm:$0x3] }
 0x711   : > { %2230 = vmatpush.msrb.mxu1 %v2142_v40  ;;  %2250 = vmatpush.msra.mxu2 %v2174_v41  ;;  %v2396_v40 = vld [vmem:[#allocation19 + $0xab0] sm:$0xff]  ;;  %v2434_v41 = vld [vmem:[#allocation19 + $0xbe0] sm:$0xff] }
 0x713   : > { %2231 = vmatpush.msrb.mxu1 %v2140_v24  ;;  %2251 = vmatpush.msra.mxu2 %v2172_v25  ;;  %v2405_v24 = vld [vmem:[#allocation19 + $0xaf8] sm:$0xff]  ;;  %v2394_v25 = vld [vmem:[#allocation19 + $0xaa0] sm:$0xff] }
 0x715   : > { %2232 = vmatpush.msrb.mxu1 %v2138_v18  ;;  %2252 = vmatpush.msra.mxu2 %v2170_v27  ;;  %v2432_v18 = vld [vmem:[#allocation19 + $0xbd0] sm:$0xff]  ;;  %v2437_v27 = vld [vmem:[#allocation19 + $0xbf8] sm:$0xff] }
 0x717   : > { %2233 = vmatpush.msrb.mxu1 %v2136_v28  ;;  %2253 = vmatpush.msra.mxu2 %v2168_v31  ;;  %v2403_v28 = vld [vmem:[#allocation19 + $0xae8] sm:$0xff] }
 0x718   : > { %v2435_v31 = vld [vmem:[#allocation19 + $0xbe8] sm:$0xff] }
 0x719   : > { %2234 = vmatpush.msrb.mxu1 %v2134_v32  ;;  %2254 = vmatpush.msra.mxu2 %v2166_v33  ;;  %v2392_v32 = vld [vmem:[#allocation19 + $0xa90] sm:$0xff]  ;;  %v2430_v33 = vld [vmem:[#allocation19 + $0xbc0] sm:$0xff] }
 0x71b   : > { %2235 = vmatpush.msrb.mxu1 %v2132_v19  ;;  %2255 = vmatpush.msra.mxu2 %v2164_v34  ;;  %v2390_v19 = vld [vmem:[#allocation19 + $0xa80] sm:$0xff]  ;;  %v2428_v34 = vld [vmem:[#allocation19 + $0xbb0] sm:$0xff] }
 0x71d   : > { %2236 = vmatpush.msrb.mxu1 %v2130_v35  ;;  %2256 = vmatpush.msra.mxu2 %v2162_v38  ;;  %v2401_v35 = vld [vmem:[#allocation19 + $0xad8] sm:$0xff] }
 0x71e   : > { %v2433_v38 = vld [vmem:[#allocation19 + $0xbd8] sm:$0xff] }
 0x71f   : > { %2237 = vmatpush.msrb.mxu1 %v2128_v39  ;;  %2257 = vmatpush.msra.mxu2 %v2160_v26  ;;  %v2388_v39 = vld [vmem:[#allocation19 + $0xa70] sm:$0xff]  ;;  %v2426_v26 = vld [vmem:[#allocation19 + $0xba0] sm:$0xff] }
 0x721   : > { %2238 = vmatpush.msrb.mxu1 %v2126_v42  ;;  %2258 = vmatpush.msra.mxu2 %v2158_v43  ;;  %v2399_v42 = vld [vmem:[#allocation19 + $0xac8] sm:$0xff] }
 0x722   : > { %v2431_v43 = vld [vmem:[#allocation19 + $0xbc8] sm:$0xff] }
 0x723   : > { %2239 = vmatpush.msrb.mxu1 %v2124_v50  ;;  %2259 = vmatpush.msra.mxu2 %v2156_v51  ;;  %v2386_v50 = vld [vmem:[#allocation19 + $0xa60] sm:$0xff]  ;;  %v2424_v51 = vld [vmem:[#allocation19 + $0xb90] sm:$0xff] }
 0x725   : > { %2240 = vmatpush.msrb.mxu1 %v2122_v52  ;;  %2260 = vmatpush.msra.mxu2 %v2154_v20  ;;  %v2397_v52 = vld [vmem:[#allocation19 + $0xab8] sm:$0xff] }
 0x726   : > { %v2429_v20 = vld [vmem:[#allocation19 + $0xbb8] sm:$0xff] }
 0x727   : > { %8265 = vmatpush.msk.msra.mxu1 %vm933_vm0, %v10613_v58  ;;  %8267 = vmatpush.msk.msrb.mxu2 %vm933_vm0, %v10615_v59  ;;  %v2402_v58 = vld [vmem:[#allocation19 + $0xae0] sm:$0xff] }
 0x728   : > { %v2398_v59 = vld [vmem:[#allocation19 + $0xac0] sm:$0xff] }
 0x782   : > { %v10715_v9 = vpop.f32.mrf.mxu1 }
 0x788   : > { %v10717_v21 = vpop.f32.mrf.mxu2 }
 0x78b   : > { %v2097_v13 = vpop.f32.mrf.mxu1 }
 0x78c   : > { %2201 = vmatmul.f32.vlgmr.msrb.gmra.mxu3 %v2097_v13  ;;  %2241 = vmatmul.f32.vlgmr.msrb.gmra.mxu1 %v2097_v13  ;;  %v2422_v13 = vld [vmem:[#allocation19 + $0xb80] sm:$0xff] }
 0x78d   : > { %2438 = vmatpush.msrb.mxu3 %v2404_v11  ;;  %2478 = vmatpush.msrb.mxu1 %v2405_v24  ;;  %v2384_v11 = vld [vmem:[#allocation19 + $0xa50] sm:$0xff]  ;;  %v2423_v24 = vld [vmem:[#allocation19 + $0xb88] sm:$0xff] }
 0x78f   : > { %2439 = vmatpush.msrb.mxu3 %v2402_v58  ;;  %2479 = vmatpush.msrb.mxu1 %v2403_v28  ;;  %v2395_v58 = vld [vmem:[#allocation19 + $0xaa8] sm:$0xff]  ;;  %v2421_v28 = vld [vmem:[#allocation19 + $0xb78] sm:$0xff] }
 0x791   : > { %2440 = vmatpush.msrb.mxu3 %v2400_v0  ;;  %v2117_v17 = vpop.f32.mrf.mxu2  ;;  %2480 = vmatpush.msrb.mxu1 %v2401_v35  ;;  %v2427_v0 = vld [vmem:[#allocation19 + $0xba8] sm:$0xff]  ;;  %v2412_v35 = vld [vmem:[#allocation19 + $0xb30] sm:$0xff] }
 0x792   : > { %2221 = vmatmul.f32.vlgmr.msrb.gmra.mxu0 %v2117_v17  ;;  %2261 = vmatmul.f32.vlgmr.msra.gmra.mxu2 %v2117_v17  ;;  %v2393_v17 = vld [vmem:[#allocation19 + $0xa98] sm:$0xff] }
 0x793   : > { %2441 = vmatpush.msrb.mxu3 %v2398_v59  ;;  %2458 = vmatpush.msrb.mxu0 %v2436_v16  ;;  %v2382_v59 = vld [vmem:[#allocation19 + $0xa40] sm:$0xff]  ;;  %v2420_v16 = vld [vmem:[#allocation19 + $0xb70] sm:$0xff] }
 0x794   : > { %8261 = vmatmul.msk.f32.vlgmr.msra.gmra.mxu3 %vm929_vm1, %v8259_v22  ;;  %8266 = vmatmul.msk.f32.vlgmr.msra.gmra.mxu1 %vm929_vm1, %v8264_v23 }
 0x795   : > { %2442 = vmatpush.msrb.mxu3 %v2396_v40  ;;  %2459 = vmatpush.msrb.mxu0 %v2434_v41  ;;  %v2418_v40 = vld [vmem:[#allocation19 + $0xb60] sm:$0xff]  ;;  %v2391_v41 = vld [vmem:[#allocation19 + $0xa88] sm:$0xff] }
 0x796   : > { %2498 = vmatpush.msra.mxu2 %v2437_v27  ;;  %2481 = vmatpush.msrb.mxu1 %v2399_v42  ;;  %v2389_v27 = vld [vmem:[#allocation19 + $0xa78] sm:$0xff]  ;;  %v2383_v42 = vld [vmem:[#allocation19 + $0xa48] sm:$0xff] }
 0x797   : > { %2443 = vmatpush.msrb.mxu3 %v2394_v25  ;;  %2460 = vmatpush.msrb.mxu0 %v2432_v18  ;;  %v2378_v25 = vld [vmem:[#allocation19 + $0xa20] sm:$0xff]  ;;  %v2416_v18 = vld [vmem:[#allocation19 + $0xb50] sm:$0xff] }
 0x798   : > { %2499 = vmatpush.msra.mxu2 %v2435_v31  ;;  %2482 = vmatpush.msrb.mxu1 %v2397_v52  ;;  %v2376_v31 = vld [vmem:[#allocation19 + $0xa10] sm:$0xff]  ;;  %v2406_v52 = vld [vmem:[#allocation19 + $0xb00] sm:$0xff] }
 0x799   : > { %2444 = vmatpush.msrb.mxu3 %v2392_v32  ;;  %2461 = vmatpush.msrb.mxu0 %v2430_v33  ;;  %v2414_v32 = vld [vmem:[#allocation19 + $0xb40] sm:$0xff]  ;;  %v2387_v33 = vld [vmem:[#allocation19 + $0xa68] sm:$0xff] }
 0x79a   : > { %8268 = vmatmul.msk.f32.vlgmr.msrb.gmra.mxu2 %vm929_vm1, %v8264_v23  ;;  %8263 = vmatmul.msk.f32.vlgmr.msra.gmra.mxu0 %vm929_vm1, %v8259_v22  ;;  %v2425_v22 = vld [vmem:[#allocation19 + $0xb98] sm:$0xff]  ;;  %v2380_v23 = vld [vmem:[#allocation19 + $0xa30] sm:$0xff] }
 0x79b   : > { %2445 = vmatpush.msrb.mxu3 %v2390_v19  ;;  %2462 = vmatpush.msrb.mxu0 %v2428_v34  ;;  %v2419_v19 = vld [vmem:[#allocation19 + $0xb68] sm:$0xff]  ;;  %v2374_v34 = vld [vmem:[#allocation19 + $0xa00] sm:$0xff] }
 0x79c   : > { %2500 = vmatpush.msra.mxu2 %v2433_v38  ;;  %2483 = vmatpush.msrb.mxu1 %v2395_v58  ;;  %v2385_v38 = vld [vmem:[#allocation19 + $0xa58] sm:$0xff] }
 0x79d   : > { %2446 = vmatpush.msrb.mxu3 %v2388_v39  ;;  %2463 = vmatpush.msrb.mxu0 %v2426_v26  ;;  %v2410_v39 = vld [vmem:[#allocation19 + $0xb20] sm:$0xff]  ;;  %v2417_v26 = vld [vmem:[#allocation19 + $0xb58] sm:$0xff] }
 0x79e   : > { %2501 = vmatpush.msra.mxu2 %v2431_v43  ;;  %2484 = vmatpush.msrb.mxu1 %v2393_v17  ;;  %v2408_v43 = vld [vmem:[#allocation19 + $0xb10] sm:$0xff]  ;;  %v2377_v58 = vld [vmem:[#allocation19 + $0xa18] sm:$0xff] }
 0x79f   : > { %2447 = vmatpush.msrb.mxu3 %v2386_v50  ;;  %2464 = vmatpush.msrb.mxu0 %v2424_v51  ;;  %v2415_v50 = vld [vmem:[#allocation19 + $0xb48] sm:$0xff]  ;;  %v2381_v51 = vld [vmem:[#allocation19 + $0xa38] sm:$0xff]  ;;  %v2635_v17 = vld [vmem:[#allocation19 + $0xdf0] sm:$0xff] }
 0x7a0   : > { %2502 = vmatpush.msra.mxu2 %v2429_v20  ;;  %2485 = vmatpush.msrb.mxu1 %v2391_v41  ;;  %v2413_v20 = vld [vmem:[#allocation19 + $0xb38] sm:$0xff]  ;;  %v2631_v41 = vld [vmem:[#allocation19 + $0xdd0] sm:$0xff] }
 0x7a1   : > { %2448 = vmatpush.msrb.mxu3 %v2384_v11  ;;  %2465 = vmatpush.msrb.mxu0 %v2422_v13  ;;  %v2379_v11 = vld [vmem:[#allocation19 + $0xa28] sm:$0xff] }
 0x7a2   : > { %2503 = vmatpush.msra.mxu2 %v2427_v0  ;;  %2486 = vmatpush.msrb.mxu1 %v2389_v27  ;;  %v2411_v13 = vld [vmem:[#allocation19 + $0xb28] sm:$0xff]  ;;  %v2593_v27 = vld [vmem:[#allocation19 + $0xca0] sm:$0xff] }
 0x7a3   : > { %2449 = vmatpush.msrb.mxu3 %v2382_v59  ;;  %2466 = vmatpush.msrb.mxu0 %v2420_v16  ;;  %v2375_v0 = vld [vmem:[#allocation19 + $0xa08] sm:$0xff]  ;;  %v2603_v59 = vld [vmem:[#allocation19 + $0xcf0] sm:$0xff] }
 0x7a4   : > { %2504 = vmatpush.msra.mxu2 %v2425_v22  ;;  %2487 = vmatpush.msrb.mxu1 %v2387_v33  ;;  %v2407_v16 = vld [vmem:[#allocation19 + $0xb08] sm:$0xff]  ;;  %v2601_v22 = vld [vmem:[#allocation19 + $0xce0] sm:$0xff] }
 0x7a5   : > { %2450 = vmatpush.msrb.mxu3 %v2380_v23  ;;  %2467 = vmatpush.msrb.mxu0 %v2418_v40  ;;  %v2633_v23 = vld [vmem:[#allocation19 + $0xde0] sm:$0xff]  ;;  %v2599_v40 = vld [vmem:[#allocation19 + $0xcd0] sm:$0xff] }
 0x7a6   : > { %2505 = vmatpush.msra.mxu2 %v2423_v24  ;;  %2488 = vmatpush.msrb.mxu1 %v2385_v38  ;;  %v2597_v24 = vld [vmem:[#allocation19 + $0xcc0] sm:$0xff]  ;;  %v2579_v38 = vld [vmem:[#allocation19 + $0xc30] sm:$0xff] }
 0x7a7   : > { %2451 = vmatpush.msrb.mxu3 %v2378_v25  ;;  %2468 = vmatpush.msrb.mxu0 %v2416_v18  ;;  %v2595_v25 = vld [vmem:[#allocation19 + $0xcb0] sm:$0xff]  ;;  %v2585_v33 = vld [vmem:[#allocation19 + $0xc60] sm:$0xff] }
 0x7a8   : > { %2506 = vmatpush.msra.mxu2 %v2421_v28  ;;  %2489 = vmatpush.msrb.mxu1 %v2383_v42  ;;  %v2627_v18 = vld [vmem:[#allocation19 + $0xdb0] sm:$0xff]  ;;  %v2621_v42 = vld [vmem:[#allocation19 + $0xd80] sm:$0xff] }
 0x7a9   : > { %2452 = vmatpush.msrb.mxu3 %v2376_v31  ;;  %2469 = vmatpush.msrb.mxu0 %v2414_v32  ;;  %v2591_v28 = vld [vmem:[#allocation19 + $0xc90] sm:$0xff]  ;;  %v2589_v31 = vld [vmem:[#allocation19 + $0xc80] sm:$0xff] }
 0x7aa   : > { %2507 = vmatpush.msra.mxu2 %v2419_v19  ;;  %2490 = vmatpush.msrb.mxu1 %v2381_v51  ;;  %v2587_v32 = vld [vmem:[#allocation19 + $0xc70] sm:$0xff]  ;;  %v2573_v51 = vld [vmem:[#allocation19 + $0xc00] sm:$0xff] }
 0x7ab   : > { %2453 = vmatpush.msrb.mxu3 %v2374_v34  ;;  %2470 = vmatpush.msrb.mxu0 %v2412_v35  ;;  %v2583_v19 = vld [vmem:[#allocation19 + $0xc50] sm:$0xff]  ;;  %v2581_v34 = vld [vmem:[#allocation19 + $0xc40] sm:$0xff] }
 0x7ac   : > { %2508 = vmatpush.msra.mxu2 %v2417_v26  ;;  %2491 = vmatpush.msrb.mxu1 %v2379_v11  ;;  %v2625_v35 = vld [vmem:[#allocation19 + $0xda0] sm:$0xff] }
 0x7ad   : > { %8270 = vmatpush.msk.msra.mxu3 %vm933_vm0, %v10618_v14  ;;  %2471 = vmatpush.msrb.mxu0 %v2410_v39  ;;  %v2409_v14 = vld [vmem:[#allocation19 + $0xb18] sm:$0xff]  ;;  %v2623_v39 = vld [vmem:[#allocation19 + $0xd90] sm:$0xff]  ;;  %v2577_v26 = vld [vmem:[#allocation19 + $0xc20] sm:$0xff] }
 0x7ae   : > { %2509 = vmatpush.msra.mxu2 %v2415_v50  ;;  %2492 = vmatpush.msrb.mxu1 %v2377_v58  ;;  %v2619_v50 = vld [vmem:[#allocation19 + $0xd70] sm:$0xff]  ;;  %v2613_v11 = vld [vmem:[#allocation19 + $0xd40] sm:$0xff] }
 0x7af   : > { %2472 = vmatpush.msrb.mxu0 %v2408_v43  ;;  %v2575_v43 = vld [vmem:[#allocation19 + $0xc10] sm:$0xff]  ;;  %v2609_v58 = vld [vmem:[#allocation19 + $0xd20] sm:$0xff] }
 0x7b0   : > { %2510 = vmatpush.msra.mxu2 %v2413_v20  ;;  %2493 = vmatpush.msrb.mxu1 %v2375_v0  ;;  %v2615_v20 = vld [vmem:[#allocation19 + $0xd50] sm:$0xff]  ;;  %v2605_v0 = vld [vmem:[#allocation19 + $0xd00] sm:$0xff] }
 0x7b1   : > { %2473 = vmatpush.msrb.mxu0 %v2406_v52  ;;  %v2617_v52 = vld [vmem:[#allocation19 + $0xd60] sm:$0xff] }
 0x7b2   : > { %2511 = vmatpush.msra.mxu2 %v2411_v13  ;;  %2637 = vmatpush.msra.mxu1 %v2603_v59  ;;  %v2611_v13 = vld [vmem:[#allocation19 + $0xd30] sm:$0xff] }
 0x7b3   : > { %8272 = vmatpush.msk.msra.mxu0 %vm933_vm0, %v10620_v15  ;;  %v2629_v15 = vld [vmem:[#allocation19 + $0xdc0] sm:$0xff] }
 0x7b4   : > { %2512 = vmatpush.msra.mxu2 %v2409_v14  ;;  %2638 = vmatpush.msra.mxu1 %v2601_v22  ;;  %v2607_v14 = vld [vmem:[#allocation19 + $0xd10] sm:$0xff]  ;;  %v2602_v22 = vld [vmem:[#allocation19 + $0xce8] sm:$0xff] }
 0x7b6   : > { %2513 = vmatpush.msra.mxu2 %v2407_v16  ;;  %2639 = vmatpush.msra.mxu1 %v2599_v40  ;;  %v2604_v16 = vld [vmem:[#allocation19 + $0xcf8] sm:$0xff] }
 0x7b8   : > { %2657 = vmatpush.msrb.mxu2 %v2635_v17  ;;  %2640 = vmatpush.msra.mxu1 %v2597_v24  ;;  %v8269_v24 = vld [vmem:[%s11551_s0 + $0xc] sm:$0x3] }
 0x7ba   : > { %2658 = vmatpush.msrb.mxu2 %v2633_v23  ;;  %2641 = vmatpush.msra.mxu1 %v2595_v25  ;;  %v2600_v23 = vld [vmem:[#allocation19 + $0xcd8] sm:$0xff]  ;;  %v2594_v25 = vld [vmem:[#allocation19 + $0xca8] sm:$0xff] }
 0x7bc   : > { %2659 = vmatpush.msrb.mxu2 %v2631_v41  ;;  %2642 = vmatpush.msra.mxu1 %v2593_v27  ;;  %v2598_v41 = vld [vmem:[#allocation19 + $0xcc8] sm:$0xff] }
 0x7be   : > { %2660 = vmatpush.msrb.mxu2 %v2629_v15  ;;  %2643 = vmatpush.msra.mxu1 %v2591_v28  ;;  %v2596_v15 = vld [vmem:[#allocation19 + $0xcb8] sm:$0xff]  ;;  %v2634_v28 = vld [vmem:[#allocation19 + $0xde8] sm:$0xff] }
 0x7c0   : > { %2661 = vmatpush.msrb.mxu2 %v2627_v18  ;;  %2644 = vmatpush.msra.mxu1 %v2589_v31  ;;  %v2636_v18 = vld [vmem:[#allocation19 + $0xdf8] sm:$0xff]  ;;  %v2590_v31 = vld [vmem:[#allocation19 + $0xc88] sm:$0xff] }
 0x7c2   : > { %2645 = vmatpush.msra.mxu1 %v2587_v32  ;;  %2662 = vmatpush.msrb.mxu2 %v2625_v35  ;;  %v2632_v32 = vld [vmem:[#allocation19 + $0xdd8] sm:$0xff] }
 0x7c3   : > { %v2628_v35 = vld [vmem:[#allocation19 + $0xdb8] sm:$0xff] }
 0x7c4   : > { %2646 = vmatpush.msra.mxu1 %v2585_v33  ;;  %2663 = vmatpush.msrb.mxu2 %v2623_v39  ;;  %v2588_v33 = vld [vmem:[#allocation19 + $0xc78] sm:$0xff]  ;;  %v2626_v39 = vld [vmem:[#allocation19 + $0xda8] sm:$0xff] }
 0x7c6   : > { %2647 = vmatpush.msra.mxu1 %v2583_v19  ;;  %2664 = vmatpush.msrb.mxu2 %v2621_v42  ;;  %v2630_v19 = vld [vmem:[#allocation19 + $0xdc8] sm:$0xff]  ;;  %v2580_v42 = vld [vmem:[#allocation19 + $0xc38] sm:$0xff] }
 0x7c8   : > { %2648 = vmatpush.msra.mxu1 %v2581_v34  ;;  %2665 = vmatpush.msrb.mxu2 %v2619_v50  ;;  %v2586_v34 = vld [vmem:[#allocation19 + $0xc68] sm:$0xff] }
 0x7c9   : > { %v2578_v50 = vld [vmem:[#allocation19 + $0xc28] sm:$0xff] }
 0x7ca   : > { %2649 = vmatpush.msra.mxu1 %v2579_v38  ;;  %2666 = vmatpush.msrb.mxu2 %v2617_v52  ;;  %v2584_v38 = vld [vmem:[#allocation19 + $0xc58] sm:$0xff] }
 0x7cb   : > { %v2576_v52 = vld [vmem:[#allocation19 + $0xc18] sm:$0xff] }
 0x7cc   : > { %2650 = vmatpush.msra.mxu1 %v2577_v26  ;;  %2667 = vmatpush.msrb.mxu2 %v2615_v20  ;;  %v2624_v26 = vld [vmem:[#allocation19 + $0xd98] sm:$0xff]  ;;  %v2618_v20 = vld [vmem:[#allocation19 + $0xd68] sm:$0xff] }
 0x7ce   : > { %2651 = vmatpush.msra.mxu1 %v2575_v43  ;;  %2668 = vmatpush.msrb.mxu2 %v2613_v11  ;;  %v2622_v43 = vld [vmem:[#allocation19 + $0xd88] sm:$0xff] }
 0x7cf   : > { %v2574_v11 = vld [vmem:[#allocation19 + $0xc08] sm:$0xff] }
 0x7d0   : > { %2652 = vmatpush.msra.mxu1 %v2573_v51  ;;  %2669 = vmatpush.msrb.mxu2 %v2611_v13  ;;  %v2620_v51 = vld [vmem:[#allocation19 + $0xd78] sm:$0xff] }
 0x7d1   : > { %v2616_v13 = vld [vmem:[#allocation19 + $0xd58] sm:$0xff] }
 0x7d2   : > { %2670 = vmatpush.msrb.mxu2 %v2609_v58  ;;  %v2802_v58 = vld [vmem:[#allocation19 + $0xef0] sm:$0xff] }
 0x7d4   : > { %2671 = vmatpush.msrb.mxu2 %v2607_v14  ;;  %v2614_v14 = vld [vmem:[#allocation19 + $0xd48] sm:$0xff] }
 0x7d6   : > { %2672 = vmatpush.msrb.mxu2 %v2605_v0  ;;  %v2800_v0 = vld [vmem:[#allocation19 + $0xee0] sm:$0xff] }
 0x809   : > { %v10733_v59 = vpop.f32.mrf.mxu1 }
 0x811   : > { %v2350_v17 = vpop.f32.mrf.mxu1 }
 0x812   : > { %2454 = vmatmul.f32.vlgmr.msrb.gmra.mxu3 %v2350_v17  ;;  %2494 = vmatmul.f32.vlgmr.msrb.gmra.mxu1 %v2350_v17  ;;  %v2798_v17 = vld [vmem:[#allocation19 + $0xed0] sm:$0xff] }
 0x813   : > { %8275 = vmatpush.msk.msrb.mxu1 %vm933_vm0, %v10623_v36  ;;  %2677 = vmatpush.msrb.mxu3 %v2604_v16  ;;  %v2592_v36 = vld [vmem:[#allocation19 + $0xc98] sm:$0xff] }
 0x814   : > { %v2612_v16 = vld [vmem:[#allocation19 + $0xd38] sm:$0xff] }
 0x815   : > { %v10737_v40 = vpop.f32.mrf.mxu2  ;;  %2678 = vmatpush.msrb.mxu3 %v2602_v22  ;;  %v2610_v22 = vld [vmem:[#allocation19 + $0xd28] sm:$0xff] }
 0x817   : > { %2679 = vmatpush.msrb.mxu3 %v2600_v23  ;;  %v2796_v23 = vld [vmem:[#allocation19 + $0xec0] sm:$0xff] }
 0x819   : > { %2680 = vmatpush.msrb.mxu3 %v2598_v41  ;;  %v2608_v41 = vld [vmem:[#allocation19 + $0xd18] sm:$0xff] }
 0x81a   : > { %8271 = vmatmul.msk.f32.vlgmr.msra.gmra.mxu3 %vm929_vm1, %v8269_v24 }
 0x81b   : > { %2681 = vmatpush.msrb.mxu3 %v2596_v15  ;;  %v2606_v15 = vld [vmem:[#allocation19 + $0xd08] sm:$0xff] }
 0x81d   : > { %v2370_v27 = vpop.f32.mrf.mxu2  ;;  %2682 = vmatpush.msrb.mxu3 %v2594_v25  ;;  %v2792_v25 = vld [vmem:[#allocation19 + $0xea0] sm:$0xff] }
 0x81e   : > { %2474 = vmatmul.f32.vlgmr.msrb.gmra.mxu0 %v2370_v27  ;;  %2514 = vmatmul.f32.vlgmr.msra.gmra.mxu2 %v2370_v27  ;;  %v2790_v27 = vld [vmem:[#allocation19 + $0xe90] sm:$0xff] }
 0x81f   : > { %8277 = vmatpush.msk.msra.mxu2 %vm933_vm0, %v10625_v37  ;;  %2697 = vmatpush.msrb.mxu0 %v2636_v18  ;;  %v2582_v37 = vld [vmem:[#allocation19 + $0xc48] sm:$0xff]  ;;  %v2834_v18 = vld [vmem:[#allocation19 + $0xff0] sm:$0xff] }
 0x820   : > { %2683 = vmatpush.msrb.mxu3 %v2592_v36  ;;  %v2832_v36 = vld [vmem:[#allocation19 + $0xfe0] sm:$0xff] }
 0x821   : > { %2698 = vmatpush.msrb.mxu0 %v2634_v28  ;;  %v2788_v28 = vld [vmem:[#allocation19 + $0xe80] sm:$0xff] }
 0x822   : > { %2684 = vmatpush.msrb.mxu3 %v2590_v31  ;;  %v2830_v31 = vld [vmem:[#allocation19 + $0xfd0] sm:$0xff] }
 0x823   : > { %2699 = vmatpush.msrb.mxu0 %v2632_v32  ;;  %v2828_v32 = vld [vmem:[#allocation19 + $0xfc0] sm:$0xff] }
 0x824   : > { %2685 = vmatpush.msrb.mxu3 %v2588_v33  ;;  %v2826_v33 = vld [vmem:[#allocation19 + $0xfb0] sm:$0xff] }
 0x825   : > { %2700 = vmatpush.msrb.mxu0 %v2630_v19  ;;  %v2786_v19 = vld [vmem:[#allocation19 + $0xe70] sm:$0xff] }
 0x826   : > { %8273 = vmatmul.msk.f32.vlgmr.msra.gmra.mxu0 %vm929_vm1, %v8269_v24  ;;  %2686 = vmatpush.msrb.mxu3 %v2586_v34  ;;  %v2794_v24 = vld [vmem:[#allocation19 + $0xeb0] sm:$0xff]  ;;  %v2824_v34 = vld [vmem:[#allocation19 + $0xfa0] sm:$0xff] }
 0x827   : > { %2701 = vmatpush.msrb.mxu0 %v2628_v35  ;;  %v2784_v35 = vld [vmem:[#allocation19 + $0xe60] sm:$0xff] }
 0x828   : > { %2687 = vmatpush.msrb.mxu3 %v2584_v38  ;;  %v2822_v38 = vld [vmem:[#allocation19 + $0xf90] sm:$0xff] }
 0x829   : > { %2702 = vmatpush.msrb.mxu0 %v2626_v39  ;;  %v2782_v39 = vld [vmem:[#allocation19 + $0xe50] sm:$0xff] }
 0x82a   : > { %2688 = vmatpush.msrb.mxu3 %v2582_v37  ;;  %v2820_v37 = vld [vmem:[#allocation19 + $0xf80] sm:$0xff] }
 0x82b   : > { %2703 = vmatpush.msrb.mxu0 %v2624_v26  ;;  %v2780_v26 = vld [vmem:[#allocation19 + $0xe40] sm:$0xff] }
 0x82c   : > { %2689 = vmatpush.msrb.mxu3 %v2580_v42  ;;  %v2818_v42 = vld [vmem:[#allocation19 + $0xf70] sm:$0xff] }
 0x82d   : > { %2704 = vmatpush.msrb.mxu0 %v2622_v43  ;;  %v2778_v43 = vld [vmem:[#allocation19 + $0xe30] sm:$0xff] }
 0x82e   : > { %2690 = vmatpush.msrb.mxu3 %v2578_v50  ;;  %v2816_v50 = vld [vmem:[#allocation19 + $0xf60] sm:$0xff] }
 0x82f   : > { %2705 = vmatpush.msrb.mxu0 %v2620_v51  ;;  %v2776_v51 = vld [vmem:[#allocation19 + $0xe20] sm:$0xff] }
 0x830   : > { %2691 = vmatpush.msrb.mxu3 %v2576_v52  ;;  %v2814_v52 = vld [vmem:[#allocation19 + $0xf50] sm:$0xff] }
 0x831   : > { %2706 = vmatpush.msrb.mxu0 %v2618_v20  ;;  %v10746_v20 = vpop.f32.mrf.mxu3 }
 0x832   : > { %2692 = vmatpush.msrb.mxu3 %v2574_v11  ;;  %v2774_v11 = vld [vmem:[#allocation19 + $0xe10] sm:$0xff] }
 0x833   : > { %2707 = vmatpush.msrb.mxu0 %v2616_v13  ;;  %v2812_v13 = vld [vmem:[#allocation19 + $0xf40] sm:$0xff] }
 0x834   : > { %2836 = vmatpush.msra.mxu3 %v2802_v58  ;;  %v2772_v58 = vld [vmem:[#allocation19 + $0xe00] sm:$0xff] }
 0x835   : > { %2708 = vmatpush.msrb.mxu0 %v2614_v14  ;;  %v2810_v14 = vld [vmem:[#allocation19 + $0xf30] sm:$0xff] }
 0x836   : > { %2837 = vmatpush.msra.mxu3 %v2800_v0  ;;  %v2808_v0 = vld [vmem:[#allocation19 + $0xf20] sm:$0xff] }
 0x837   : > { %2709 = vmatpush.msrb.mxu0 %v2612_v16  ;;  %v2806_v16 = vld [vmem:[#allocation19 + $0xf10] sm:$0xff] }
 0x838   : > { %2838 = vmatpush.msra.mxu3 %v2798_v17  ;;  %v10748_v17 = vpop.f32.mrf.mxu0 }
 0x839   : > { %2710 = vmatpush.msrb.mxu0 %v2610_v22  ;;  %v10750_v22 = vpop.f32.mrf.mxu3 }
 0x83a   : > { %2839 = vmatpush.msra.mxu3 %v2796_v23  ;;  %v2804_v23 = vld [vmem:[#allocation19 + $0xf00] sm:$0xff] }
 0x83b   : > { %2711 = vmatpush.msrb.mxu0 %v2608_v41 }
 0x83c   : > { %2840 = vmatpush.msra.mxu3 %v2794_v24 }
 0x83d   : > { %2712 = vmatpush.msrb.mxu0 %v2606_v15 }
 0x83e   : > { %2841 = vmatpush.msra.mxu3 %v2792_v25 }
 0x83f   : > { %2856 = vmatpush.msra.mxu0 %v2834_v18 }
 0x840   : > { %2842 = vmatpush.msra.mxu3 %v2790_v27  ;;  %v10752_v41 = vpop.f32.mrf.mxu0  ;;  %v2803_v27 = vld [vmem:[#allocation19 + $0xef8] sm:$0xff] }
 0x841   : > { %2857 = vmatpush.msra.mxu0 %v2832_v36  ;;  %v10754_v24 = vpop.f32.mrf.mxu3 }
 0x842   : > { %2843 = vmatpush.msra.mxu3 %v2788_v28  ;;  %v2801_v28 = vld [vmem:[#allocation19 + $0xee8] sm:$0xff] }
 0x843   : > { %2858 = vmatpush.msra.mxu0 %v2830_v31  ;;  %v2799_v31 = vld [vmem:[#allocation19 + $0xed8] sm:$0xff] }
 0x844   : > { %2844 = vmatpush.msra.mxu3 %v2786_v19  ;;  %v8274_v19 = vld [vmem:[%s11551_s0 + $0xe] sm:$0x3] }
 0x845   : > { %2859 = vmatpush.msra.mxu0 %v2828_v32  ;;  %v2797_v32 = vld [vmem:[#allocation19 + $0xec8] sm:$0xff] }
 0x846   : > { %2845 = vmatpush.msra.mxu3 %v2784_v35  ;;  %v2795_v35 = vld [vmem:[#allocation19 + $0xeb8] sm:$0xff] }
 0x847   : > { %2860 = vmatpush.msra.mxu0 %v2826_v33 }
 0x848   : > { %2846 = vmatpush.msra.mxu3 %v2782_v39  ;;  %v10756_v15 = vpop.f32.mrf.mxu0  ;;  %v2831_v39 = vld [vmem:[#allocation19 + $0xfd8] sm:$0xff] }
 0x849   : > { %2861 = vmatpush.msra.mxu0 %v2824_v34  ;;  %v2835_v34 = vld [vmem:[#allocation19 + $0xff8] sm:$0xff] }
 0x84a   : > { %2847 = vmatpush.msra.mxu3 %v2780_v26  ;;  %v2789_v26 = vld [vmem:[#allocation19 + $0xe88] sm:$0xff] }
 0x84b   : > { %2862 = vmatpush.msra.mxu0 %v2822_v38  ;;  %v2833_v38 = vld [vmem:[#allocation19 + $0xfe8] sm:$0xff] }
 0x84c   : > { %2848 = vmatpush.msra.mxu3 %v2778_v43  ;;  %v2787_v43 = vld [vmem:[#allocation19 + $0xe78] sm:$0xff] }
 0x84d   : > { %2863 = vmatpush.msra.mxu0 %v2820_v37  ;;  %v2791_v37 = vld [vmem:[#allocation19 + $0xe98] sm:$0xff] }
 0x84e   : > { %2849 = vmatpush.msra.mxu3 %v2776_v51  ;;  %v2825_v51 = vld [vmem:[#allocation19 + $0xfa8] sm:$0xff] }
 0x84f   : > { %2864 = vmatpush.msra.mxu0 %v2818_v42  ;;  %v2829_v42 = vld [vmem:[#allocation19 + $0xfc8] sm:$0xff] }
 0x850   : > { %2850 = vmatpush.msra.mxu3 %v2774_v11  ;;  %v2823_v11 = vld [vmem:[#allocation19 + $0xf98] sm:$0xff] }
 0x851   : > { %2865 = vmatpush.msra.mxu0 %v2816_v50  ;;  %v2827_v50 = vld [vmem:[#allocation19 + $0xfb8] sm:$0xff] }
 0x852   : > { %2851 = vmatpush.msra.mxu3 %v2772_v58  ;;  %v2821_v58 = vld [vmem:[#allocation19 + $0xf88] sm:$0xff] }
 0x853   : > { %2866 = vmatpush.msra.mxu0 %v2814_v52  ;;  %v2783_v52 = vld [vmem:[#allocation19 + $0xe58] sm:$0xff] }
 0x855   : > { %2867 = vmatpush.msra.mxu0 %v2812_v13  ;;  %v2781_v13 = vld [vmem:[#allocation19 + $0xe48] sm:$0xff] }
 0x857   : > { %2868 = vmatpush.msra.mxu0 %v2810_v14  ;;  %v2779_v14 = vld [vmem:[#allocation19 + $0xe38] sm:$0xff] }
 0x859   : > { %2869 = vmatpush.msra.mxu0 %v2808_v0  ;;  %v2819_v0 = vld [vmem:[#allocation19 + $0xf78] sm:$0xff] }
 0x85b   : > { %2870 = vmatpush.msra.mxu0 %v2806_v16  ;;  %v2777_v16 = vld [vmem:[#allocation19 + $0xe28] sm:$0xff] }
 0x85d   : > { %2871 = vmatpush.msra.mxu0 %v2804_v23  ;;  %v2817_v23 = vld [vmem:[#allocation19 + $0xf68] sm:$0xff] }
 0x895   : > { %v10758_v25 = vpop.f32.mrf.mxu3 }
 0x89b   : > { %v10760_v18 = vpop.f32.mrf.mxu0 }
 0x89d   : > { %v2549_v36 = vpop.f32.mrf.mxu3 }
 0x89e   : > { %2653 = vmatmul.f32.vlgmr.msra.gmra.mxu1 %v2549_v36  ;;  %2693 = vmatmul.f32.vlgmr.msrb.gmra.mxu3 %v2549_v36  ;;  %v2815_v36 = vld [vmem:[#allocation19 + $0xf58] sm:$0xff] }
 0x89f   : > { %8280 = vmatpush.msk.msrb.mxu3 %vm933_vm0, %v10628_v2  ;;  %2876 = vmatpush.msra.mxu1 %v2803_v27  ;;  %v2793_v2 = vld [vmem:[#allocation19 + $0xea8] sm:$0xff]  ;;  %v2775_v27 = vld [vmem:[#allocation19 + $0xe18] sm:$0xff] }
 0x8a1   : > { %2877 = vmatpush.msra.mxu1 %v2801_v28  ;;  %v2773_v28 = vld [vmem:[#allocation19 + $0xe08] sm:$0xff] }
 0x8a3   : > { %v2569_v33 = vpop.f32.mrf.mxu0  ;;  %2878 = vmatpush.msra.mxu1 %v2799_v31  ;;  %v2813_v31 = vld [vmem:[#allocation19 + $0xf48] sm:$0xff] }
 0x8a4   : > { %2673 = vmatmul.f32.vlgmr.msrb.gmra.mxu2 %v2569_v33  ;;  %2713 = vmatmul.f32.vlgmr.msrb.gmra.mxu0 %v2569_v33  ;;  %v2811_v33 = vld [vmem:[#allocation19 + $0xf38] sm:$0xff] }
 0x8a5   : > { %8282 = vmatpush.msk.msrb.mxu0 %vm933_vm0, %v10630_v5  ;;  %2879 = vmatpush.msra.mxu1 %v2797_v32  ;;  %v2785_v5 = vld [vmem:[#allocation19 + $0xe68] sm:$0xff]  ;;  %v3001_v32 = vld [vmem:[#allocation19 + $0x10f0] sm:$0xff] }
 0x8a6   : > { %8276 = vmatmul.msk.f32.vlgmr.msrb.gmra.mxu1 %vm929_vm1, %v8274_v19  ;;  %2896 = vmatpush.msrb.mxu2 %v2835_v34  ;;  %v2809_v34 = vld [vmem:[#allocation19 + $0xf28] sm:$0xff] }
 0x8a7   : > { %2880 = vmatpush.msra.mxu1 %v2795_v35  ;;  %v2997_v35 = vld [vmem:[#allocation19 + $0x10d0] sm:$0xff] }
 0x8a8   : > { %2897 = vmatpush.msrb.mxu2 %v2833_v38  ;;  %v2807_v38 = vld [vmem:[#allocation19 + $0xf18] sm:$0xff] }
 0x8a9   : > { %2881 = vmatpush.msra.mxu1 %v2793_v2  ;;  %v2995_v2 = vld [vmem:[#allocation19 + $0x10c0] sm:$0xff] }
 0x8aa   : > { %2898 = vmatpush.msrb.mxu2 %v2831_v39  ;;  %v2805_v39 = vld [vmem:[#allocation19 + $0xf08] sm:$0xff] }
 0x8ab   : > { %2882 = vmatpush.msra.mxu1 %v2791_v37  ;;  %v2993_v37 = vld [vmem:[#allocation19 + $0x10b0] sm:$0xff] }
 0x8ac   : > { %8278 = vmatmul.msk.f32.vlgmr.msra.gmra.mxu2 %vm929_vm1, %v8274_v19  ;;  %v2999_v19 = vld [vmem:[#allocation19 + $0x10e0] sm:$0xff] }
 0x8ad   : > { %2883 = vmatpush.msra.mxu1 %v2789_v26  ;;  %2899 = vmatpush.msrb.mxu2 %v2829_v42  ;;  %v3033_v26 = vld [vmem:[#allocation19 + $0x11f0] sm:$0xff]  ;;  %v2991_v42 = vld [vmem:[#allocation19 + $0x10a0] sm:$0xff] }
 0x8af   : > { %2884 = vmatpush.msra.mxu1 %v2787_v43  ;;  %2900 = vmatpush.msrb.mxu2 %v2827_v50  ;;  %v3031_v43 = vld [vmem:[#allocation19 + $0x11e0] sm:$0xff]  ;;  %v2989_v50 = vld [vmem:[#allocation19 + $0x1090] sm:$0xff] }
 0x8b1   : > { %2885 = vmatpush.msra.mxu1 %v2785_v5  ;;  %2901 = vmatpush.msrb.mxu2 %v2825_v51  ;;  %v3029_v5 = vld [vmem:[#allocation19 + $0x11d0] sm:$0xff]  ;;  %v2987_v51 = vld [vmem:[#allocation19 + $0x1080] sm:$0xff] }
 0x8b3   : > { %2886 = vmatpush.msra.mxu1 %v2783_v52  ;;  %2902 = vmatpush.msrb.mxu2 %v2823_v11  ;;  %v3027_v52 = vld [vmem:[#allocation19 + $0x11c0] sm:$0xff]  ;;  %v2985_v11 = vld [vmem:[#allocation19 + $0x1070] sm:$0xff] }
 0x8b5   : > { %2887 = vmatpush.msra.mxu1 %v2781_v13  ;;  %2903 = vmatpush.msrb.mxu2 %v2821_v58  ;;  %v3025_v13 = vld [vmem:[#allocation19 + $0x11b0] sm:$0xff]  ;;  %v2983_v58 = vld [vmem:[#allocation19 + $0x1060] sm:$0xff] }
 0x8b7   : > { %2888 = vmatpush.msra.mxu1 %v2779_v14  ;;  %2904 = vmatpush.msrb.mxu2 %v2819_v0  ;;  %v2981_v14 = vld [vmem:[#allocation19 + $0x1050] sm:$0xff]  ;;  %v2979_v0 = vld [vmem:[#allocation19 + $0x1040] sm:$0xff] }
 0x8b9   : > { %2889 = vmatpush.msra.mxu1 %v2777_v16  ;;  %2905 = vmatpush.msrb.mxu2 %v2817_v23  ;;  %v3023_v16 = vld [vmem:[#allocation19 + $0x11a0] sm:$0xff]  ;;  %v2977_v23 = vld [vmem:[#allocation19 + $0x1030] sm:$0xff] }
 0x8bb   : > { %2890 = vmatpush.msra.mxu1 %v2775_v27  ;;  %2906 = vmatpush.msrb.mxu2 %v2815_v36  ;;  %v3021_v27 = vld [vmem:[#allocation19 + $0x1190] sm:$0xff]  ;;  %v2975_v36 = vld [vmem:[#allocation19 + $0x1020] sm:$0xff] }
 0x8bd   : > { %2891 = vmatpush.msra.mxu1 %v2773_v28  ;;  %2907 = vmatpush.msrb.mxu2 %v2813_v31  ;;  %v3019_v28 = vld [vmem:[#allocation19 + $0x1180] sm:$0xff]  ;;  %v2973_v31 = vld [vmem:[#allocation19 + $0x1010] sm:$0xff] }
 0x8bf   : > { %3035 = vmatpush.msrb.mxu1 %v3001_v32  ;;  %2908 = vmatpush.msrb.mxu2 %v2811_v33  ;;  %v3017_v32 = vld [vmem:[#allocation19 + $0x1170] sm:$0xff]  ;;  %v2971_v33 = vld [vmem:[#allocation19 + $0x1000] sm:$0xff] }
 0x8c1   : > { %3036 = vmatpush.msrb.mxu1 %v2999_v19  ;;  %2909 = vmatpush.msrb.mxu2 %v2809_v34  ;;  %v3015_v19 = vld [vmem:[#allocation19 + $0x1160] sm:$0xff]  ;;  %v3013_v34 = vld [vmem:[#allocation19 + $0x1150] sm:$0xff] }
 0x8c3   : > { %3037 = vmatpush.msrb.mxu1 %v2997_v35  ;;  %2910 = vmatpush.msrb.mxu2 %v2807_v38  ;;  %v3011_v35 = vld [vmem:[#allocation19 + $0x1140] sm:$0xff]  ;;  %v3009_v38 = vld [vmem:[#allocation19 + $0x1130] sm:$0xff] }
 0x8c5   : > { %3038 = vmatpush.msrb.mxu1 %v2995_v2  ;;  %2911 = vmatpush.msrb.mxu2 %v2805_v39  ;;  %v3007_v2 = vld [vmem:[#allocation19 + $0x1120] sm:$0xff]  ;;  %v3005_v39 = vld [vmem:[#allocation19 + $0x1110] sm:$0xff] }
 0x8c7   : > { %3039 = vmatpush.msrb.mxu1 %v2993_v37  ;;  %3055 = vmatpush.msra.mxu2 %v3033_v26  ;;  %v3003_v37 = vld [vmem:[#allocation19 + $0x1100] sm:$0xff]  ;;  %v10771_v26 = vpop.f32.mrf.mxu1 }
 0x8c9   : > { %3040 = vmatpush.msrb.mxu1 %v2991_v42  ;;  %3056 = vmatpush.msra.mxu2 %v3031_v43  ;;  %v10775_v43 = vpop.f32.mrf.mxu2 }
 0x8cb   : > { %3041 = vmatpush.msrb.mxu1 %v2989_v50  ;;  %3057 = vmatpush.msra.mxu2 %v3029_v5  ;;  %v3002_v50 = vld [vmem:[#allocation19 + $0x10f8] sm:$0xff] }
 0x8cd   : > { %3042 = vmatpush.msrb.mxu1 %v2987_v51  ;;  %3058 = vmatpush.msra.mxu2 %v3027_v52  ;;  %v3000_v51 = vld [vmem:[#allocation19 + $0x10e8] sm:$0xff]  ;;  %v2998_v52 = vld [vmem:[#allocation19 + $0x10d8] sm:$0xff] }
 0x8cf   : > { %3043 = vmatpush.msrb.mxu1 %v2985_v11  ;;  %3059 = vmatpush.msra.mxu2 %v3025_v13  ;;  %v2996_v13 = vld [vmem:[#allocation19 + $0x10c8] sm:$0xff] }
 0x8d1   : > { %3044 = vmatpush.msrb.mxu1 %v2983_v58  ;;  %3060 = vmatpush.msra.mxu2 %v3023_v16  ;;  %v8279_v58 = vld [vmem:[%s11551_s0 + $0x10] sm:$0x3]  ;;  %v2990_v16 = vld [vmem:[#allocation19 + $0x1098] sm:$0xff] }
 0x8d3   : > { %3045 = vmatpush.msrb.mxu1 %v2981_v14  ;;  %3061 = vmatpush.msra.mxu2 %v3021_v27  ;;  %v2994_v14 = vld [vmem:[#allocation19 + $0x10b8] sm:$0xff]  ;;  %v2988_v27 = vld [vmem:[#allocation19 + $0x1088] sm:$0xff] }
 0x8d5   : > { %3046 = vmatpush.msrb.mxu1 %v2979_v0  ;;  %3062 = vmatpush.msra.mxu2 %v3019_v28  ;;  %v2992_v0 = vld [vmem:[#allocation19 + $0x10a8] sm:$0xff]  ;;  %v2986_v28 = vld [vmem:[#allocation19 + $0x1078] sm:$0xff] }
 0x8d7   : > { %3047 = vmatpush.msrb.mxu1 %v2977_v23  ;;  %3063 = vmatpush.msra.mxu2 %v3017_v32  ;;  %v3034_v23 = vld [vmem:[#allocation19 + $0x11f8] sm:$0xff]  ;;  %v2984_v32 = vld [vmem:[#allocation19 + $0x1068] sm:$0xff] }
 0x8d9   : > { %3048 = vmatpush.msrb.mxu1 %v2975_v36  ;;  %3064 = vmatpush.msra.mxu2 %v3015_v19  ;;  %v3032_v36 = vld [vmem:[#allocation19 + $0x11e8] sm:$0xff]  ;;  %v2982_v19 = vld [vmem:[#allocation19 + $0x1058] sm:$0xff] }
 0x8db   : > { %3049 = vmatpush.msrb.mxu1 %v2973_v31  ;;  %3065 = vmatpush.msra.mxu2 %v3013_v34  ;;  %v3030_v31 = vld [vmem:[#allocation19 + $0x11d8] sm:$0xff] }
 0x8dc   : > { %v3026_v34 = vld [vmem:[#allocation19 + $0x11b8] sm:$0xff] }
 0x8dd   : > { %3050 = vmatpush.msrb.mxu1 %v2971_v33  ;;  %3066 = vmatpush.msra.mxu2 %v3011_v35  ;;  %v3028_v33 = vld [vmem:[#allocation19 + $0x11c8] sm:$0xff] }
 0x8de   : > { %v2980_v35 = vld [vmem:[#allocation19 + $0x1048] sm:$0xff] }
 0x8df   : > { %3067 = vmatpush.msra.mxu2 %v3009_v38  ;;  %v3024_v38 = vld [vmem:[#allocation19 + $0x11a8] sm:$0xff] }
 0x8e1   : > { %3068 = vmatpush.msra.mxu2 %v3007_v2  ;;  %v2978_v2 = vld [vmem:[#allocation19 + $0x1038] sm:$0xff] }
 0x8e3   : > { %3069 = vmatpush.msra.mxu2 %v3005_v39  ;;  %v2976_v39 = vld [vmem:[#allocation19 + $0x1028] sm:$0xff] }
 0x8e5   : > { %3070 = vmatpush.msra.mxu2 %v3003_v37  ;;  %v3020_v37 = vld [vmem:[#allocation19 + $0x1188] sm:$0xff] }
 0x91b   : > { %v10773_v42 = vpop.f32.mrf.mxu1 }
 0x923   : > { %v2748_v5 = vpop.f32.mrf.mxu1 }
 0x924   : > { %2852 = vmatmul.f32.vlgmr.msra.gmra.mxu3 %v2748_v5  ;;  %2892 = vmatmul.f32.vlgmr.msra.gmra.mxu1 %v2748_v5  ;;  %v3018_v5 = vld [vmem:[#allocation19 + $0x1178] sm:$0xff] }
 0x925   : > { %3075 = vmatpush.msra.mxu3 %v3002_v50  ;;  %8284 = vmatpush.msk.msra.mxu1 %vm933_vm0, %v10633_v29  ;;  %v2974_v50 = vld [vmem:[#allocation19 + $0x1018] sm:$0xff] }
 0x927   : > { %3076 = vmatpush.msra.mxu3 %v3000_v51  ;;  %v10779_v11 = vpop.f32.mrf.mxu2  ;;  %v2972_v51 = vld [vmem:[#allocation19 + $0x1008] sm:$0xff] }
 0x929   : > { %3077 = vmatpush.msra.mxu3 %v2998_v52  ;;  %v3016_v52 = vld [vmem:[#allocation19 + $0x1168] sm:$0xff] }
 0x92b   : > { %3078 = vmatpush.msra.mxu3 %v2996_v13  ;;  %v3014_v13 = vld [vmem:[#allocation19 + $0x1158] sm:$0xff] }
 0x92c   : > { %8281 = vmatmul.msk.f32.vlgmr.msrb.gmra.mxu3 %vm929_vm1, %v8279_v58 }
 0x92d   : > { %3079 = vmatpush.msra.mxu3 %v2994_v14  ;;  %v3010_v14 = vld [vmem:[#allocation19 + $0x1138] sm:$0xff] }
 0x92f   : > { %3080 = vmatpush.msra.mxu3 %v2992_v0  ;;  %v2768_v29 = vpop.f32.mrf.mxu2  ;;  %v3008_v0 = vld [vmem:[#allocation19 + $0x1128] sm:$0xff] }
 0x930   : > { %2872 = vmatmul.f32.vlgmr.msra.gmra.mxu0 %v2768_v29  ;;  %2912 = vmatmul.f32.vlgmr.msrb.gmra.mxu2 %v2768_v29  ;;  %v10792_v29 = vpop.f32.mrf.mxu3 }
 0x931   : > { %3081 = vmatpush.msra.mxu3 %v2990_v16  ;;  %3095 = vmatpush.msra.mxu0 %v3034_v23  ;;  %v3006_v16 = vld [vmem:[#allocation19 + $0x1118] sm:$0xff]  ;;  %v3004_v23 = vld [vmem:[#allocation19 + $0x1108] sm:$0xff] }
 0x932   : > { %8286 = vmatpush.msk.msrb.mxu2 %vm933_vm0, %v10635_v30  ;;  %v3022_v30 = vld [vmem:[#allocation19 + $0x1198] sm:$0xff] }
 0x933   : > { %3082 = vmatpush.msra.mxu3 %v2988_v27  ;;  %3096 = vmatpush.msra.mxu0 %v3032_v36  ;;  %v10794_v27 = vpop.f32.mrf.mxu0 }
 0x935   : > { %3083 = vmatpush.msra.mxu3 %v2986_v28  ;;  %3097 = vmatpush.msra.mxu0 %v3030_v31  ;;  %v3337_v28 = vld [vmem:[#allocation21 + $0x2f0] sm:$0xff]  ;;  %v3338_v31 = vld [vmem:[#allocation21 + $0x2f8] sm:$0xff] }
 0x937   : > { %3084 = vmatpush.msra.mxu3 %v2984_v32  ;;  %3098 = vmatpush.msra.mxu0 %v3028_v33  ;;  %v3335_v33 = vld [vmem:[#allocation21 + $0x2e0] sm:$0xff] }
 0x938   : > { %8283 = vmatmul.msk.f32.vlgmr.msrb.gmra.mxu0 %vm929_vm1, %v8279_v58  ;;  %v3012_v58 = vld [vmem:[#allocation19 + $0x1148] sm:$0xff] }
 0x939   : > { %3085 = vmatpush.msra.mxu3 %v2982_v19  ;;  %3099 = vmatpush.msra.mxu0 %v3026_v34  ;;  %v3336_v19 = vld [vmem:[#allocation21 + $0x2e8] sm:$0xff]  ;;  %v3333_v34 = vld [vmem:[#allocation21 + $0x2d0] sm:$0xff] }
 0x93b   : > { %3086 = vmatpush.msra.mxu3 %v2980_v35  ;;  %3100 = vmatpush.msra.mxu0 %v3024_v38  ;;  %v3334_v35 = vld [vmem:[#allocation21 + $0x2d8] sm:$0xff] }
 0x93c   : > { %v3370_v38 = vld [vmem:[#allocation21 + $0x3f8] sm:$0xff] }
 0x93d   : > { %3087 = vmatpush.msra.mxu3 %v2978_v2  ;;  %3101 = vmatpush.msra.mxu0 %v3022_v30  ;;  %v8288_v30 = vld [vmem:[%s11552_s23 + $0x2] sm:$0x3] }
 0x93f   : > { %3088 = vmatpush.msra.mxu3 %v2976_v39  ;;  %3102 = vmatpush.msra.mxu0 %v3020_v37  ;;  %v3367_v39 = vld [vmem:[#allocation21 + $0x3e0] sm:$0xff]  ;;  %v3368_v37 = vld [vmem:[#allocation21 + $0x3e8] sm:$0xff] }
 0x941   : > { %3089 = vmatpush.msra.mxu3 %v2974_v50  ;;  %3103 = vmatpush.msra.mxu0 %v3018_v5  ;;  %v3139_v50 = vld [vmem:[%s11552_s23] sm:$0x3]  ;;  %v3331_v5 = vld [vmem:[#allocation21 + $0x2c0] sm:$0xff] }
 0x943   : > { %3090 = vmatpush.msra.mxu3 %v2972_v51  ;;  %3104 = vmatpush.msra.mxu0 %v3016_v52  ;;  %v3332_v51 = vld [vmem:[#allocation21 + $0x2c8] sm:$0xff]  ;;  %v3365_v52 = vld [vmem:[#allocation21 + $0x3d0] sm:$0xff] }
 0x945   : > { %8289 = vmatpush.msk.msrb.mxu3 %vm933_vm0, %v10638_v44  ;;  %3105 = vmatpush.msra.mxu0 %v3014_v13  ;;  %v3366_v13 = vld [vmem:[#allocation21 + $0x3d8] sm:$0xff] }
 0x947   : > { %3106 = vmatpush.msra.mxu0 %v3012_v58  ;;  %v3329_v58 = vld [vmem:[#allocation21 + $0x2b0] sm:$0xff] }
 0x949   : > { %3107 = vmatpush.msra.mxu0 %v3010_v14  ;;  %v3330_v14 = vld [vmem:[#allocation21 + $0x2b8] sm:$0xff] }
 0x94b   : > { %3108 = vmatpush.msra.mxu0 %v3008_v0  ;;  %v3363_v0 = vld [vmem:[#allocation21 + $0x3c0] sm:$0xff] }
 0x94d   : > { %3109 = vmatpush.msra.mxu0 %v3006_v16  ;;  %v3364_v16 = vld [vmem:[#allocation21 + $0x3c8] sm:$0xff] }
 0x94f   : > { %3110 = vmatpush.msra.mxu0 %v3004_v23  ;;  %v3361_v23 = vld [vmem:[#allocation21 + $0x3b0] sm:$0xff] }
 0x951   : > { %8291 = vmatpush.msk.msrb.mxu0 %vm933_vm0, %v10640_v45  ;;  %v3369_v45 = vld [vmem:[#allocation21 + $0x3f0] sm:$0xff] }
 0x9a7   : > { %v10796_v36 = vpop.f32.mrf.mxu3 }
 0x9ad   : > { %v10798_v44 = vpop.f32.mrf.mxu0 }
 0x9af   : > { %v2947_v32 = vpop.f32.mrf.mxu3 }
 0x9b0   : > { %3051 = vmatmul.f32.vlgmr.msrb.gmra.mxu1 %v2947_v32  ;;  %3091 = vmatmul.f32.vlgmr.msra.gmra.mxu3 %v2947_v32  ;;  %v3328_v32 = vld [vmem:[#allocation21 + $0x2a8] sm:$0xff] }
 0x9b1   : > { %3371 = vmatpush.msrb.mxu1 %v3337_v28  ;;  %3411 = vmatpush.msra.mxu3 %v3338_v31  ;;  %v3362_v28 = vld [vmem:[#allocation21 + $0x3b8] sm:$0xff]  ;;  %v3327_v31 = vld [vmem:[#allocation21 + $0x2a0] sm:$0xff] }
 0x9b3   : > { %3372 = vmatpush.msrb.mxu1 %v3335_v33  ;;  %3412 = vmatpush.msra.mxu3 %v3336_v19  ;;  %v3359_v33 = vld [vmem:[#allocation21 + $0x3a0] sm:$0xff]  ;;  %v3360_v19 = vld [vmem:[#allocation21 + $0x3a8] sm:$0xff] }
 0x9b5   : > { %v2967_v2 = vpop.f32.mrf.mxu0  ;;  %3373 = vmatpush.msrb.mxu1 %v3333_v34  ;;  %3413 = vmatpush.msra.mxu3 %v3334_v35  ;;  %v3325_v34 = vld [vmem:[#allocation21 + $0x290] sm:$0xff]  ;;  %v3326_v35 = vld [vmem:[#allocation21 + $0x298] sm:$0xff] }
 0x9b6   : > { %3071 = vmatmul.f32.vlgmr.msra.gmra.mxu2 %v2967_v2  ;;  %3111 = vmatmul.f32.vlgmr.msra.gmra.mxu0 %v2967_v2  ;;  %v3323_v2 = vld [vmem:[#allocation21 + $0x280] sm:$0xff] }
 0x9b7   : > { %3391 = vmatpush.msra.mxu2 %v3369_v45  ;;  %3431 = vmatpush.msra.mxu0 %v3370_v38  ;;  %v3357_v45 = vld [vmem:[#allocation21 + $0x390] sm:$0xff]  ;;  %v3358_v38 = vld [vmem:[#allocation21 + $0x398] sm:$0xff] }
 0x9b8   : > { %8290 = vmatmul.msk.f32.vlgmr.msrb.gmra.mxu3 %vm929_vm1, %v8288_v30  ;;  %8285 = vmatmul.msk.f32.vlgmr.msra.gmra.mxu1 %vm929_vm1, %v3139_v50 }
 0x9b9   : > { %3392 = vmatpush.msra.mxu2 %v3367_v39  ;;  %3432 = vmatpush.msra.mxu0 %v3368_v37  ;;  %v3324_v39 = vld [vmem:[#allocation21 + $0x288] sm:$0xff]  ;;  %v3355_v37 = vld [vmem:[#allocation21 + $0x380] sm:$0xff] }
 0x9ba   : > { %3374 = vmatpush.msrb.mxu1 %v3331_v5  ;;  %3414 = vmatpush.msra.mxu3 %v3332_v51  ;;  %v3322_v5 = vld [vmem:[#allocation21 + $0x278] sm:$0xff]  ;;  %v3353_v51 = vld [vmem:[#allocation21 + $0x370] sm:$0xff] }
 0x9bb   : > { %3393 = vmatpush.msra.mxu2 %v3365_v52  ;;  %3433 = vmatpush.msra.mxu0 %v3366_v13  ;;  %v3354_v52 = vld [vmem:[#allocation21 + $0x378] sm:$0xff]  ;;  %v3319_v13 = vld [vmem:[#allocation21 + $0x260] sm:$0xff] }
 0x9bc   : > { %3375 = vmatpush.msrb.mxu1 %v3329_v58  ;;  %3415 = vmatpush.msra.mxu3 %v3330_v14  ;;  %v3320_v58 = vld [vmem:[#allocation21 + $0x268] sm:$0xff]  ;;  %v3351_v14 = vld [vmem:[#allocation21 + $0x360] sm:$0xff] }
 0x9bd   : > { %3394 = vmatpush.msra.mxu2 %v3363_v0  ;;  %3434 = vmatpush.msra.mxu0 %v3364_v16  ;;  %v3352_v0 = vld [vmem:[#allocation21 + $0x368] sm:$0xff]  ;;  %v3317_v16 = vld [vmem:[#allocation21 + $0x250] sm:$0xff] }
 0x9be   : > { %8292 = vmatmul.msk.f32.vlgmr.msrb.gmra.mxu0 %vm929_vm1, %v8288_v30  ;;  %8287 = vmatmul.msk.f32.vlgmr.msrb.gmra.mxu2 %vm929_vm1, %v3139_v50  ;;  %v3356_v30 = vld [vmem:[#allocation21 + $0x388] sm:$0xff]  ;;  %v3321_v50 = vld [vmem:[#allocation21 + $0x270] sm:$0xff] }
 0x9bf   : > { %3395 = vmatpush.msra.mxu2 %v3361_v23  ;;  %3435 = vmatpush.msra.mxu0 %v3362_v28  ;;  %v3318_v23 = vld [vmem:[#allocation21 + $0x258] sm:$0xff]  ;;  %v3349_v28 = vld [vmem:[#allocation21 + $0x350] sm:$0xff] }
 0x9c0   : > { %3376 = vmatpush.msrb.mxu1 %v3327_v31  ;;  %3416 = vmatpush.msra.mxu3 %v3328_v32  ;;  %v3350_v31 = vld [vmem:[#allocation21 + $0x358] sm:$0xff]  ;;  %v3315_v32 = vld [vmem:[#allocation21 + $0x240] sm:$0xff] }
 0x9c1   : > { %3396 = vmatpush.msra.mxu2 %v3359_v33  ;;  %3436 = vmatpush.msra.mxu0 %v3360_v19  ;;  %v3316_v33 = vld [vmem:[#allocation21 + $0x248] sm:$0xff]  ;;  %v3347_v19 = vld [vmem:[#allocation21 + $0x340] sm:$0xff] }
 0x9c2   : > { %3377 = vmatpush.msrb.mxu1 %v3325_v34  ;;  %3417 = vmatpush.msra.mxu3 %v3326_v35  ;;  %v3348_v34 = vld [vmem:[#allocation21 + $0x348] sm:$0xff]  ;;  %v3313_v35 = vld [vmem:[#allocation21 + $0x230] sm:$0xff] }
 0x9c3   : > { %3397 = vmatpush.msra.mxu2 %v3357_v45  ;;  %3437 = vmatpush.msra.mxu0 %v3358_v38  ;;  %v3314_v45 = vld [vmem:[#allocation21 + $0x238] sm:$0xff]  ;;  %v3345_v38 = vld [vmem:[#allocation21 + $0x330] sm:$0xff] }
 0x9c4   : > { %3378 = vmatpush.msrb.mxu1 %v3323_v2  ;;  %3418 = vmatpush.msra.mxu3 %v3324_v39  ;;  %v3346_v2 = vld [vmem:[#allocation21 + $0x338] sm:$0xff]  ;;  %v3311_v39 = vld [vmem:[#allocation21 + $0x220] sm:$0xff] }
 0x9c5   : > { %3398 = vmatpush.msra.mxu2 %v3355_v37  ;;  %3438 = vmatpush.msra.mxu0 %v3356_v30  ;;  %v3312_v37 = vld [vmem:[#allocation21 + $0x228] sm:$0xff]  ;;  %v3343_v30 = vld [vmem:[#allocation21 + $0x320] sm:$0xff] }
 0x9c6   : > { %3379 = vmatpush.msrb.mxu1 %v3321_v50  ;;  %3419 = vmatpush.msra.mxu3 %v3322_v5  ;;  %v3344_v50 = vld [vmem:[#allocation21 + $0x328] sm:$0xff]  ;;  %v3309_v5 = vld [vmem:[#allocation21 + $0x210] sm:$0xff] }
 0x9c7   : > { %3399 = vmatpush.msra.mxu2 %v3353_v51  ;;  %3439 = vmatpush.msra.mxu0 %v3354_v52  ;;  %v3310_v51 = vld [vmem:[#allocation21 + $0x218] sm:$0xff]  ;;  %v3341_v52 = vld [vmem:[#allocation21 + $0x310] sm:$0xff] }
 0x9c8   : > { %3380 = vmatpush.msrb.mxu1 %v3319_v13  ;;  %3420 = vmatpush.msra.mxu3 %v3320_v58  ;;  %v3342_v13 = vld [vmem:[#allocation21 + $0x318] sm:$0xff]  ;;  %v3307_v58 = vld [vmem:[#allocation21 + $0x200] sm:$0xff] }
 0x9c9   : > { %3400 = vmatpush.msra.mxu2 %v3351_v14  ;;  %3440 = vmatpush.msra.mxu0 %v3352_v0  ;;  %v3308_v14 = vld [vmem:[#allocation21 + $0x208] sm:$0xff]  ;;  %v3339_v0 = vld [vmem:[#allocation21 + $0x300] sm:$0xff] }
 0x9ca   : > { %3381 = vmatpush.msrb.mxu1 %v3317_v16  ;;  %3421 = vmatpush.msra.mxu3 %v3318_v23  ;;  %v3340_v16 = vld [vmem:[#allocation21 + $0x308] sm:$0xff]  ;;  %v3220_v23 = vld [vmem:[#allocation21 + $0xf0] sm:$0xff] }
 0x9cb   : > { %3401 = vmatpush.msra.mxu2 %v3349_v28  ;;  %3441 = vmatpush.msra.mxu0 %v3350_v31  ;;  %v3252_v28 = vld [vmem:[#allocation21 + $0x1f0] sm:$0xff]  ;;  %v3221_v31 = vld [vmem:[#allocation21 + $0xf8] sm:$0xff] }
 0x9cc   : > { %3382 = vmatpush.msrb.mxu1 %v3315_v32  ;;  %3422 = vmatpush.msra.mxu3 %v3316_v33  ;;  %v3253_v32 = vld [vmem:[#allocation21 + $0x1f8] sm:$0xff]  ;;  %v3218_v33 = vld [vmem:[#allocation21 + $0xe0] sm:$0xff] }
 0x9cd   : > { %3402 = vmatpush.msra.mxu2 %v3347_v19  ;;  %3442 = vmatpush.msra.mxu0 %v3348_v34  ;;  %v3250_v19 = vld [vmem:[#allocation21 + $0x1e0] sm:$0xff]  ;;  %v3219_v34 = vld [vmem:[#allocation21 + $0xe8] sm:$0xff] }
 0x9ce   : > { %3383 = vmatpush.msrb.mxu1 %v3313_v35  ;;  %3423 = vmatpush.msra.mxu3 %v3314_v45  ;;  %v3251_v35 = vld [vmem:[#allocation21 + $0x1e8] sm:$0xff]  ;;  %v3216_v45 = vld [vmem:[#allocation21 + $0xd0] sm:$0xff] }
 0x9cf   : > { %3403 = vmatpush.msra.mxu2 %v3345_v38  ;;  %3443 = vmatpush.msra.mxu0 %v3346_v2  ;;  %v3248_v38 = vld [vmem:[#allocation21 + $0x1d0] sm:$0xff]  ;;  %v3217_v2 = vld [vmem:[#allocation21 + $0xd8] sm:$0xff] }
 0x9d0   : > { %3384 = vmatpush.msrb.mxu1 %v3311_v39  ;;  %3424 = vmatpush.msra.mxu3 %v3312_v37  ;;  %v3249_v39 = vld [vmem:[#allocation21 + $0x1d8] sm:$0xff]  ;;  %v3214_v37 = vld [vmem:[#allocation21 + $0xc0] sm:$0xff] }
 0x9d1   : > { %3404 = vmatpush.msra.mxu2 %v3343_v30  ;;  %3444 = vmatpush.msra.mxu0 %v3344_v50  ;;  %v3246_v30 = vld [vmem:[#allocation21 + $0x1c0] sm:$0xff]  ;;  %v3215_v50 = vld [vmem:[#allocation21 + $0xc8] sm:$0xff] }
 0x9d2   : > { %3385 = vmatpush.msrb.mxu1 %v3309_v5  ;;  %3425 = vmatpush.msra.mxu3 %v3310_v51  ;;  %v3247_v5 = vld [vmem:[#allocation21 + $0x1c8] sm:$0xff]  ;;  %v3212_v51 = vld [vmem:[#allocation21 + $0xb0] sm:$0xff] }
 0x9d3   : > { %3405 = vmatpush.msra.mxu2 %v3341_v52  ;;  %3445 = vmatpush.msra.mxu0 %v3342_v13  ;;  %v3244_v52 = vld [vmem:[#allocation21 + $0x1b0] sm:$0xff]  ;;  %v3213_v13 = vld [vmem:[#allocation21 + $0xb8] sm:$0xff] }
 0x9d4   : > { %3386 = vmatpush.msrb.mxu1 %v3307_v58  ;;  %3426 = vmatpush.msra.mxu3 %v3308_v14  ;;  %v3245_v58 = vld [vmem:[#allocation21 + $0x1b8] sm:$0xff]  ;;  %v3210_v14 = vld [vmem:[#allocation21 + $0xa0] sm:$0xff] }
 0x9d5   : > { %3406 = vmatpush.msra.mxu2 %v3339_v0  ;;  %3446 = vmatpush.msra.mxu0 %v3340_v16  ;;  %v3242_v0 = vld [vmem:[#allocation21 + $0x1a0] sm:$0xff]  ;;  %v3211_v16 = vld [vmem:[#allocation21 + $0xa8] sm:$0xff] }
 0x9d6   : > { %3451 = vmatpush.msra.mxu1 %v3220_v23  ;;  %3491 = vmatpush.msrb.mxu3 %v3221_v31  ;;  %v3243_v23 = vld [vmem:[#allocation21 + $0x1a8] sm:$0xff]  ;;  %v3240_v31 = vld [vmem:[#allocation21 + $0x190] sm:$0xff] }
 0x9d7   : > { %3471 = vmatpush.msrb.mxu2 %v3252_v28  ;;  %3511 = vmatpush.msrb.mxu0 %v3253_v32  ;;  %v3208_v28 = vld [vmem:[#allocation21 + $0x90] sm:$0xff]  ;;  %v3209_v32 = vld [vmem:[#allocation21 + $0x98] sm:$0xff] }
 0x9d8   : > { %3452 = vmatpush.msra.mxu1 %v3218_v33  ;;  %3492 = vmatpush.msrb.mxu3 %v3219_v34  ;;  %v3241_v33 = vld [vmem:[#allocation21 + $0x198] sm:$0xff]  ;;  %v3238_v34 = vld [vmem:[#allocation21 + $0x180] sm:$0xff] }
 0x9d9   : > { %3472 = vmatpush.msrb.mxu2 %v3250_v19  ;;  %3512 = vmatpush.msrb.mxu0 %v3251_v35  ;;  %v3206_v19 = vld [vmem:[#allocation21 + $0x80] sm:$0xff]  ;;  %v3207_v35 = vld [vmem:[#allocation21 + $0x88] sm:$0xff] }
 0x9da   : > { %3453 = vmatpush.msra.mxu1 %v3216_v45  ;;  %3493 = vmatpush.msrb.mxu3 %v3217_v2  ;;  %v3239_v45 = vld [vmem:[#allocation21 + $0x188] sm:$0xff]  ;;  %v3236_v2 = vld [vmem:[#allocation21 + $0x170] sm:$0xff] }
 0x9db   : > { %3473 = vmatpush.msrb.mxu2 %v3248_v38  ;;  %3513 = vmatpush.msrb.mxu0 %v3249_v39  ;;  %v3204_v38 = vld [vmem:[#allocation21 + $0x70] sm:$0xff]  ;;  %v3205_v39 = vld [vmem:[#allocation21 + $0x78] sm:$0xff] }
 0x9dc   : > { %3454 = vmatpush.msra.mxu1 %v3214_v37  ;;  %3494 = vmatpush.msrb.mxu3 %v3215_v50  ;;  %v3237_v37 = vld [vmem:[#allocation21 + $0x178] sm:$0xff]  ;;  %v3234_v50 = vld [vmem:[#allocation21 + $0x160] sm:$0xff] }
 0x9dd   : > { %3474 = vmatpush.msrb.mxu2 %v3246_v30  ;;  %3514 = vmatpush.msrb.mxu0 %v3247_v5  ;;  %v3202_v30 = vld [vmem:[#allocation21 + $0x60] sm:$0xff]  ;;  %v3203_v5 = vld [vmem:[#allocation21 + $0x68] sm:$0xff] }
 0x9de   : > { %3455 = vmatpush.msra.mxu1 %v3212_v51  ;;  %3495 = vmatpush.msrb.mxu3 %v3213_v13  ;;  %v3235_v51 = vld [vmem:[#allocation21 + $0x168] sm:$0xff]  ;;  %v3232_v13 = vld [vmem:[#allocation21 + $0x150] sm:$0xff] }
 0x9df   : > { %3475 = vmatpush.msrb.mxu2 %v3244_v52  ;;  %3515 = vmatpush.msrb.mxu0 %v3245_v58  ;;  %v3200_v52 = vld [vmem:[#allocation21 + $0x50] sm:$0xff]  ;;  %v3201_v58 = vld [vmem:[#allocation21 + $0x58] sm:$0xff] }
 0x9e0   : > { %3456 = vmatpush.msra.mxu1 %v3210_v14  ;;  %3496 = vmatpush.msrb.mxu3 %v3211_v16  ;;  %v3233_v14 = vld [vmem:[#allocation21 + $0x158] sm:$0xff]  ;;  %v3230_v16 = vld [vmem:[#allocation21 + $0x140] sm:$0xff] }
 0x9e1   : > { %3476 = vmatpush.msrb.mxu2 %v3242_v0  ;;  %3516 = vmatpush.msrb.mxu0 %v3243_v23  ;;  %v3198_v0 = vld [vmem:[#allocation21 + $0x40] sm:$0xff]  ;;  %v3199_v23 = vld [vmem:[#allocation21 + $0x48] sm:$0xff] }
 0x9e2   : > { %3457 = vmatpush.msra.mxu1 %v3208_v28  ;;  %3497 = vmatpush.msrb.mxu3 %v3209_v32  ;;  %v3231_v28 = vld [vmem:[#allocation21 + $0x148] sm:$0xff]  ;;  %v3228_v32 = vld [vmem:[#allocation21 + $0x130] sm:$0xff] }
 0x9e3   : > { %3477 = vmatpush.msrb.mxu2 %v3240_v31  ;;  %3517 = vmatpush.msrb.mxu0 %v3241_v33  ;;  %v3196_v31 = vld [vmem:[#allocation21 + $0x30] sm:$0xff]  ;;  %v3197_v33 = vld [vmem:[#allocation21 + $0x38] sm:$0xff] }
 0x9e4   : > { %3458 = vmatpush.msra.mxu1 %v3206_v19  ;;  %3498 = vmatpush.msrb.mxu3 %v3207_v35  ;;  %v3229_v19 = vld [vmem:[#allocation21 + $0x138] sm:$0xff]  ;;  %v3226_v35 = vld [vmem:[#allocation21 + $0x120] sm:$0xff] }
 0x9e5   : > { %3478 = vmatpush.msrb.mxu2 %v3238_v34  ;;  %3518 = vmatpush.msrb.mxu0 %v3239_v45  ;;  %v3194_v34 = vld [vmem:[#allocation21 + $0x20] sm:$0xff]  ;;  %v3195_v45 = vld [vmem:[#allocation21 + $0x28] sm:$0xff] }
 0x9e6   : > { %3459 = vmatpush.msra.mxu1 %v3204_v38  ;;  %3499 = vmatpush.msrb.mxu3 %v3205_v39  ;;  %v3227_v38 = vld [vmem:[#allocation21 + $0x128] sm:$0xff]  ;;  %v3224_v39 = vld [vmem:[#allocation21 + $0x110] sm:$0xff] }
 0x9e7   : > { %3479 = vmatpush.msrb.mxu2 %v3236_v2  ;;  %3519 = vmatpush.msrb.mxu0 %v3237_v37  ;;  %v3192_v2 = vld [vmem:[#allocation21 + $0x10] sm:$0xff]  ;;  %v3193_v37 = vld [vmem:[#allocation21 + $0x18] sm:$0xff] }
 0x9e8   : > { %3460 = vmatpush.msra.mxu1 %v3202_v30  ;;  %3500 = vmatpush.msrb.mxu3 %v3203_v5  ;;  %v3225_v30 = vld [vmem:[#allocation21 + $0x118] sm:$0xff]  ;;  %v3222_v5 = vld [vmem:[#allocation21 + $0x100] sm:$0xff] }
 0x9e9   : > { %3480 = vmatpush.msrb.mxu2 %v3234_v50  ;;  %3520 = vmatpush.msrb.mxu0 %v3235_v51  ;;  %v3190_v50 = vld [vmem:[#allocation21] sm:$0xff]  ;;  %v3191_v51 = vld [vmem:[#allocation21 + $0x8] sm:$0xff] }
 0x9ea   : > { %3461 = vmatpush.msra.mxu1 %v3200_v52  ;;  %3501 = vmatpush.msrb.mxu3 %v3201_v58  ;;  %v3223_v52 = vld [vmem:[#allocation21 + $0x108] sm:$0xff]  ;;  %v10812_v58 = vpop.f32.mrf.mxu2 }
 0x9eb   : > { %3481 = vmatpush.msrb.mxu2 %v3232_v13  ;;  %3521 = vmatpush.msrb.mxu0 %v3233_v14  ;;  %v10810_v13 = vpop.f32.mrf.mxu1 }
 0x9ec   : > { %3462 = vmatpush.msra.mxu1 %v3198_v0  ;;  %3502 = vmatpush.msrb.mxu3 %v3199_v23 }
 0x9ed   : > { %3482 = vmatpush.msrb.mxu2 %v3230_v16  ;;  %3522 = vmatpush.msrb.mxu0 %v3231_v28 }
 0x9ee   : > { %3463 = vmatpush.msra.mxu1 %v3196_v31  ;;  %3503 = vmatpush.msrb.mxu3 %v3197_v33  ;;  %v3646_v33 = vld [vmem:[#allocation21 + $0x5f0] sm:$0xff] }
 0x9ef   : > { %3483 = vmatpush.msrb.mxu2 %v3228_v32  ;;  %3523 = vmatpush.msrb.mxu0 %v3229_v19  ;;  %v3614_v32 = vld [vmem:[#allocation21 + $0x4f0] sm:$0xff]  ;;  %v3612_v19 = vld [vmem:[#allocation21 + $0x4e0] sm:$0xff] }
 0x9f0   : > { %3464 = vmatpush.msra.mxu1 %v3194_v34  ;;  %3504 = vmatpush.msrb.mxu3 %v3195_v45  ;;  %v3644_v34 = vld [vmem:[#allocation21 + $0x5e0] sm:$0xff]  ;;  %v3642_v45 = vld [vmem:[#allocation21 + $0x5d0] sm:$0xff] }
 0x9f1   : > { %3484 = vmatpush.msrb.mxu2 %v3226_v35  ;;  %3524 = vmatpush.msrb.mxu0 %v3227_v38  ;;  %v3610_v35 = vld [vmem:[#allocation21 + $0x4d0] sm:$0xff] }
 0x9f2   : > { %3465 = vmatpush.msra.mxu1 %v3192_v2  ;;  %3505 = vmatpush.msrb.mxu3 %v3193_v37  ;;  %v3640_v37 = vld [vmem:[#allocation21 + $0x5c0] sm:$0xff] }
 0x9f3   : > { %3485 = vmatpush.msrb.mxu2 %v3224_v39  ;;  %3525 = vmatpush.msrb.mxu0 %v3225_v30  ;;  %v3608_v39 = vld [vmem:[#allocation21 + $0x4c0] sm:$0xff]  ;;  %v3638_v30 = vld [vmem:[#allocation21 + $0x5b0] sm:$0xff] }
 0x9f4   : > { %3466 = vmatpush.msra.mxu1 %v3190_v50  ;;  %3506 = vmatpush.msrb.mxu3 %v3191_v51  ;;  %v3647_v50 = vld [vmem:[#allocation21 + $0x5f8] sm:$0xff]  ;;  %v3636_v51 = vld [vmem:[#allocation21 + $0x5a0] sm:$0xff] }
 0x9f5   : > { %3486 = vmatpush.msrb.mxu2 %v3222_v5  ;;  %3526 = vmatpush.msrb.mxu0 %v3223_v52  ;;  %v3604_v5 = vld [vmem:[#allocation21 + $0x4a0] sm:$0xff]  ;;  %v3613_v52 = vld [vmem:[#allocation21 + $0x4e8] sm:$0xff] }
 0xa2d   : > { %v10818_v16 = vpop.f32.mrf.mxu1 }
 0xa33   : > { %v10814_v14 = vpop.f32.mrf.mxu3  ;;  %v10816_v0 = vpop.f32.mrf.mxu0 }
 0xa35   : > { %v3167_v38 = vpop.f32.mrf.mxu1 }
 0xa39   : > { %v10820_v23 = vpop.f32.mrf.mxu2 }
 0xa3b   : > { %v3283_v28 = vpop.f32.mrf.mxu3  ;;  %v3303_v31 = vpop.f32.mrf.mxu0 }
 0xa3c   : > { %3387 = vmatmul.f32.vlgmr.msrb.gmra.mxu1 %v3283_v28  ;;  %3407 = vmatmul.f32.vlgmr.msra.gmra.mxu2 %v3303_v31 }
 0xa3d   : > { %3427 = vmatmul.f32.vlgmr.msra.gmra.mxu3 %v3283_v28  ;;  %3447 = vmatmul.f32.vlgmr.msra.gmra.mxu0 %v3303_v31  ;;  %v3645_v28 = vld [vmem:[#allocation21 + $0x5e8] sm:$0xff]  ;;  %v3602_v31 = vld [vmem:[#allocation21 + $0x490] sm:$0xff] }
 0xa3e   : > { %8294 = vmatpush.msk.msrb.mxu1 %vm933_vm0, %v10643_v46  ;;  %8296 = vmatpush.msk.msra.mxu2 %vm933_vm0, %v10645_v47  ;;  %v3606_v46 = vld [vmem:[#allocation21 + $0x4b0] sm:$0xff]  ;;  %v3615_v47 = vld [vmem:[#allocation21 + $0x4f8] sm:$0xff] }
 0xa3f   : > { %3648 = vmatpush.msra.mxu3 %v3614_v32  ;;  %3668 = vmatpush.msra.mxu0 %v3646_v33  ;;  %v3634_v32 = vld [vmem:[#allocation21 + $0x590] sm:$0xff] }
 0xa40   : > { %v8293_v33 = vld [vmem:[%s11552_s23 + $0x4] sm:$0x3] }
 0xa41   : > { %3649 = vmatpush.msra.mxu3 %v3612_v19  ;;  %3669 = vmatpush.msra.mxu0 %v3644_v34  ;;  %v3187_v2 = vpop.f32.mrf.mxu2  ;;  %v3600_v19 = vld [vmem:[#allocation21 + $0x480] sm:$0xff] }
 0xa42   : > { %v3632_v34 = vld [vmem:[#allocation21 + $0x580] sm:$0xff] }
 0xa43   : > { %3650 = vmatpush.msra.mxu3 %v3610_v35  ;;  %3670 = vmatpush.msra.mxu0 %v3642_v45  ;;  %v3611_v35 = vld [vmem:[#allocation21 + $0x4d8] sm:$0xff] }
 0xa44   : > { %3467 = vmatmul.f32.vlgmr.msra.gmra.mxu1 %v3167_v38  ;;  %3487 = vmatmul.f32.vlgmr.msrb.gmra.mxu2 %v3187_v2  ;;  %v3643_v45 = vld [vmem:[#allocation21 + $0x5d8] sm:$0xff] }
 0xa45   : > { %3651 = vmatpush.msra.mxu3 %v3608_v39  ;;  %3671 = vmatpush.msra.mxu0 %v3640_v37  ;;  %v3609_v39 = vld [vmem:[#allocation21 + $0x4c8] sm:$0xff] }
 0xa46   : > { %3507 = vmatmul.f32.vlgmr.msrb.gmra.mxu3 %v3167_v38  ;;  %3527 = vmatmul.f32.vlgmr.msrb.gmra.mxu0 %v3187_v2  ;;  %v3598_v38 = vld [vmem:[#allocation21 + $0x470] sm:$0xff]  ;;  %v3641_v37 = vld [vmem:[#allocation21 + $0x5c8] sm:$0xff] }
 0xa47   : > { %3652 = vmatpush.msra.mxu3 %v3606_v46  ;;  %3672 = vmatpush.msra.mxu0 %v3638_v30  ;;  %v3630_v2 = vld [vmem:[#allocation21 + $0x570] sm:$0xff]  ;;  %v3596_v46 = vld [vmem:[#allocation21 + $0x460] sm:$0xff] }
 0xa48   : > { %3688 = vmatpush.msra.mxu1 %v3615_v47  ;;  %3708 = vmatpush.msrb.mxu2 %v3647_v50  ;;  %v3628_v30 = vld [vmem:[#allocation21 + $0x560] sm:$0xff]  ;;  %v3607_v47 = vld [vmem:[#allocation21 + $0x4b8] sm:$0xff] }
 0xa49   : > { %3653 = vmatpush.msra.mxu3 %v3604_v5  ;;  %3673 = vmatpush.msra.mxu0 %v3636_v51  ;;  %v3639_v50 = vld [vmem:[#allocation21 + $0x5b8] sm:$0xff]  ;;  %v3594_v5 = vld [vmem:[#allocation21 + $0x450] sm:$0xff] }
 0xa4a   : > { %3689 = vmatpush.msra.mxu1 %v3613_v52  ;;  %3709 = vmatpush.msrb.mxu2 %v3645_v28  ;;  %v3626_v51 = vld [vmem:[#allocation21 + $0x550] sm:$0xff]  ;;  %v3605_v52 = vld [vmem:[#allocation21 + $0x4a8] sm:$0xff] }
 0xa4b   : > { %3654 = vmatpush.msra.mxu3 %v3602_v31  ;;  %3674 = vmatpush.msra.mxu0 %v3634_v32  ;;  %v3637_v28 = vld [vmem:[#allocation21 + $0x5a8] sm:$0xff]  ;;  %v3592_v31 = vld [vmem:[#allocation21 + $0x440] sm:$0xff] }
 0xa4c   : > { %8295 = vmatmul.msk.f32.vlgmr.msrb.gmra.mxu1 %vm929_vm1, %v8293_v33  ;;  %8297 = vmatmul.msk.f32.vlgmr.msra.gmra.mxu2 %vm929_vm1, %v8293_v33  ;;  %v3624_v32 = vld [vmem:[#allocation21 + $0x540] sm:$0xff]  ;;  %v3603_v33 = vld [vmem:[#allocation21 + $0x498] sm:$0xff] }
 0xa4d   : > { %3655 = vmatpush.msra.mxu3 %v3600_v19  ;;  %3675 = vmatpush.msra.mxu0 %v3632_v34  ;;  %v3635_v19 = vld [vmem:[#allocation21 + $0x598] sm:$0xff]  ;;  %v3590_v34 = vld [vmem:[#allocation21 + $0x430] sm:$0xff] }
 0xa4e   : > { %3690 = vmatpush.msra.mxu1 %v3611_v35  ;;  %3710 = vmatpush.msrb.mxu2 %v3643_v45  ;;  %v3622_v35 = vld [vmem:[#allocation21 + $0x530] sm:$0xff]  ;;  %v3601_v45 = vld [vmem:[#allocation21 + $0x488] sm:$0xff] }
 0xa4f   : > { %3656 = vmatpush.msra.mxu3 %v3598_v38  ;;  %3676 = vmatpush.msra.mxu0 %v3630_v2  ;;  %v3633_v38 = vld [vmem:[#allocation21 + $0x588] sm:$0xff]  ;;  %v3588_v2 = vld [vmem:[#allocation21 + $0x420] sm:$0xff] }
 0xa50   : > { %3691 = vmatpush.msra.mxu1 %v3609_v39  ;;  %3711 = vmatpush.msrb.mxu2 %v3641_v37  ;;  %v3620_v39 = vld [vmem:[#allocation21 + $0x520] sm:$0xff]  ;;  %v3599_v37 = vld [vmem:[#allocation21 + $0x478] sm:$0xff] }
 0xa51   : > { %3657 = vmatpush.msra.mxu3 %v3596_v46  ;;  %3677 = vmatpush.msra.mxu0 %v3628_v30  ;;  %v3631_v46 = vld [vmem:[#allocation21 + $0x578] sm:$0xff]  ;;  %v3586_v30 = vld [vmem:[#allocation21 + $0x410] sm:$0xff] }
 0xa52   : > { %3692 = vmatpush.msra.mxu1 %v3607_v47  ;;  %3712 = vmatpush.msrb.mxu2 %v3639_v50  ;;  %v3618_v47 = vld [vmem:[#allocation21 + $0x510] sm:$0xff]  ;;  %v3597_v50 = vld [vmem:[#allocation21 + $0x468] sm:$0xff] }
 0xa53   : > { %3658 = vmatpush.msra.mxu3 %v3594_v5  ;;  %3678 = vmatpush.msra.mxu0 %v3626_v51  ;;  %v3629_v5 = vld [vmem:[#allocation21 + $0x568] sm:$0xff]  ;;  %v3584_v51 = vld [vmem:[#allocation21 + $0x400] sm:$0xff] }
 0xa54   : > { %3693 = vmatpush.msra.mxu1 %v3605_v52  ;;  %3713 = vmatpush.msrb.mxu2 %v3637_v28  ;;  %v3616_v52 = vld [vmem:[#allocation21 + $0x500] sm:$0xff]  ;;  %v3595_v28 = vld [vmem:[#allocation21 + $0x458] sm:$0xff] }
 0xa55   : > { %3659 = vmatpush.msra.mxu3 %v3592_v31  ;;  %3679 = vmatpush.msra.mxu0 %v3624_v32  ;;  %v3627_v31 = vld [vmem:[#allocation21 + $0x558] sm:$0xff]  ;;  %v3593_v32 = vld [vmem:[#allocation21 + $0x448] sm:$0xff] }
 0xa56   : > { %3694 = vmatpush.msra.mxu1 %v3603_v33  ;;  %3714 = vmatpush.msrb.mxu2 %v3635_v19  ;;  %v3625_v33 = vld [vmem:[#allocation21 + $0x548] sm:$0xff]  ;;  %v3591_v19 = vld [vmem:[#allocation21 + $0x438] sm:$0xff] }
 0xa57   : > { %3660 = vmatpush.msra.mxu3 %v3590_v34  ;;  %3680 = vmatpush.msra.mxu0 %v3622_v35  ;;  %v3623_v34 = vld [vmem:[#allocation21 + $0x538] sm:$0xff]  ;;  %v3589_v35 = vld [vmem:[#allocation21 + $0x428] sm:$0xff] }
 0xa58   : > { %3695 = vmatpush.msra.mxu1 %v3601_v45  ;;  %3715 = vmatpush.msrb.mxu2 %v3633_v38  ;;  %v3621_v45 = vld [vmem:[#allocation21 + $0x528] sm:$0xff]  ;;  %v3587_v38 = vld [vmem:[#allocation21 + $0x418] sm:$0xff] }
 0xa59   : > { %3661 = vmatpush.msra.mxu3 %v3588_v2  ;;  %3681 = vmatpush.msra.mxu0 %v3620_v39  ;;  %v3619_v2 = vld [vmem:[#allocation21 + $0x518] sm:$0xff]  ;;  %v3617_v39 = vld [vmem:[#allocation21 + $0x508] sm:$0xff] }
 0xa5a   : > { %3696 = vmatpush.msra.mxu1 %v3599_v37  ;;  %3716 = vmatpush.msrb.mxu2 %v3631_v46  ;;  %v3845_v37 = vld [vmem:[#allocation21 + $0x7f0] sm:$0xff]  ;;  %v3811_v46 = vld [vmem:[#allocation21 + $0x6e0] sm:$0xff] }
 0xa5b   : > { %3662 = vmatpush.msra.mxu3 %v3586_v30  ;;  %3682 = vmatpush.msra.mxu0 %v3618_v47  ;;  %v3843_v30 = vld [vmem:[#allocation21 + $0x7e0] sm:$0xff]  ;;  %v3809_v47 = vld [vmem:[#allocation21 + $0x6d0] sm:$0xff] }
 0xa5c   : > { %3697 = vmatpush.msra.mxu1 %v3597_v50  ;;  %3717 = vmatpush.msrb.mxu2 %v3629_v5  ;;  %v3841_v50 = vld [vmem:[#allocation21 + $0x7d0] sm:$0xff]  ;;  %v3807_v5 = vld [vmem:[#allocation21 + $0x6c0] sm:$0xff] }
 0xa5d   : > { %3663 = vmatpush.msra.mxu3 %v3584_v51  ;;  %3683 = vmatpush.msra.mxu0 %v3616_v52  ;;  %v3839_v51 = vld [vmem:[#allocation21 + $0x7c0] sm:$0xff]  ;;  %v3805_v52 = vld [vmem:[#allocation21 + $0x6b0] sm:$0xff] }
 0xa5e   : > { %3698 = vmatpush.msra.mxu1 %v3595_v28  ;;  %3718 = vmatpush.msrb.mxu2 %v3627_v31  ;;  %v3803_v28 = vld [vmem:[#allocation21 + $0x6a0] sm:$0xff]  ;;  %v3801_v31 = vld [vmem:[#allocation21 + $0x690] sm:$0xff] }
 0xa5f   : > { %8299 = vmatpush.msk.msrb.mxu3 %vm933_vm0, %v10648_v48  ;;  %8301 = vmatpush.msk.msrb.mxu0 %vm933_vm0, %v10650_v49  ;;  %v3585_v48 = vld [vmem:[#allocation21 + $0x408] sm:$0xff]  ;;  %v3813_v49 = vld [vmem:[#allocation21 + $0x6f0] sm:$0xff] }
 0xa60   : > { %3699 = vmatpush.msra.mxu1 %v3593_v32  ;;  %3719 = vmatpush.msrb.mxu2 %v3625_v33  ;;  %v3799_v32 = vld [vmem:[#allocation21 + $0x680] sm:$0xff]  ;;  %v3837_v33 = vld [vmem:[#allocation21 + $0x7b0] sm:$0xff] }
 0xa62   : > { %3700 = vmatpush.msra.mxu1 %v3591_v19  ;;  %3720 = vmatpush.msrb.mxu2 %v3623_v34  ;;  %v3797_v19 = vld [vmem:[#allocation21 + $0x670] sm:$0xff]  ;;  %v3835_v34 = vld [vmem:[#allocation21 + $0x7a0] sm:$0xff] }
 0xa64   : > { %3701 = vmatpush.msra.mxu1 %v3589_v35  ;;  %3721 = vmatpush.msrb.mxu2 %v3621_v45  ;;  %v3795_v35 = vld [vmem:[#allocation21 + $0x660] sm:$0xff]  ;;  %v3833_v45 = vld [vmem:[#allocation21 + $0x790] sm:$0xff] }
 0xa66   : > { %3702 = vmatpush.msra.mxu1 %v3587_v38  ;;  %3722 = vmatpush.msrb.mxu2 %v3619_v2  ;;  %v3793_v38 = vld [vmem:[#allocation21 + $0x650] sm:$0xff]  ;;  %v3831_v2 = vld [vmem:[#allocation21 + $0x780] sm:$0xff] }
 0xa68   : > { %3703 = vmatpush.msra.mxu1 %v3585_v48  ;;  %3723 = vmatpush.msrb.mxu2 %v3617_v39  ;;  %v3791_v48 = vld [vmem:[#allocation21 + $0x640] sm:$0xff]  ;;  %v3829_v39 = vld [vmem:[#allocation21 + $0x770] sm:$0xff] }
 0xa6a   : > { %3847 = vmatpush.msrb.mxu1 %v3813_v49  ;;  %3867 = vmatpush.msra.mxu2 %v3845_v37  ;;  %v3789_v49 = vld [vmem:[#allocation21 + $0x630] sm:$0xff]  ;;  %v3827_v37 = vld [vmem:[#allocation21 + $0x760] sm:$0xff] }
 0xa6c   : > { %3848 = vmatpush.msrb.mxu1 %v3811_v46  ;;  %3868 = vmatpush.msra.mxu2 %v3843_v30  ;;  %v3787_v46 = vld [vmem:[#allocation21 + $0x620] sm:$0xff]  ;;  %v3825_v30 = vld [vmem:[#allocation21 + $0x750] sm:$0xff] }
 0xa6e   : > { %3849 = vmatpush.msrb.mxu1 %v3809_v47  ;;  %3869 = vmatpush.msra.mxu2 %v3841_v50  ;;  %v3785_v47 = vld [vmem:[#allocation21 + $0x610] sm:$0xff]  ;;  %v3823_v50 = vld [vmem:[#allocation21 + $0x740] sm:$0xff] }
 0xa70   : > { %3850 = vmatpush.msrb.mxu1 %v3807_v5  ;;  %3870 = vmatpush.msra.mxu2 %v3839_v51  ;;  %v3783_v5 = vld [vmem:[#allocation21 + $0x600] sm:$0xff]  ;;  %v3821_v51 = vld [vmem:[#allocation21 + $0x730] sm:$0xff] }
 0xa72   : > { %3851 = vmatpush.msrb.mxu1 %v3805_v52  ;;  %3871 = vmatpush.msra.mxu2 %v3837_v33  ;;  %v3819_v52 = vld [vmem:[#allocation21 + $0x720] sm:$0xff] }
 0xa74   : > { %3852 = vmatpush.msrb.mxu1 %v3803_v28  ;;  %3872 = vmatpush.msra.mxu2 %v3835_v34  ;;  %v3817_v28 = vld [vmem:[#allocation21 + $0x710] sm:$0xff] }
 0xa76   : > { %3853 = vmatpush.msrb.mxu1 %v3801_v31  ;;  %3873 = vmatpush.msra.mxu2 %v3833_v45  ;;  %v3815_v31 = vld [vmem:[#allocation21 + $0x700] sm:$0xff] }
 0xa78   : > { %3854 = vmatpush.msrb.mxu1 %v3799_v32  ;;  %3874 = vmatpush.msra.mxu2 %v3831_v2  ;;  %v3810_v2 = vld [vmem:[#allocation21 + $0x6d8] sm:$0xff] }
 0xa7a   : > { %3855 = vmatpush.msrb.mxu1 %v3797_v19  ;;  %3875 = vmatpush.msra.mxu2 %v3829_v39  ;;  %v3846_v39 = vld [vmem:[#allocation21 + $0x7f8] sm:$0xff] }
 0xa7c   : > { %3856 = vmatpush.msrb.mxu1 %v3795_v35  ;;  %3876 = vmatpush.msra.mxu2 %v3827_v37  ;;  %v3814_v35 = vld [vmem:[#allocation21 + $0x6f8] sm:$0xff]  ;;  %v8298_v37 = vld [vmem:[%s11552_s23 + $0x6] sm:$0x3] }
 0xa7e   : > { %3857 = vmatpush.msrb.mxu1 %v3793_v38  ;;  %3877 = vmatpush.msra.mxu2 %v3825_v30  ;;  %v3812_v38 = vld [vmem:[#allocation21 + $0x6e8] sm:$0xff] }
 0xa7f   : > { %v3844_v30 = vld [vmem:[#allocation21 + $0x7e8] sm:$0xff] }
 0xa80   : > { %3858 = vmatpush.msrb.mxu1 %v3791_v48  ;;  %3878 = vmatpush.msra.mxu2 %v3823_v50  ;;  %v3808_v48 = vld [vmem:[#allocation21 + $0x6c8] sm:$0xff]  ;;  %v3802_v50 = vld [vmem:[#allocation21 + $0x698] sm:$0xff] }
 0xa82   : > { %3859 = vmatpush.msrb.mxu1 %v3789_v49  ;;  %3879 = vmatpush.msra.mxu2 %v3821_v51  ;;  %v3800_v51 = vld [vmem:[#allocation21 + $0x688] sm:$0xff] }
 0xa84   : > { %3860 = vmatpush.msrb.mxu1 %v3787_v46  ;;  %3880 = vmatpush.msra.mxu2 %v3819_v52  ;;  %v3806_v46 = vld [vmem:[#allocation21 + $0x6b8] sm:$0xff] }
 0xa85   : > { %v3838_v52 = vld [vmem:[#allocation21 + $0x7b8] sm:$0xff] }
 0xa86   : > { %3861 = vmatpush.msrb.mxu1 %v3785_v47  ;;  %3881 = vmatpush.msra.mxu2 %v3817_v28  ;;  %v3842_v47 = vld [vmem:[#allocation21 + $0x7d8] sm:$0xff] }
 0xa87   : > { %v3798_v28 = vld [vmem:[#allocation21 + $0x678] sm:$0xff] }
 0xa88   : > { %3862 = vmatpush.msrb.mxu1 %v3783_v5  ;;  %3882 = vmatpush.msra.mxu2 %v3815_v31  ;;  %v3840_v5 = vld [vmem:[#allocation21 + $0x7c8] sm:$0xff] }
 0xa89   : > { %v3836_v31 = vld [vmem:[#allocation21 + $0x7a8] sm:$0xff] }
 0xab9   : > { %v10835_v32 = vpop.f32.mrf.mxu1 }
 0xabf   : > { %v10837_v33 = vpop.f32.mrf.mxu2 }
 0xac1   : > { %v10839_v19 = vpop.f32.mrf.mxu1 }
 0xac7   : > { %v10841_v34 = vpop.f32.mrf.mxu2 }
 0xac9   : > { %v3560_v45 = vpop.f32.mrf.mxu1 }
 0xaca   : > { %3664 = vmatmul.f32.vlgmr.msra.gmra.mxu3 %v3560_v45  ;;  %3704 = vmatmul.f32.vlgmr.msra.gmra.mxu1 %v3560_v45  ;;  %v3794_v45 = vld [vmem:[#allocation21 + $0x658] sm:$0xff] }
 0xacb   : > { %3887 = vmatpush.msra.mxu3 %v3814_v35  ;;  %8304 = vmatpush.msk.msra.mxu1 %vm933_vm0, %v10653_v62  ;;  %v3804_v62 = vld [vmem:[#allocation21 + $0x6a8] sm:$0xff]  ;;  %v3834_v35 = vld [vmem:[#allocation21 + $0x798] sm:$0xff] }
 0xacd   : > { %3888 = vmatpush.msra.mxu3 %v3812_v38  ;;  %v3832_v38 = vld [vmem:[#allocation21 + $0x788] sm:$0xff] }
 0xacf   : > { %3889 = vmatpush.msra.mxu3 %v3810_v2  ;;  %v3580_v49 = vpop.f32.mrf.mxu2  ;;  %v3792_v2 = vld [vmem:[#allocation21 + $0x648] sm:$0xff] }
 0xad0   : > { %3684 = vmatmul.f32.vlgmr.msra.gmra.mxu0 %v3580_v49  ;;  %3724 = vmatmul.f32.vlgmr.msrb.gmra.mxu2 %v3580_v49  ;;  %v3828_v49 = vld [vmem:[#allocation21 + $0x768] sm:$0xff] }
 0xad1   : > { %3890 = vmatpush.msra.mxu3 %v3808_v48  ;;  %3907 = vmatpush.msra.mxu0 %v3846_v39  ;;  %v3830_v48 = vld [vmem:[#allocation21 + $0x778] sm:$0xff] }
 0xad2   : > { %8306 = vmatpush.msk.msrb.mxu2 %vm933_vm0, %v10655_v63  ;;  %8300 = vmatmul.msk.f32.vlgmr.msrb.gmra.mxu3 %vm929_vm1, %v8298_v37  ;;  %v3796_v63 = vld [vmem:[#allocation21 + $0x668] sm:$0xff]  ;;  %v3790_v39 = vld [vmem:[#allocation21 + $0x638] sm:$0xff] }
 0xad3   : > { %3891 = vmatpush.msra.mxu3 %v3806_v46  ;;  %3908 = vmatpush.msra.mxu0 %v3844_v30  ;;  %v3826_v46 = vld [vmem:[#allocation21 + $0x758] sm:$0xff] }
 0xad4   : > { %v3786_v30 = vld [vmem:[#allocation21 + $0x618] sm:$0xff] }
 0xad5   : > { %3892 = vmatpush.msra.mxu3 %v3804_v62  ;;  %3909 = vmatpush.msra.mxu0 %v3842_v47  ;;  %v3824_v62 = vld [vmem:[#allocation21 + $0x748] sm:$0xff] }
 0xad6   : > { %v3784_v47 = vld [vmem:[#allocation21 + $0x608] sm:$0xff] }
 0xad7   : > { %3893 = vmatpush.msra.mxu3 %v3802_v50  ;;  %3910 = vmatpush.msra.mxu0 %v3840_v5  ;;  %v3822_v50 = vld [vmem:[#allocation21 + $0x738] sm:$0xff]  ;;  %v3820_v5 = vld [vmem:[#allocation21 + $0x728] sm:$0xff] }
 0xad8   : > { %8302 = vmatmul.msk.f32.vlgmr.msrb.gmra.mxu0 %vm929_vm1, %v8298_v37  ;;  %v3788_v37 = vld [vmem:[#allocation21 + $0x628] sm:$0xff] }
 0xad9   : > { %3894 = vmatpush.msra.mxu3 %v3800_v51  ;;  %3911 = vmatpush.msra.mxu0 %v3838_v52  ;;  %v3818_v51 = vld [vmem:[#allocation21 + $0x718] sm:$0xff]  ;;  %v3816_v52 = vld [vmem:[#allocation21 + $0x708] sm:$0xff] }
 0xadb   : > { %3895 = vmatpush.msra.mxu3 %v3798_v28  ;;  %3912 = vmatpush.msra.mxu0 %v3836_v31  ;;  %v10856_v28 = vpop.f32.mrf.mxu0  ;;  %v10858_v31 = vpop.f32.mrf.mxu3 }
 0xadd   : > { %3896 = vmatpush.msra.mxu3 %v3796_v63  ;;  %3913 = vmatpush.msra.mxu0 %v3834_v35 }
 0xadf   : > { %3897 = vmatpush.msra.mxu3 %v3794_v45  ;;  %3914 = vmatpush.msra.mxu0 %v3832_v38 }
 0xae1   : > { %3898 = vmatpush.msra.mxu3 %v3792_v2  ;;  %3915 = vmatpush.msra.mxu0 %v3830_v48  ;;  %v4066_v48 = vld [vmem:[#allocation21 + $0xaf0] sm:$0xff] }
 0xae3   : > { %3899 = vmatpush.msra.mxu3 %v3790_v39  ;;  %3916 = vmatpush.msra.mxu0 %v3828_v49  ;;  %v10860_v63 = vpop.f32.mrf.mxu0  ;;  %v10862_v35 = vpop.f32.mrf.mxu3  ;;  %v4098_v39 = vld [vmem:[#allocation21 + $0xbf0] sm:$0xff]  ;;  %v4096_v49 = vld [vmem:[#allocation21 + $0xbe0] sm:$0xff] }
 0xae5   : > { %3900 = vmatpush.msra.mxu3 %v3788_v37  ;;  %3917 = vmatpush.msra.mxu0 %v3826_v46  ;;  %v4099_v37 = vld [vmem:[#allocation21 + $0xbf8] sm:$0xff]  ;;  %v4097_v46 = vld [vmem:[#allocation21 + $0xbe8] sm:$0xff] }
 0xae7   : > { %3901 = vmatpush.msra.mxu3 %v3786_v30  ;;  %3918 = vmatpush.msra.mxu0 %v3824_v62  ;;  %v4062_v30 = vld [vmem:[#allocation21 + $0xad0] sm:$0xff] }
 0xae8   : > { %v4094_v62 = vld [vmem:[#allocation21 + $0xbd0] sm:$0xff] }
 0xae9   : > { %3902 = vmatpush.msra.mxu3 %v3784_v47  ;;  %3919 = vmatpush.msra.mxu0 %v3822_v50  ;;  %v4067_v47 = vld [vmem:[#allocation21 + $0xaf8] sm:$0xff] }
 0xaea   : > { %v4095_v50 = vld [vmem:[#allocation21 + $0xbd8] sm:$0xff] }
 0xaeb   : > { %8309 = vmatpush.msk.msrb.mxu3 %vm933_vm0, %v10658_v1  ;;  %3920 = vmatpush.msra.mxu0 %v3820_v5  ;;  %v4065_v5 = vld [vmem:[#allocation21 + $0xae8] sm:$0xff] }
 0xaed   : > { %3921 = vmatpush.msra.mxu0 %v3818_v51  ;;  %v4060_v51 = vld [vmem:[#allocation21 + $0xac0] sm:$0xff] }
 0xaef   : > { %3922 = vmatpush.msra.mxu0 %v3816_v52  ;;  %v4092_v52 = vld [vmem:[#allocation21 + $0xbc0] sm:$0xff] }
 0xaf1   : > { %8311 = vmatpush.msk.msrb.mxu0 %vm933_vm0, %v10660_v3  ;;  %v4064_v3 = vld [vmem:[#allocation21 + $0xae0] sm:$0xff] }
 0xb4d   : > { %v10864_v45 = vpop.f32.mrf.mxu3  ;;  %v10866_v38 = vpop.f32.mrf.mxu0 }
 0xb55   : > { %v3759_v1 = vpop.f32.mrf.mxu3  ;;  %v3779_v2 = vpop.f32.mrf.mxu0 }
 0xb56   : > { %3863 = vmatmul.f32.vlgmr.msrb.gmra.mxu1 %v3759_v1  ;;  %3883 = vmatmul.f32.vlgmr.msra.gmra.mxu2 %v3779_v2 }
 0xb57   : > { %3903 = vmatmul.f32.vlgmr.msra.gmra.mxu3 %v3759_v1  ;;  %3923 = vmatmul.f32.vlgmr.msra.gmra.mxu0 %v3779_v2  ;;  %v8303_v1 = vld [vmem:[%s11552_s23 + $0x8] sm:$0x3]  ;;  %v8308_v2 = vld [vmem:[%s11552_s23 + $0xa] sm:$0x3] }
 0xb58   : > { %4100 = vmatpush.msrb.mxu1 %v4066_v48  ;;  %4120 = vmatpush.msra.mxu2 %v4098_v39  ;;  %v4058_v48 = vld [vmem:[#allocation21 + $0xab0] sm:$0xff] }
 0xb59   : > { %4160 = vmatpush.msra.mxu0 %v4099_v37  ;;  %4140 = vmatpush.msra.mxu3 %v4067_v47  ;;  %v4090_v39 = vld [vmem:[#allocation21 + $0xbb0] sm:$0xff]  ;;  %v4088_v37 = vld [vmem:[#allocation21 + $0xba0] sm:$0xff] }
 0xb5a   : > { %4101 = vmatpush.msrb.mxu1 %v4064_v3  ;;  %4121 = vmatpush.msra.mxu2 %v4096_v49  ;;  %v4056_v3 = vld [vmem:[#allocation21 + $0xaa0] sm:$0xff]  ;;  %v4093_v49 = vld [vmem:[#allocation21 + $0xbc8] sm:$0xff]  ;;  %v4086_v47 = vld [vmem:[#allocation21 + $0xb90] sm:$0xff] }
 0xb5b   : > { %4161 = vmatpush.msra.mxu0 %v4097_v46  ;;  %4141 = vmatpush.msra.mxu3 %v4065_v5  ;;  %v4063_v46 = vld [vmem:[#allocation21 + $0xad8] sm:$0xff]  ;;  %v4052_v5 = vld [vmem:[#allocation21 + $0xa80] sm:$0xff] }
 0xb5c   : > { %4102 = vmatpush.msrb.mxu1 %v4062_v30  ;;  %4122 = vmatpush.msra.mxu2 %v4094_v62  ;;  %v4054_v30 = vld [vmem:[#allocation21 + $0xa90] sm:$0xff]  ;;  %v4091_v62 = vld [vmem:[#allocation21 + $0xbb8] sm:$0xff] }
 0xb5d   : > { %4162 = vmatpush.msra.mxu0 %v4095_v50  ;;  %v4061_v50 = vld [vmem:[#allocation21 + $0xac8] sm:$0xff]  ;;  %4142 = vmatpush.msra.mxu3 %v4063_v46  ;;  %v4055_v46 = vld [vmem:[#allocation21 + $0xa98] sm:$0xff] }
 0xb5e   : > { %4103 = vmatpush.msrb.mxu1 %v4060_v51  ;;  %4123 = vmatpush.msra.mxu2 %v4092_v52  ;;  %v4089_v51 = vld [vmem:[#allocation21 + $0xba8] sm:$0xff]  ;;  %v4084_v52 = vld [vmem:[#allocation21 + $0xb80] sm:$0xff] }
 0xb5f   : > { %8307 = vmatmul.msk.f32.vlgmr.msrb.gmra.mxu2 %vm929_vm1, %v8303_v1  ;;  %8310 = vmatmul.msk.f32.vlgmr.msrb.gmra.mxu3 %vm929_vm1, %v8308_v2 }
 0xb60   : > { %8312 = vmatmul.msk.f32.vlgmr.msrb.gmra.mxu0 %vm929_vm1, %v8308_v2  ;;  %4104 = vmatpush.msrb.mxu1 %v4058_v48  ;;  %v4059_v2 = vld [vmem:[#allocation21 + $0xab8] sm:$0xff]  ;;  %v4050_v48 = vld [vmem:[#allocation21 + $0xa70] sm:$0xff] }
 0xb61   : > { %4124 = vmatpush.msra.mxu2 %v4090_v39  ;;  %8305 = vmatmul.msk.f32.vlgmr.msra.gmra.mxu1 %vm929_vm1, %v8303_v1  ;;  %v4087_v39 = vld [vmem:[#allocation21 + $0xb98] sm:$0xff]  ;;  %v4082_v1 = vld [vmem:[#allocation21 + $0xb70] sm:$0xff] }
 0xb62   : > { %4105 = vmatpush.msrb.mxu1 %v4056_v3  ;;  %4163 = vmatpush.msra.mxu0 %v4093_v49  ;;  %v4048_v3 = vld [vmem:[#allocation21 + $0xa60] sm:$0xff]  ;;  %v4085_v49 = vld [vmem:[#allocation21 + $0xb88] sm:$0xff] }
 0xb63   : > { %4125 = vmatpush.msra.mxu2 %v4088_v37  ;;  %4143 = vmatpush.msra.mxu3 %v4061_v50  ;;  %v4080_v37 = vld [vmem:[#allocation21 + $0xb60] sm:$0xff]  ;;  %v4053_v50 = vld [vmem:[#allocation21 + $0xa88] sm:$0xff] }
 0xb64   : > { %4106 = vmatpush.msrb.mxu1 %v4054_v30  ;;  %4164 = vmatpush.msra.mxu0 %v4091_v62  ;;  %v4046_v30 = vld [vmem:[#allocation21 + $0xa50] sm:$0xff]  ;;  %v4083_v62 = vld [vmem:[#allocation21 + $0xb78] sm:$0xff] }
 0xb65   : > { %4126 = vmatpush.msra.mxu2 %v4086_v47  ;;  %4144 = vmatpush.msra.mxu3 %v4059_v2  ;;  %v4078_v47 = vld [vmem:[#allocation21 + $0xb50] sm:$0xff]  ;;  %v4051_v2 = vld [vmem:[#allocation21 + $0xa78] sm:$0xff] }
 0xb66   : > { %4107 = vmatpush.msrb.mxu1 %v4052_v5  ;;  %4165 = vmatpush.msra.mxu0 %v4089_v51  ;;  %v4044_v5 = vld [vmem:[#allocation21 + $0xa40] sm:$0xff]  ;;  %v4081_v51 = vld [vmem:[#allocation21 + $0xb68] sm:$0xff] }
 0xb67   : > { %4127 = vmatpush.msra.mxu2 %v4084_v52  ;;  %4145 = vmatpush.msra.mxu3 %v4057_v12  ;;  %v4076_v52 = vld [vmem:[#allocation21 + $0xb40] sm:$0xff]  ;;  %v4049_v12 = vld [vmem:[#allocation21 + $0xa68] sm:$0xff] }
 0xb68   : > { %4108 = vmatpush.msrb.mxu1 %v4050_v48  ;;  %4166 = vmatpush.msra.mxu0 %v4087_v39  ;;  %v4042_v48 = vld [vmem:[#allocation21 + $0xa30] sm:$0xff]  ;;  %v4079_v39 = vld [vmem:[#allocation21 + $0xb58] sm:$0xff] }
 0xb69   : > { %4128 = vmatpush.msra.mxu2 %v4082_v1  ;;  %4146 = vmatpush.msra.mxu3 %v4055_v46  ;;  %v4074_v1 = vld [vmem:[#allocation21 + $0xb30] sm:$0xff]  ;;  %v4047_v46 = vld [vmem:[#allocation21 + $0xa58] sm:$0xff] }
 0xb6a   : > { %4109 = vmatpush.msrb.mxu1 %v4048_v3  ;;  %4167 = vmatpush.msra.mxu0 %v4085_v49  ;;  %v4040_v3 = vld [vmem:[#allocation21 + $0xa20] sm:$0xff]  ;;  %v4077_v49 = vld [vmem:[#allocation21 + $0xb48] sm:$0xff] }
 0xb6b   : > { %4129 = vmatpush.msra.mxu2 %v4080_v37  ;;  %4147 = vmatpush.msra.mxu3 %v4053_v50  ;;  %v4072_v37 = vld [vmem:[#allocation21 + $0xb20] sm:$0xff]  ;;  %v4045_v50 = vld [vmem:[#allocation21 + $0xa48] sm:$0xff] }
 0xb6c   : > { %4110 = vmatpush.msrb.mxu1 %v4046_v30  ;;  %4168 = vmatpush.msra.mxu0 %v4083_v62  ;;  %v4038_v30 = vld [vmem:[#allocation21 + $0xa10] sm:$0xff]  ;;  %v4075_v62 = vld [vmem:[#allocation21 + $0xb38] sm:$0xff] }
 0xb6d   : > { %4130 = vmatpush.msra.mxu2 %v4078_v47  ;;  %4148 = vmatpush.msra.mxu3 %v4051_v2  ;;  %v4070_v47 = vld [vmem:[#allocation21 + $0xb10] sm:$0xff]  ;;  %v4071_v2 = vld [vmem:[#allocation21 + $0xb18] sm:$0xff] }
 0xb6e   : > { %4111 = vmatpush.msrb.mxu1 %v4044_v5  ;;  %4169 = vmatpush.msra.mxu0 %v4081_v51  ;;  %v4036_v5 = vld [vmem:[#allocation21 + $0xa00] sm:$0xff]  ;;  %v4073_v51 = vld [vmem:[#allocation21 + $0xb28] sm:$0xff] }
 0xb6f   : > { %4131 = vmatpush.msra.mxu2 %v4076_v52  ;;  %4149 = vmatpush.msra.mxu3 %v4049_v12  ;;  %v4068_v52 = vld [vmem:[#allocation21 + $0xb00] sm:$0xff]  ;;  %v4041_v12 = vld [vmem:[#allocation21 + $0xa28] sm:$0xff] }
 0xb70   : > { %4112 = vmatpush.msrb.mxu1 %v4042_v48  ;;  %4170 = vmatpush.msra.mxu0 %v4079_v39  ;;  %v4043_v48 = vld [vmem:[#allocation21 + $0xa38] sm:$0xff]  ;;  %v4069_v39 = vld [vmem:[#allocation21 + $0xb08] sm:$0xff] }
 0xb71   : > { %4132 = vmatpush.msra.mxu2 %v4074_v1  ;;  %4150 = vmatpush.msra.mxu3 %v4047_v46  ;;  %v4297_v1 = vld [vmem:[#allocation21 + $0xdf0] sm:$0xff]  ;;  %v4037_v46 = vld [vmem:[#allocation21 + $0xa08] sm:$0xff] }
 0xb72   : > { %4113 = vmatpush.msrb.mxu1 %v4040_v3  ;;  %4171 = vmatpush.msra.mxu0 %v4077_v49  ;;  %v4295_v3 = vld [vmem:[#allocation21 + $0xde0] sm:$0xff]  ;;  %v4039_v49 = vld [vmem:[#allocation21 + $0xa18] sm:$0xff] }
 0xb73   : > { %4133 = vmatpush.msra.mxu2 %v4072_v37  ;;  %4151 = vmatpush.msra.mxu3 %v4045_v50  ;;  %v4293_v37 = vld [vmem:[#allocation21 + $0xdd0] sm:$0xff]  ;;  %v4287_v50 = vld [vmem:[#allocation21 + $0xda0] sm:$0xff] }
 0xb74   : > { %4114 = vmatpush.msrb.mxu1 %v4038_v30  ;;  %4172 = vmatpush.msra.mxu0 %v4075_v62  ;;  %v4265_v30 = vld [vmem:[#allocation21 + $0xcf0] sm:$0xff]  ;;  %v4291_v62 = vld [vmem:[#allocation21 + $0xdc0] sm:$0xff] }
 0xb75   : > { %4134 = vmatpush.msra.mxu2 %v4070_v47  ;;  %4152 = vmatpush.msra.mxu3 %v4043_v48  ;;  %v4261_v47 = vld [vmem:[#allocation21 + $0xcd0] sm:$0xff]  ;;  %v4255_v48 = vld [vmem:[#allocation21 + $0xca0] sm:$0xff] }
 0xb76   : > { %4115 = vmatpush.msrb.mxu1 %v4036_v5  ;;  %4173 = vmatpush.msra.mxu0 %v4073_v51  ;;  %v4259_v5 = vld [vmem:[#allocation21 + $0xcc0] sm:$0xff]  ;;  %v4285_v51 = vld [vmem:[#allocation21 + $0xd90] sm:$0xff] }
 0xb77   : > { %4135 = vmatpush.msra.mxu2 %v4068_v52  ;;  %4153 = vmatpush.msra.mxu3 %v4041_v12  ;;  %v4257_v52 = vld [vmem:[#allocation21 + $0xcb0] sm:$0xff]  ;;  %v4279_v12 = vld [vmem:[#allocation21 + $0xd60] sm:$0xff] }
 0xb78   : > { %8314 = vmatpush.msk.msra.mxu1 %vm933_vm0, %v10663_v4  ;;  %4174 = vmatpush.msra.mxu0 %v4071_v2  ;;  %v4263_v4 = vld [vmem:[#allocation21 + $0xce0] sm:$0xff] }
 0xb79   : > { %8316 = vmatpush.msk.msrb.mxu2 %vm933_vm0, %v10665_v6  ;;  %4154 = vmatpush.msra.mxu3 %v4039_v49  ;;  %v4289_v6 = vld [vmem:[#allocation21 + $0xdb0] sm:$0xff]  ;;  %v4283_v2 = vld [vmem:[#allocation21 + $0xd80] sm:$0xff] }
 0xb7a   : > { %4175 = vmatpush.msra.mxu0 %v4069_v39  ;;  %v4281_v39 = vld [vmem:[#allocation21 + $0xd70] sm:$0xff] }
 0xb7b   : > { %4155 = vmatpush.msra.mxu3 %v4037_v46  ;;  %v4277_v49 = vld [vmem:[#allocation21 + $0xd50] sm:$0xff]  ;;  %v4275_v46 = vld [vmem:[#allocation21 + $0xd40] sm:$0xff] }
 0xb7c   : > { %4319 = vmatpush.msrb.mxu0 %v4297_v1  ;;  %v4253_v1 = vld [vmem:[#allocation21 + $0xc90] sm:$0xff] }
 0xb7d   : > { %4299 = vmatpush.msrb.mxu3 %v4265_v30  ;;  %v4247_v30 = vld [vmem:[#allocation21 + $0xc60] sm:$0xff] }
 0xb7e   : > { %4320 = vmatpush.msrb.mxu0 %v4295_v3  ;;  %v4251_v3 = vld [vmem:[#allocation21 + $0xc80] sm:$0xff] }
 0xb7f   : > { %4300 = vmatpush.msrb.mxu3 %v4263_v4  ;;  %v4245_v4 = vld [vmem:[#allocation21 + $0xc50] sm:$0xff] }
 0xb80   : > { %4321 = vmatpush.msrb.mxu0 %v4293_v37  ;;  %v4249_v37 = vld [vmem:[#allocation21 + $0xc70] sm:$0xff] }
 0xb81   : > { %4301 = vmatpush.msrb.mxu3 %v4261_v47  ;;  %v4243_v47 = vld [vmem:[#allocation21 + $0xc40] sm:$0xff] }
 0xb82   : > { %4322 = vmatpush.msrb.mxu0 %v4291_v62  ;;  %v4273_v62 = vld [vmem:[#allocation21 + $0xd30] sm:$0xff] }
 0xb83   : > { %4302 = vmatpush.msrb.mxu3 %v4259_v5  ;;  %v4241_v5 = vld [vmem:[#allocation21 + $0xc30] sm:$0xff] }
 0xb84   : > { %4323 = vmatpush.msrb.mxu0 %v4289_v6  ;;  %v4271_v6 = vld [vmem:[#allocation21 + $0xd20] sm:$0xff] }
 0xb85   : > { %4303 = vmatpush.msrb.mxu3 %v4257_v52  ;;  %v4239_v52 = vld [vmem:[#allocation21 + $0xc20] sm:$0xff] }
 0xb86   : > { %4324 = vmatpush.msrb.mxu0 %v4287_v50  ;;  %v4269_v50 = vld [vmem:[#allocation21 + $0xd10] sm:$0xff] }
 0xb87   : > { %4304 = vmatpush.msrb.mxu3 %v4255_v48  ;;  %v4235_v48 = vld [vmem:[#allocation21 + $0xc00] sm:$0xff] }
 0xb88   : > { %4325 = vmatpush.msrb.mxu0 %v4285_v51  ;;  %v4267_v51 = vld [vmem:[#allocation21 + $0xd00] sm:$0xff] }
 0xb89   : > { %4305 = vmatpush.msrb.mxu3 %v4253_v1 }
 0xb8a   : > { %4326 = vmatpush.msrb.mxu0 %v4283_v2  ;;  %v4237_v2 = vld [vmem:[#allocation21 + $0xc10] sm:$0xff] }
 0xb8b   : > { %4306 = vmatpush.msrb.mxu3 %v4251_v3 }
 0xb8c   : > { %4327 = vmatpush.msrb.mxu0 %v4281_v39 }
 0xb8d   : > { %4307 = vmatpush.msrb.mxu3 %v4249_v37  ;;  %v4266_v37 = vld [vmem:[#allocation21 + $0xcf8] sm:$0xff] }
 0xb8e   : > { %4328 = vmatpush.msrb.mxu0 %v4279_v12  ;;  %v4298_v12 = vld [vmem:[#allocation21 + $0xdf8] sm:$0xff] }
 0xb8f   : > { %4308 = vmatpush.msrb.mxu3 %v4247_v30  ;;  %v4294_v30 = vld [vmem:[#allocation21 + $0xdd8] sm:$0xff] }
 0xb90   : > { %4329 = vmatpush.msrb.mxu0 %v4277_v49  ;;  %v4296_v49 = vld [vmem:[#allocation21 + $0xde8] sm:$0xff] }
 0xb91   : > { %4309 = vmatpush.msrb.mxu3 %v4245_v4  ;;  %v4264_v4 = vld [vmem:[#allocation21 + $0xce8] sm:$0xff] }
 0xb92   : > { %4330 = vmatpush.msrb.mxu0 %v4275_v46 }
 0xb93   : > { %4310 = vmatpush.msrb.mxu3 %v4243_v47  ;;  %v4262_v47 = vld [vmem:[#allocation21 + $0xcd8] sm:$0xff] }
 0xb94   : > { %4331 = vmatpush.msrb.mxu0 %v4273_v62  ;;  %v8313_v62 = vld [vmem:[%s11552_s23 + $0xc] sm:$0x3] }
 0xb95   : > { %4311 = vmatpush.msrb.mxu3 %v4241_v5  ;;  %v4288_v5 = vld [vmem:[#allocation21 + $0xda8] sm:$0xff] }
 0xb96   : > { %4332 = vmatpush.msrb.mxu0 %v4271_v6  ;;  %v4292_v6 = vld [vmem:[#allocation21 + $0xdc8] sm:$0xff] }
 0xb97   : > { %4312 = vmatpush.msrb.mxu3 %v4239_v52  ;;  %v4286_v52 = vld [vmem:[#allocation21 + $0xd98] sm:$0xff] }
 0xb98   : > { %4333 = vmatpush.msrb.mxu0 %v4269_v50  ;;  %v4260_v50 = vld [vmem:[#allocation21 + $0xcc8] sm:$0xff] }
 0xb99   : > { %4313 = vmatpush.msrb.mxu3 %v4237_v2  ;;  %v4256_v2 = vld [vmem:[#allocation21 + $0xca8] sm:$0xff] }
 0xb9a   : > { %4334 = vmatpush.msrb.mxu0 %v4267_v51  ;;  %v4258_v51 = vld [vmem:[#allocation21 + $0xcb8] sm:$0xff] }
 0xb9b   : > { %4314 = vmatpush.msrb.mxu3 %v4235_v48  ;;  %v4254_v48 = vld [vmem:[#allocation21 + $0xc98] sm:$0xff] }
 0xbd4   : > { %v10882_v39 = vpop.f32.mrf.mxu0 }
 0xbda   : > { %v10884_v1 = vpop.f32.mrf.mxu3 }
 0xbdd   : > { %v4032_v3 = vpop.f32.mrf.mxu0 }
 0xbde   : > { %4136 = vmatmul.f32.vlgmr.msra.gmra.mxu2 %v4032_v3  ;;  %4176 = vmatmul.f32.vlgmr.msra.gmra.mxu0 %v4032_v3  ;;  %v4252_v3 = vld [vmem:[#allocation21 + $0xc88] sm:$0xff] }
 0xbdf   : > { %8321 = vmatpush.msk.msra.mxu0 %vm933_vm0, %v10668_v8  ;;  %4359 = vmatpush.msra.mxu2 %v4298_v12  ;;  %v4290_v8 = vld [vmem:[#allocation21 + $0xdb8] sm:$0xff] }
 0xbe0   : > { %v4282_v12 = vld [vmem:[#allocation21 + $0xd78] sm:$0xff] }
 0xbe1   : > { %4360 = vmatpush.msra.mxu2 %v4296_v49  ;;  %v4280_v49 = vld [vmem:[#allocation21 + $0xd68] sm:$0xff] }
 0xbe2   : > { %v4012_v46 = vpop.f32.mrf.mxu3 }
 0xbe3   : > { %4116 = vmatmul.f32.vlgmr.msrb.gmra.mxu1 %v4012_v46  ;;  %4156 = vmatmul.f32.vlgmr.msra.gmra.mxu3 %v4012_v46  ;;  %v4278_v46 = vld [vmem:[#allocation21 + $0xd58] sm:$0xff] }
 0xbe4   : > { %8319 = vmatpush.msk.msra.mxu3 %vm933_vm0, %v10670_v10  ;;  %4339 = vmatpush.msrb.mxu1 %v4266_v37  ;;  %v4284_v10 = vld [vmem:[#allocation21 + $0xd88] sm:$0xff]  ;;  %v4250_v37 = vld [vmem:[#allocation21 + $0xc78] sm:$0xff] }
 0xbe5   : > { %4361 = vmatpush.msra.mxu2 %v4294_v30  ;;  %v4248_v30 = vld [vmem:[#allocation21 + $0xc68] sm:$0xff] }
 0xbe6   : > { %8317 = vmatmul.msk.f32.vlgmr.msrb.gmra.mxu2 %vm929_vm1, %v8313_v62  ;;  %4340 = vmatpush.msrb.mxu1 %v4264_v4  ;;  %v4246_v4 = vld [vmem:[#allocation21 + $0xc58] sm:$0xff] }
 0xbe7   : > { %4362 = vmatpush.msra.mxu2 %v4292_v6  ;;  %v4274_v6 = vld [vmem:[#allocation21 + $0xd38] sm:$0xff] }
 0xbe8   : > { %4341 = vmatpush.msrb.mxu1 %v4262_v47  ;;  %v4244_v47 = vld [vmem:[#allocation21 + $0xc48] sm:$0xff] }
 0xbe9   : > { %4363 = vmatpush.msra.mxu2 %v4290_v8  ;;  %v4272_v8 = vld [vmem:[#allocation21 + $0xd28] sm:$0xff] }
 0xbea   : > { %4342 = vmatpush.msrb.mxu1 %v4260_v50  ;;  %v4242_v50 = vld [vmem:[#allocation21 + $0xc38] sm:$0xff] }
 0xbeb   : > { %8315 = vmatmul.msk.f32.vlgmr.msra.gmra.mxu1 %vm929_vm1, %v8313_v62  ;;  %4364 = vmatpush.msra.mxu2 %v4288_v5  ;;  %v4276_v62 = vld [vmem:[#allocation21 + $0xd48] sm:$0xff]  ;;  %v4270_v5 = vld [vmem:[#allocation21 + $0xd18] sm:$0xff] }
 0xbec   : > { %4343 = vmatpush.msrb.mxu1 %v4258_v51  ;;  %v4240_v51 = vld [vmem:[#allocation21 + $0xc28] sm:$0xff] }
 0xbed   : > { %4365 = vmatpush.msra.mxu2 %v4286_v52  ;;  %v4268_v52 = vld [vmem:[#allocation21 + $0xd08] sm:$0xff] }
 0xbee   : > { %4344 = vmatpush.msrb.mxu1 %v4256_v2  ;;  %v4238_v2 = vld [vmem:[#allocation21 + $0xc18] sm:$0xff] }
 0xbef   : > { %4366 = vmatpush.msra.mxu2 %v4284_v10  ;;  %v4496_v10 = vld [vmem:[#allocation21 + $0xff0] sm:$0xff] }
 0xbf0   : > { %4345 = vmatpush.msrb.mxu1 %v4254_v48  ;;  %v4236_v48 = vld [vmem:[#allocation21 + $0xc08] sm:$0xff] }
 0xbf1   : > { %4367 = vmatpush.msra.mxu2 %v4282_v12  ;;  %v4494_v12 = vld [vmem:[#allocation21 + $0xfe0] sm:$0xff] }
 0xbf2   : > { %4346 = vmatpush.msrb.mxu1 %v4252_v3  ;;  %v4464_v3 = vld [vmem:[#allocation21 + $0xef0] sm:$0xff] }
 0xbf3   : > { %4368 = vmatpush.msra.mxu2 %v4280_v49  ;;  %v4492_v49 = vld [vmem:[#allocation21 + $0xfd0] sm:$0xff] }
 0xbf4   : > { %4347 = vmatpush.msrb.mxu1 %v4250_v37  ;;  %v4462_v37 = vld [vmem:[#allocation21 + $0xee0] sm:$0xff] }
 0xbf5   : > { %4369 = vmatpush.msra.mxu2 %v4278_v46  ;;  %v4490_v46 = vld [vmem:[#allocation21 + $0xfc0] sm:$0xff] }
 0xbf6   : > { %4348 = vmatpush.msrb.mxu1 %v4248_v30  ;;  %v4460_v30 = vld [vmem:[#allocation21 + $0xed0] sm:$0xff] }
 0xbf7   : > { %4370 = vmatpush.msra.mxu2 %v4276_v62  ;;  %v4488_v62 = vld [vmem:[#allocation21 + $0xfb0] sm:$0xff] }
 0xbf8   : > { %4349 = vmatpush.msrb.mxu1 %v4246_v4  ;;  %v4458_v4 = vld [vmem:[#allocation21 + $0xec0] sm:$0xff] }
 0xbf9   : > { %4371 = vmatpush.msra.mxu2 %v4274_v6  ;;  %v4486_v6 = vld [vmem:[#allocation21 + $0xfa0] sm:$0xff] }
 0xbfa   : > { %4350 = vmatpush.msrb.mxu1 %v4244_v47  ;;  %v4456_v47 = vld [vmem:[#allocation21 + $0xeb0] sm:$0xff] }
 0xbfb   : > { %4372 = vmatpush.msra.mxu2 %v4272_v8  ;;  %v4484_v8 = vld [vmem:[#allocation21 + $0xf90] sm:$0xff] }
 0xbfc   : > { %4351 = vmatpush.msrb.mxu1 %v4242_v50  ;;  %v4454_v50 = vld [vmem:[#allocation21 + $0xea0] sm:$0xff] }
 0xbfd   : > { %4373 = vmatpush.msra.mxu2 %v4270_v5  ;;  %v4482_v5 = vld [vmem:[#allocation21 + $0xf80] sm:$0xff] }
 0xbfe   : > { %4352 = vmatpush.msrb.mxu1 %v4240_v51  ;;  %v4452_v51 = vld [vmem:[#allocation21 + $0xe90] sm:$0xff] }
 0xbff   : > { %4374 = vmatpush.msra.mxu2 %v4268_v52  ;;  %v4480_v52 = vld [vmem:[#allocation21 + $0xf70] sm:$0xff] }
 0xc00   : > { %4353 = vmatpush.msrb.mxu1 %v4238_v2  ;;  %v4450_v2 = vld [vmem:[#allocation21 + $0xe80] sm:$0xff] }
 0xc01   : > { %4518 = vmatpush.msrb.mxu2 %v4496_v10  ;;  %v4478_v10 = vld [vmem:[#allocation21 + $0xf60] sm:$0xff] }
 0xc02   : > { %4354 = vmatpush.msrb.mxu1 %v4236_v48  ;;  %v4448_v48 = vld [vmem:[#allocation21 + $0xe70] sm:$0xff] }
 0xc03   : > { %4519 = vmatpush.msrb.mxu2 %v4494_v12  ;;  %v4446_v12 = vld [vmem:[#allocation21 + $0xe60] sm:$0xff] }
 0xc04   : > { %4498 = vmatpush.msra.mxu1 %v4464_v3  ;;  %v4444_v3 = vld [vmem:[#allocation21 + $0xe50] sm:$0xff] }
 0xc05   : > { %4520 = vmatpush.msrb.mxu2 %v4492_v49  ;;  %v4476_v49 = vld [vmem:[#allocation21 + $0xf50] sm:$0xff] }
 0xc06   : > { %4499 = vmatpush.msra.mxu1 %v4462_v37  ;;  %v4442_v37 = vld [vmem:[#allocation21 + $0xe40] sm:$0xff] }
 0xc07   : > { %4521 = vmatpush.msrb.mxu2 %v4490_v46  ;;  %v4474_v46 = vld [vmem:[#allocation21 + $0xf40] sm:$0xff] }
 0xc08   : > { %4500 = vmatpush.msra.mxu1 %v4460_v30  ;;  %v4440_v30 = vld [vmem:[#allocation21 + $0xe30] sm:$0xff] }
 0xc09   : > { %4522 = vmatpush.msrb.mxu2 %v4488_v62  ;;  %v4472_v62 = vld [vmem:[#allocation21 + $0xf30] sm:$0xff] }
 0xc0a   : > { %4501 = vmatpush.msra.mxu1 %v4458_v4  ;;  %v4438_v4 = vld [vmem:[#allocation21 + $0xe20] sm:$0xff] }
 0xc0b   : > { %4523 = vmatpush.msrb.mxu2 %v4486_v6  ;;  %v4470_v6 = vld [vmem:[#allocation21 + $0xf20] sm:$0xff] }
 0xc0c   : > { %4502 = vmatpush.msra.mxu1 %v4456_v47  ;;  %v10895_v47 = vpop.f32.mrf.mxu2 }
 0xc0d   : > { %4524 = vmatpush.msrb.mxu2 %v4484_v8  ;;  %v10897_v8 = vpop.f32.mrf.mxu1 }
 0xc0e   : > { %4503 = vmatpush.msra.mxu1 %v4454_v50  ;;  %v4436_v50 = vld [vmem:[#allocation21 + $0xe10] sm:$0xff] }
 0xc0f   : > { %4525 = vmatpush.msrb.mxu2 %v4482_v5  ;;  %v4468_v5 = vld [vmem:[#allocation21 + $0xf10] sm:$0xff] }
 0xc10   : > { %4504 = vmatpush.msra.mxu1 %v4452_v51  ;;  %v4434_v51 = vld [vmem:[#allocation21 + $0xe00] sm:$0xff] }
 0xc11   : > { %4526 = vmatpush.msrb.mxu2 %v4480_v52  ;;  %v4466_v52 = vld [vmem:[#allocation21 + $0xf00] sm:$0xff] }
 0xc12   : > { %4505 = vmatpush.msra.mxu1 %v4450_v2 }
 0xc13   : > { %4527 = vmatpush.msrb.mxu2 %v4478_v10 }
 0xc14   : > { %4506 = vmatpush.msra.mxu1 %v4448_v48  ;;  %v10899_v2 = vpop.f32.mrf.mxu2 }
 0xc15   : > { %4528 = vmatpush.msrb.mxu2 %v4476_v49  ;;  %v10901_v10 = vpop.f32.mrf.mxu1 }
 0xc16   : > { %4507 = vmatpush.msra.mxu1 %v4446_v12 }
 0xc17   : > { %4529 = vmatpush.msrb.mxu2 %v4474_v46 }
 0xc18   : > { %4508 = vmatpush.msra.mxu1 %v4444_v3 }
 0xc19   : > { %4530 = vmatpush.msrb.mxu2 %v4472_v62  ;;  %v4465_v62 = vld [vmem:[#allocation21 + $0xef8] sm:$0xff] }
 0xc1a   : > { %4509 = vmatpush.msra.mxu1 %v4442_v37 }
 0xc1b   : > { %4531 = vmatpush.msrb.mxu2 %v4470_v6  ;;  %v4584_v6 = vld.sshfl [vmem:[#allocation1 + $0x8] sm:$0xff pattern:$0x75316420] }
 0xc1c   : > { %4510 = vmatpush.msra.mxu1 %v4440_v30  ;;  %v10905_v12 = vpop.f32.mrf.mxu2  ;;  %v4497_v30 = vld [vmem:[#allocation21 + $0xff8] sm:$0xff] }
 0xc1d   : > { %4532 = vmatpush.msrb.mxu2 %v4468_v5  ;;  %v10903_v48 = vpop.f32.mrf.mxu1  ;;  %11554 = vst [vmem:[#allocation33_spill] sm:$0xff] %v10905_v12  ;;  %v4463_v5 = vld [vmem:[#allocation21 + $0xee8] sm:$0xff] }
 0xc1e   : > { %4511 = vmatpush.msra.mxu1 %v4438_v4  ;;  %11553 = vst [vmem:[#allocation32_spill] sm:$0xff] %v10903_v48  ;;  %v4583_v4 = vld.sshfl [vmem:[#allocation1] sm:$0xff pattern:$0x75316420]  ;;  %v4459_v12 = vld [vmem:[#allocation21 + $0xec8] sm:$0xff]  ;;  %v4453_v48 = vld [vmem:[#allocation21 + $0xe98] sm:$0xff] }
 0xc1f   : > { %4533 = vmatpush.msrb.mxu2 %v4466_v52  ;;  %v4461_v52 = vld [vmem:[#allocation21 + $0xed8] sm:$0xff] }
 0xc20   : > { %4512 = vmatpush.msra.mxu1 %v4436_v50  ;;  %v4495_v50 = vld [vmem:[#allocation21 + $0xfe8] sm:$0xff] }
 0xc22   : > { %4513 = vmatpush.msra.mxu1 %v4434_v51  ;;  %v4493_v51 = vld [vmem:[#allocation21 + $0xfd8] sm:$0xff] }
 0xc60   : > { %v10907_v3 = vpop.f32.mrf.mxu1 }
 0xc61   : > { %v10909_v49 = vpop.f32.mrf.mxu2 }
 0xc62   : > { %11555 = vst [vmem:[#allocation34_spill] sm:$0xff] %v10909_v49  ;;  %v4447_v49 = vld [vmem:[#allocation21 + $0xe68] sm:$0xff] }
 0xc68   : > { %v4211_v37 = vpop.f32.mrf.mxu1 }
 0xc69   : > { %v4231_v46 = vpop.f32.mrf.mxu2  ;;  %4315 = vmatmul.f32.vlgmr.msrb.gmra.mxu3 %v4211_v37  ;;  %4355 = vmatmul.f32.vlgmr.msrb.gmra.mxu1 %v4211_v37  ;;  %v8318_v37 = vld [vmem:[%s11552_s23 + $0xe] sm:$0x3] }
 0xc6a   : > { %4335 = vmatmul.f32.vlgmr.msrb.gmra.mxu0 %v4231_v46  ;;  %4375 = vmatmul.f32.vlgmr.msra.gmra.mxu2 %v4231_v46  ;;  %v4491_v46 = vld [vmem:[#allocation21 + $0xfc8] sm:$0xff] }
 0xc6b   : > { %8324 = vmatpush.msk.msrb.mxu1 %vm933_vm0, %v4583_v4  ;;  %8326 = vmatpush.msk.msra.mxu2 %vm933_vm0, %v4584_v6  ;;  %v4457_v4 = vld [vmem:[#allocation21 + $0xeb8] sm:$0xff]  ;;  %v4487_v6 = vld [vmem:[#allocation21 + $0xfa8] sm:$0xff] }
 0xc6c   : > { %4558 = vmatpush.msrb.mxu0 %v4497_v30  ;;  %4538 = vmatpush.msrb.mxu3 %v4465_v62  ;;  %v4489_v30 = vld [vmem:[#allocation21 + $0xfb8] sm:$0xff]  ;;  %v4455_v62 = vld [vmem:[#allocation21 + $0xea8] sm:$0xff] }
 0xc6e   : > { %4559 = vmatpush.msrb.mxu0 %v4495_v50  ;;  %4539 = vmatpush.msrb.mxu3 %v4463_v5  ;;  %v4485_v50 = vld [vmem:[#allocation21 + $0xf98] sm:$0xff]  ;;  %v4451_v5 = vld [vmem:[#allocation21 + $0xe88] sm:$0xff] }
 0xc70   : > { %4560 = vmatpush.msrb.mxu0 %v4493_v51  ;;  %4540 = vmatpush.msrb.mxu3 %v4461_v52  ;;  %v4483_v51 = vld [vmem:[#allocation21 + $0xf88] sm:$0xff]  ;;  %v4481_v52 = vld [vmem:[#allocation21 + $0xf78] sm:$0xff] }
 0xc71   : > { %8320 = vmatmul.msk.f32.vlgmr.msra.gmra.mxu3 %vm929_vm1, %v8318_v37 }
 0xc72   : > { %8322 = vmatmul.msk.f32.vlgmr.msra.gmra.mxu0 %vm929_vm1, %v8318_v37  ;;  %4541 = vmatpush.msrb.mxu3 %v4459_v12  ;;  %v4449_v37 = vld [vmem:[#allocation21 + $0xe78] sm:$0xff]  ;;  %v4479_v12 = vld [vmem:[#allocation21 + $0xf68] sm:$0xff] }
 0xc73   : > { %4561 = vmatpush.msrb.mxu0 %v4491_v46  ;;  %v4477_v46 = vld [vmem:[#allocation21 + $0xf58] sm:$0xff] }
 0xc74   : > { %4542 = vmatpush.msrb.mxu3 %v4457_v4  ;;  %v4445_v4 = vld [vmem:[#allocation21 + $0xe58] sm:$0xff] }
 0xc75   : > { %4562 = vmatpush.msrb.mxu0 %v4489_v30  ;;  %v4475_v30 = vld [vmem:[#allocation21 + $0xf48] sm:$0xff] }
 0xc76   : > { %4543 = vmatpush.msrb.mxu3 %v4455_v62  ;;  %v4443_v62 = vld [vmem:[#allocation21 + $0xe48] sm:$0xff] }
 0xc77   : > { %4563 = vmatpush.msrb.mxu0 %v4487_v6  ;;  %v4441_v6 = vld [vmem:[#allocation21 + $0xe38] sm:$0xff] }
 0xc78   : > { %4544 = vmatpush.msrb.mxu3 %v4453_v48  ;;  %v4473_v48 = vld [vmem:[#allocation21 + $0xf38] sm:$0xff] }
 0xc79   : > { %4564 = vmatpush.msrb.mxu0 %v4485_v50  ;;  %v4471_v50 = vld [vmem:[#allocation21 + $0xf28] sm:$0xff] }
 0xc7a   : > { %4545 = vmatpush.msrb.mxu3 %v4451_v5  ;;  %v4439_v5 = vld [vmem:[#allocation21 + $0xe28] sm:$0xff] }
 0xc7b   : > { %4565 = vmatpush.msrb.mxu0 %v4483_v51  ;;  %v4469_v51 = vld [vmem:[#allocation21 + $0xf18] sm:$0xff] }
 0xc7c   : > { %4546 = vmatpush.msrb.mxu3 %v4449_v37  ;;  %v4467_v37 = vld [vmem:[#allocation21 + $0xf08] sm:$0xff] }
 0xc7d   : > { %4566 = vmatpush.msrb.mxu0 %v4481_v52  ;;  %v4437_v52 = vld [vmem:[#allocation21 + $0xe18] sm:$0xff] }
 0xc7e   : > { %4547 = vmatpush.msrb.mxu3 %v4447_v49  ;;  %v10918_v49 = vpop.f32.mrf.mxu0 }
 0xc7f   : > { %4567 = vmatpush.msrb.mxu0 %v4479_v12  ;;  %v4435_v12 = vld [vmem:[#allocation21 + $0xe08] sm:$0xff] }
 0xc80   : > { %4548 = vmatpush.msrb.mxu3 %v4445_v4 }
 0xc81   : > { %4568 = vmatpush.msrb.mxu0 %v4477_v46  ;;  %v10920_v46 = vpop.f32.mrf.mxu3 }
 0xc82   : > { %4549 = vmatpush.msrb.mxu3 %v4443_v62 }
 0xc83   : > { %4569 = vmatpush.msrb.mxu0 %v4475_v30  ;;  %v1787_v30 = vadd.f32 %v10709_v60, %v10707_v57  ;;  %v4694_v57 = vld [vmem:[#allocation21 + $0x11e8] sm:$0xff] }
 0xc84   : > { %4550 = vmatpush.msrb.mxu3 %v4441_v6 }
 0xc85   : > { %4570 = vmatpush.msrb.mxu0 %v4473_v48  ;;  %v1847_v62 = vadd.f32 %v10711_v61, %v1787_v30  ;;  %v2064_v48 = vadd.f32 %v10748_v17, %v10746_v20  ;;  %v4692_v20 = vld [vmem:[#allocation21 + $0x11d8] sm:$0xff]  ;;  %v2223_v30 = vadd.f32 %v10752_v41, %v10750_v22  ;;  %v4695_v41 = vld [vmem:[#allocation21 + $0x11f0] sm:$0xff] }
 0xc86   : > { %4551 = vmatpush.msrb.mxu3 %v4439_v5  ;;  %v2263_v5 = vadd.f32 %v10737_v40, %v10733_v59  ;;  %v4664_v17 = vld [vmem:[#allocation21 + $0x10f8] sm:$0xff]  ;;  %v2516_v59 = vadd.f32 %v10775_v43, %v10771_v26  ;;  %v2715_v26 = vadd.f32 %v10794_v27, %v10792_v29  ;;  %v2476_v29 = vadd.f32 %v10760_v18, %v10758_v25  ;;  %v4658_v27 = vld [vmem:[#allocation21 + $0x10c8] sm:$0xff]  ;;  %v4657_v25 = vld [vmem:[#allocation21 + $0x10c0] sm:$0xff] }
 0xc87   : > { %4571 = vmatpush.msrb.mxu0 %v4471_v50  ;;  %v1867_v50 = vadd.f32 %v10713_v7, %v1847_v62  ;;  %v2024_v7 = vadd.f32 %v10717_v21, %v10715_v9  ;;  %v4662_v62 = vld [vmem:[#allocation21 + $0x10e8] sm:$0xff]  ;;  %v4663_v9 = vld [vmem:[#allocation21 + $0x10f0] sm:$0xff]  ;;  %v4688_v43 = vld [vmem:[#allocation21 + $0x11b8] sm:$0xff] }
 0xc88   : > { %4552 = vmatpush.msrb.mxu3 %v4437_v52  ;;  %v1747_v52 = vadd.f32 %v10688_v54, %v10686_v53  ;;  %v4690_v53 = vld [vmem:[#allocation21 + $0x11c8] sm:$0xff]  ;;  %v4660_v22 = vld [vmem:[#allocation21 + $0x10d8] sm:$0xff] }
 0xc89   : > { %4572 = vmatpush.msrb.mxu0 %v4469_v51  ;;  %v4696_v51 = vld [vmem:[#allocation21 + $0x11f8] sm:$0xff] }
 0xc8a   : > { %4553 = vmatpush.msrb.mxu3 %v4435_v12  ;;  %v2067_v12 = vadd.f32 %v2064_v48, %v1867_v50  ;;  %v1807_v60 = vadd.f32 %v10690_v55, %v1747_v52  ;;  %v8323_v55 = vld [vmem:[%s11552_s23 + $0x10] sm:$0x3] }
 0xc8b   : > { %4573 = vmatpush.msrb.mxu0 %v4467_v37 }
 0xc8c   : > { %v2266_v61 = vadd.f32 %v2263_v5, %v2067_v12  ;;  %v1827_v54 = vadd.f32 %v10692_v56, %v1807_v60  ;;  %v4661_v56 = vld [vmem:[#allocation21 + $0x10e0] sm:$0xff]  ;;  %4697 = vmatpush.msra.mxu3 %v4663_v9  ;;  %v2914_v5 = vadd.f32 %v10812_v58, %v10810_v13  ;;  %v4684_v60 = vld [vmem:[#allocation21 + $0x1198] sm:$0xff]  ;;  %v2675_v58 = vadd.f32 %v10779_v11, %v10773_v42  ;;  %v4650_v9 = vld [vmem:[#allocation21 + $0x1088] sm:$0xff] }
 0xc8d   : > { %4717 = vmatpush.msra.mxu0 %v4695_v41  ;;  %v4680_v42 = vld [vmem:[#allocation21 + $0x1178] sm:$0xff]  ;;  %v4689_v11 = vld [vmem:[#allocation21 + $0x11c0] sm:$0xff]  ;;  %v4683_v41 = vld [vmem:[#allocation21 + $0x1190] sm:$0xff] }
 0xc8e   : > { %v2320_v21 = vadd.f32 %v10756_v15, %v2266_v61  ;;  %v2066_v48 = vadd.f32 %v2024_v7, %v1827_v54  ;;  %v4686_v15 = vld [vmem:[#allocation21 + $0x11a8] sm:$0xff]  ;;  %4698 = vmatpush.msra.mxu3 %v4661_v56  ;;  %v4656_v61 = vld [vmem:[#allocation21 + $0x10b8] sm:$0xff]  ;;  %v4691_v7 = vld [vmem:[#allocation21 + $0x11d0] sm:$0xff]  ;;  %v3073_v54 = vadd.f32 %v10820_v23, %v10818_v16 }
 0xc8f   : > { %v4685_v56 = vld [vmem:[#allocation21 + $0x11a0] sm:$0xff]  ;;  %v4648_v16 = vld [vmem:[#allocation21 + $0x1078] sm:$0xff] }
 0xc90   : > { %v2519_v50 = vadd.f32 %v2516_v59, %v2320_v21  ;;  %v2265_v52 = vadd.f32 %v2223_v30, %v2066_v48  ;;  %v4652_v30 = vld [vmem:[#allocation21 + $0x1098] sm:$0xff]  ;;  %v4651_v21 = vld [vmem:[#allocation21 + $0x1090] sm:$0xff]  ;;  %v4649_v23 = vld [vmem:[#allocation21 + $0x1080] sm:$0xff] }
 0xc92   : > { %v2718_v12 = vadd.f32 %v2715_v26, %v2519_v50  ;;  %v2319_v13 = vadd.f32 %v10754_v24, %v2265_v52  ;;  %v4654_v24 = vld [vmem:[#allocation21 + $0x10a8] sm:$0xff]  ;;  %v4681_v52 = vld [vmem:[#allocation21 + $0x1180] sm:$0xff] }
 0xc93   : > { %v4646_v50 = vld [vmem:[#allocation21 + $0x1068] sm:$0xff] }
 0xc94   : > { %v2917_v18 = vadd.f32 %v2914_v5, %v2718_v12  ;;  %v4647_v5 = vld [vmem:[#allocation21 + $0x1070] sm:$0xff]  ;;  %v4670_v12 = vld [vmem:[#allocation21 + $0x1128] sm:$0xff] }
 0xce7   : > { %v10922_v4 = vpop.f32.mrf.mxu0 }
 0xcec   : > { %v10929_v6 = vpop.f32.mrf.mxu3 }
 0xcef   : > { %v4430_v37 = vpop.f32.mrf.mxu0 }
 0xcf0   : > { %4534 = vmatmul.f32.vlgmr.msrb.gmra.mxu2 %v4430_v37  ;;  %4574 = vmatmul.f32.vlgmr.msrb.gmra.mxu0 %v4430_v37  ;;  %v4693_v37 = vld [vmem:[#allocation21 + $0x11e0] sm:$0xff] }
 0xcf1   : > { %4757 = vmatpush.msrb.mxu2 %v4696_v51  ;;  %v4659_v51 = vld [vmem:[#allocation21 + $0x10d0] sm:$0xff]  ;;  %4718 = vmatpush.msra.mxu0 %v4693_v37  ;;  %v4645_v37 = vld [vmem:[#allocation21 + $0x1060] sm:$0xff] }
 0xcf2   : > { %4699 = vmatpush.msra.mxu3 %v4659_v51  ;;  %v4672_v51 = vld [vmem:[#allocation21 + $0x1138] sm:$0xff] }
 0xcf3   : > { %4758 = vmatpush.msrb.mxu2 %v4694_v57  ;;  %v3113_v57 = vadd.f32 %v10816_v0, %v10814_v14  ;;  %v2874_v14 = vadd.f32 %v10798_v44, %v10796_v36  ;;  %v4655_v0 = vld [vmem:[#allocation21 + $0x10b0] sm:$0xff]  ;;  %4719 = vmatpush.msra.mxu0 %v4691_v7  ;;  %v4678_v36 = vld [vmem:[#allocation21 + $0x1168] sm:$0xff] }
 0xcf4   : > { %v4410_v40 = vpop.f32.mrf.mxu3  ;;  %4700 = vmatpush.msra.mxu3 %v4657_v25  ;;  %v4687_v44 = vld [vmem:[#allocation21 + $0x11b0] sm:$0xff]  ;;  %v4640_v25 = vld [vmem:[#allocation21 + $0x1038] sm:$0xff]  ;;  %v4638_v7 = vld [vmem:[#allocation21 + $0x1028] sm:$0xff] }
 0xcf5   : > { %4759 = vmatpush.msrb.mxu2 %v4692_v20  ;;  %4514 = vmatmul.f32.vlgmr.msra.gmra.mxu1 %v4410_v40  ;;  %v4682_v20 = vld [vmem:[#allocation21 + $0x1188] sm:$0xff]  ;;  %v3116_v59 = vadd.f32 %v3113_v57, %v2917_v18 }
 0xcf6   : > { %4554 = vmatmul.f32.vlgmr.msrb.gmra.mxu3 %v4410_v40  ;;  %4737 = vmatpush.msra.mxu1 %v4664_v17  ;;  %v2518_v17 = vadd.f32 %v2476_v29, %v2319_v13  ;;  %v3121_v40 = vpop.permute.xlu2 %3120 }
 0xcf7   : > { %4760 = vmatpush.msrb.mxu2 %v4690_v53  ;;  %4701 = vmatpush.msra.mxu3 %v4655_v0  ;;  %v3124_v26 = vadd.f32 %v3121_v40, %v3116_v59  ;;  %v4634_v59 = vld [vmem:[#allocation21 + $0x1008] sm:$0xff] }
 0xcf8   : > { %8327 = vmatmul.msk.f32.vlgmr.msra.gmra.mxu2 %vm929_vm1, %v8323_v55  ;;  %4738 = vmatpush.msra.mxu1 %v4662_v62  ;;  %v2717_v53 = vadd.f32 %v2675_v58, %v2518_v17  ;;  %v4653_v62 = vld [vmem:[#allocation21 + $0x10a0] sm:$0xff]  ;;  %v4668_v58 = vld [vmem:[#allocation21 + $0x1118] sm:$0xff] }
 0xcf9   : > { %4761 = vmatpush.msrb.mxu2 %v4688_v43  ;;  %4720 = vmatpush.msra.mxu0 %v4689_v11  ;;  %v4676_v43 = vld [vmem:[#allocation21 + $0x1158] sm:$0xff]  ;;  %v3127_v18 = vmax.f32 %v3124_v26, 0.0  ;;  %v4643_v11 = vld [vmem:[#allocation21 + $0x1050] sm:$0xff] }
 0xcfa   : > { %4739 = vmatpush.msra.mxu1 %v4660_v22  ;;  %4702 = vmatpush.msra.mxu3 %v4653_v62  ;;  %v4674_v22 = vld [vmem:[#allocation21 + $0x1148] sm:$0xff]  ;;  %v4675_v62 = vld [vmem:[#allocation21 + $0x1150] sm:$0xff] }
 0xcfb   : > { %4762 = vmatpush.msrb.mxu2 %v4686_v15  ;;  %4721 = vmatpush.msra.mxu0 %v4687_v44  ;;  %v3129_v15 = vmin.f32 %v3124_v26, 0.0  ;;  %v4673_v44 = vld [vmem:[#allocation21 + $0x1140] sm:$0xff] }
 0xcfc   : > { %4740 = vmatpush.msra.mxu1 %v4658_v27  ;;  %4703 = vmatpush.msra.mxu3 %v4651_v21  ;;  %v4644_v27 = vld [vmem:[#allocation21 + $0x1058] sm:$0xff]  ;;  %v4633_v21 = vld [vmem:[#allocation21 + $0x1000] sm:$0xff] }
 0xcfd   : > { %4763 = vmatpush.msrb.mxu2 %v4684_v60  ;;  %8325 = vmatmul.msk.f32.vlgmr.msrb.gmra.mxu1 %vm929_vm1, %v8323_v55  ;;  %v2916_v55 = vadd.f32 %v2874_v14, %v2717_v53  ;;  %v4642_v60 = vld [vmem:[#allocation21 + $0x1048] sm:$0xff]  ;;  %v4641_v53 = vld [vmem:[#allocation21 + $0x1040] sm:$0xff] }
 0xcfe   : > { %4741 = vmatpush.msra.mxu1 %v4656_v61  ;;  %4722 = vmatpush.msra.mxu0 %v4685_v56  ;;  %v3133_v57 = vpop.permute.xlu2 %3132  ;;  %v4669_v26 = vld [vmem:[#allocation21 + $0x1120] sm:$0xff]  ;;  %v4801_v56 = vld [vmem:[#allocation16] sm:$0xf] }
 0xcff   : > { %4764 = vmatpush.msrb.mxu2 %v4682_v20  ;;  %v3115_v48 = vadd.f32 %v3073_v54, %v2916_v55  ;;  %4704 = vmatpush.msra.mxu3 %v4649_v23  ;;  %v3136_v13 = vmul.f32 %v3133_v57, %v3129_v15  ;;  %v4666_v20 = vld [vmem:[#allocation21 + $0x1108] sm:$0xff]  ;;  %v4677_v54 = vld [vmem:[#allocation21 + $0x1160] sm:$0xff]  ;;  %v4635_v55 = vld [vmem:[#allocation21 + $0x1010] sm:$0xff]  ;;  %v4376_v23 = vpop.f32.mrf.mxu2  ;;  %v3409_v15 = vadd.f32 %v10837_v33, %v10835_v32 }
 0xd00   : > { %4742 = vmatpush.msra.mxu1 %v4654_v24  ;;  %4723 = vmatpush.msra.mxu0 %v4683_v41  ;;  %v4636_v24 = vld [vmem:[#allocation21 + $0x1018] sm:$0xff]  ;;  %v3726_v32 = vadd.f32 %v10895_v47, %v10897_v8  ;;  %v4337_v47 = vadd.f32 %v10922_v4, %v10929_v6 }
 0xd01   : > { %4765 = vmatpush.msrb.mxu2 %v4680_v42  ;;  %v3123_v29 = vadd.f32 %v3121_v40, %v3115_v48  ;;  %4705 = vmatpush.msra.mxu3 %v4647_v5  ;;  %v3138_v17 = vadd.f32 %v3136_v13, %v3127_v18  ;;  %v4679_v40 = vld [vmem:[#allocation21 + $0x1170] sm:$0xff]  ;;  %v4665_v48 = vld [vmem:[#allocation21 + $0x1100] sm:$0xff] }
 0xd02   : > { %4743 = vmatpush.msra.mxu1 %v4652_v30  ;;  %4724 = vmatpush.msra.mxu0 %v4681_v52  ;;  %v4639_v30 = vld [vmem:[#allocation21 + $0x1030] sm:$0xff]  ;;  %v3469_v52 = vadd.f32 %v10839_v19, %v3409_v15 }
 0xd03   : > { %4766 = vmatpush.msrb.mxu2 %v4678_v36  ;;  %4706 = vmatpush.msra.mxu3 %v4645_v37  ;;  %v3128_v61 = vmin.f32 %v3123_v29, 0.0  ;;  %v3126_v0 = vmax.f32 %v3123_v29, 0.0  ;;  %v4637_v36 = vld [vmem:[#allocation21 + $0x1020] sm:$0xff]  ;;  %v3686_v29 = vadd.f32 %v10866_v38, %v10864_v45 }
 0xd04   : > { %4744 = vmatpush.msra.mxu1 %v4650_v9  ;;  %4725 = vmatpush.msra.mxu0 %v4679_v40  ;;  %v4671_v9 = vld [vmem:[#allocation21 + $0x1130] sm:$0xff]  ;;  %v3489_v37 = vadd.f32 %v10841_v34, %v3469_v52 }
 0xd05   : > { %4767 = vmatpush.msrb.mxu2 %v4676_v43  ;;  %v3135_v14 = vmul.f32 %v3133_v57, %v3128_v61  ;;  %4707 = vmatpush.msra.mxu3 %v4643_v11  ;;  %v4667_v43 = vld [vmem:[#allocation21 + $0x1110] sm:$0xff]  ;;  %v4783_v61 = vpop.permute.xlu0 %4782 }
 0xd06   : > { %4745 = vmatpush.msra.mxu1 %v4648_v16  ;;  %4726 = vmatpush.msra.mxu0 %v4677_v54  ;;  %v4356_v16 = vpop.f32.mrf.mxu1  ;;  %v3728_v33 = vadd.f32 %v3686_v29, %v3489_v37 }
 0xd07   : > { %4768 = vmatpush.msrb.mxu2 %v4674_v22  ;;  %v3137_v42 = vadd.f32 %v3135_v14, %v3126_v0  ;;  %4708 = vmatpush.msra.mxu3 %v4641_v53 }
 0xd08   : > { %4746 = vmatpush.msra.mxu1 %v4646_v50  ;;  %4727 = vmatpush.msra.mxu0 %v4675_v62 }
 0xd09   : > { %4769 = vmatpush.msrb.mxu2 %v4672_v51  ;;  %4709 = vmatpush.msra.mxu3 %v4639_v30  ;;  %v3449_v51 = vadd.f32 %v10856_v28, %v10858_v31  ;;  %v3925_v28 = vadd.f32 %v10882_v39, %v10884_v1 }
 0xd0a   : > { %4747 = vmatpush.msra.mxu1 %v4644_v27  ;;  %4728 = vmatpush.msra.mxu0 %v4673_v44 }
 0xd0b   : > { %4770 = vmatpush.msrb.mxu2 %v4670_v12  ;;  %4710 = vmatpush.msra.mxu3 %v4637_v36  ;;  %v3509_v27 = vadd.f32 %v10862_v35, %v3449_v51  ;;  %v3885_v12 = vadd.f32 %v10899_v2, %v10901_v10  ;;  %v11556_v35 = vld [vmem:[#allocation34_spill] sm:$0xff]  ;;  %v4178_v2 = vadd.f32 %v10918_v49, %v10920_v46  ;;  %v11557_v10 = vld [vmem:[#allocation32_spill] sm:$0xff] }
 0xd0c   : > { %4748 = vmatpush.msra.mxu1 %v4642_v60  ;;  %4729 = vmatpush.msra.mxu0 %v4671_v9  ;;  %v4138_v38 = vadd.f32 %v11556_v35, %v10907_v3 }
 0xd0d   : > { %4771 = vmatpush.msrb.mxu2 %v4668_v58  ;;  %4711 = vmatpush.msra.mxu3 %v4635_v55  ;;  %v3529_v57 = vadd.f32 %v10860_v63, %v3509_v27  ;;  %v3927_v19 = vadd.f32 %v3885_v12, %v3728_v33  ;;  %v11558_v63 = vld [vmem:[#allocation33_spill] sm:$0xff]  ;;  %v4377_v58 = vadd.f32 %v4376_v23, %v4356_v16  ;;  %v4795_v53 = vpop.permute.xlu0 %4794 }
 0xd0e   : > { %4749 = vmatpush.msra.mxu1 %v4640_v25  ;;  %4730 = vmatpush.msra.mxu0 %v4669_v26 }
 0xd0f   : > { %4772 = vmatpush.msrb.mxu2 %v4666_v20  ;;  %4712 = vmatpush.msra.mxu3 %v4633_v21  ;;  %v3729_v31 = vadd.f32 %v3726_v32, %v3529_v57  ;;  %v3981_v13 = vadd.f32 %v11557_v10, %v3927_v19 }
 0xd10   : > { %4750 = vmatpush.msra.mxu1 %v4638_v7  ;;  %4803 = vrot.lane.b32.xlu2 %v4801_v56, %s11505_s6  ;;  %s11560_s6 = smov 126  }
 0xd11   : > { %8334 = vmatpush.msk.msra.mxu2 %vm4808_vm3, %v3138_v17  ;;  %4731 = vmatpush.msra.mxu0 %v4667_v43  ;;  %v3928_v34 = vadd.f32 %v3925_v28, %v3729_v31  ;;  %v4180_v39 = vadd.f32 %v4138_v38, %v3981_v13 }
 0xd12   : > { %4751 = vmatpush.msra.mxu1 %v4636_v24 }
 0xd13   : > { %4732 = vmatpush.msra.mxu0 %v4665_v48  ;;  %v3982_v8 = vadd.f32 %v11558_v63, %v3928_v34  ;;  %v4379_v20 = vadd.f32 %v4337_v47, %v4180_v39 }
 0xd14   : > { %4752 = vmatpush.msra.mxu1 %v4634_v59 }
 0xd15   : > { %v4181_v25 = vadd.f32 %v4178_v2, %v3982_v8 }
 0xd16   : > { %8332 = vmatpush.msk.msrb.mxu1 %vm4808_vm3, %v3137_v42 }
 0xd17   : > { %v4380_v7 = vadd.f32 %v4377_v58, %v4181_v25 }
 0xd6a   : > { %v4804_v9 = vpop.permute.xlu2 %4803 }
 0xd6d   : > { %v4575_v60 = vpop.f32.mrf.mxu0 }
 0xd72   : > { %v4515_v22 = vpop.f32.mrf.mxu1 }
 0xd73   : > { %v4535_v41 = vpop.f32.mrf.mxu2 }
 0xd74   : > { %v4536_v1 = vadd.f32 %v4535_v41, %v4515_v22 }
 0xd76   : > { %v4578_v14 = vadd.f32 %v4536_v1, %v4379_v20  ;;  %v11559_v1 = vld [vmem:[#allocation31_spill] sm:$0xff]  ;;  %v5475_v20 = vstv %s5474_s4 }
 0xd79   : > { %v4555_v45 = vpop.f32.mrf.mxu3 }
 0xd7a   : > { %v4609_v50 = vpop.f32.mrf.mxu1  ;;  %v4576_v18 = vadd.f32 %v4575_v60, %v4555_v45 }
 0xd7b   : > { %v4629_v5 = vpop.f32.mrf.mxu2  ;;  %4713 = vmatmul.f32.vlgmr.msra.gmra.mxu3 %v4609_v50  ;;  %4753 = vmatmul.f32.vlgmr.msra.gmra.mxu1 %v4609_v50 }
 0xd7c   : > { %4773 = vmatmul.f32.vlgmr.msrb.gmra.mxu2 %v4629_v5  ;;  %4733 = vmatmul.f32.vlgmr.msra.gmra.mxu0 %v4629_v5  ;;  %v4579_v0 = vadd.f32 %v4576_v18, %v4380_v7 }
 0xd83   : > { %8333 = vmatmul.msk.f32.vlgmr.msrb.gmra.mxu1 %vm4805_vm4, %v4801_v56 }
 0xd84   : > { %8335 = vmatmul.msk.f32.vlgmr.msra.gmra.mxu2 %vm4805_vm4, %v4801_v56 }
 0xdf8   : > { %v4754_v24 = vpop.f32.mrf.mxu1 }
 0xdf9   : > { %v4734_v3 = vpop.f32.mrf.mxu0 }
 0xdfe   : > { %v4714_v17 = vpop.f32.mrf.mxu3 }
 0xdff   : > { %v4735_v49 = vadd.f32 %v4734_v3, %v4714_v17  ;;  %v4774_v46 = vpop.f32.mrf.mxu2 }
 0xe00   : > { %v4775_v59 = vadd.f32 %v4774_v46, %v4754_v24  ;;  %v4880_v16 = vpop.f32.mrf.mxu1 }
 0xe01   : > { %v4777_v42 = vadd.f32 %v4735_v49, %v4578_v14  ;;  %v5054_v14 = vld [vmem:[#allocation8 + $0x4] sm:$0xf] }
 0xe02   : > { %v4778_v4 = vadd.f32 %v4775_v59, %v4579_v0 }
 0xe03   : > { %v4785_v6 = vadd.f32 %v4783_v61, %v4777_v42 }
 0xe04   : > { %v4786_v11 = vadd.f32 %v4783_v61, %v4778_v4  ;;  %v8342_v4 = vld [vmem:[%s11545_s22 + $0x4] sm:$0xf] }
 0xe05   : > { %v4790_v40 = vmin.f32 %v4785_v6, 0.0  ;;  %v4788_v30 = vmax.f32 %v4785_v6, 0.0 }
 0xe06   : > { %v4791_v54 = vmin.f32 %v4786_v11, 0.0  ;;  %v4789_v36 = vmax.f32 %v4786_v11, 0.0 }
 0xe07   : > { %v4797_v62 = vmul.f32 %v4795_v53, %v4790_v40  ;;  %v4900_v26 = vpop.f32.mrf.mxu2 }
 0xe08   : > { %v4798_v44 = vmul.f32 %v4795_v53, %v4791_v54  ;;  %v8336_v53 = vld [vmem:[%s11544_s9 + $0x4] sm:$0xf] }
 0xe09   : > { %v4799_v55 = vadd.f32 %v4797_v62, %v4788_v30  ;;  %4989 = vperm.xlu1 %8651, %v8336_v53   ;;  %v8339_v54 = vld [vmem:[%s11547_s16 + $0x4] sm:$0xf] }
 0xe0a   : > { %v4800_v21 = vadd.f32 %v4798_v44, %v4789_v36  ;;  %v8355_v62 = vld [vmem:[%s11546_s8 + $0x4] sm:$0xf]  ;;  %v4984_v44 = vld [vmem:[#allocation6 + $0x4] sm:$0xf] }
 0xe0b   : > { %8328 = vmatpush.msk.msrb.mxu3 %vm4808_vm3, %v4799_v55 }
 0xe0c   : > { %8330 = vmatpush.msk.msrb.mxu0 %vm4808_vm3, %v4800_v21  ;;  %8329 = vmatmul.msk.f32.vlgmr.msrb.gmra.mxu3 %vm4805_vm4, %v4804_v9  ;;  %v8465_v21 = vld [vmem:[%s11548_s10 + $0x2] sm:$0x3] }
 0xe0d   : > { %8331 = vmatmul.msk.f32.vlgmr.msrb.gmra.mxu0 %vm4805_vm4, %v4804_v9 }
 0xe8a   : > { %v4852_v43 = vpop.f32.mrf.mxu0 }
 0xe8b   : > { %v4901_v56 = vadd.f32 %v4900_v26, %v4852_v43  ;;  %v8466_v43 = vld [vmem:[%s11549_s25 + $0x2] sm:$0x3] }
 0xe8d   : > { %v4904_v48 = vsub.f32 0.0, %v4901_v56  ;;  %v7838_v56 = vld [vmem:[#allocation16 + $0x4] sm:$0xf] }
 0xe8f   : > { %v4907_v23 = vmul.f32 1.442695, %v4904_v48  ;;  %v4832_v22 = vpop.f32.mrf.mxu3  ;;  %v8419_v48 = vld [vmem:[%s11483_s14 + $0x2] sm:$0x3] }
 0xe90   : > { %v4881_v41 = vadd.f32 %v4880_v16, %v4832_v22 }
 0xe91   : > { %8664 = vpow2.f32 %v4907_v23 }
 0xe92   : > { %v4903_v50 = vsub.f32 0.0, %v4881_v41 }
 0xe94   : > { %v4905_v5 = vmul.f32 1.442695, %v4903_v50  ;;  %v5019_v50 = vld [vmem:[#allocation9 + $0x4] sm:$0xf] }
 0xe96   : > { %8666 = vpow2.f32 %v4905_v5 }
 0xe97   : > { %v8665_v15 = vpop.eup %8664 }
 0xe98   : > { %v4910_v51 = vadd.f32 1.0, %v8665_v15  ;;  %v4990_v15 = vpop.permute.xlu1 %4989 }
 0xe9a   : > { %8668 = vrcp.f32 %v4910_v51  ;;  %v4937_v57 = vand.u32 2147483648, %v4910_v51  ;;  %v4935_v28 = vand.u32 2147483647, %v4910_v51  ;;  %vm4931_vm6 = vweird.f32 %v4910_v51 }
 0xe9c   : > { %v8667_v52 = vpop.eup %8666  ;;  %v4938_v35 = vor.u32 1.1754944e-38, %v4937_v57  ;;  %vm4936_vm8 = vcmp.eq.f32.partialorder %v4935_v28, 8.507059e+37 }
 0xe9d   : > { %v4909_v29 = vadd.f32 1.0, %v8667_v52 }
 0xe9f   : > { %8670 = vrcp.f32 %v4909_v29  ;;  %v4922_v38 = vand.u32 2147483648, %v4909_v29  ;;  %v4920_v2 = vand.u32 2147483647, %v4909_v29  ;;  %vm4916_vm10 = vweird.f32 %v4909_v29 }
 0xea0   : > { %v8669_v27 = vpop.eup %8668 }
 0xea1   : > { %v4927_v37 = vmul.f32 %v8669_v27, %v4910_v51  ;;  %vm4932_vm5 = vweird.f32 %v8669_v27  ;;  %v4923_v47 = vor.u32 1.1754944e-38, %v4922_v38  ;;  %vm4921_vm12 = vcmp.eq.f32.partialorder %v4920_v2, 8.507059e+37 }
 0xea2   : > { %vm4933_vm7 = vmor %vm4931_vm6, %vm4932_vm5 }
 0xea3   : > { %v4928_v12 = vsub.f32 1.0, %v4927_v37  ;;  %v8692_v37 = vld [vmem:[#allocation18 + $0x18] sm:$0xff] }
 0xea5   : > { %v8671_v32 = vpop.eup %8670  ;;  %v4929_v33 = vmul.f32 %v8669_v27, %v4928_v12  ;;  %v8693_v12 = vld [vmem:[#allocation18 + $0x8] sm:$0xff] }
 0xea6   : > { %v4912_v19 = vmul.f32 %v8671_v32, %v4909_v29  ;;  %vm4917_vm9 = vweird.f32 %v8671_v32  ;;  %v8418_v29 = vld [vmem:[%s11482_s13 + $0x2] sm:$0x3] }
 0xea7   : > { %v4930_v31 = vadd.f32 %v8669_v27, %v4929_v33  ;;  %vm4918_vm11 = vmor %vm4916_vm10, %vm4917_vm9 }
 0xea8   : > { %v4913_v60 = vsub.f32 1.0, %v4912_v19 }
 0xea9   : > { %v4934_v45 = vsel %vm4933_vm7, %v8669_v27, %v4930_v31 }
 0xeaa   : > { %v4914_v34 = vmul.f32 %v8671_v32, %v4913_v60  ;;  %v4939_v10 = vsel %vm4936_vm8, %v4938_v35, %v4934_v45 }
 0xeab   : > { %v4943_v63 = vrot.slane %v4939_v10, 4 }
 0xeac   : > { %v4915_v13 = vadd.f32 %v8671_v32, %v4914_v34 }
 0xeae   : > { %v4919_v8 = vsel %vm4918_vm11, %v8671_v32, %v4915_v13 }
 0xeaf   : > { %v4924_v58 = vsel %vm4921_vm12, %v4923_v47, %v4919_v8 }
 0xeb0   : > { %v4944_v39 = vsel %vm933_vm0, %v4924_v58, %v4943_v63 }
 0xeb1   : > { %v11002_v61 = vadd.f32 %v4944_v39, %v11559_v1 }
 0xeb3   : > { %v4948_v25 = vrot.slane %v11002_v61, 4  ;;  %5062 = vst [vmem:[#allocation1] ss:$2 sm:$0xff] %v11002_v61  ;;  %v5476_v7 = vmul.f32 %v5475_v20, %v11002_v61 }
 0xeb5   : > { %v4950_v18 = vmax.f32 %v11002_v61, %v4948_v25  ;;  %v4951_v46 = vadd.f32 %v4948_v25, %v11002_v61 }
 0xeb7   : > { %4953 = vrot.lane.b32.xlu0 %v4950_v18, %s10173_s7 }
 0xeba   : > { %v5063_v3 = vld.sshfl [vmem:[#allocation1] sm:$0xff pattern:$0x75316420]  ;;  %v5064_v17 = vld.sshfl [vmem:[#allocation1 + $0x8] sm:$0xff pattern:$0x75316420] }
 0xebb   : > { %8343 = vmatpush.msk.msra.mxu1 %vm933_vm0, %v5063_v3  ;;  %8345 = vmatpush.msk.msrb.mxu2 %vm933_vm0, %v5064_v17  ;;  %5478 = vst [vmem:[#allocation1] ss:$2 sm:$0xff] %v5476_v7 }
 0xebc   : > { %8346 = vmatmul.msk.f32.vlgmr.msrb.gmra.mxu2 %vm929_vm1, %v5054_v14  ;;  %8344 = vmatmul.msk.f32.vlgmr.msra.gmra.mxu1 %vm929_vm1, %v5054_v14 }
 0xf29   : > { %v4954_v24 = vpop.permute.xlu0 %4953 }
 0xf2a   : > { %v4956_v49 = vmax.f32 %v4950_v18, %v4954_v24 }
 0xf2c   : > { %4963 = vrot.lane.b32.xlu2 %v4956_v49, %s10174_s11 }
 0xf34   : > { %4958 = vrot.lane.b32.xlu2 %v4951_v46, %s10173_s7 }
 0xf39   : > { %v5089_v55 = vpop.f32.mrf.mxu1 }
 0xf3f   : > { %v5109_v22 = vpop.f32.mrf.mxu2 }
 0xf86   : > { %v4964_v0 = vpop.permute.xlu2 %4963 }
 0xf87   : > { %v4966_v59 = vmax.f32 %v4956_v49, %v4964_v0 }
 0xf89   : > { %4973 = vrot.lane.b32.xlu0 %v4966_v59, %s10175_s24 }
 0xf8e   : > { %v4959_v42 = vpop.permute.xlu2 %4958 }
 0xf8f   : > { %v4961_v6 = vadd.f32 %v4959_v42, %v4951_v46 }
 0xf91   : > { %5059 = vperm.xlu0 %8650, %v8342_v4   ;;  %4968 = vrot.lane.b32.xlu2 %v4961_v6, %s10174_s11 }
 0xfeb   : > { %v4969_v11 = vpop.permute.xlu2 %4968 }
 0xfec   : > { %v4971_v40 = vadd.f32 %v4969_v11, %v4961_v6 }
 0xfee   : > { %4978 = vrot.lane.b32.xlu2 %v4971_v40, %s10175_s24  ;;  %s11561_s24 = sld [smem:[#allocation53_spill]] }
 0xff6   : > { %5024 = vperm.xlu2 %8649, %v8339_v54  }
 0xffb   : > { %v4974_v30 = vpop.permute.xlu0 %4973 }
 0xffc   : > { %v4976_v36 = vmax.f32 %v4966_v59, %v4974_v30 }
 0xffe   : > { %8337 = vmatpush.msk.msra.mxu3 %vm933_vm0, %v4976_v36  ;;  %5297 = vperm.xlu2 %8649, %v8355_v62  }
 0xfff   : > { %8338 = vmatmul.msk.f32.vlgmr.msra.gmra.mxu3 %vm929_vm1, %v4984_v44 }
0x1003   : > { %v5060_v9 = vpop.permute.xlu0 %5059 }
0x1004   : > { %v5090_v26 = vadd.f32 %v5089_v55, %v5060_v9  ;;  %v5110_v5 = vadd.f32 %v5109_v22, %v5060_v9 }
0x1006   : > { %8347 = vmatpush.msk.msrb.mxu3 %vm933_vm0, %v5090_v26  ;;  %7817 = vperm.xlu2 %8649, %v8465_v21  }
0x1008   : > { %8360 = vmatpush.msk.msra.mxu3 %vm933_vm0, %v5090_v26 }
0x100e   : > { %7830 = vperm.xlu2 %8649, %v8466_v43  }
0x1016   : > { %7840 = vrot.lane.b32.xlu2 %v7838_v56, %s11560_s6 }
0x101e   : > { %6684 = vperm.xlu2 %8649, %v8419_v48  }
0x1048   : > { %v4979_v16 = vpop.permute.xlu2 %4978 }
0x1049   : > { %v4981_v23 = vadd.f32 %v4979_v16, %v4971_v40 }
0x104b   : > { %v4982_v41 = vmul.f32 0.0625, %v4981_v23 }
0x104d   : > { %8340 = vmatpush.msk.msra.mxu0 %vm933_vm0, %v4982_v41 }
0x104e   : > { %8341 = vmatmul.msk.f32.vlgmr.msra.gmra.mxu0 %vm929_vm1, %v5019_v50  ;;  %v5350_v50 = vld [vmem:[#allocation12 + $0x4] sm:$0xf] }
0x104f   : > { %8350 = vmatpush.msk.msrb.mxu0 %vm933_vm0, %v5110_v5 }
0x1050   : > { %v5025_v56 = vpop.permute.xlu2 %5024 }
0x1051   : > { %8362 = vmatpush.msk.msra.mxu0 %vm933_vm0, %v5110_v5  ;;  %v5292_v5 = vld [vmem:[#allocation11 + $0x4] sm:$0xf] }
0x1082   : > { %v5015_v51 = vpop.f32.mrf.mxu3 }
0x1083   : > { %v11050_v52 = vadd.f32 %v5015_v51, %v4990_v15 }
0x1085   : > { %5112 = vxpose.xlu0.b32.start.end [1/1] (short) (narrow) %v11050_v52, 16 }
0x10cb   : > { %v5050_v33 = vpop.f32.mrf.mxu0 }
0x10cc   : > { %v5051_v16 = vadd.f32 %v5050_v33, %v5025_v56  ;;  %v5298_v33 = vpop.permute.xlu2 %5297  ;;  %v8707_v56 = vld [vmem:[#allocation19 + $0x3e8] sm:$0xff] }
0x10fb   : > { %6671 = vperm.xlu0 %8650, %v8418_v29   ;;  %v8694_v29 = vld [vmem:[#allocation18 + $0x10] sm:$0xff] }
0x1129   : > { %v5128_v27 = vpop.trf.xlu0 }
0x112a   : > { %8348 = vmatmul.msk.f32.vlgmr.msrb.gmra.mxu3 %vm929_vm1, %v5128_v27  ;;  %8351 = vmatmul.msk.f32.vlgmr.msrb.gmra.mxu0 %vm929_vm1, %v5128_v27  ;;  %v8695_v27 = vld [vmem:[#allocation18] sm:$0xff] }
0x112b   : > { %5454 = vmatpush.msrb.mxu3 %v8692_v37 }
0x112d   : > { %5455 = vmatpush.msrb.mxu3 %v8693_v12 }
0x1131   : > { %v5129_v32 = vpop.trf.xlu0 }
0x1132   : > { %8349 = vmatmul.msk.f32.gmra.mxu3 %vm929_vm1, %v5129_v32  ;;  %8352 = vmatmul.msk.f32.gmra.mxu0 %vm929_vm1, %v5129_v32 }
0x113a   : > { %8361 = vmatmul.msk.f32.vlgmr.msra.gmra.mxu3 %vm929_vm1, %v5350_v50  ;;  %8363 = vmatmul.msk.f32.vlgmr.msra.gmra.mxu0 %vm929_vm1, %v5350_v50 }
0x11a7   : > { %v5196_v57 = vpop.f32.mrf.mxu0 }
0x11ad   : > { %v5173_v28 = vpop.f32.mrf.mxu3 }
0x11af   : > { %v5199_v19 = vpop.f32.mrf.mxu0 }
0x11b0   : > { %v5209_v31 = vmax.f32 %v5196_v57, %v5199_v19 }
0x11b2   : > { %v5210_v60 = vrot.slane %v5209_v31, 4 }
0x11b4   : > { %v5211_v45 = vmax.f32 %v5209_v31, %v5210_v60 }
0x11b5   : > { %v5176_v35 = vpop.f32.mrf.mxu3 }
0x11b6   : > { %v5212_v38 = vrot.slane %v5211_v45, 2  ;;  %v5202_v34 = vmax.f32 %v5173_v28, %v5176_v35 }
0x11b7   : > { %v5391_v60 = vpop.f32.mrf.mxu0 }
0x11b8   : > { %v5213_v2 = vmax.f32 %v5211_v45, %v5212_v38  ;;  %v5203_v10 = vrot.slane %v5202_v34, 4 }
0x11ba   : > { %v5214_v13 = vrot.slane %v5213_v2, 1  ;;  %v5204_v47 = vmax.f32 %v5202_v34, %v5203_v10 }
0x11bc   : > { %v5215_v63 = vmax.f32 %v5213_v2, %v5214_v13  ;;  %v5205_v8 = vrot.slane %v5204_v47, 2 }
0x11be   : > { %v5217_v58 = vsub.f32 %v5196_v57, %v5215_v63  ;;  %v5219_v39 = vsub.f32 %v5199_v19, %v5215_v63  ;;  %v5206_v1 = vmax.f32 %v5204_v47, %v5205_v8  ;;  %v5371_v57 = vpop.f32.mrf.mxu3  ;;  %v5471_v63 = vstv %s10998_s12  ;;  %s8481_s12 = sshll.u32 %s10317_s5, 3  ;;  %s11562_s5 = sshll.u32 %s10470_s15, 3 }
0x11bf   : > { %s7995_s6 = scalar_lea.hbm %s11561_s24, %s8481_s12  ;;  %s880_s7 = scalar_lea.vmem [#allocation22], %s11562_s5 }
0x11c0   : > { %v5222_v25 = vmul.f32 1.442695, %v5217_v58  ;;  %v5226_v18 = vmul.f32 1.442695, %v5219_v39  ;;  %v5207_v20 = vrot.slane %v5206_v1, 1  ;;  %s7997_s2 = sshll.u32 %s880_s7, 4  ;;  %s7998_s2 = int_to_ptr.vmem [resolvable:$true] %s7997_s2 }
0x11c1   : > { %s7999_s4 = sshll.u32 %s7995_s6, 4  ;;  %s10086_s6 = scalar_lea.hbm %s11561_s24, 16  ;;  %s8000_s4 = int_to_ptr.hbm [resolvable:$true] %s7999_s4 }
0x11c2   : > { %8672 = vpow2.f32 %v5222_v25  ;;  %v5208_v7 = vmax.f32 %v5206_v1, %v5207_v20  ;;  %v5479_v25 = vld.sshfl [vmem:[#allocation1] sm:$0xff pattern:$0x75316420]  ;;  %s10080_s12 = sshra.s32 %s8000_s4, 4  ;;  %s10081_s12 = int_to_ptr.hbm [resolvable:$true] %s10080_s12 }
0x11c3   : > { %8674 = vpow2.f32 %v5226_v18  ;;  %v5480_v18 = vld.sshfl [vmem:[#allocation1 + $0x8] sm:$0xff pattern:$0x75316420]  ;;  %s10082_s11 = scalar_lea.hbm %s10081_s12, 8  ;;  %p10087_p12 = scmp.lt.s32.totalorder %s10081_s12, %s11561_s24 }
0x11c4   : > { %v5216_v3 = vsub.f32 %v5173_v28, %v5208_v7  ;;  %v5218_v17 = vsub.f32 %v5176_v35, %v5208_v7  ;;  %p10083_p1 = scmp.ne.s32.totalorder %s10081_s12, %s10082_s11  ;;  %p10088_p8 = scmp.lt.s32.totalorder %s10086_s6, %s10082_s11 }
0x11c6   : > { %v5220_v14 = vmul.f32 1.442695, %v5216_v3  ;;  %v5224_v24 = vmul.f32 1.442695, %v5218_v17  ;;  %p10084_p3 = pnand %p10083_p1, %p10439_p13  ;;  %p10089_p7 = por %p10088_p8, %p10087_p12 }
0x11c8   : > { %v8673_v49 = vpop.eup %8672  ;;  %8676 = vpow2.f32 %v5220_v14  ;;  %v5486_v14 = vld [vmem:[#allocation14 + $0x4] sm:$0xf]  ;;  %p10085_p5 = pneg %p10084_p3 }
0x11c9   : > { %v8675_v46 = vpop.eup %8674  ;;  %8678 = vpow2.f32 %v5224_v24 }
0x11ca   : > { %v5235_v0 = vadd.f32 %v8675_v46, %v8673_v49  ;;  %p10090_p9 = pnand %p10089_p7, %p10085_p5 }
0x11cc   : > { %v5236_v59 = vrot.slane %v5235_v0, 4 }
0x11ce   : > { %v8677_v42 = vpop.eup %8676  ;;  %v5237_v4 = vadd.f32 %v5236_v59, %v5235_v0 }
0x11cf   : > { %v8679_v6 = vpop.eup %8678 }
0x11d0   : > { %v5238_v11 = vrot.slane %v5237_v4, 2  ;;  %v5228_v40 = vadd.f32 %v8679_v6, %v8677_v42 }
0x11d2   : > { %v5239_v53 = vadd.f32 %v5238_v11, %v5237_v4  ;;  %v5229_v54 = vrot.slane %v5228_v40, 4  ;;  %v8697_v11 = vld [vmem:[#allocation19 + $0x3f0] sm:$0xff] }
0x11d4   : > { %v5230_v30 = vadd.f32 %v5229_v54, %v5228_v40  ;;  %v5240_v62 = vrot.slane %v5239_v53, 1  ;;  %v8698_v40 = vld [vmem:[#allocation19 + $0x2e0] sm:$0xff] }
0x11d5   : > { %v8378_v54 = vld [vmem:[%s11551_s0 + $0x14] sm:$0x3] }
0x11d6   : > { %v5231_v36 = vrot.slane %v5230_v30, 2  ;;  %v5241_v44 = vadd.f32 %v5240_v62, %v5239_v53  ;;  %v8699_v53 = vld [vmem:[#allocation19 + $0x3e0] sm:$0xff]  ;;  %v8701_v62 = vld [vmem:[#allocation19 + $0x3d0] sm:$0xff] }
0x11d8   : > { %v5232_v55 = vadd.f32 %v5231_v36, %v5230_v30  ;;  %8680 = vrcp.f32 %v5241_v44  ;;  %v8700_v30 = vld [vmem:[#allocation19 + $0x2d0] sm:$0xff] }
0x11da   : > { %v5233_v9 = vrot.slane %v5232_v55, 1 }
0x11dc   : > { %v5234_v21 = vadd.f32 %v5233_v9, %v5232_v55  ;;  %v8702_v55 = vld [vmem:[#allocation19 + $0x2f8] sm:$0xff] }
0x11dd   : > { %v8703_v9 = vld [vmem:[#allocation19 + $0x3f8] sm:$0xff] }
0x11de   : > { %v8681_v26 = vpop.eup %8680  ;;  %8682 = vrcp.f32 %v5234_v21  ;;  %v8704_v21 = vld [vmem:[#allocation19 + $0x2c0] sm:$0xff] }
0x11df   : > { %v5247_v43 = vmul.f32 %v8681_v26, %v8675_v46  ;;  %v5245_v48 = vmul.f32 %v8681_v26, %v8673_v49  ;;  %v8705_v26 = vld [vmem:[#allocation19 + $0x3c0] sm:$0xff] }
0x11e1   : > { %5285 = vmatpush.msra.mxu2 %v5247_v43  ;;  %v8706_v43 = vld [vmem:[#allocation19 + $0x2e8] sm:$0xff] }
0x11e3   : > { %5286 = vmatpush.msra.mxu2 %v5245_v48  ;;  %v8708_v48 = vld [vmem:[#allocation19 + $0x2b0] sm:$0xff] }
0x11e4   : > { %v8683_v23 = vpop.eup %8682  ;;  %8354 = vmatmul.msk.f32.vlgmr.msra.gmra.mxu2 %vm1183_vm2, %v5051_v16 }
0x11e5   : > { %v5246_v22 = vmul.f32 %v8683_v23, %v8679_v6  ;;  %v5244_v41 = vmul.f32 %v8683_v23, %v8677_v42  ;;  %v8373_v42 = vld [vmem:[%s11551_s0 + $0x12] sm:$0x3]  ;;  %v8710_v23 = vld [vmem:[#allocation19 + $0x2d8] sm:$0xff] }
0x11e7   : > { %5265 = vmatpush.msrb.mxu1 %v5246_v22  ;;  %v8711_v22 = vld [vmem:[#allocation19 + $0x3d8] sm:$0xff] }
0x11e9   : > { %5266 = vmatpush.msrb.mxu1 %v5244_v41  ;;  %v8712_v41 = vld [vmem:[#allocation19 + $0x2a0] sm:$0xff] }
0x11ea   : > { %8353 = vmatmul.msk.f32.vlgmr.msrb.gmra.mxu1 %vm1183_vm2, %v5051_v16  ;;  %v8709_v16 = vld [vmem:[#allocation19 + $0x3b0] sm:$0xff] }
0x1267   : > { %v5268_v15 = vpop.f32.mrf.mxu1  ;;  %v5288_v51 = vpop.f32.mrf.mxu2 }
0x1268   : > { %8356 = vmatpush.msk.msra.mxu1 %vm933_vm0, %v5268_v15  ;;  %8358 = vmatpush.msk.msrb.mxu2 %vm933_vm0, %v5288_v51  ;;  %v8714_v51 = vld [vmem:[#allocation19 + $0x2c8] sm:$0xff] }
0x1269   : > { %8357 = vmatmul.msk.f32.vlgmr.msra.gmra.mxu1 %vm929_vm1, %v5292_v5  ;;  %8359 = vmatmul.msk.f32.vlgmr.msrb.gmra.mxu2 %vm929_vm1, %v5292_v5 }
0x126a   : > { %8364 = vmatpush.msk.msrb.mxu1 %vm933_vm0, %v11050_v52  ;;  %5434 = vmatpush.msra.mxu2 %v8694_v29  ;;  %v8715_v29 = vld [vmem:[#allocation19 + $0x3c8] sm:$0xff] }
0x126c   : > { %5435 = vmatpush.msra.mxu2 %v8695_v27  ;;  %v8716_v27 = vld [vmem:[#allocation19 + $0x290] sm:$0xff] }
0x1271   : > { %8365 = vmatmul.msk.f32.vlgmr.msrb.gmra.mxu1 %vm929_vm1, %v5350_v50  ;;  %v8713_v50 = vld [vmem:[#allocation19 + $0x3a0] sm:$0xff] }
0x12e6   : > { %v5326_v37 = vpop.f32.mrf.mxu1 }
0x12e7   : > { %v5327_v28 = vadd.f32 %v5326_v37, %v5298_v33  ;;  %v8717_v37 = vld [vmem:[#allocation19 + $0x390] sm:$0xff] }
0x12e9   : > { %v5460_v31 = vperm.slane %v5327_v28, 0  ;;  %v5464_v45 = vperm.slane %v5327_v28, 1  ;;  %v8722_v28 = vld [vmem:[#allocation19 + $0x2a8] sm:$0xff] }
0x12eb   : > { %v5462_v2 = vmul.f32 %v5460_v31, %v5371_v57  ;;  %v8721_v57 = vld [vmem:[#allocation19 + $0x380] sm:$0xff]  ;;  %v8724_v31 = vld [vmem:[#allocation19 + $0x270] sm:$0xff] }
0x12ec   : > { %v5346_v32 = vpop.f32.mrf.mxu2 }
0x12ed   : > { %v5347_v19 = vadd.f32 %v5346_v32, %v5298_v33  ;;  %v8719_v32 = vld [vmem:[#allocation19 + $0x3b8] sm:$0xff]  ;;  %v8720_v33 = vld [vmem:[#allocation19 + $0x280] sm:$0xff] }
0x12ee   : > { %v5414_v12 = vpop.f32.mrf.mxu1 }
0x12ef   : > { %8366 = vmatmul.msk.f32.vlgmr.msra.gmra.mxu2 %vm1183_vm2, %v5414_v12  ;;  %8367 = vmatmul.msk.f32.vlgmr.msrb.gmra.mxu3 %vm1183_vm2, %v5414_v12  ;;  %v5461_v52 = vperm.slane %v5347_v19, 0  ;;  %v5465_v35 = vperm.slane %v5347_v19, 1  ;;  %v8718_v12 = vld [vmem:[#allocation19 + $0x2b8] sm:$0xff]  ;;  %v8723_v19 = vld [vmem:[#allocation19 + $0x3a8] sm:$0xff] }
0x12f1   : > { %v5463_v10 = vmul.f32 %v5461_v52, %v5391_v60  ;;  %v8725_v52 = vld [vmem:[#allocation19 + $0x370] sm:$0xff]  ;;  %v8726_v60 = vld [vmem:[#allocation19 + $0x298] sm:$0xff] }
0x1372   : > { %v5437_v38 = vpop.f32.mrf.mxu2  ;;  %v5457_v34 = vpop.f32.mrf.mxu3 }
0x1373   : > { %v5466_v13 = vmul.f32 %v5464_v45, %v5437_v38  ;;  %v5467_v47 = vmul.f32 %v5465_v35, %v5457_v34  ;;  %v8727_v45 = vld [vmem:[#allocation19 + $0x398] sm:$0xff]  ;;  %v8728_v35 = vld [vmem:[#allocation19 + $0x260] sm:$0xff] }
0x1374   : > { %v8729_v38 = vld [vmem:[#allocation19 + $0x360] sm:$0xff] }
0x1375   : > { %v5468_v8 = vadd.f32 %v5466_v13, %v5462_v2  ;;  %v5469_v58 = vadd.f32 %v5467_v47, %v5463_v10  ;;  %v8730_v10 = vld [vmem:[#allocation19 + $0x288] sm:$0xff]  ;;  %v8732_v47 = vld [vmem:[#allocation19 + $0x250] sm:$0xff] }
0x1376   : > { %v8731_v13 = vld [vmem:[#allocation19 + $0x388] sm:$0xff] }
0x1377   : > { %v5472_v39 = vmul.f32 %v5471_v63, %v5468_v8  ;;  %v5473_v1 = vmul.f32 %v5471_v63, %v5469_v58  ;;  %v8733_v63 = vld [vmem:[#allocation19 + $0x350] sm:$0xff]  ;;  %v8734_v8 = vld [vmem:[#allocation19 + $0x278] sm:$0xff] }
0x1378   : > { %v8735_v58 = vld [vmem:[#allocation19 + $0x378] sm:$0xff] }
0x1379   : > { %v5483_v20 = vadd.f32 %v5479_v25, %v5472_v39  ;;  %v5484_v7 = vadd.f32 %v5480_v18, %v5473_v1  ;;  %v8736_v39 = vld [vmem:[#allocation19 + $0x240] sm:$0xff]  ;;  %v8738_v25 = vld [vmem:[#allocation19 + $0x268] sm:$0xff] }
0x137a   : > { %v8737_v1 = vld [vmem:[#allocation19 + $0x340] sm:$0xff]  ;;  %v8739_v18 = vld [vmem:[#allocation19 + $0x368] sm:$0xff] }
0x137b   : > { %v5487_v3 = vmax.f32 %v5483_v20, 0.0  ;;  %v5488_v17 = vmax.f32 %v5484_v7, 0.0  ;;  %v8740_v20 = vld [vmem:[#allocation19 + $0x230] sm:$0xff] }
0x137c   : > { %v8741_v7 = vld [vmem:[#allocation19 + $0x330] sm:$0xff] }
0x137d   : > { %8369 = vmatpush.msk.msrb.mxu0 %vm933_vm0, %v5487_v3  ;;  %8371 = vmatpush.msk.msra.mxu1 %vm933_vm0, %v5488_v17  ;;  %v8742_v3 = vld [vmem:[#allocation19 + $0x258] sm:$0xff] }
0x137e   : > { %8372 = vmatmul.msk.f32.vlgmr.msra.gmra.mxu1 %vm929_vm1, %v5486_v14  ;;  %8370 = vmatmul.msk.f32.vlgmr.msrb.gmra.mxu0 %vm929_vm1, %v5486_v14  ;;  %v8743_v17 = vld [vmem:[#allocation19 + $0x358] sm:$0xff]  ;;  %v8744_v14 = vld [vmem:[#allocation19 + $0x220] sm:$0xff] }
0x13fb   : > { %v5535_v24 = vpop.f32.mrf.mxu1  ;;  %v5515_v49 = vpop.f32.mrf.mxu0 }
0x13fc   : > { %v5540_v46 = vrot.slane %v5535_v24, 4  ;;  %v8745_v24 = vld [vmem:[#allocation19 + $0x320] sm:$0xff] }
0x13fe   : > { %v5541_v0 = vsel %vm933_vm0, %v5515_v49, %v5540_v46 }
0x13ff   : > { %v11080_v59 = vadd.f32 %v5541_v0, %v11002_v61  ;;  %v8696_v61 = vld [vmem:[#allocation19 + $0x2f0] sm:$0xff]  ;;  %v8746_v0 = vld [vmem:[#allocation19 + $0x248] sm:$0xff] }
0x1401   : > { %5547 = vst [vmem:[#allocation1] ss:$2 sm:$0xff] %v11080_v59 }
0x1408   : > { %v5548_v4 = vld.sshfl [vmem:[#allocation1] sm:$0xff pattern:$0x75316420]  ;;  %v5549_v6 = vld.sshfl [vmem:[#allocation1 + $0x8] sm:$0xff pattern:$0x75316420] }
0x1409   : > { %8374 = vmatpush.msk.msrb.mxu2 %vm933_vm0, %v5548_v4  ;;  %8376 = vmatpush.msk.msra.mxu3 %vm933_vm0, %v5549_v6  ;;  %5599 = vst [vmem:[#allocation1] ss:$2 sm:$0xff] %v11080_v59  ;;  %v8748_v4 = vld [vmem:[#allocation19 + $0x210] sm:$0xff] }
0x140a   : > { %8375 = vmatmul.msk.f32.vlgmr.msrb.gmra.mxu2 %vm929_vm1, %v8373_v42  ;;  %8377 = vmatmul.msk.f32.vlgmr.msra.gmra.mxu3 %vm929_vm1, %v8373_v42  ;;  %v8747_v42 = vld [vmem:[#allocation19 + $0x348] sm:$0xff]  ;;  %v8749_v6 = vld [vmem:[#allocation19 + $0x310] sm:$0xff] }
0x140b   : > { %5649 = vmatpush.msra.mxu2 %v8696_v61  ;;  %5669 = vmatpush.msrb.mxu3 %v8697_v11  ;;  %v8750_v61 = vld [vmem:[#allocation19 + $0x238] sm:$0xff] }
0x140c   : > { %v8751_v11 = vld [vmem:[#allocation19 + $0x338] sm:$0xff] }
0x140d   : > { %5650 = vmatpush.msra.mxu2 %v8698_v40  ;;  %5670 = vmatpush.msrb.mxu3 %v8699_v53  ;;  %v8752_v40 = vld [vmem:[#allocation19 + $0x200] sm:$0xff] }
0x140e   : > { %v8753_v53 = vld [vmem:[#allocation19 + $0x300] sm:$0xff] }
0x140f   : > { %5651 = vmatpush.msra.mxu2 %v8700_v30  ;;  %5671 = vmatpush.msrb.mxu3 %v8701_v62  ;;  %v8755_v30 = vld [vmem:[#allocation19 + $0x328] sm:$0xff]  ;;  %v8756_v62 = vld [vmem:[#allocation19 + $0xf0] sm:$0xff] }
0x1410   : > { %v5600_v36 = vld.sshfl [vmem:[#allocation1] sm:$0xff pattern:$0x75316420]  ;;  %v5601_v44 = vld.sshfl [vmem:[#allocation1 + $0x8] sm:$0xff pattern:$0x75316420] }
0x1411   : > { %8379 = vmatpush.msk.msra.mxu0 %vm933_vm0, %v5600_v36  ;;  %8381 = vmatpush.msk.msrb.mxu1 %vm933_vm0, %v5601_v44  ;;  %5811 = vst [vmem:[#allocation1] ss:$2 sm:$0xff] %v11080_v59  ;;  %v8757_v36 = vld [vmem:[#allocation19 + $0x1f0] sm:$0xff]  ;;  %v8758_v44 = vld [vmem:[#allocation19 + $0x218] sm:$0xff] }
0x1412   : > { %8380 = vmatmul.msk.f32.vlgmr.msra.gmra.mxu0 %vm929_vm1, %v8378_v54  ;;  %8382 = vmatmul.msk.f32.vlgmr.msrb.gmra.mxu1 %vm929_vm1, %v8378_v54  ;;  %v8754_v54 = vld [vmem:[#allocation19 + $0x228] sm:$0xff] }
0x1413   : > { %5689 = vmatpush.msrb.mxu0 %v8702_v55  ;;  %5709 = vmatpush.msra.mxu1 %v8703_v9  ;;  %v8759_v55 = vld [vmem:[#allocation19 + $0x318] sm:$0xff]  ;;  %v8760_v9 = vld [vmem:[#allocation19 + $0xe0] sm:$0xff] }
0x1414   : > { %5652 = vmatpush.msra.mxu2 %v8704_v21  ;;  %5672 = vmatpush.msrb.mxu3 %v8705_v26  ;;  %v8761_v21 = vld [vmem:[#allocation19 + $0x1e0] sm:$0xff] }
0x1415   : > { %5690 = vmatpush.msrb.mxu0 %v8706_v43  ;;  %5710 = vmatpush.msra.mxu1 %v8707_v56  ;;  %v8762_v56 = vld [vmem:[#allocation19 + $0x208] sm:$0xff] }
0x1416   : > { %5653 = vmatpush.msra.mxu2 %v8708_v48  ;;  %5673 = vmatpush.msrb.mxu3 %v8709_v16  ;;  %v8763_v48 = vld [vmem:[#allocation19 + $0x308] sm:$0xff]  ;;  %v8764_v16 = vld [vmem:[#allocation19 + $0xf8] sm:$0xff] }
0x1417   : > { %5691 = vmatpush.msrb.mxu0 %v8710_v23  ;;  %5711 = vmatpush.msra.mxu1 %v8711_v22  ;;  %v8765_v23 = vld [vmem:[#allocation19 + $0x1f8] sm:$0xff]  ;;  %v8766_v22 = vld [vmem:[#allocation19 + $0xd0] sm:$0xff] }
0x1418   : > { %5654 = vmatpush.msra.mxu2 %v8712_v41  ;;  %5674 = vmatpush.msrb.mxu3 %v8713_v50  ;;  %v11099_v5 = vld.sshfl [vmem:[#allocation1] sm:$0xff pattern:$0x75316420]  ;;  %v11101_v15 = vld.sshfl [vmem:[#allocation1 + $0x8] sm:$0xff pattern:$0x75316420] }
0x1419   : > { %5692 = vmatpush.msrb.mxu0 %v8714_v51  ;;  %5712 = vmatpush.msra.mxu1 %v8715_v29  ;;  %5945 = vst [vmem:[#allocation1] ss:$2 sm:$0xff] %v11080_v59  ;;  %v8767_v41 = vld [vmem:[#allocation19 + $0x1d0] sm:$0xff]  ;;  %v8768_v50 = vld [vmem:[#allocation19 + $0xe8] sm:$0xff]  ;;  %v8770_v29 = vld [vmem:[#allocation19 + $0xc0] sm:$0xff] }
0x141a   : > { %5655 = vmatpush.msra.mxu2 %v8716_v27  ;;  %5675 = vmatpush.msrb.mxu3 %v8717_v37  ;;  %v8769_v51 = vld [vmem:[#allocation19 + $0x1e8] sm:$0xff]  ;;  %v8771_v27 = vld [vmem:[#allocation19 + $0x1c0] sm:$0xff]  ;;  %v8772_v37 = vld [vmem:[#allocation19 + $0xd8] sm:$0xff] }
0x141b   : > { %5693 = vmatpush.msrb.mxu0 %v8718_v12  ;;  %5713 = vmatpush.msra.mxu1 %v8719_v32  ;;  %v8773_v12 = vld [vmem:[#allocation19 + $0x1d8] sm:$0xff]  ;;  %v8774_v32 = vld [vmem:[#allocation19 + $0xb0] sm:$0xff] }
0x141c   : > { %5656 = vmatpush.msra.mxu2 %v8720_v33  ;;  %5676 = vmatpush.msrb.mxu3 %v8721_v57  ;;  %v8775_v33 = vld [vmem:[#allocation19 + $0x1b0] sm:$0xff]  ;;  %v8776_v57 = vld [vmem:[#allocation19 + $0xc8] sm:$0xff] }
0x141d   : > { %5694 = vmatpush.msrb.mxu0 %v8722_v28  ;;  %5714 = vmatpush.msra.mxu1 %v8723_v19  ;;  %v8777_v28 = vld [vmem:[#allocation19 + $0x1c8] sm:$0xff] }
0x141e   : > { %5657 = vmatpush.msra.mxu2 %v8724_v31  ;;  %5677 = vmatpush.msrb.mxu3 %v8725_v52  ;;  %v8778_v52 = vld [vmem:[#allocation19 + $0xa0] sm:$0xff] }
0x141f   : > { %5695 = vmatpush.msrb.mxu0 %v8726_v60  ;;  %5715 = vmatpush.msra.mxu1 %v8727_v45  ;;  %v8779_v60 = vld [vmem:[#allocation19 + $0x1a0] sm:$0xff]  ;;  %v8780_v45 = vld [vmem:[#allocation19 + $0xb8] sm:$0xff] }
0x1420   : > { %5658 = vmatpush.msra.mxu2 %v8728_v35  ;;  %5678 = vmatpush.msrb.mxu3 %v8729_v38  ;;  %v11104_v34 = vld.sshfl [vmem:[#allocation1] sm:$0xff pattern:$0x75316420]  ;;  %v11106_v2 = vld.sshfl [vmem:[#allocation1 + $0x8] sm:$0xff pattern:$0x75316420] }
0x1421   : > { %5696 = vmatpush.msrb.mxu0 %v8730_v10  ;;  %5716 = vmatpush.msra.mxu1 %v8731_v13  ;;  %6079 = vst [vmem:[#allocation1] ss:$2 sm:$0xff] %v11080_v59  ;;  %v8781_v35 = vld [vmem:[#allocation19 + $0x1b8] sm:$0xff]  ;;  %v8782_v38 = vld [vmem:[#allocation19 + $0x90] sm:$0xff]  ;;  %v8784_v13 = vld [vmem:[#allocation19 + $0xa8] sm:$0xff] }
0x1422   : > { %5659 = vmatpush.msra.mxu2 %v8732_v47  ;;  %5679 = vmatpush.msrb.mxu3 %v8733_v63  ;;  %v8783_v10 = vld [vmem:[#allocation19 + $0x190] sm:$0xff]  ;;  %v8785_v47 = vld [vmem:[#allocation19 + $0x1a8] sm:$0xff]  ;;  %v8786_v63 = vld [vmem:[#allocation19 + $0x80] sm:$0xff] }
0x1423   : > { %5697 = vmatpush.msrb.mxu0 %v8734_v8  ;;  %5717 = vmatpush.msra.mxu1 %v8735_v58  ;;  %v8787_v8 = vld [vmem:[#allocation19 + $0x180] sm:$0xff]  ;;  %v8788_v58 = vld [vmem:[#allocation19 + $0x98] sm:$0xff] }
0x1424   : > { %5660 = vmatpush.msra.mxu2 %v8736_v39  ;;  %5680 = vmatpush.msrb.mxu3 %v8737_v1  ;;  %v8789_v39 = vld [vmem:[#allocation19 + $0x198] sm:$0xff]  ;;  %v8790_v1 = vld [vmem:[#allocation19 + $0x70] sm:$0xff] }
0x1425   : > { %5698 = vmatpush.msrb.mxu0 %v8738_v25  ;;  %5718 = vmatpush.msra.mxu1 %v8739_v18  ;;  %v8791_v25 = vld [vmem:[#allocation19 + $0x170] sm:$0xff]  ;;  %v8792_v18 = vld [vmem:[#allocation19 + $0x88] sm:$0xff] }
0x1426   : > { %5661 = vmatpush.msra.mxu2 %v8740_v20  ;;  %5681 = vmatpush.msrb.mxu3 %v8741_v7  ;;  %v8793_v20 = vld [vmem:[#allocation19 + $0x188] sm:$0xff] }
0x1427   : > { %5699 = vmatpush.msrb.mxu0 %v8742_v3  ;;  %5719 = vmatpush.msra.mxu1 %v8743_v17  ;;  %v8794_v17 = vld [vmem:[#allocation19 + $0x60] sm:$0xff] }
0x1428   : > { %5662 = vmatpush.msra.mxu2 %v8744_v14  ;;  %5682 = vmatpush.msrb.mxu3 %v8745_v24  ;;  %v11109_v49 = vld.sshfl [vmem:[#allocation1] sm:$0xff pattern:$0x75316420]  ;;  %v11111_v46 = vld.sshfl [vmem:[#allocation1 + $0x8] sm:$0xff pattern:$0x75316420] }
0x1429   : > { %5700 = vmatpush.msrb.mxu0 %v8746_v0  ;;  %5720 = vmatpush.msra.mxu1 %v8747_v42  ;;  %6133 = vst [vmem:[#allocation1] ss:$2 sm:$0xff] %v11080_v59  ;;  %v8795_v14 = vld [vmem:[#allocation19 + $0x160] sm:$0xff]  ;;  %v8796_v24 = vld [vmem:[#allocation19 + $0x78] sm:$0xff]  ;;  %v8798_v42 = vld [vmem:[#allocation19 + $0x50] sm:$0xff] }
0x142a   : > { %5663 = vmatpush.msra.mxu2 %v8748_v4  ;;  %5683 = vmatpush.msrb.mxu3 %v8749_v6  ;;  %v8797_v0 = vld [vmem:[#allocation19 + $0x178] sm:$0xff]  ;;  %v8799_v4 = vld [vmem:[#allocation19 + $0x150] sm:$0xff]  ;;  %v8800_v6 = vld [vmem:[#allocation19 + $0x68] sm:$0xff] }
0x142b   : > { %5701 = vmatpush.msrb.mxu0 %v8750_v61  ;;  %5721 = vmatpush.msra.mxu1 %v8751_v11  ;;  %v8801_v61 = vld [vmem:[#allocation19 + $0x168] sm:$0xff]  ;;  %v8802_v11 = vld [vmem:[#allocation19 + $0x40] sm:$0xff] }
0x142c   : > { %5664 = vmatpush.msra.mxu2 %v8752_v40  ;;  %5684 = vmatpush.msrb.mxu3 %v8753_v53  ;;  %v8803_v40 = vld [vmem:[#allocation19 + $0x140] sm:$0xff]  ;;  %v8804_v53 = vld [vmem:[#allocation19 + $0x58] sm:$0xff] }
0x142d   : > { %5702 = vmatpush.msrb.mxu0 %v8754_v54  ;;  %5722 = vmatpush.msra.mxu1 %v8755_v30  ;;  %v8805_v54 = vld [vmem:[#allocation19 + $0x158] sm:$0xff]  ;;  %v8806_v30 = vld [vmem:[#allocation19 + $0x30] sm:$0xff] }
0x142e   : > { %5729 = vmatpush.msrb.mxu2 %v8756_v62  ;;  %5749 = vmatpush.msra.mxu3 %v8757_v36  ;;  %v8807_v62 = vld [vmem:[#allocation19 + $0x130] sm:$0xff]  ;;  %v8808_v36 = vld [vmem:[#allocation19 + $0x48] sm:$0xff] }
0x142f   : > { %5703 = vmatpush.msrb.mxu0 %v8758_v44  ;;  %5723 = vmatpush.msra.mxu1 %v8759_v55  ;;  %v8809_v44 = vld [vmem:[#allocation19 + $0x148] sm:$0xff] }
0x1430   : > { %5730 = vmatpush.msrb.mxu2 %v8760_v9  ;;  %5750 = vmatpush.msra.mxu3 %v8761_v21  ;;  %v11114_v26 = vld.sshfl [vmem:[#allocation1] sm:$0xff pattern:$0x75316420]  ;;  %v11116_v43 = vld.sshfl [vmem:[#allocation1 + $0x8] sm:$0xff pattern:$0x75316420] }
0x1431   : > { %5704 = vmatpush.msrb.mxu0 %v8762_v56  ;;  %5724 = vmatpush.msra.mxu1 %v8763_v48  ;;  %6267 = vst [vmem:[#allocation1] ss:$2 sm:$0xff] %v11080_v59  ;;  %v8810_v21 = vld [vmem:[#allocation19 + $0x20] sm:$0xff]  ;;  %v8812_v48 = vld [vmem:[#allocation19 + $0x38] sm:$0xff] }
0x1432   : > { %5731 = vmatpush.msrb.mxu2 %v8766_v22  ;;  %5751 = vmatpush.msra.mxu3 %v8767_v41  ;;  %v8811_v56 = vld [vmem:[#allocation19 + $0x120] sm:$0xff]  ;;  %v8815_v22 = vld [vmem:[#allocation19 + $0x110] sm:$0xff]  ;;  %v8816_v41 = vld [vmem:[#allocation19 + $0x28] sm:$0xff] }
0x1433   : > { %5769 = vmatpush.msra.mxu0 %v8764_v16  ;;  %5789 = vmatpush.msrb.mxu1 %v8765_v23  ;;  %v8813_v16 = vld [vmem:[#allocation19 + $0x138] sm:$0xff]  ;;  %v8814_v23 = vld [vmem:[#allocation19 + $0x10] sm:$0xff] }
0x1434   : > { %5732 = vmatpush.msrb.mxu2 %v8770_v29  ;;  %5752 = vmatpush.msra.mxu3 %v8771_v27  ;;  %v8819_v29 = vld [vmem:[#allocation19 + $0x100] sm:$0xff]  ;;  %v8820_v27 = vld [vmem:[#allocation19 + $0x18] sm:$0xff] }
0x1435   : > { %5770 = vmatpush.msra.mxu0 %v8768_v50  ;;  %5790 = vmatpush.msrb.mxu1 %v8769_v51  ;;  %v8817_v50 = vld [vmem:[#allocation19 + $0x128] sm:$0xff]  ;;  %v8818_v51 = vld [vmem:[#allocation19] sm:$0xff] }
0x1436   : > { %5733 = vmatpush.msrb.mxu2 %v8774_v32  ;;  %5753 = vmatpush.msra.mxu3 %v8775_v33  ;;  %v8823_v32 = vld [vmem:[#allocation19 + $0x108] sm:$0xff] }
0x1437   : > { %5771 = vmatpush.msra.mxu0 %v8772_v37  ;;  %5791 = vmatpush.msrb.mxu1 %v8773_v12  ;;  %v8821_v37 = vld [vmem:[#allocation19 + $0x118] sm:$0xff]  ;;  %v8822_v12 = vld [vmem:[#allocation19 + $0x8] sm:$0xff] }
0x1438   : > { %v11119_v19 = vld.sshfl [vmem:[#allocation1] sm:$0xff pattern:$0x75316420]  ;;  %v11121_v31 = vld.sshfl [vmem:[#allocation1 + $0x8] sm:$0xff pattern:$0x75316420]  ;;  %5734 = vmatpush.msrb.mxu2 %v8778_v52  ;;  %5754 = vmatpush.msra.mxu3 %v8779_v60 }
0x1439   : > { %5772 = vmatpush.msra.mxu0 %v8776_v57  ;;  %5792 = vmatpush.msrb.mxu1 %v8777_v28  ;;  %6401 = vst [vmem:[#allocation1] ss:$2 sm:$0xff] %v11080_v59 }
0x143a   : > { %5735 = vmatpush.msrb.mxu2 %v8782_v38  ;;  %5755 = vmatpush.msra.mxu3 %v8783_v10 }
0x143b   : > { %5773 = vmatpush.msra.mxu0 %v8780_v45  ;;  %5793 = vmatpush.msrb.mxu1 %v8781_v35 }
0x143c   : > { %5736 = vmatpush.msrb.mxu2 %v8786_v63  ;;  %5756 = vmatpush.msra.mxu3 %v8787_v8 }
0x143d   : > { %5774 = vmatpush.msra.mxu0 %v8784_v13  ;;  %5794 = vmatpush.msrb.mxu1 %v8785_v47 }
0x143e   : > { %5737 = vmatpush.msrb.mxu2 %v8790_v1  ;;  %5757 = vmatpush.msra.mxu3 %v8791_v25 }
0x143f   : > { %5775 = vmatpush.msra.mxu0 %v8788_v58  ;;  %5795 = vmatpush.msrb.mxu1 %v8789_v39 }
0x1440   : > { %v11124_v7 = vld.sshfl [vmem:[#allocation1] sm:$0xff pattern:$0x75316420]  ;;  %v11126_v3 = vld.sshfl [vmem:[#allocation1 + $0x8] sm:$0xff pattern:$0x75316420]  ;;  %5738 = vmatpush.msrb.mxu2 %v8794_v17  ;;  %5758 = vmatpush.msra.mxu3 %v8795_v14 }
0x1441   : > { %5776 = vmatpush.msra.mxu0 %v8792_v18  ;;  %5796 = vmatpush.msrb.mxu1 %v8793_v20  ;;  %6535 = vst [vmem:[#allocation1] ss:$2 sm:$0xff] %v11080_v59  ;;  %v8824_v20 = vld [vmem:[#allocation19 + $0x4f0] sm:$0xff]  ;;  %v8826_v14 = vld [vmem:[#allocation19 + $0x4e0] sm:$0xff] }
0x1442   : > { %5739 = vmatpush.msrb.mxu2 %v8798_v42  ;;  %5759 = vmatpush.msra.mxu3 %v8799_v4  ;;  %v8825_v17 = vld [vmem:[#allocation19 + $0x5f0] sm:$0xff] }
0x1443   : > { %5777 = vmatpush.msra.mxu0 %v8796_v24  ;;  %5797 = vmatpush.msrb.mxu1 %v8797_v0  ;;  %v8827_v24 = vld [vmem:[#allocation19 + $0x5e0] sm:$0xff]  ;;  %v8828_v4 = vld [vmem:[#allocation19 + $0x4d0] sm:$0xff] }
0x1444   : > { %5740 = vmatpush.msrb.mxu2 %v8802_v11  ;;  %5760 = vmatpush.msra.mxu3 %v8803_v40  ;;  %v8833_v11 = vld [vmem:[#allocation19 + $0x5b0] sm:$0xff]  ;;  %v8834_v40 = vld [vmem:[#allocation19 + $0x4f8] sm:$0xff] }
0x1445   : > { %5778 = vmatpush.msra.mxu0 %v8800_v6  ;;  %5798 = vmatpush.msrb.mxu1 %v8801_v61  ;;  %v8829_v6 = vld [vmem:[#allocation19 + $0x5d0] sm:$0xff]  ;;  %v8831_v61 = vld [vmem:[#allocation19 + $0x5c0] sm:$0xff] }
0x1446   : > { %5741 = vmatpush.msrb.mxu2 %v8806_v30  ;;  %5761 = vmatpush.msra.mxu3 %v8807_v62  ;;  %v8837_v30 = vld [vmem:[#allocation19 + $0x5a0] sm:$0xff] }
0x1447   : > { %5779 = vmatpush.msra.mxu0 %v8804_v53  ;;  %5799 = vmatpush.msrb.mxu1 %v8805_v54  ;;  %v8835_v53 = vld [vmem:[#allocation19 + $0x5f8] sm:$0xff]  ;;  %v8836_v54 = vld [vmem:[#allocation19 + $0x4a0] sm:$0xff] }
0x1448   : > { %v11129_v55 = vld.sshfl [vmem:[#allocation1] sm:$0xff pattern:$0x75316420]  ;;  %v11131_v9 = vld.sshfl [vmem:[#allocation1 + $0x8] sm:$0xff pattern:$0x75316420]  ;;  %5742 = vmatpush.msrb.mxu2 %v8810_v21  ;;  %5762 = vmatpush.msra.mxu3 %v8811_v56 }
0x1449   : > { %5780 = vmatpush.msra.mxu0 %v8808_v36  ;;  %5800 = vmatpush.msrb.mxu1 %v8809_v44  ;;  %6693 = vst [vmem:[#allocation1] ss:$2 sm:$0xff] %v11080_v59  ;;  %v8383_v62 = vld [vmem:[%s11551_s0 + $0x16] sm:$0x3]  ;;  %v8838_v36 = vld [vmem:[#allocation19 + $0x4e8] sm:$0xff]  ;;  %v8840_v21 = vld [vmem:[#allocation19 + $0x490] sm:$0xff] }
0x144a   : > { %5743 = vmatpush.msrb.mxu2 %v8814_v23  ;;  %5763 = vmatpush.msra.mxu3 %v8815_v22  ;;  %v8839_v44 = vld [vmem:[#allocation19 + $0x5e8] sm:$0xff]  ;;  %v8841_v56 = vld [vmem:[#allocation19 + $0x590] sm:$0xff]  ;;  %v8844_v23 = vld [vmem:[#allocation19 + $0x4d8] sm:$0xff] }
0x144b   : > { %5781 = vmatpush.msra.mxu0 %v8812_v48  ;;  %5801 = vmatpush.msrb.mxu1 %v8813_v16  ;;  %v8842_v48 = vld [vmem:[#allocation19 + $0x480] sm:$0xff]  ;;  %v8845_v22 = vld [vmem:[#allocation19 + $0x5d8] sm:$0xff] }
0x144c   : > { %5744 = vmatpush.msrb.mxu2 %v8818_v51  ;;  %5764 = vmatpush.msra.mxu3 %v8819_v29  ;;  %v8843_v16 = vld [vmem:[#allocation19 + $0x580] sm:$0xff]  ;;  %v8848_v51 = vld [vmem:[#allocation19 + $0x4c8] sm:$0xff] }
0x144d   : > { %5782 = vmatpush.msra.mxu0 %v8816_v41  ;;  %5802 = vmatpush.msrb.mxu1 %v8817_v50  ;;  %v8846_v41 = vld [vmem:[#allocation19 + $0x470] sm:$0xff]  ;;  %v8849_v29 = vld [vmem:[#allocation19 + $0x5c8] sm:$0xff] }
0x144e   : > { %v8847_v50 = vld [vmem:[#allocation19 + $0x570] sm:$0xff] }
0x144f   : > { %5783 = vmatpush.msra.mxu0 %v8820_v27  ;;  %5803 = vmatpush.msrb.mxu1 %v8821_v37  ;;  %v8850_v27 = vld [vmem:[#allocation19 + $0x460] sm:$0xff] }
0x1450   : > { %v11134_v33 = vld.sshfl [vmem:[#allocation1] sm:$0xff pattern:$0x75316420]  ;;  %v11136_v57 = vld.sshfl [vmem:[#allocation1 + $0x8] sm:$0xff pattern:$0x75316420] }
0x1451   : > { %5784 = vmatpush.msra.mxu0 %v8822_v12  ;;  %5804 = vmatpush.msrb.mxu1 %v8823_v32  ;;  %6745 = vst [vmem:[#allocation1] ss:$2 sm:$0xff] %v11080_v59  ;;  %v8851_v37 = vld [vmem:[#allocation19 + $0x560] sm:$0xff]  ;;  %v8852_v12 = vld [vmem:[#allocation19 + $0x4b8] sm:$0xff] }
0x1452   : > { %v8853_v32 = vld [vmem:[#allocation19 + $0x5b8] sm:$0xff] }
0x1458   : > { %v11139_v28 = vld.sshfl [vmem:[#allocation1] sm:$0xff pattern:$0x75316420]  ;;  %v11141_v52 = vld.sshfl [vmem:[#allocation1 + $0x8] sm:$0xff pattern:$0x75316420] }
0x1459   : > { %6957 = vst [vmem:[#allocation1] ss:$2 sm:$0xff] %v11080_v59 }
0x1460   : > { %v11144_v60 = vld.sshfl [vmem:[#allocation1] sm:$0xff pattern:$0x75316420]  ;;  %v11146_v45 = vld.sshfl [vmem:[#allocation1 + $0x8] sm:$0xff pattern:$0x75316420] }
0x1461   : > { %7091 = vst [vmem:[#allocation1] ss:$2 sm:$0xff] %v11080_v59 }
0x1468   : > { %v11149_v35 = vld.sshfl [vmem:[#allocation1] sm:$0xff pattern:$0x75316420]  ;;  %v11151_v38 = vld.sshfl [vmem:[#allocation1 + $0x8] sm:$0xff pattern:$0x75316420] }
0x1469   : > { %7225 = vst [vmem:[#allocation1] ss:$2 sm:$0xff] %v11080_v59 }
0x1470   : > { %v11154_v10 = vld.sshfl [vmem:[#allocation1] sm:$0xff pattern:$0x75316420]  ;;  %v11156_v13 = vld.sshfl [vmem:[#allocation1 + $0x8] sm:$0xff pattern:$0x75316420] }
0x1471   : > { %7279 = vst [vmem:[#allocation1] ss:$2 sm:$0xff] %v11080_v59 }
0x1478   : > { %v11159_v47 = vld.sshfl [vmem:[#allocation1] sm:$0xff pattern:$0x75316420]  ;;  %v11161_v63 = vld.sshfl [vmem:[#allocation1 + $0x8] sm:$0xff pattern:$0x75316420] }
0x1479   : > { %7413 = vst [vmem:[#allocation1] ss:$2 sm:$0xff] %v11080_v59 }
0x1480   : > { %v11164_v8 = vld.sshfl [vmem:[#allocation1] sm:$0xff pattern:$0x75316420]  ;;  %v11166_v58 = vld.sshfl [vmem:[#allocation1 + $0x8] sm:$0xff pattern:$0x75316420] }
0x1481   : > { %7547 = vst [vmem:[#allocation1] ss:$2 sm:$0xff] %v11080_v59 }
0x1488   : > { %v11169_v39 = vld.sshfl [vmem:[#allocation1] sm:$0xff pattern:$0x75316420]  ;;  %v11171_v1 = vld.sshfl [vmem:[#allocation1 + $0x8] sm:$0xff pattern:$0x75316420] }
0x1489   : > { %7681 = vst [vmem:[#allocation1] ss:$2 sm:$0xff] %v11080_v59 }
0x148d   : > { %v5574_v0 = vpop.f32.mrf.mxu2  ;;  %v5594_v42 = vpop.f32.mrf.mxu3 }
0x148f   : > { %v5626_v25 = vpop.f32.mrf.mxu0  ;;  %v5646_v18 = vpop.f32.mrf.mxu1 }
0x1490   : > { %5665 = vmatmul.f32.vlgmr.msra.gmra.mxu2 %v5626_v25  ;;  %5685 = vmatmul.f32.vlgmr.msrb.gmra.mxu3 %v5646_v18 }
0x1491   : > { %5705 = vmatmul.f32.vlgmr.msrb.gmra.mxu0 %v5626_v25  ;;  %5725 = vmatmul.f32.vlgmr.msra.gmra.mxu1 %v5646_v18  ;;  %v8854_v25 = vld [vmem:[#allocation19 + $0x450] sm:$0xff] }
0x1492   : > { %8384 = vmatpush.msk.msra.mxu2 %vm933_vm0, %v11099_v5  ;;  %8386 = vmatpush.msk.msrb.mxu3 %vm933_vm0, %v11101_v15  ;;  %v8830_v5 = vld [vmem:[#allocation19 + $0x4c0] sm:$0xff]  ;;  %v8832_v15 = vld [vmem:[#allocation19 + $0x4b0] sm:$0xff] }
0x1493   : > { %5861 = vmatpush.msrb.mxu0 %v8824_v20  ;;  %5881 = vmatpush.msra.mxu1 %v8825_v17  ;;  %v8855_v18 = vld [vmem:[#allocation19 + $0x550] sm:$0xff]  ;;  %v8856_v20 = vld [vmem:[#allocation19 + $0x4a8] sm:$0xff] }
0x1494   : > { %v8857_v17 = vld [vmem:[#allocation19 + $0x5a8] sm:$0xff] }
0x1495   : > { %5862 = vmatpush.msrb.mxu0 %v8826_v14  ;;  %5882 = vmatpush.msra.mxu1 %v8827_v24  ;;  %v8858_v14 = vld [vmem:[#allocation19 + $0x440] sm:$0xff] }
0x1496   : > { %v8859_v24 = vld [vmem:[#allocation19 + $0x540] sm:$0xff] }
0x1497   : > { %5863 = vmatpush.msrb.mxu0 %v8828_v4  ;;  %5883 = vmatpush.msra.mxu1 %v8829_v6  ;;  %v8862_v4 = vld [vmem:[#allocation19 + $0x430] sm:$0xff] }
0x1498   : > { %5745 = vmatmul.f32.vlgmr.msrb.gmra.mxu2 %v5574_v0  ;;  %5765 = vmatmul.f32.vlgmr.msra.gmra.mxu3 %v5594_v42  ;;  %v8863_v6 = vld [vmem:[#allocation19 + $0x530] sm:$0xff] }
0x1499   : > { %5864 = vmatpush.msrb.mxu0 %v8830_v5  ;;  %5884 = vmatpush.msra.mxu1 %v8831_v61  ;;  %v8864_v5 = vld [vmem:[#allocation19 + $0x488] sm:$0xff] }
0x149a   : > { %5785 = vmatmul.f32.vlgmr.msra.gmra.mxu0 %v5574_v0  ;;  %5805 = vmatmul.f32.vlgmr.msrb.gmra.mxu1 %v5594_v42  ;;  %v8860_v0 = vld [vmem:[#allocation19 + $0x498] sm:$0xff]  ;;  %v8865_v61 = vld [vmem:[#allocation19 + $0x588] sm:$0xff] }
0x149b   : > { %5865 = vmatpush.msrb.mxu0 %v8832_v15  ;;  %5885 = vmatpush.msra.mxu1 %v8833_v11  ;;  %v8861_v42 = vld [vmem:[#allocation19 + $0x598] sm:$0xff]  ;;  %v8866_v15 = vld [vmem:[#allocation19 + $0x420] sm:$0xff] }
0x149c   : > { %5901 = vmatpush.msrb.mxu2 %v8834_v40  ;;  %5921 = vmatpush.msra.mxu3 %v8835_v53  ;;  %v8867_v11 = vld [vmem:[#allocation19 + $0x520] sm:$0xff]  ;;  %v8868_v40 = vld [vmem:[#allocation19 + $0x478] sm:$0xff] }
0x149d   : > { %5866 = vmatpush.msrb.mxu0 %v8836_v54  ;;  %5886 = vmatpush.msra.mxu1 %v8837_v30  ;;  %v8869_v53 = vld [vmem:[#allocation19 + $0x578] sm:$0xff]  ;;  %v8870_v54 = vld [vmem:[#allocation19 + $0x410] sm:$0xff] }
0x149e   : > { %5902 = vmatpush.msrb.mxu2 %v8838_v36  ;;  %5922 = vmatpush.msra.mxu3 %v8839_v44  ;;  %v8871_v30 = vld [vmem:[#allocation19 + $0x510] sm:$0xff]  ;;  %v8873_v36 = vld [vmem:[#allocation19 + $0x568] sm:$0xff]  ;;  %v8874_v44 = vld [vmem:[#allocation19 + $0x400] sm:$0xff] }
0x149f   : > { %5867 = vmatpush.msrb.mxu0 %v8840_v21  ;;  %5887 = vmatpush.msra.mxu1 %v8841_v56  ;;  %v8875_v21 = vld [vmem:[#allocation19 + $0x500] sm:$0xff]  ;;  %v8876_v56 = vld [vmem:[#allocation19 + $0x458] sm:$0xff] }
0x14a0   : > { %8385 = vmatmul.msk.f32.vlgmr.msra.gmra.mxu2 %vm929_vm1, %v8383_v62  ;;  %8387 = vmatmul.msk.f32.vlgmr.msrb.gmra.mxu3 %vm929_vm1, %v8383_v62  ;;  %v8872_v62 = vld [vmem:[#allocation19 + $0x468] sm:$0xff] }
0x14a1   : > { %5868 = vmatpush.msrb.mxu0 %v8842_v48  ;;  %5888 = vmatpush.msra.mxu1 %v8843_v16  ;;  %v8877_v48 = vld [vmem:[#allocation19 + $0x558] sm:$0xff]  ;;  %v8878_v16 = vld [vmem:[#allocation19 + $0x448] sm:$0xff] }
0x14a2   : > { %5903 = vmatpush.msrb.mxu2 %v8844_v23  ;;  %5923 = vmatpush.msra.mxu3 %v8845_v22  ;;  %v8879_v23 = vld [vmem:[#allocation19 + $0x548] sm:$0xff]  ;;  %v8880_v22 = vld [vmem:[#allocation19 + $0x438] sm:$0xff] }
0x14a3   : > { %5869 = vmatpush.msrb.mxu0 %v8846_v41  ;;  %5889 = vmatpush.msra.mxu1 %v8847_v50  ;;  %v8881_v41 = vld [vmem:[#allocation19 + $0x538] sm:$0xff]  ;;  %v8882_v50 = vld [vmem:[#allocation19 + $0x428] sm:$0xff] }
0x14a4   : > { %5904 = vmatpush.msrb.mxu2 %v8848_v51  ;;  %5924 = vmatpush.msra.mxu3 %v8849_v29  ;;  %v8883_v51 = vld [vmem:[#allocation19 + $0x528] sm:$0xff]  ;;  %v8885_v29 = vld [vmem:[#allocation19 + $0x518] sm:$0xff] }
0x14a5   : > { %5870 = vmatpush.msrb.mxu0 %v8850_v27  ;;  %5890 = vmatpush.msra.mxu1 %v8851_v37  ;;  %v8887_v27 = vld [vmem:[#allocation19 + $0x508] sm:$0xff]  ;;  %v8888_v37 = vld [vmem:[#allocation19 + $0x6f0] sm:$0xff] }
0x14a6   : > { %5905 = vmatpush.msrb.mxu2 %v8852_v12  ;;  %5925 = vmatpush.msra.mxu3 %v8853_v32  ;;  %v8889_v12 = vld [vmem:[#allocation19 + $0x7f0] sm:$0xff]  ;;  %v8890_v32 = vld [vmem:[#allocation19 + $0x6e0] sm:$0xff] }
0x14a7   : > { %5871 = vmatpush.msrb.mxu0 %v8854_v25  ;;  %5891 = vmatpush.msra.mxu1 %v8855_v18  ;;  %v8891_v25 = vld [vmem:[#allocation19 + $0x7e0] sm:$0xff]  ;;  %v8892_v18 = vld [vmem:[#allocation19 + $0x6d0] sm:$0xff] }
0x14a8   : > { %5906 = vmatpush.msrb.mxu2 %v8856_v20  ;;  %5926 = vmatpush.msra.mxu3 %v8857_v17  ;;  %v8893_v20 = vld [vmem:[#allocation19 + $0x7d0] sm:$0xff]  ;;  %v8894_v17 = vld [vmem:[#allocation19 + $0x6c0] sm:$0xff] }
0x14a9   : > { %5872 = vmatpush.msrb.mxu0 %v8858_v14  ;;  %5892 = vmatpush.msra.mxu1 %v8859_v24  ;;  %v8895_v14 = vld [vmem:[#allocation19 + $0x7c0] sm:$0xff]  ;;  %v8896_v24 = vld [vmem:[#allocation19 + $0x6b0] sm:$0xff] }
0x14aa   : > { %5907 = vmatpush.msrb.mxu2 %v8860_v0  ;;  %5927 = vmatpush.msra.mxu3 %v8861_v42  ;;  %v8897_v0 = vld [vmem:[#allocation19 + $0x7b0] sm:$0xff]  ;;  %v8898_v42 = vld [vmem:[#allocation19 + $0x6a0] sm:$0xff] }
0x14ab   : > { %5873 = vmatpush.msrb.mxu0 %v8862_v4  ;;  %5893 = vmatpush.msra.mxu1 %v8863_v6  ;;  %v8899_v4 = vld [vmem:[#allocation19 + $0x7a0] sm:$0xff]  ;;  %v8900_v6 = vld [vmem:[#allocation19 + $0x690] sm:$0xff] }
0x14ac   : > { %5908 = vmatpush.msrb.mxu2 %v8864_v5  ;;  %5928 = vmatpush.msra.mxu3 %v8865_v61  ;;  %v8901_v5 = vld [vmem:[#allocation19 + $0x790] sm:$0xff]  ;;  %v8902_v61 = vld [vmem:[#allocation19 + $0x680] sm:$0xff] }
0x14ad   : > { %5874 = vmatpush.msrb.mxu0 %v8866_v15  ;;  %5894 = vmatpush.msra.mxu1 %v8867_v11  ;;  %v8903_v15 = vld [vmem:[#allocation19 + $0x780] sm:$0xff]  ;;  %v8904_v11 = vld [vmem:[#allocation19 + $0x670] sm:$0xff] }
0x14ae   : > { %5909 = vmatpush.msrb.mxu2 %v8868_v40  ;;  %5929 = vmatpush.msra.mxu3 %v8869_v53  ;;  %v8905_v40 = vld [vmem:[#allocation19 + $0x770] sm:$0xff]  ;;  %v8906_v53 = vld [vmem:[#allocation19 + $0x660] sm:$0xff] }
0x14af   : > { %5875 = vmatpush.msrb.mxu0 %v8870_v54  ;;  %5895 = vmatpush.msra.mxu1 %v8871_v30  ;;  %v8907_v54 = vld [vmem:[#allocation19 + $0x760] sm:$0xff]  ;;  %v8908_v30 = vld [vmem:[#allocation19 + $0x650] sm:$0xff] }
0x14b0   : > { %5910 = vmatpush.msrb.mxu2 %v8872_v62  ;;  %5930 = vmatpush.msra.mxu3 %v8873_v36  ;;  %v8909_v62 = vld [vmem:[#allocation19 + $0x750] sm:$0xff]  ;;  %v8910_v36 = vld [vmem:[#allocation19 + $0x640] sm:$0xff] }
0x14b1   : > { %5876 = vmatpush.msrb.mxu0 %v8874_v44  ;;  %5896 = vmatpush.msra.mxu1 %v8875_v21  ;;  %v8911_v44 = vld [vmem:[#allocation19 + $0x740] sm:$0xff]  ;;  %v8912_v21 = vld [vmem:[#allocation19 + $0x630] sm:$0xff] }
0x14b2   : > { %5911 = vmatpush.msrb.mxu2 %v8876_v56  ;;  %5931 = vmatpush.msra.mxu3 %v8877_v48  ;;  %v8913_v56 = vld [vmem:[#allocation19 + $0x730] sm:$0xff]  ;;  %v8914_v48 = vld [vmem:[#allocation19 + $0x620] sm:$0xff] }
0x14b3   : > { %8389 = vmatpush.msk.msra.mxu0 %vm933_vm0, %v11104_v34  ;;  %8391 = vmatpush.msk.msrb.mxu1 %vm933_vm0, %v11106_v2  ;;  %v8884_v34 = vld [vmem:[#allocation19 + $0x418] sm:$0xff]  ;;  %v8886_v2 = vld [vmem:[#allocation19 + $0x408] sm:$0xff] }
0x14b4   : > { %5912 = vmatpush.msrb.mxu2 %v8878_v16  ;;  %5932 = vmatpush.msra.mxu3 %v8879_v23  ;;  %v8915_v16 = vld [vmem:[#allocation19 + $0x720] sm:$0xff]  ;;  %v8916_v23 = vld [vmem:[#allocation19 + $0x610] sm:$0xff] }
0x14b6   : > { %5913 = vmatpush.msrb.mxu2 %v8880_v22  ;;  %5933 = vmatpush.msra.mxu3 %v8881_v41  ;;  %v8917_v22 = vld [vmem:[#allocation19 + $0x710] sm:$0xff]  ;;  %v8918_v41 = vld [vmem:[#allocation19 + $0x600] sm:$0xff] }
0x14b8   : > { %5914 = vmatpush.msrb.mxu2 %v8882_v50  ;;  %5934 = vmatpush.msra.mxu3 %v8883_v51  ;;  %v8919_v50 = vld [vmem:[#allocation19 + $0x700] sm:$0xff] }
0x14ba   : > { %5915 = vmatpush.msrb.mxu2 %v8884_v34  ;;  %5935 = vmatpush.msra.mxu3 %v8885_v29 }
0x14bc   : > { %5916 = vmatpush.msrb.mxu2 %v8886_v2  ;;  %5936 = vmatpush.msra.mxu3 %v8887_v27 }
0x14be   : > { %5995 = vmatpush.msra.mxu2 %v8888_v37  ;;  %6015 = vmatpush.msrb.mxu3 %v8889_v12 }
0x14c0   : > { %5996 = vmatpush.msra.mxu2 %v8890_v32  ;;  %6016 = vmatpush.msrb.mxu3 %v8891_v25 }
0x14c2   : > { %5997 = vmatpush.msra.mxu2 %v8892_v18  ;;  %6017 = vmatpush.msrb.mxu3 %v8893_v20  ;;  %v8920_v18 = vld [vmem:[#allocation19 + $0x6f8] sm:$0xff] }
0x14c3   : > { %v8921_v20 = vld [vmem:[#allocation19 + $0x7f8] sm:$0xff] }
0x14c4   : > { %5998 = vmatpush.msra.mxu2 %v8894_v17  ;;  %6018 = vmatpush.msrb.mxu3 %v8895_v14  ;;  %v8922_v17 = vld [vmem:[#allocation19 + $0x6e8] sm:$0xff] }
0x14c5   : > { %v8923_v14 = vld [vmem:[#allocation19 + $0x7e8] sm:$0xff] }
0x14c6   : > { %5999 = vmatpush.msra.mxu2 %v8896_v24  ;;  %6019 = vmatpush.msrb.mxu3 %v8897_v0  ;;  %v8924_v24 = vld [vmem:[#allocation19 + $0x6d8] sm:$0xff] }
0x14c7   : > { %v8925_v0 = vld [vmem:[#allocation19 + $0x7d8] sm:$0xff] }
0x14c8   : > { %6000 = vmatpush.msra.mxu2 %v8898_v42  ;;  %6020 = vmatpush.msrb.mxu3 %v8899_v4  ;;  %v8388_v42 = vld [vmem:[%s11551_s0 + $0x18] sm:$0x3] }
0x14c9   : > { %v8926_v4 = vld [vmem:[#allocation19 + $0x6c8] sm:$0xff] }
0x14ca   : > { %6001 = vmatpush.msra.mxu2 %v8900_v6  ;;  %6021 = vmatpush.msrb.mxu3 %v8901_v5  ;;  %v8927_v6 = vld [vmem:[#allocation19 + $0x7c8] sm:$0xff] }
0x14cb   : > { %v8930_v5 = vld [vmem:[#allocation19 + $0x6a8] sm:$0xff] }
0x14cc   : > { %6002 = vmatpush.msra.mxu2 %v8902_v61  ;;  %6022 = vmatpush.msrb.mxu3 %v8903_v15  ;;  %v8931_v61 = vld [vmem:[#allocation19 + $0x7a8] sm:$0xff]  ;;  %v8932_v15 = vld [vmem:[#allocation19 + $0x698] sm:$0xff] }
0x14ce   : > { %6003 = vmatpush.msra.mxu2 %v8904_v11  ;;  %6023 = vmatpush.msrb.mxu3 %v8905_v40  ;;  %v8933_v11 = vld [vmem:[#allocation19 + $0x798] sm:$0xff]  ;;  %v8934_v40 = vld [vmem:[#allocation19 + $0x688] sm:$0xff] }
0x14d0   : > { %6004 = vmatpush.msra.mxu2 %v8906_v53  ;;  %6024 = vmatpush.msrb.mxu3 %v8907_v54  ;;  %v8935_v53 = vld [vmem:[#allocation19 + $0x788] sm:$0xff]  ;;  %v8936_v54 = vld [vmem:[#allocation19 + $0x678] sm:$0xff] }
0x14d2   : > { %6005 = vmatpush.msra.mxu2 %v8908_v30  ;;  %6025 = vmatpush.msrb.mxu3 %v8909_v62  ;;  %v8937_v30 = vld [vmem:[#allocation19 + $0x778] sm:$0xff]  ;;  %v8938_v62 = vld [vmem:[#allocation19 + $0x668] sm:$0xff] }
0x14d4   : > { %6006 = vmatpush.msra.mxu2 %v8910_v36  ;;  %6026 = vmatpush.msrb.mxu3 %v8911_v44  ;;  %v8939_v36 = vld [vmem:[#allocation19 + $0x768] sm:$0xff]  ;;  %v8940_v44 = vld [vmem:[#allocation19 + $0x658] sm:$0xff] }
0x14d6   : > { %6007 = vmatpush.msra.mxu2 %v8912_v21  ;;  %6027 = vmatpush.msrb.mxu3 %v8913_v56  ;;  %v8941_v21 = vld [vmem:[#allocation19 + $0x758] sm:$0xff]  ;;  %v8942_v56 = vld [vmem:[#allocation19 + $0x648] sm:$0xff] }
0x14d8   : > { %6008 = vmatpush.msra.mxu2 %v8914_v48  ;;  %6028 = vmatpush.msrb.mxu3 %v8915_v16  ;;  %v8943_v48 = vld [vmem:[#allocation19 + $0x748] sm:$0xff]  ;;  %v8944_v16 = vld [vmem:[#allocation19 + $0x638] sm:$0xff] }
0x14da   : > { %6009 = vmatpush.msra.mxu2 %v8916_v23  ;;  %6029 = vmatpush.msrb.mxu3 %v8917_v22  ;;  %v8945_v23 = vld [vmem:[#allocation19 + $0x738] sm:$0xff]  ;;  %v8946_v22 = vld [vmem:[#allocation19 + $0x628] sm:$0xff] }
0x14dc   : > { %6010 = vmatpush.msra.mxu2 %v8918_v41  ;;  %6030 = vmatpush.msrb.mxu3 %v8919_v50  ;;  %v8947_v41 = vld [vmem:[#allocation19 + $0x728] sm:$0xff]  ;;  %v8948_v50 = vld [vmem:[#allocation19 + $0x618] sm:$0xff] }
0x1513   : > { %v5666_v51 = vpop.f32.mrf.mxu2  ;;  %v5686_v34 = vpop.f32.mrf.mxu3 }
0x1514   : > { %v5687_v29 = vadd.f32 %v5686_v34, %v5666_v51  ;;  %v8949_v51 = vld [vmem:[#allocation19 + $0x718] sm:$0xff]  ;;  %v8950_v34 = vld [vmem:[#allocation19 + $0x608] sm:$0xff] }
0x151b   : > { %v5746_v2 = vpop.f32.mrf.mxu2  ;;  %v5766_v27 = vpop.f32.mrf.mxu3 }
0x151c   : > { %v5747_v37 = vadd.f32 %v5746_v2, %v5687_v29  ;;  %v8951_v29 = vld [vmem:[#allocation19 + $0x708] sm:$0xff]  ;;  %v11202_v2 = vpop.f32.mrf.mxu0 }
0x151e   : > { %v11187_v12 = vadd.f32 %v5766_v27, %v5747_v37  ;;  %v11204_v27 = vpop.f32.mrf.mxu1 }
0x1523   : > { %v5838_v32 = vpop.f32.mrf.mxu2  ;;  %v5858_v25 = vpop.f32.mrf.mxu3 }
0x1524   : > { %5877 = vmatmul.f32.vlgmr.msrb.gmra.mxu0 %v5838_v32  ;;  %5897 = vmatmul.f32.vlgmr.msra.gmra.mxu1 %v5858_v25  ;;  %v11206_v37 = vpop.f32.mrf.mxu0 }
0x1525   : > { %5917 = vmatmul.f32.vlgmr.msrb.gmra.mxu2 %v5838_v32  ;;  %5937 = vmatmul.f32.vlgmr.msra.gmra.mxu3 %v5858_v25 }
0x1526   : > { %6035 = vmatpush.msrb.mxu0 %v8920_v18  ;;  %6055 = vmatpush.msra.mxu1 %v8921_v20  ;;  %v11208_v32 = vpop.f32.mrf.mxu1 }
0x1527   : > { %8394 = vmatpush.msk.msrb.mxu2 %vm933_vm0, %v11109_v49  ;;  %8396 = vmatpush.msk.msra.mxu3 %vm933_vm0, %v11111_v46  ;;  %v8928_v49 = vld [vmem:[#allocation19 + $0x6b8] sm:$0xff] }
0x1528   : > { %6036 = vmatpush.msrb.mxu0 %v8922_v17  ;;  %6056 = vmatpush.msra.mxu1 %v8923_v14  ;;  %v8929_v46 = vld [vmem:[#allocation19 + $0x7b8] sm:$0xff] }
0x152a   : > { %6037 = vmatpush.msrb.mxu0 %v8924_v24  ;;  %6057 = vmatpush.msra.mxu1 %v8925_v0  ;;  %v8954_v0 = vld [vmem:[#allocation19 + $0xaf8] sm:$0xff] }
0x152c   : > { %6038 = vmatpush.msrb.mxu0 %v8926_v4  ;;  %6058 = vmatpush.msra.mxu1 %v8927_v6  ;;  %v8956_v4 = vld [vmem:[#allocation19 + $0xae0] sm:$0xff] }
0x152d   : > { %8390 = vmatmul.msk.f32.vlgmr.msra.gmra.mxu0 %vm929_vm1, %v8388_v42  ;;  %8392 = vmatmul.msk.f32.vlgmr.msrb.gmra.mxu1 %vm929_vm1, %v8388_v42  ;;  %v8955_v42 = vld [vmem:[#allocation19 + $0xbf8] sm:$0xff]  ;;  %v8957_v6 = vld [vmem:[#allocation19 + $0xbe0] sm:$0xff] }
0x152e   : > { %6039 = vmatpush.msrb.mxu0 %v8928_v49  ;;  %6059 = vmatpush.msra.mxu1 %v8929_v46  ;;  %v8959_v49 = vld [vmem:[#allocation19 + $0xbe8] sm:$0xff]  ;;  %v8960_v46 = vld [vmem:[#allocation19 + $0xad0] sm:$0xff] }
0x1530   : > { %6040 = vmatpush.msrb.mxu0 %v8930_v5  ;;  %6060 = vmatpush.msra.mxu1 %v8931_v61  ;;  %v8961_v5 = vld [vmem:[#allocation19 + $0xbd0] sm:$0xff]  ;;  %v8393_v61 = vld [vmem:[%s11551_s0 + $0x1a] sm:$0x3] }
0x1532   : > { %6041 = vmatpush.msrb.mxu0 %v8932_v15  ;;  %6061 = vmatpush.msra.mxu1 %v8933_v11  ;;  %v8398_v15 = vld [vmem:[%s11551_s0 + $0x1c] sm:$0x3]  ;;  %v8962_v11 = vld [vmem:[#allocation19 + $0xad8] sm:$0xff] }
0x1534   : > { %6042 = vmatpush.msrb.mxu0 %v8934_v40  ;;  %6062 = vmatpush.msra.mxu1 %v8935_v53  ;;  %v8963_v40 = vld [vmem:[#allocation19 + $0xbd8] sm:$0xff]  ;;  %v8964_v53 = vld [vmem:[#allocation19 + $0xac0] sm:$0xff] }
0x1536   : > { %6043 = vmatpush.msrb.mxu0 %v8936_v54  ;;  %6063 = vmatpush.msra.mxu1 %v8937_v30  ;;  %v8965_v54 = vld [vmem:[#allocation19 + $0xbc0] sm:$0xff]  ;;  %v8966_v30 = vld [vmem:[#allocation19 + $0xab0] sm:$0xff] }
0x1538   : > { %6044 = vmatpush.msrb.mxu0 %v8938_v62  ;;  %6064 = vmatpush.msra.mxu1 %v8939_v36  ;;  %v8967_v62 = vld [vmem:[#allocation19 + $0xbb0] sm:$0xff]  ;;  %v8968_v36 = vld [vmem:[#allocation19 + $0xac8] sm:$0xff] }
0x153a   : > { %6045 = vmatpush.msrb.mxu0 %v8940_v44  ;;  %6065 = vmatpush.msra.mxu1 %v8941_v21  ;;  %v8969_v44 = vld [vmem:[#allocation19 + $0xbc8] sm:$0xff]  ;;  %v8970_v21 = vld [vmem:[#allocation19 + $0xaa0] sm:$0xff] }
0x153c   : > { %6046 = vmatpush.msrb.mxu0 %v8942_v56  ;;  %6066 = vmatpush.msra.mxu1 %v8943_v48  ;;  %v8971_v56 = vld [vmem:[#allocation19 + $0xba0] sm:$0xff]  ;;  %v8972_v48 = vld [vmem:[#allocation19 + $0xab8] sm:$0xff] }
0x153e   : > { %6047 = vmatpush.msrb.mxu0 %v8944_v16  ;;  %6067 = vmatpush.msra.mxu1 %v8945_v23  ;;  %v8973_v16 = vld [vmem:[#allocation19 + $0xbb8] sm:$0xff]  ;;  %v8974_v23 = vld [vmem:[#allocation19 + $0xa90] sm:$0xff] }
0x1540   : > { %6048 = vmatpush.msrb.mxu0 %v8946_v22  ;;  %6068 = vmatpush.msra.mxu1 %v8947_v41  ;;  %v8975_v22 = vld [vmem:[#allocation19 + $0xb90] sm:$0xff]  ;;  %v8976_v41 = vld [vmem:[#allocation19 + $0xaa8] sm:$0xff] }
0x1542   : > { %6049 = vmatpush.msrb.mxu0 %v8948_v50  ;;  %6069 = vmatpush.msra.mxu1 %v8949_v51  ;;  %v8977_v50 = vld [vmem:[#allocation19 + $0xba8] sm:$0xff]  ;;  %v8978_v51 = vld [vmem:[#allocation19 + $0xa80] sm:$0xff] }
0x1544   : > { %6050 = vmatpush.msrb.mxu0 %v8950_v34  ;;  %6070 = vmatpush.msra.mxu1 %v8951_v29  ;;  %v8979_v34 = vld [vmem:[#allocation19 + $0xb80] sm:$0xff]  ;;  %v8980_v29 = vld [vmem:[#allocation19 + $0xa98] sm:$0xff] }
0x1546   : > { %8399 = vmatpush.msk.msra.mxu0 %vm933_vm0, %v11114_v26  ;;  %8401 = vmatpush.msk.msrb.mxu1 %vm933_vm0, %v11116_v43  ;;  %v8952_v26 = vld [vmem:[#allocation19 + $0xaf0] sm:$0xff] }
0x1547   : > { %v8953_v43 = vld [vmem:[#allocation19 + $0xbf0] sm:$0xff] }
0x15a1   : > { %v5878_v25 = vpop.f32.mrf.mxu0  ;;  %v5898_v18 = vpop.f32.mrf.mxu1 }
0x15a2   : > { %v5899_v20 = vadd.f32 %v5898_v18, %v5878_v25  ;;  %v8981_v25 = vld [vmem:[#allocation19 + $0xb98] sm:$0xff]  ;;  %v8982_v18 = vld [vmem:[#allocation19 + $0xa70] sm:$0xff] }
0x15a4   : > { %v11211_v17 = vadd.f32 %v5899_v20, %v11187_v12  ;;  %v8958_v12 = vld [vmem:[#allocation19 + $0xae8] sm:$0xff]  ;;  %v8983_v20 = vld [vmem:[#allocation19 + $0xb70] sm:$0xff] }
0x15aa   : > { %v5972_v14 = vpop.f32.mrf.mxu0  ;;  %v5992_v24 = vpop.f32.mrf.mxu1 }
0x15ab   : > { %6011 = vmatmul.f32.vlgmr.msra.gmra.mxu2 %v5972_v14  ;;  %6031 = vmatmul.f32.vlgmr.msrb.gmra.mxu3 %v5992_v24 }
0x15ac   : > { %6051 = vmatmul.f32.vlgmr.msrb.gmra.mxu0 %v5972_v14  ;;  %6071 = vmatmul.f32.vlgmr.msra.gmra.mxu1 %v5992_v24  ;;  %v8984_v14 = vld [vmem:[#allocation19 + $0xa88] sm:$0xff] }
0x15ad   : > { %6183 = vmatpush.msra.mxu2 %v8952_v26  ;;  %6203 = vmatpush.msrb.mxu3 %v8953_v43  ;;  %v8985_v24 = vld [vmem:[#allocation19 + $0xb88] sm:$0xff]  ;;  %v8986_v26 = vld [vmem:[#allocation19 + $0xa60] sm:$0xff] }
0x15ae   : > { %6223 = vmatpush.msrb.mxu0 %v8954_v0  ;;  %6243 = vmatpush.msra.mxu1 %v8955_v42  ;;  %v8987_v43 = vld [vmem:[#allocation19 + $0xb60] sm:$0xff]  ;;  %v8988_v0 = vld [vmem:[#allocation19 + $0xa78] sm:$0xff] }
0x15af   : > { %6184 = vmatpush.msra.mxu2 %v8956_v4  ;;  %6204 = vmatpush.msrb.mxu3 %v8957_v6  ;;  %v8989_v42 = vld [vmem:[#allocation19 + $0xb78] sm:$0xff]  ;;  %v8990_v4 = vld [vmem:[#allocation19 + $0xa50] sm:$0xff] }
0x15b0   : > { %6224 = vmatpush.msrb.mxu0 %v8958_v12  ;;  %6244 = vmatpush.msra.mxu1 %v8959_v49  ;;  %v8991_v6 = vld [vmem:[#allocation19 + $0xb50] sm:$0xff]  ;;  %v8992_v12 = vld [vmem:[#allocation19 + $0xa68] sm:$0xff] }
0x15b1   : > { %6185 = vmatpush.msra.mxu2 %v8960_v46  ;;  %6205 = vmatpush.msrb.mxu3 %v8961_v5  ;;  %v8993_v49 = vld [vmem:[#allocation19 + $0xb68] sm:$0xff]  ;;  %v8994_v46 = vld [vmem:[#allocation19 + $0xa40] sm:$0xff] }
0x15b2   : > { %6225 = vmatpush.msrb.mxu0 %v8962_v11  ;;  %6245 = vmatpush.msra.mxu1 %v8963_v40  ;;  %v8995_v5 = vld [vmem:[#allocation19 + $0xb40] sm:$0xff]  ;;  %v8998_v11 = vld [vmem:[#allocation19 + $0xa30] sm:$0xff] }
0x15b3   : > { %6186 = vmatpush.msra.mxu2 %v8964_v53  ;;  %6206 = vmatpush.msrb.mxu3 %v8965_v54  ;;  %v8999_v40 = vld [vmem:[#allocation19 + $0xb30] sm:$0xff]  ;;  %v9000_v53 = vld [vmem:[#allocation19 + $0xa48] sm:$0xff] }
0x15b4   : > { %8395 = vmatmul.msk.f32.vlgmr.msrb.gmra.mxu2 %vm929_vm1, %v8393_v61  ;;  %8397 = vmatmul.msk.f32.vlgmr.msra.gmra.mxu3 %vm929_vm1, %v8393_v61  ;;  %v8996_v61 = vld [vmem:[#allocation19 + $0xa58] sm:$0xff]  ;;  %v9001_v54 = vld [vmem:[#allocation19 + $0xb48] sm:$0xff] }
0x15b5   : > { %8400 = vmatmul.msk.f32.vlgmr.msra.gmra.mxu0 %vm929_vm1, %v8398_v15  ;;  %8402 = vmatmul.msk.f32.vlgmr.msrb.gmra.mxu1 %vm929_vm1, %v8398_v15  ;;  %v8997_v15 = vld [vmem:[#allocation19 + $0xb58] sm:$0xff] }
0x15b6   : > { %6187 = vmatpush.msra.mxu2 %v8966_v30  ;;  %6207 = vmatpush.msrb.mxu3 %v8967_v62  ;;  %v9002_v30 = vld [vmem:[#allocation19 + $0xa20] sm:$0xff] }
0x15b7   : > { %6226 = vmatpush.msrb.mxu0 %v8968_v36  ;;  %6246 = vmatpush.msra.mxu1 %v8969_v44  ;;  %v9003_v62 = vld [vmem:[#allocation19 + $0xb20] sm:$0xff]  ;;  %v9004_v36 = vld [vmem:[#allocation19 + $0xa38] sm:$0xff] }
0x15b8   : > { %6188 = vmatpush.msra.mxu2 %v8970_v21  ;;  %6208 = vmatpush.msrb.mxu3 %v8971_v56  ;;  %v9005_v44 = vld [vmem:[#allocation19 + $0xb38] sm:$0xff]  ;;  %v9006_v21 = vld [vmem:[#allocation19 + $0xa10] sm:$0xff] }
0x15b9   : > { %6227 = vmatpush.msrb.mxu0 %v8972_v48  ;;  %6247 = vmatpush.msra.mxu1 %v8973_v16  ;;  %v9007_v56 = vld [vmem:[#allocation19 + $0xb10] sm:$0xff]  ;;  %v9008_v48 = vld [vmem:[#allocation19 + $0xa28] sm:$0xff] }
0x15ba   : > { %6189 = vmatpush.msra.mxu2 %v8974_v23  ;;  %6209 = vmatpush.msrb.mxu3 %v8975_v22  ;;  %v9009_v16 = vld [vmem:[#allocation19 + $0xb28] sm:$0xff]  ;;  %v9010_v23 = vld [vmem:[#allocation19 + $0xa00] sm:$0xff] }
0x15bb   : > { %6228 = vmatpush.msrb.mxu0 %v8976_v41  ;;  %6248 = vmatpush.msra.mxu1 %v8977_v50  ;;  %v9011_v22 = vld [vmem:[#allocation19 + $0xb00] sm:$0xff]  ;;  %v9012_v41 = vld [vmem:[#allocation19 + $0xa18] sm:$0xff] }
0x15bc   : > { %6190 = vmatpush.msra.mxu2 %v8978_v51  ;;  %6210 = vmatpush.msrb.mxu3 %v8979_v34  ;;  %v9013_v50 = vld [vmem:[#allocation19 + $0xb18] sm:$0xff]  ;;  %v9014_v51 = vld [vmem:[#allocation19 + $0xa08] sm:$0xff] }
0x15bd   : > { %6229 = vmatpush.msrb.mxu0 %v8980_v29  ;;  %6249 = vmatpush.msra.mxu1 %v8981_v25  ;;  %v9015_v34 = vld [vmem:[#allocation19 + $0xb08] sm:$0xff]  ;;  %v9016_v29 = vld [vmem:[#allocation19 + $0xcf0] sm:$0xff] }
0x15be   : > { %6191 = vmatpush.msra.mxu2 %v8982_v18  ;;  %6211 = vmatpush.msrb.mxu3 %v8983_v20  ;;  %v9017_v25 = vld [vmem:[#allocation19 + $0xdf0] sm:$0xff]  ;;  %v9018_v18 = vld [vmem:[#allocation19 + $0xce0] sm:$0xff] }
0x15bf   : > { %6230 = vmatpush.msrb.mxu0 %v8984_v14  ;;  %6250 = vmatpush.msra.mxu1 %v8985_v24  ;;  %v9019_v20 = vld [vmem:[#allocation19 + $0xde0] sm:$0xff]  ;;  %v9021_v14 = vld [vmem:[#allocation19 + $0xdd0] sm:$0xff] }
0x15c0   : > { %6192 = vmatpush.msra.mxu2 %v8986_v26  ;;  %6212 = vmatpush.msrb.mxu3 %v8987_v43  ;;  %v9023_v24 = vld [vmem:[#allocation19 + $0xdc0] sm:$0xff]  ;;  %v9024_v26 = vld [vmem:[#allocation19 + $0xcb0] sm:$0xff] }
0x15c1   : > { %6231 = vmatpush.msrb.mxu0 %v8988_v0  ;;  %6251 = vmatpush.msra.mxu1 %v8989_v42  ;;  %v9025_v43 = vld [vmem:[#allocation19 + $0xdb0] sm:$0xff]  ;;  %v9026_v0 = vld [vmem:[#allocation19 + $0xca0] sm:$0xff] }
0x15c2   : > { %6193 = vmatpush.msra.mxu2 %v8990_v4  ;;  %6213 = vmatpush.msrb.mxu3 %v8991_v6  ;;  %v9027_v42 = vld [vmem:[#allocation19 + $0xda0] sm:$0xff]  ;;  %v9028_v4 = vld [vmem:[#allocation19 + $0xc90] sm:$0xff] }
0x15c3   : > { %6232 = vmatpush.msrb.mxu0 %v8992_v12  ;;  %6252 = vmatpush.msra.mxu1 %v8993_v49  ;;  %v9029_v6 = vld [vmem:[#allocation19 + $0xd90] sm:$0xff]  ;;  %v9030_v12 = vld [vmem:[#allocation19 + $0xc80] sm:$0xff] }
0x15c4   : > { %6194 = vmatpush.msra.mxu2 %v8994_v46  ;;  %6214 = vmatpush.msrb.mxu3 %v8995_v5  ;;  %v9031_v49 = vld [vmem:[#allocation19 + $0xd80] sm:$0xff]  ;;  %v9032_v46 = vld [vmem:[#allocation19 + $0xc70] sm:$0xff] }
0x15c5   : > { %6233 = vmatpush.msrb.mxu0 %v8996_v61  ;;  %6253 = vmatpush.msra.mxu1 %v8997_v15  ;;  %v9033_v5 = vld [vmem:[#allocation19 + $0xd70] sm:$0xff]  ;;  %v9034_v61 = vld [vmem:[#allocation19 + $0xc60] sm:$0xff] }
0x15c6   : > { %6195 = vmatpush.msra.mxu2 %v8998_v11  ;;  %6215 = vmatpush.msrb.mxu3 %v8999_v40  ;;  %v9035_v15 = vld [vmem:[#allocation19 + $0xd60] sm:$0xff]  ;;  %v9036_v11 = vld [vmem:[#allocation19 + $0xc50] sm:$0xff] }
0x15c7   : > { %6234 = vmatpush.msrb.mxu0 %v9000_v53  ;;  %6254 = vmatpush.msra.mxu1 %v9001_v54  ;;  %v9037_v40 = vld [vmem:[#allocation19 + $0xd50] sm:$0xff]  ;;  %v9038_v53 = vld [vmem:[#allocation19 + $0xc40] sm:$0xff] }
0x15c8   : > { %6196 = vmatpush.msra.mxu2 %v9002_v30  ;;  %6216 = vmatpush.msrb.mxu3 %v9003_v62  ;;  %v9039_v54 = vld [vmem:[#allocation19 + $0xd40] sm:$0xff]  ;;  %v9040_v30 = vld [vmem:[#allocation19 + $0xc30] sm:$0xff] }
0x15c9   : > { %6235 = vmatpush.msrb.mxu0 %v9004_v36  ;;  %6255 = vmatpush.msra.mxu1 %v9005_v44  ;;  %v9041_v62 = vld [vmem:[#allocation19 + $0xd30] sm:$0xff]  ;;  %v9042_v36 = vld [vmem:[#allocation19 + $0xc20] sm:$0xff] }
0x15ca   : > { %6197 = vmatpush.msra.mxu2 %v9006_v21  ;;  %6217 = vmatpush.msrb.mxu3 %v9007_v56  ;;  %v9043_v44 = vld [vmem:[#allocation19 + $0xd20] sm:$0xff]  ;;  %v9044_v21 = vld [vmem:[#allocation19 + $0xc10] sm:$0xff] }
0x15cb   : > { %6236 = vmatpush.msrb.mxu0 %v9008_v48  ;;  %6256 = vmatpush.msra.mxu1 %v9009_v16  ;;  %v9045_v56 = vld [vmem:[#allocation19 + $0xd10] sm:$0xff]  ;;  %v9046_v48 = vld [vmem:[#allocation19 + $0xc00] sm:$0xff] }
0x15cc   : > { %6198 = vmatpush.msra.mxu2 %v9010_v23  ;;  %6218 = vmatpush.msrb.mxu3 %v9011_v22  ;;  %v9047_v16 = vld [vmem:[#allocation19 + $0xd00] sm:$0xff]  ;;  %v11227_v23 = vpop.f32.mrf.mxu2  ;;  %v11229_v22 = vpop.f32.mrf.mxu3 }
0x15cd   : > { %6237 = vmatpush.msrb.mxu0 %v9012_v41  ;;  %6257 = vmatpush.msra.mxu1 %v9013_v50 }
0x15ce   : > { %8404 = vmatpush.msk.msrb.mxu2 %vm933_vm0, %v11119_v19  ;;  %8406 = vmatpush.msk.msra.mxu3 %vm933_vm0, %v11121_v31  ;;  %v9020_v19 = vld [vmem:[#allocation19 + $0xcd0] sm:$0xff]  ;;  %v9022_v31 = vld [vmem:[#allocation19 + $0xcc0] sm:$0xff] }
0x15cf   : > { %6238 = vmatpush.msrb.mxu0 %v9014_v51  ;;  %6258 = vmatpush.msra.mxu1 %v9015_v34 }
0x15d1   : > { %6317 = vmatpush.msra.mxu0 %v9016_v29  ;;  %6337 = vmatpush.msrb.mxu1 %v9017_v25 }
0x15d3   : > { %6318 = vmatpush.msra.mxu0 %v9018_v18  ;;  %6338 = vmatpush.msrb.mxu1 %v9019_v20 }
0x15d5   : > { %6319 = vmatpush.msra.mxu0 %v9020_v19  ;;  %6339 = vmatpush.msrb.mxu1 %v9021_v14  ;;  %v9048_v14 = vld [vmem:[#allocation19 + $0xcf8] sm:$0xff] }
0x15d7   : > { %6320 = vmatpush.msra.mxu0 %v9022_v31  ;;  %6340 = vmatpush.msrb.mxu1 %v9023_v24  ;;  %v9049_v31 = vld [vmem:[#allocation19 + $0xdf8] sm:$0xff]  ;;  %v9050_v24 = vld [vmem:[#allocation19 + $0xce8] sm:$0xff] }
0x15d9   : > { %6321 = vmatpush.msra.mxu0 %v9024_v26  ;;  %6341 = vmatpush.msrb.mxu1 %v9025_v43  ;;  %v9051_v26 = vld [vmem:[#allocation19 + $0xde8] sm:$0xff]  ;;  %v9052_v43 = vld [vmem:[#allocation19 + $0xcd8] sm:$0xff] }
0x15db   : > { %6322 = vmatpush.msra.mxu0 %v9026_v0  ;;  %6342 = vmatpush.msrb.mxu1 %v9027_v42  ;;  %v9053_v0 = vld [vmem:[#allocation19 + $0xdd8] sm:$0xff] }
0x15dc   : > { %v9056_v42 = vld [vmem:[#allocation19 + $0xcb8] sm:$0xff] }
0x15dd   : > { %6323 = vmatpush.msra.mxu0 %v9028_v4  ;;  %6343 = vmatpush.msrb.mxu1 %v9029_v6  ;;  %v9057_v4 = vld [vmem:[#allocation19 + $0xdb8] sm:$0xff]  ;;  %v9058_v6 = vld [vmem:[#allocation19 + $0xca8] sm:$0xff] }
0x15df   : > { %6324 = vmatpush.msra.mxu0 %v9030_v12  ;;  %6344 = vmatpush.msrb.mxu1 %v9031_v49  ;;  %v9059_v12 = vld [vmem:[#allocation19 + $0xda8] sm:$0xff]  ;;  %v9060_v49 = vld [vmem:[#allocation19 + $0xc98] sm:$0xff] }
0x15e1   : > { %6325 = vmatpush.msra.mxu0 %v9032_v46  ;;  %6345 = vmatpush.msrb.mxu1 %v9033_v5  ;;  %v9061_v46 = vld [vmem:[#allocation19 + $0xd98] sm:$0xff]  ;;  %v9062_v5 = vld [vmem:[#allocation19 + $0xc88] sm:$0xff] }
0x15e3   : > { %6326 = vmatpush.msra.mxu0 %v9034_v61  ;;  %6346 = vmatpush.msrb.mxu1 %v9035_v15  ;;  %v9063_v61 = vld [vmem:[#allocation19 + $0xd88] sm:$0xff]  ;;  %v9064_v15 = vld [vmem:[#allocation19 + $0xc78] sm:$0xff] }
0x15e5   : > { %6327 = vmatpush.msra.mxu0 %v9036_v11  ;;  %6347 = vmatpush.msrb.mxu1 %v9037_v40  ;;  %v9065_v11 = vld [vmem:[#allocation19 + $0xd78] sm:$0xff]  ;;  %v9066_v40 = vld [vmem:[#allocation19 + $0xc68] sm:$0xff] }
0x15e7   : > { %6328 = vmatpush.msra.mxu0 %v9038_v53  ;;  %6348 = vmatpush.msrb.mxu1 %v9039_v54  ;;  %v9067_v53 = vld [vmem:[#allocation19 + $0xd68] sm:$0xff]  ;;  %v9068_v54 = vld [vmem:[#allocation19 + $0xc58] sm:$0xff] }
0x15e9   : > { %6329 = vmatpush.msra.mxu0 %v9040_v30  ;;  %6349 = vmatpush.msrb.mxu1 %v9041_v62  ;;  %v9069_v30 = vld [vmem:[#allocation19 + $0xd58] sm:$0xff]  ;;  %v9070_v62 = vld [vmem:[#allocation19 + $0xc48] sm:$0xff] }
0x15eb   : > { %6330 = vmatpush.msra.mxu0 %v9042_v36  ;;  %6350 = vmatpush.msrb.mxu1 %v9043_v44  ;;  %v9071_v36 = vld [vmem:[#allocation19 + $0xd48] sm:$0xff]  ;;  %v9072_v44 = vld [vmem:[#allocation19 + $0xc38] sm:$0xff] }
0x15ed   : > { %6331 = vmatpush.msra.mxu0 %v9044_v21  ;;  %6351 = vmatpush.msrb.mxu1 %v9045_v56  ;;  %v9073_v21 = vld [vmem:[#allocation19 + $0xd38] sm:$0xff]  ;;  %v9074_v56 = vld [vmem:[#allocation19 + $0xc28] sm:$0xff] }
0x15ef   : > { %6332 = vmatpush.msra.mxu0 %v9046_v48  ;;  %6352 = vmatpush.msrb.mxu1 %v9047_v16  ;;  %v9075_v48 = vld [vmem:[#allocation19 + $0xd28] sm:$0xff]  ;;  %v9076_v16 = vld [vmem:[#allocation19 + $0xc18] sm:$0xff] }
0x1629   : > { %v6052_v41 = vpop.f32.mrf.mxu0  ;;  %v6072_v50 = vpop.f32.mrf.mxu1 }
0x162a   : > { %v11231_v51 = vadd.f32 %v6072_v50, %v6052_v41  ;;  %v9077_v41 = vld [vmem:[#allocation19 + $0xd18] sm:$0xff]  ;;  %v9078_v50 = vld [vmem:[#allocation19 + $0xc08] sm:$0xff] }
0x162e   : > { %v6012_v34 = vpop.f32.mrf.mxu2  ;;  %v6032_v29 = vpop.f32.mrf.mxu3 }
0x162f   : > { %v6033_v25 = vadd.f32 %v6032_v29, %v6012_v34  ;;  %v9079_v34 = vld [vmem:[#allocation19 + $0xd08] sm:$0xff]  ;;  %v9080_v29 = vld [vmem:[#allocation19 + $0xef0] sm:$0xff] }
0x1631   : > { %v11234_v18 = vadd.f32 %v6033_v25, %v11211_v17  ;;  %v8403_v17 = vld [vmem:[%s11551_s0 + $0x1e] sm:$0x3]  ;;  %v9081_v25 = vld [vmem:[#allocation19 + $0xff0] sm:$0xff] }
0x1632   : > { %v6160_v20 = vpop.f32.mrf.mxu0  ;;  %v6180_v19 = vpop.f32.mrf.mxu1 }
0x1633   : > { %6199 = vmatmul.f32.vlgmr.msra.gmra.mxu2 %v6160_v20  ;;  %6219 = vmatmul.f32.vlgmr.msrb.gmra.mxu3 %v6180_v19 }
0x1634   : > { %6239 = vmatmul.f32.vlgmr.msrb.gmra.mxu0 %v6160_v20  ;;  %6259 = vmatmul.f32.vlgmr.msra.gmra.mxu1 %v6180_v19  ;;  %v9082_v20 = vld [vmem:[#allocation19 + $0xee0] sm:$0xff] }
0x1635   : > { %8409 = vmatpush.msk.msrb.mxu0 %vm933_vm0, %v11124_v7  ;;  %8411 = vmatpush.msk.msra.mxu1 %vm933_vm0, %v11126_v3  ;;  %v9054_v7 = vld [vmem:[#allocation19 + $0xcc8] sm:$0xff]  ;;  %v9083_v19 = vld [vmem:[#allocation19 + $0xfe0] sm:$0xff] }
0x1636   : > { %6357 = vmatpush.msra.mxu2 %v9048_v14  ;;  %6377 = vmatpush.msrb.mxu3 %v9049_v31  ;;  %v9055_v3 = vld [vmem:[#allocation19 + $0xdc8] sm:$0xff]  ;;  %v9084_v14 = vld [vmem:[#allocation19 + $0xed0] sm:$0xff] }
0x1637   : > { %v9085_v31 = vld [vmem:[#allocation19 + $0xfd0] sm:$0xff] }
0x1638   : > { %6358 = vmatpush.msra.mxu2 %v9050_v24  ;;  %6378 = vmatpush.msrb.mxu3 %v9051_v26  ;;  %v9087_v24 = vld [vmem:[#allocation19 + $0xfc0] sm:$0xff]  ;;  %v9088_v26 = vld [vmem:[#allocation19 + $0xeb0] sm:$0xff] }
0x163a   : > { %6359 = vmatpush.msra.mxu2 %v9052_v43  ;;  %6379 = vmatpush.msrb.mxu3 %v9053_v0  ;;  %v9089_v43 = vld [vmem:[#allocation19 + $0xfb0] sm:$0xff]  ;;  %v9090_v0 = vld [vmem:[#allocation19 + $0xea0] sm:$0xff] }
0x163b   : > { %8405 = vmatmul.msk.f32.vlgmr.msrb.gmra.mxu2 %vm929_vm1, %v8403_v17  ;;  %8407 = vmatmul.msk.f32.vlgmr.msra.gmra.mxu3 %vm929_vm1, %v8403_v17  ;;  %v9086_v17 = vld [vmem:[#allocation19 + $0xec0] sm:$0xff] }
0x163c   : > { %6360 = vmatpush.msra.mxu2 %v9054_v7  ;;  %6380 = vmatpush.msrb.mxu3 %v9055_v3  ;;  %v9091_v7 = vld [vmem:[#allocation19 + $0xfa0] sm:$0xff]  ;;  %v9092_v3 = vld [vmem:[#allocation19 + $0xe90] sm:$0xff] }
0x163e   : > { %6361 = vmatpush.msra.mxu2 %v9056_v42  ;;  %6381 = vmatpush.msrb.mxu3 %v9057_v4  ;;  %v9093_v42 = vld [vmem:[#allocation19 + $0xf90] sm:$0xff]  ;;  %v9094_v4 = vld [vmem:[#allocation19 + $0xe80] sm:$0xff] }
0x1640   : > { %6362 = vmatpush.msra.mxu2 %v9058_v6  ;;  %6382 = vmatpush.msrb.mxu3 %v9059_v12  ;;  %v9095_v6 = vld [vmem:[#allocation19 + $0xf80] sm:$0xff]  ;;  %v9096_v12 = vld [vmem:[#allocation19 + $0xe70] sm:$0xff] }
0x1642   : > { %6363 = vmatpush.msra.mxu2 %v9060_v49  ;;  %6383 = vmatpush.msrb.mxu3 %v9061_v46  ;;  %v9097_v49 = vld [vmem:[#allocation19 + $0xf70] sm:$0xff]  ;;  %v9098_v46 = vld [vmem:[#allocation19 + $0xe60] sm:$0xff] }
0x1644   : > { %6364 = vmatpush.msra.mxu2 %v9062_v5  ;;  %6384 = vmatpush.msrb.mxu3 %v9063_v61  ;;  %v9099_v5 = vld [vmem:[#allocation19 + $0xf60] sm:$0xff]  ;;  %v9100_v61 = vld [vmem:[#allocation19 + $0xe50] sm:$0xff] }
0x1646   : > { %6365 = vmatpush.msra.mxu2 %v9064_v15  ;;  %6385 = vmatpush.msrb.mxu3 %v9065_v11  ;;  %v9101_v15 = vld [vmem:[#allocation19 + $0xf50] sm:$0xff]  ;;  %v9102_v11 = vld [vmem:[#allocation19 + $0xe40] sm:$0xff] }
0x1648   : > { %6366 = vmatpush.msra.mxu2 %v9066_v40  ;;  %6386 = vmatpush.msrb.mxu3 %v9067_v53  ;;  %v9103_v40 = vld [vmem:[#allocation19 + $0xf40] sm:$0xff]  ;;  %v9104_v53 = vld [vmem:[#allocation19 + $0xe30] sm:$0xff] }
0x164a   : > { %6367 = vmatpush.msra.mxu2 %v9068_v54  ;;  %6387 = vmatpush.msrb.mxu3 %v9069_v30  ;;  %v9105_v54 = vld [vmem:[#allocation19 + $0xf30] sm:$0xff]  ;;  %v9106_v30 = vld [vmem:[#allocation19 + $0xe20] sm:$0xff] }
0x164c   : > { %6368 = vmatpush.msra.mxu2 %v9070_v62  ;;  %6388 = vmatpush.msrb.mxu3 %v9071_v36  ;;  %v9107_v62 = vld [vmem:[#allocation19 + $0xf20] sm:$0xff]  ;;  %v9108_v36 = vld [vmem:[#allocation19 + $0xe10] sm:$0xff] }
0x164e   : > { %6369 = vmatpush.msra.mxu2 %v9072_v44  ;;  %6389 = vmatpush.msrb.mxu3 %v9073_v21  ;;  %v9109_v44 = vld [vmem:[#allocation19 + $0xf10] sm:$0xff]  ;;  %v9110_v21 = vld [vmem:[#allocation19 + $0xe00] sm:$0xff] }
0x1650   : > { %6370 = vmatpush.msra.mxu2 %v9074_v56  ;;  %6390 = vmatpush.msrb.mxu3 %v9075_v48  ;;  %v9111_v56 = vld [vmem:[#allocation19 + $0xf00] sm:$0xff]  ;;  %v6106_v48 = vpop.f32.mrf.mxu2 }
0x1652   : > { %6371 = vmatpush.msra.mxu2 %v9076_v16  ;;  %6391 = vmatpush.msrb.mxu3 %v9077_v41  ;;  %v11245_v16 = vpop.f32.mrf.mxu3 }
0x1654   : > { %6372 = vmatpush.msra.mxu2 %v9078_v50  ;;  %6392 = vmatpush.msrb.mxu3 %v9079_v34  ;;  %v6129_v34 = vadd.f32 %v6106_v48, %v11234_v18  ;;  %v8408_v18 = vld [vmem:[%s11551_s0 + $0x20] sm:$0x3]  ;;  %v9142_v48 = vld [vmem:[#allocation19 + $0xe08] sm:$0xff] }
0x1656   : > { %6451 = vmatpush.msrb.mxu2 %v9080_v29  ;;  %6471 = vmatpush.msra.mxu3 %v9081_v25 }
0x1658   : > { %6452 = vmatpush.msrb.mxu2 %v9082_v20  ;;  %6472 = vmatpush.msra.mxu3 %v9083_v19 }
0x165a   : > { %6453 = vmatpush.msrb.mxu2 %v9084_v14  ;;  %6473 = vmatpush.msra.mxu3 %v9085_v31  ;;  %v9112_v14 = vld [vmem:[#allocation19 + $0xef8] sm:$0xff] }
0x165b   : > { %v9113_v31 = vld [vmem:[#allocation19 + $0xff8] sm:$0xff] }
0x165c   : > { %6454 = vmatpush.msrb.mxu2 %v9086_v17  ;;  %6474 = vmatpush.msra.mxu3 %v9087_v24  ;;  %v9114_v17 = vld [vmem:[#allocation19 + $0xee8] sm:$0xff] }
0x165d   : > { %v9115_v24 = vld [vmem:[#allocation19 + $0xfe8] sm:$0xff] }
0x165e   : > { %6455 = vmatpush.msrb.mxu2 %v9088_v26  ;;  %6475 = vmatpush.msra.mxu3 %v9089_v43  ;;  %v9116_v26 = vld [vmem:[#allocation19 + $0xed8] sm:$0xff] }
0x165f   : > { %v9117_v43 = vld [vmem:[#allocation19 + $0xfd8] sm:$0xff] }
0x1660   : > { %6456 = vmatpush.msrb.mxu2 %v9090_v0  ;;  %6476 = vmatpush.msra.mxu3 %v9091_v7  ;;  %v9120_v0 = vld [vmem:[#allocation19 + $0xeb8] sm:$0xff] }
0x1661   : > { %v9121_v7 = vld [vmem:[#allocation19 + $0xfb8] sm:$0xff] }
0x1662   : > { %6457 = vmatpush.msrb.mxu2 %v9092_v3  ;;  %6477 = vmatpush.msra.mxu3 %v9093_v42  ;;  %v9122_v3 = vld [vmem:[#allocation19 + $0xea8] sm:$0xff] }
0x1663   : > { %v9123_v42 = vld [vmem:[#allocation19 + $0xfa8] sm:$0xff] }
0x1664   : > { %6458 = vmatpush.msrb.mxu2 %v9094_v4  ;;  %6478 = vmatpush.msra.mxu3 %v9095_v6  ;;  %v9124_v4 = vld [vmem:[#allocation19 + $0xe98] sm:$0xff] }
0x1665   : > { %v9125_v6 = vld [vmem:[#allocation19 + $0xf98] sm:$0xff] }
0x1666   : > { %6459 = vmatpush.msrb.mxu2 %v9096_v12  ;;  %6479 = vmatpush.msra.mxu3 %v9097_v49  ;;  %v9126_v12 = vld [vmem:[#allocation19 + $0xe88] sm:$0xff] }
0x1667   : > { %v9127_v49 = vld [vmem:[#allocation19 + $0xf88] sm:$0xff] }
0x1668   : > { %6460 = vmatpush.msrb.mxu2 %v9098_v46  ;;  %6480 = vmatpush.msra.mxu3 %v9099_v5  ;;  %v9128_v46 = vld [vmem:[#allocation19 + $0xe78] sm:$0xff] }
0x1669   : > { %v9129_v5 = vld [vmem:[#allocation19 + $0xf78] sm:$0xff] }
0x166a   : > { %6461 = vmatpush.msrb.mxu2 %v9100_v61  ;;  %6481 = vmatpush.msra.mxu3 %v9101_v15  ;;  %v9130_v61 = vld [vmem:[#allocation19 + $0xe68] sm:$0xff] }
0x166b   : > { %v9131_v15 = vld [vmem:[#allocation19 + $0xf68] sm:$0xff] }
0x166c   : > { %6462 = vmatpush.msrb.mxu2 %v9102_v11  ;;  %6482 = vmatpush.msra.mxu3 %v9103_v40  ;;  %v9132_v11 = vld [vmem:[#allocation19 + $0xe58] sm:$0xff] }
0x166d   : > { %v9133_v40 = vld [vmem:[#allocation19 + $0xf58] sm:$0xff] }
0x166e   : > { %6463 = vmatpush.msrb.mxu2 %v9104_v53  ;;  %6483 = vmatpush.msra.mxu3 %v9105_v54  ;;  %v9134_v53 = vld [vmem:[#allocation19 + $0xe48] sm:$0xff] }
0x166f   : > { %v9135_v54 = vld [vmem:[#allocation19 + $0xf48] sm:$0xff] }
0x1670   : > { %6464 = vmatpush.msrb.mxu2 %v9106_v30  ;;  %6484 = vmatpush.msra.mxu3 %v9107_v62  ;;  %v9136_v30 = vld [vmem:[#allocation19 + $0xe38] sm:$0xff] }
0x1671   : > { %v9137_v62 = vld [vmem:[#allocation19 + $0xf38] sm:$0xff] }
0x1672   : > { %6465 = vmatpush.msrb.mxu2 %v9108_v36  ;;  %6485 = vmatpush.msra.mxu3 %v9109_v44  ;;  %v9138_v36 = vld [vmem:[#allocation19 + $0xe28] sm:$0xff] }
0x1673   : > { %v9139_v44 = vld [vmem:[#allocation19 + $0xf28] sm:$0xff] }
0x1674   : > { %6466 = vmatpush.msrb.mxu2 %v9110_v21  ;;  %6486 = vmatpush.msra.mxu3 %v9111_v56  ;;  %v9140_v21 = vld [vmem:[#allocation19 + $0xe18] sm:$0xff] }
0x1675   : > { %v9141_v56 = vld [vmem:[#allocation19 + $0xf18] sm:$0xff] }
0x16b6   : > { %v6200_v41 = vpop.f32.mrf.mxu2  ;;  %v6220_v50 = vpop.f32.mrf.mxu3 }
0x16b7   : > { %v6221_v29 = vadd.f32 %v6220_v50, %v6200_v41  ;;  %v9143_v41 = vld [vmem:[#allocation19 + $0xf08] sm:$0xff]  ;;  %v9144_v50 = vld [vmem:[#allocation19 + $0x10f0] sm:$0xff] }
0x16b9   : > { %v11248_v25 = vadd.f32 %v6221_v29, %v6129_v34  ;;  %v9145_v34 = vld [vmem:[#allocation19 + $0x11f0] sm:$0xff]  ;;  %v9146_v29 = vld [vmem:[#allocation19 + $0x10e0] sm:$0xff] }
0x16be   : > { %v6294_v20 = vpop.f32.mrf.mxu2  ;;  %v6314_v19 = vpop.f32.mrf.mxu3 }
0x16bf   : > { %6333 = vmatmul.f32.vlgmr.msra.gmra.mxu0 %v6294_v20  ;;  %6353 = vmatmul.f32.vlgmr.msrb.gmra.mxu1 %v6314_v19 }
0x16c0   : > { %6373 = vmatmul.f32.vlgmr.msra.gmra.mxu2 %v6294_v20  ;;  %6393 = vmatmul.f32.vlgmr.msrb.gmra.mxu3 %v6314_v19  ;;  %v9147_v20 = vld [vmem:[#allocation19 + $0x11e0] sm:$0xff]  ;;  %v9148_v19 = vld [vmem:[#allocation19 + $0x10d0] sm:$0xff] }
0x16c1   : > { %8414 = vmatpush.msk.msra.mxu2 %vm933_vm0, %v11129_v55  ;;  %8416 = vmatpush.msk.msrb.mxu3 %vm933_vm0, %v11131_v9  ;;  %v9118_v55 = vld [vmem:[#allocation19 + $0xec8] sm:$0xff] }
0x16c2   : > { %6491 = vmatpush.msra.mxu0 %v9112_v14  ;;  %6511 = vmatpush.msrb.mxu1 %v9113_v31  ;;  %v9119_v9 = vld [vmem:[#allocation19 + $0xfc8] sm:$0xff]  ;;  %v9149_v14 = vld [vmem:[#allocation19 + $0x11d0] sm:$0xff]  ;;  %v9150_v31 = vld [vmem:[#allocation19 + $0x10c0] sm:$0xff] }
0x16c4   : > { %6492 = vmatpush.msra.mxu0 %v9114_v17  ;;  %6512 = vmatpush.msrb.mxu1 %v9115_v24  ;;  %v9152_v17 = vld [vmem:[#allocation19 + $0x10b0] sm:$0xff] }
0x16c5   : > { %v9153_v24 = vld [vmem:[#allocation19 + $0x11b0] sm:$0xff] }
0x16c6   : > { %6493 = vmatpush.msra.mxu0 %v9116_v26  ;;  %6513 = vmatpush.msrb.mxu1 %v9117_v43  ;;  %v9154_v26 = vld [vmem:[#allocation19 + $0x10a0] sm:$0xff] }
0x16c7   : > { %8410 = vmatmul.msk.f32.vlgmr.msrb.gmra.mxu0 %vm929_vm1, %v8408_v18  ;;  %8412 = vmatmul.msk.f32.vlgmr.msra.gmra.mxu1 %vm929_vm1, %v8408_v18  ;;  %v9151_v18 = vld [vmem:[#allocation19 + $0x11c0] sm:$0xff] }
0x16c8   : > { %6494 = vmatpush.msra.mxu0 %v9118_v55  ;;  %6514 = vmatpush.msrb.mxu1 %v9119_v9  ;;  %v9155_v43 = vld [vmem:[#allocation19 + $0x11a0] sm:$0xff]  ;;  %v9156_v55 = vld [vmem:[#allocation19 + $0x1090] sm:$0xff] }
0x16c9   : > { %v9157_v9 = vld [vmem:[#allocation19 + $0x1190] sm:$0xff] }
0x16ca   : > { %6495 = vmatpush.msra.mxu0 %v9120_v0  ;;  %6515 = vmatpush.msrb.mxu1 %v9121_v7  ;;  %v9158_v0 = vld [vmem:[#allocation19 + $0x1080] sm:$0xff] }
0x16cb   : > { %v9159_v7 = vld [vmem:[#allocation19 + $0x1180] sm:$0xff] }
0x16cc   : > { %6496 = vmatpush.msra.mxu0 %v9122_v3  ;;  %6516 = vmatpush.msrb.mxu1 %v9123_v42  ;;  %v9160_v3 = vld [vmem:[#allocation19 + $0x1070] sm:$0xff] }
0x16cd   : > { %v9161_v42 = vld [vmem:[#allocation19 + $0x1170] sm:$0xff] }
0x16ce   : > { %6497 = vmatpush.msra.mxu0 %v9124_v4  ;;  %6517 = vmatpush.msrb.mxu1 %v9125_v6  ;;  %v9162_v4 = vld [vmem:[#allocation19 + $0x1060] sm:$0xff] }
0x16cf   : > { %v9163_v6 = vld [vmem:[#allocation19 + $0x1160] sm:$0xff] }
0x16d0   : > { %6498 = vmatpush.msra.mxu0 %v9126_v12  ;;  %6518 = vmatpush.msrb.mxu1 %v9127_v49  ;;  %v9164_v12 = vld [vmem:[#allocation19 + $0x1050] sm:$0xff] }
0x16d1   : > { %v9165_v49 = vld [vmem:[#allocation19 + $0x1150] sm:$0xff] }
0x16d2   : > { %6499 = vmatpush.msra.mxu0 %v9128_v46  ;;  %6519 = vmatpush.msrb.mxu1 %v9129_v5  ;;  %v9166_v46 = vld [vmem:[#allocation19 + $0x1040] sm:$0xff] }
0x16d3   : > { %v9167_v5 = vld [vmem:[#allocation19 + $0x1140] sm:$0xff] }
0x16d4   : > { %6500 = vmatpush.msra.mxu0 %v9130_v61  ;;  %6520 = vmatpush.msrb.mxu1 %v9131_v15  ;;  %v9168_v61 = vld [vmem:[#allocation19 + $0x1030] sm:$0xff] }
0x16d5   : > { %v9169_v15 = vld [vmem:[#allocation19 + $0x1130] sm:$0xff] }
0x16d6   : > { %6501 = vmatpush.msra.mxu0 %v9132_v11  ;;  %6521 = vmatpush.msrb.mxu1 %v9133_v40  ;;  %v9170_v11 = vld [vmem:[#allocation19 + $0x1020] sm:$0xff] }
0x16d7   : > { %v9171_v40 = vld [vmem:[#allocation19 + $0x1120] sm:$0xff] }
0x16d8   : > { %6502 = vmatpush.msra.mxu0 %v9134_v53  ;;  %6522 = vmatpush.msrb.mxu1 %v9135_v54  ;;  %v9172_v53 = vld [vmem:[#allocation19 + $0x1010] sm:$0xff] }
0x16d9   : > { %v9173_v54 = vld [vmem:[#allocation19 + $0x1110] sm:$0xff] }
0x16da   : > { %6503 = vmatpush.msra.mxu0 %v9136_v30  ;;  %6523 = vmatpush.msrb.mxu1 %v9137_v62  ;;  %v9174_v30 = vld [vmem:[#allocation19 + $0x1000] sm:$0xff] }
0x16db   : > { %v9175_v62 = vld [vmem:[#allocation19 + $0x1100] sm:$0xff] }
0x16dc   : > { %6504 = vmatpush.msra.mxu0 %v9138_v36  ;;  %6524 = vmatpush.msrb.mxu1 %v9139_v44  ;;  %v11259_v36 = vpop.f32.mrf.mxu0  ;;  %v11261_v44 = vpop.f32.mrf.mxu1 }
0x16de   : > { %6505 = vmatpush.msra.mxu0 %v9140_v21  ;;  %6525 = vmatpush.msrb.mxu1 %v9141_v56 }
0x16e0   : > { %6506 = vmatpush.msra.mxu0 %v9142_v48  ;;  %6526 = vmatpush.msrb.mxu1 %v9143_v41 }
0x16e2   : > { %6585 = vmatpush.msrb.mxu0 %v9144_v50  ;;  %6605 = vmatpush.msra.mxu1 %v9145_v34 }
0x16e4   : > { %6586 = vmatpush.msrb.mxu0 %v9146_v29  ;;  %6606 = vmatpush.msra.mxu1 %v9147_v20  ;;  %v9176_v29 = vld [vmem:[#allocation19 + $0x10f8] sm:$0xff] }
0x16e5   : > { %v9177_v20 = vld [vmem:[#allocation19 + $0x11f8] sm:$0xff] }
0x16e6   : > { %6587 = vmatpush.msrb.mxu0 %v9148_v19  ;;  %6607 = vmatpush.msra.mxu1 %v9149_v14  ;;  %v9178_v19 = vld [vmem:[#allocation19 + $0x10e8] sm:$0xff]  ;;  %v9180_v14 = vld [vmem:[#allocation19 + $0x10d8] sm:$0xff] }
0x16e8   : > { %6588 = vmatpush.msrb.mxu0 %v9150_v31  ;;  %6608 = vmatpush.msra.mxu1 %v9151_v18  ;;  %v9181_v31 = vld [vmem:[#allocation19 + $0x11d8] sm:$0xff]  ;;  %v8413_v18 = vld [vmem:[%s11551_s0 + $0x22] sm:$0x3] }
0x16ea   : > { %6589 = vmatpush.msrb.mxu0 %v9152_v17  ;;  %6609 = vmatpush.msra.mxu1 %v9153_v24  ;;  %v9182_v17 = vld [vmem:[#allocation19 + $0x10c8] sm:$0xff] }
0x16eb   : > { %v9183_v24 = vld [vmem:[#allocation19 + $0x11c8] sm:$0xff] }
0x16ec   : > { %6590 = vmatpush.msrb.mxu0 %v9154_v26  ;;  %6610 = vmatpush.msra.mxu1 %v9155_v43  ;;  %v9186_v26 = vld [vmem:[#allocation19 + $0x10a8] sm:$0xff] }
0x16ed   : > { %v9187_v43 = vld [vmem:[#allocation19 + $0x11a8] sm:$0xff] }
0x16ee   : > { %6591 = vmatpush.msrb.mxu0 %v9156_v55  ;;  %6611 = vmatpush.msra.mxu1 %v9157_v9  ;;  %v9188_v55 = vld [vmem:[#allocation19 + $0x1098] sm:$0xff] }
0x16ef   : > { %v9189_v9 = vld [vmem:[#allocation19 + $0x1198] sm:$0xff] }
0x16f0   : > { %6592 = vmatpush.msrb.mxu0 %v9158_v0  ;;  %6612 = vmatpush.msra.mxu1 %v9159_v7  ;;  %v9190_v0 = vld [vmem:[#allocation19 + $0x1088] sm:$0xff] }
0x16f1   : > { %v9191_v7 = vld [vmem:[#allocation19 + $0x1188] sm:$0xff] }
0x16f2   : > { %6593 = vmatpush.msrb.mxu0 %v9160_v3  ;;  %6613 = vmatpush.msra.mxu1 %v9161_v42  ;;  %v9192_v3 = vld [vmem:[#allocation19 + $0x1078] sm:$0xff] }
0x16f3   : > { %v9193_v42 = vld [vmem:[#allocation19 + $0x1178] sm:$0xff] }
0x16f4   : > { %6594 = vmatpush.msrb.mxu0 %v9162_v4  ;;  %6614 = vmatpush.msra.mxu1 %v9163_v6  ;;  %v9194_v4 = vld [vmem:[#allocation19 + $0x1068] sm:$0xff] }
0x16f5   : > { %v9195_v6 = vld [vmem:[#allocation19 + $0x1168] sm:$0xff] }
0x16f6   : > { %6595 = vmatpush.msrb.mxu0 %v9164_v12  ;;  %6615 = vmatpush.msra.mxu1 %v9165_v49  ;;  %v9196_v12 = vld [vmem:[#allocation19 + $0x1058] sm:$0xff] }
0x16f7   : > { %v9197_v49 = vld [vmem:[#allocation19 + $0x1158] sm:$0xff] }
0x16f8   : > { %6596 = vmatpush.msrb.mxu0 %v9166_v46  ;;  %6616 = vmatpush.msra.mxu1 %v9167_v5  ;;  %v9198_v46 = vld [vmem:[#allocation19 + $0x1048] sm:$0xff] }
0x16f9   : > { %v9199_v5 = vld [vmem:[#allocation19 + $0x1148] sm:$0xff] }
0x16fa   : > { %6597 = vmatpush.msrb.mxu0 %v9168_v61  ;;  %6617 = vmatpush.msra.mxu1 %v9169_v15  ;;  %v9200_v61 = vld [vmem:[#allocation19 + $0x1038] sm:$0xff] }
0x16fb   : > { %v9201_v15 = vld [vmem:[#allocation19 + $0x1138] sm:$0xff] }
0x16fc   : > { %6598 = vmatpush.msrb.mxu0 %v9170_v11  ;;  %6618 = vmatpush.msra.mxu1 %v9171_v40  ;;  %v9202_v11 = vld [vmem:[#allocation19 + $0x1028] sm:$0xff] }
0x16fd   : > { %v9203_v40 = vld [vmem:[#allocation19 + $0x1128] sm:$0xff] }
0x16fe   : > { %6599 = vmatpush.msrb.mxu0 %v9172_v53  ;;  %6619 = vmatpush.msra.mxu1 %v9173_v54  ;;  %v9204_v53 = vld [vmem:[#allocation19 + $0x1018] sm:$0xff] }
0x16ff   : > { %v9205_v54 = vld [vmem:[#allocation19 + $0x1118] sm:$0xff] }
0x1700   : > { %6600 = vmatpush.msrb.mxu0 %v9174_v30  ;;  %6620 = vmatpush.msra.mxu1 %v9175_v62  ;;  %v9206_v30 = vld [vmem:[#allocation19 + $0x1008] sm:$0xff] }
0x1701   : > { %v9207_v62 = vld [vmem:[#allocation19 + $0x1108] sm:$0xff] }
0x173c   : > { %v6334_v21 = vpop.f32.mrf.mxu0  ;;  %v6354_v56 = vpop.f32.mrf.mxu1 }
0x173d   : > { %v6355_v48 = vadd.f32 %v6354_v56, %v6334_v21 }
0x173f   : > { %v11264_v41 = vadd.f32 %v6355_v48, %v11248_v25  ;;  %v9179_v25 = vld [vmem:[#allocation19 + $0x11e8] sm:$0xff] }
0x1743   : > { %v11279_v21 = vpop.f32.mrf.mxu2  ;;  %v11281_v56 = vpop.f32.mrf.mxu3 }
0x1744   : > { %v6428_v50 = vpop.f32.mrf.mxu0  ;;  %v6448_v34 = vpop.f32.mrf.mxu1 }
0x1745   : > { %6467 = vmatmul.f32.vlgmr.msrb.gmra.mxu2 %v6428_v50  ;;  %6487 = vmatmul.f32.vlgmr.msra.gmra.mxu3 %v6448_v34 }
0x1746   : > { %6507 = vmatmul.f32.vlgmr.msra.gmra.mxu0 %v6428_v50  ;;  %6527 = vmatmul.f32.vlgmr.msrb.gmra.mxu1 %v6448_v34 }
0x1747   : > { %6625 = vmatpush.msrb.mxu2 %v9176_v29  ;;  %6645 = vmatpush.msra.mxu3 %v9177_v20 }
0x1748   : > { %8421 = vmatpush.msk.msra.mxu0 %vm933_vm0, %v11134_v33  ;;  %8423 = vmatpush.msk.msrb.mxu1 %vm933_vm0, %v11136_v57  ;;  %v9184_v33 = vld [vmem:[#allocation19 + $0x10b8] sm:$0xff] }
0x1749   : > { %6626 = vmatpush.msrb.mxu2 %v9178_v19  ;;  %6646 = vmatpush.msra.mxu3 %v9179_v25  ;;  %v9185_v57 = vld [vmem:[#allocation19 + $0x11b8] sm:$0xff]  ;;  %v9209_v25 = vld [vmem:[#allocation21 + $0x3f0] sm:$0xff] }
0x174b   : > { %6627 = vmatpush.msrb.mxu2 %v9180_v14  ;;  %6647 = vmatpush.msra.mxu3 %v9181_v31  ;;  %v9211_v14 = vld [vmem:[#allocation21 + $0x3f8] sm:$0xff]  ;;  %v9212_v31 = vld [vmem:[#allocation21 + $0x2e0] sm:$0xff] }
0x174d   : > { %6628 = vmatpush.msrb.mxu2 %v9182_v17  ;;  %6648 = vmatpush.msra.mxu3 %v9183_v24  ;;  %v9214_v17 = vld [vmem:[#allocation21 + $0x2e8] sm:$0xff] }
0x174e   : > { %8415 = vmatmul.msk.f32.vlgmr.msra.gmra.mxu2 %vm929_vm1, %v8413_v18  ;;  %8417 = vmatmul.msk.f32.vlgmr.msrb.gmra.mxu3 %vm929_vm1, %v8413_v18  ;;  %v9213_v18 = vld [vmem:[#allocation21 + $0x3e0] sm:$0xff]  ;;  %v9215_v24 = vld [vmem:[#allocation21 + $0x3e8] sm:$0xff] }
0x174f   : > { %6629 = vmatpush.msrb.mxu2 %v9184_v33  ;;  %6649 = vmatpush.msra.mxu3 %v9185_v57  ;;  %v8425_v33 = vld [vmem:[%s11552_s23 + $0x14] sm:$0x3]  ;;  %v9216_v57 = vld [vmem:[#allocation21 + $0x2d0] sm:$0xff] }
0x1751   : > { %6630 = vmatpush.msrb.mxu2 %v9186_v26  ;;  %6650 = vmatpush.msra.mxu3 %v9187_v43  ;;  %v9217_v26 = vld [vmem:[#allocation21 + $0x3d0] sm:$0xff]  ;;  %v9218_v43 = vld [vmem:[#allocation21 + $0x2d8] sm:$0xff] }
0x1753   : > { %6631 = vmatpush.msrb.mxu2 %v9188_v55  ;;  %6651 = vmatpush.msra.mxu3 %v9189_v9  ;;  %v9219_v55 = vld [vmem:[#allocation21 + $0x3d8] sm:$0xff]  ;;  %v9220_v9 = vld [vmem:[#allocation21 + $0x2c0] sm:$0xff] }
0x1755   : > { %6632 = vmatpush.msrb.mxu2 %v9190_v0  ;;  %6652 = vmatpush.msra.mxu3 %v9191_v7  ;;  %v9221_v0 = vld [vmem:[#allocation21 + $0x3c0] sm:$0xff]  ;;  %v9222_v7 = vld [vmem:[#allocation21 + $0x2c8] sm:$0xff] }
0x1757   : > { %6633 = vmatpush.msrb.mxu2 %v9192_v3  ;;  %6653 = vmatpush.msra.mxu3 %v9193_v42  ;;  %v9223_v3 = vld [vmem:[#allocation21 + $0x3c8] sm:$0xff]  ;;  %v9224_v42 = vld [vmem:[#allocation21 + $0x2b0] sm:$0xff] }
0x1759   : > { %6634 = vmatpush.msrb.mxu2 %v9194_v4  ;;  %6654 = vmatpush.msra.mxu3 %v9195_v6  ;;  %v9225_v4 = vld [vmem:[#allocation21 + $0x3b0] sm:$0xff]  ;;  %v9226_v6 = vld [vmem:[#allocation21 + $0x2b8] sm:$0xff] }
0x175b   : > { %6635 = vmatpush.msrb.mxu2 %v9196_v12  ;;  %6655 = vmatpush.msra.mxu3 %v9197_v49  ;;  %v9227_v12 = vld [vmem:[#allocation21 + $0x3b8] sm:$0xff]  ;;  %v9228_v49 = vld [vmem:[#allocation21 + $0x2a0] sm:$0xff] }
0x175d   : > { %6636 = vmatpush.msrb.mxu2 %v9198_v46  ;;  %6656 = vmatpush.msra.mxu3 %v9199_v5  ;;  %v9229_v46 = vld [vmem:[#allocation21 + $0x3a0] sm:$0xff]  ;;  %v9230_v5 = vld [vmem:[#allocation21 + $0x2a8] sm:$0xff] }
0x175f   : > { %6637 = vmatpush.msrb.mxu2 %v9200_v61  ;;  %6657 = vmatpush.msra.mxu3 %v9201_v15  ;;  %v9231_v61 = vld [vmem:[#allocation21 + $0x3a8] sm:$0xff]  ;;  %v9232_v15 = vld [vmem:[#allocation21 + $0x290] sm:$0xff] }
0x1761   : > { %6638 = vmatpush.msrb.mxu2 %v9202_v11  ;;  %6658 = vmatpush.msra.mxu3 %v9203_v40  ;;  %v9233_v11 = vld [vmem:[#allocation21 + $0x390] sm:$0xff]  ;;  %v9234_v40 = vld [vmem:[#allocation21 + $0x298] sm:$0xff] }
0x1763   : > { %6639 = vmatpush.msrb.mxu2 %v9204_v53  ;;  %6659 = vmatpush.msra.mxu3 %v9205_v54  ;;  %v9235_v53 = vld [vmem:[#allocation21 + $0x398] sm:$0xff]  ;;  %v9236_v54 = vld [vmem:[#allocation21 + $0x280] sm:$0xff] }
0x1765   : > { %6640 = vmatpush.msrb.mxu2 %v9206_v30  ;;  %6660 = vmatpush.msra.mxu3 %v9207_v62  ;;  %v9237_v30 = vld [vmem:[#allocation21 + $0x380] sm:$0xff]  ;;  %v9238_v62 = vld [vmem:[#allocation21 + $0x288] sm:$0xff] }
0x1767   : > { %8426 = vmatpush.msk.msra.mxu2 %vm933_vm0, %v11139_v28  ;;  %8428 = vmatpush.msk.msrb.mxu3 %vm933_vm0, %v11141_v52  ;;  %v9208_v28 = vld [vmem:[#allocation21 + $0x2f0] sm:$0xff]  ;;  %v9210_v52 = vld [vmem:[#allocation21 + $0x2f8] sm:$0xff] }
0x17c8   : > { %v6468_v48 = vpop.f32.mrf.mxu2  ;;  %v6488_v50 = vpop.f32.mrf.mxu3 }
0x17c9   : > { %v6489_v34 = vadd.f32 %v6488_v50, %v6468_v48  ;;  %v9239_v48 = vld [vmem:[#allocation21 + $0x388] sm:$0xff]  ;;  %v9240_v50 = vld [vmem:[#allocation21 + $0x270] sm:$0xff] }
0x17cb   : > { %v11284_v29 = vadd.f32 %v6489_v34, %v11264_v41  ;;  %v8420_v41 = vld [vmem:[%s11552_s23 + $0x12] sm:$0x3]  ;;  %v9241_v34 = vld [vmem:[#allocation21 + $0x370] sm:$0xff] }
0x17d1   : > { %v6562_v20 = vpop.f32.mrf.mxu2  ;;  %v6582_v19 = vpop.f32.mrf.mxu3 }
0x17d2   : > { %6601 = vmatmul.f32.vlgmr.msrb.gmra.mxu0 %v6562_v20  ;;  %6621 = vmatmul.f32.vlgmr.msra.gmra.mxu1 %v6582_v19 }
0x17d3   : > { %6641 = vmatmul.f32.vlgmr.msrb.gmra.mxu2 %v6562_v20  ;;  %6661 = vmatmul.f32.vlgmr.msra.gmra.mxu3 %v6582_v19  ;;  %v9242_v20 = vld [vmem:[#allocation21 + $0x278] sm:$0xff] }
0x17d4   : > { %6795 = vmatpush.msrb.mxu0 %v9208_v28  ;;  %6815 = vmatpush.msra.mxu1 %v9209_v25  ;;  %v9243_v19 = vld [vmem:[#allocation21 + $0x378] sm:$0xff]  ;;  %v9244_v28 = vld [vmem:[#allocation21 + $0x260] sm:$0xff] }
0x17d5   : > { %6835 = vmatpush.msrb.mxu2 %v9210_v52  ;;  %6855 = vmatpush.msra.mxu3 %v9211_v14  ;;  %v9245_v25 = vld [vmem:[#allocation21 + $0x360] sm:$0xff]  ;;  %v9246_v52 = vld [vmem:[#allocation21 + $0x268] sm:$0xff] }
0x17d6   : > { %6796 = vmatpush.msrb.mxu0 %v9212_v31  ;;  %6816 = vmatpush.msra.mxu1 %v9213_v18  ;;  %v9247_v14 = vld [vmem:[#allocation21 + $0x368] sm:$0xff]  ;;  %v9248_v31 = vld [vmem:[#allocation21 + $0x250] sm:$0xff] }
0x17d7   : > { %6836 = vmatpush.msrb.mxu2 %v9214_v17  ;;  %6856 = vmatpush.msra.mxu3 %v9215_v24  ;;  %v9249_v18 = vld [vmem:[#allocation21 + $0x350] sm:$0xff]  ;;  %v9251_v17 = vld [vmem:[#allocation21 + $0x358] sm:$0xff]  ;;  %v9252_v24 = vld [vmem:[#allocation21 + $0x240] sm:$0xff] }
0x17d8   : > { %6797 = vmatpush.msrb.mxu0 %v9216_v57  ;;  %6817 = vmatpush.msra.mxu1 %v9217_v26  ;;  %v9254_v57 = vld [vmem:[#allocation21 + $0x248] sm:$0xff] }
0x17d9   : > { %6837 = vmatpush.msrb.mxu2 %v9218_v43  ;;  %6857 = vmatpush.msra.mxu3 %v9219_v55  ;;  %v9255_v26 = vld [vmem:[#allocation21 + $0x348] sm:$0xff]  ;;  %v9256_v43 = vld [vmem:[#allocation21 + $0x230] sm:$0xff] }
0x17da   : > { %8422 = vmatmul.msk.f32.vlgmr.msra.gmra.mxu0 %vm929_vm1, %v8420_v41  ;;  %8424 = vmatmul.msk.f32.vlgmr.msrb.gmra.mxu1 %vm929_vm1, %v8420_v41  ;;  %v9250_v41 = vld [vmem:[#allocation21 + $0x258] sm:$0xff]  ;;  %v9257_v55 = vld [vmem:[#allocation21 + $0x330] sm:$0xff] }
0x17db   : > { %8427 = vmatmul.msk.f32.vlgmr.msra.gmra.mxu2 %vm929_vm1, %v8425_v33  ;;  %8429 = vmatmul.msk.f32.vlgmr.msrb.gmra.mxu3 %vm929_vm1, %v8425_v33  ;;  %v9253_v33 = vld [vmem:[#allocation21 + $0x340] sm:$0xff] }
0x17dc   : > { %6798 = vmatpush.msrb.mxu0 %v9220_v9  ;;  %6818 = vmatpush.msra.mxu1 %v9221_v0  ;;  %v9258_v9 = vld [vmem:[#allocation21 + $0x238] sm:$0xff] }
0x17dd   : > { %6838 = vmatpush.msrb.mxu2 %v9222_v7  ;;  %6858 = vmatpush.msra.mxu3 %v9223_v3  ;;  %v9259_v0 = vld [vmem:[#allocation21 + $0x338] sm:$0xff]  ;;  %v9260_v7 = vld [vmem:[#allocation21 + $0x220] sm:$0xff] }
0x17de   : > { %6799 = vmatpush.msrb.mxu0 %v9224_v42  ;;  %6819 = vmatpush.msra.mxu1 %v9225_v4  ;;  %v9261_v3 = vld [vmem:[#allocation21 + $0x320] sm:$0xff]  ;;  %v9262_v42 = vld [vmem:[#allocation21 + $0x228] sm:$0xff] }
0x17df   : > { %6839 = vmatpush.msrb.mxu2 %v9226_v6  ;;  %6859 = vmatpush.msra.mxu3 %v9227_v12  ;;  %v9263_v4 = vld [vmem:[#allocation21 + $0x328] sm:$0xff]  ;;  %v9264_v6 = vld [vmem:[#allocation21 + $0x210] sm:$0xff] }
0x17e0   : > { %6800 = vmatpush.msrb.mxu0 %v9228_v49  ;;  %6820 = vmatpush.msra.mxu1 %v9229_v46  ;;  %v9265_v12 = vld [vmem:[#allocation21 + $0x310] sm:$0xff]  ;;  %v9266_v49 = vld [vmem:[#allocation21 + $0x218] sm:$0xff] }
0x17e1   : > { %6840 = vmatpush.msrb.mxu2 %v9230_v5  ;;  %6860 = vmatpush.msra.mxu3 %v9231_v61  ;;  %v9267_v46 = vld [vmem:[#allocation21 + $0x318] sm:$0xff]  ;;  %v9268_v5 = vld [vmem:[#allocation21 + $0x200] sm:$0xff] }
0x17e2   : > { %6801 = vmatpush.msrb.mxu0 %v9232_v15  ;;  %6821 = vmatpush.msra.mxu1 %v9233_v11  ;;  %v9269_v61 = vld [vmem:[#allocation21 + $0x300] sm:$0xff]  ;;  %v9270_v15 = vld [vmem:[#allocation21 + $0x208] sm:$0xff] }
0x17e3   : > { %6841 = vmatpush.msrb.mxu2 %v9234_v40  ;;  %6861 = vmatpush.msra.mxu3 %v9235_v53  ;;  %v9271_v11 = vld [vmem:[#allocation21 + $0x308] sm:$0xff]  ;;  %v9272_v40 = vld [vmem:[#allocation21 + $0xf0] sm:$0xff] }
0x17e4   : > { %6802 = vmatpush.msrb.mxu0 %v9236_v54  ;;  %6822 = vmatpush.msra.mxu1 %v9237_v30  ;;  %v9273_v53 = vld [vmem:[#allocation21 + $0x1f0] sm:$0xff]  ;;  %v9274_v54 = vld [vmem:[#allocation21 + $0xf8] sm:$0xff] }
0x17e5   : > { %6842 = vmatpush.msrb.mxu2 %v9238_v62  ;;  %6862 = vmatpush.msra.mxu3 %v9239_v48  ;;  %v9275_v30 = vld [vmem:[#allocation21 + $0x1f8] sm:$0xff]  ;;  %v9276_v62 = vld [vmem:[#allocation21 + $0xe0] sm:$0xff] }
0x17e6   : > { %6803 = vmatpush.msrb.mxu0 %v9240_v50  ;;  %6823 = vmatpush.msra.mxu1 %v9241_v34  ;;  %v9277_v48 = vld [vmem:[#allocation21 + $0x1e0] sm:$0xff]  ;;  %v9278_v50 = vld [vmem:[#allocation21 + $0xe8] sm:$0xff] }
0x17e7   : > { %6843 = vmatpush.msrb.mxu2 %v9242_v20  ;;  %6863 = vmatpush.msra.mxu3 %v9243_v19  ;;  %v9279_v34 = vld [vmem:[#allocation21 + $0x1e8] sm:$0xff]  ;;  %v9280_v20 = vld [vmem:[#allocation21 + $0xd0] sm:$0xff] }
0x17e8   : > { %6804 = vmatpush.msrb.mxu0 %v9244_v28  ;;  %6824 = vmatpush.msra.mxu1 %v9245_v25  ;;  %v9281_v19 = vld [vmem:[#allocation21 + $0x1d0] sm:$0xff]  ;;  %v9282_v28 = vld [vmem:[#allocation21 + $0xd8] sm:$0xff] }
0x17e9   : > { %6844 = vmatpush.msrb.mxu2 %v9246_v52  ;;  %6864 = vmatpush.msra.mxu3 %v9247_v14  ;;  %v9283_v25 = vld [vmem:[#allocation21 + $0x1d8] sm:$0xff]  ;;  %v9284_v52 = vld [vmem:[#allocation21 + $0xc0] sm:$0xff] }
0x17ea   : > { %6805 = vmatpush.msrb.mxu0 %v9248_v31  ;;  %6825 = vmatpush.msra.mxu1 %v9249_v18  ;;  %v9285_v14 = vld [vmem:[#allocation21 + $0x1c0] sm:$0xff]  ;;  %v9286_v31 = vld [vmem:[#allocation21 + $0xc8] sm:$0xff] }
0x17eb   : > { %6845 = vmatpush.msrb.mxu2 %v9250_v41  ;;  %6865 = vmatpush.msra.mxu3 %v9251_v17  ;;  %v9287_v18 = vld [vmem:[#allocation21 + $0x1c8] sm:$0xff]  ;;  %v9288_v41 = vld [vmem:[#allocation21 + $0xb0] sm:$0xff] }
0x17ec   : > { %6806 = vmatpush.msrb.mxu0 %v9252_v24  ;;  %6826 = vmatpush.msra.mxu1 %v9253_v33  ;;  %v9289_v17 = vld [vmem:[#allocation21 + $0x1b0] sm:$0xff]  ;;  %v9290_v24 = vld [vmem:[#allocation21 + $0xb8] sm:$0xff] }
0x17ed   : > { %6846 = vmatpush.msrb.mxu2 %v9254_v57  ;;  %6866 = vmatpush.msra.mxu3 %v9255_v26  ;;  %v9291_v33 = vld [vmem:[#allocation21 + $0x1b8] sm:$0xff]  ;;  %v9292_v57 = vld [vmem:[#allocation21 + $0xa0] sm:$0xff] }
0x17ee   : > { %6807 = vmatpush.msrb.mxu0 %v9256_v43  ;;  %6827 = vmatpush.msra.mxu1 %v9257_v55  ;;  %v9293_v26 = vld [vmem:[#allocation21 + $0x1a0] sm:$0xff]  ;;  %v9294_v43 = vld [vmem:[#allocation21 + $0xa8] sm:$0xff] }
0x17ef   : > { %6847 = vmatpush.msrb.mxu2 %v9258_v9  ;;  %6867 = vmatpush.msra.mxu3 %v9259_v0  ;;  %v9295_v55 = vld [vmem:[#allocation21 + $0x1a8] sm:$0xff]  ;;  %v9296_v9 = vld [vmem:[#allocation21 + $0x90] sm:$0xff] }
0x17f0   : > { %6808 = vmatpush.msrb.mxu0 %v9260_v7  ;;  %6828 = vmatpush.msra.mxu1 %v9261_v3  ;;  %v9297_v0 = vld [vmem:[#allocation21 + $0x190] sm:$0xff]  ;;  %v9298_v7 = vld [vmem:[#allocation21 + $0x98] sm:$0xff] }
0x17f1   : > { %6848 = vmatpush.msrb.mxu2 %v9262_v42  ;;  %6868 = vmatpush.msra.mxu3 %v9263_v4  ;;  %v9299_v3 = vld [vmem:[#allocation21 + $0x198] sm:$0xff]  ;;  %v9300_v42 = vld [vmem:[#allocation21 + $0x80] sm:$0xff] }
0x17f2   : > { %6809 = vmatpush.msrb.mxu0 %v9264_v6  ;;  %6829 = vmatpush.msra.mxu1 %v9265_v12  ;;  %v9301_v4 = vld [vmem:[#allocation21 + $0x180] sm:$0xff]  ;;  %v9302_v6 = vld [vmem:[#allocation21 + $0x88] sm:$0xff] }
0x17f3   : > { %6849 = vmatpush.msrb.mxu2 %v9266_v49  ;;  %6869 = vmatpush.msra.mxu3 %v9267_v46  ;;  %v9303_v12 = vld [vmem:[#allocation21 + $0x188] sm:$0xff]  ;;  %v9304_v49 = vld [vmem:[#allocation21 + $0x70] sm:$0xff] }
0x17f4   : > { %6810 = vmatpush.msrb.mxu0 %v9268_v5  ;;  %6830 = vmatpush.msra.mxu1 %v9269_v61  ;;  %v9305_v46 = vld [vmem:[#allocation21 + $0x170] sm:$0xff]  ;;  %v9306_v5 = vld [vmem:[#allocation21 + $0x78] sm:$0xff] }
0x17f5   : > { %6850 = vmatpush.msrb.mxu2 %v9270_v15  ;;  %6870 = vmatpush.msra.mxu3 %v9271_v11  ;;  %v9307_v61 = vld [vmem:[#allocation21 + $0x178] sm:$0xff]  ;;  %v9308_v15 = vld [vmem:[#allocation21 + $0x60] sm:$0xff] }
0x17f6   : > { %6875 = vmatpush.msra.mxu0 %v9272_v40  ;;  %6895 = vmatpush.msrb.mxu1 %v9273_v53  ;;  %v9309_v11 = vld [vmem:[#allocation21 + $0x160] sm:$0xff]  ;;  %v9310_v40 = vld [vmem:[#allocation21 + $0x68] sm:$0xff] }
0x17f7   : > { %6915 = vmatpush.msra.mxu2 %v9274_v54  ;;  %6935 = vmatpush.msrb.mxu3 %v9275_v30  ;;  %v9311_v53 = vld [vmem:[#allocation21 + $0x168] sm:$0xff]  ;;  %v9312_v54 = vld [vmem:[#allocation21 + $0x50] sm:$0xff] }
0x17f8   : > { %6876 = vmatpush.msra.mxu0 %v9276_v62  ;;  %6896 = vmatpush.msrb.mxu1 %v9277_v48  ;;  %v9313_v30 = vld [vmem:[#allocation21 + $0x150] sm:$0xff]  ;;  %v9314_v62 = vld [vmem:[#allocation21 + $0x58] sm:$0xff] }
0x17f9   : > { %6916 = vmatpush.msra.mxu2 %v9278_v50  ;;  %6936 = vmatpush.msrb.mxu3 %v9279_v34  ;;  %v9315_v48 = vld [vmem:[#allocation21 + $0x158] sm:$0xff]  ;;  %v9316_v50 = vld [vmem:[#allocation21 + $0x40] sm:$0xff] }
0x17fa   : > { %6877 = vmatpush.msra.mxu0 %v9280_v20  ;;  %6897 = vmatpush.msrb.mxu1 %v9281_v19  ;;  %v9317_v34 = vld [vmem:[#allocation21 + $0x140] sm:$0xff]  ;;  %v9318_v20 = vld [vmem:[#allocation21 + $0x48] sm:$0xff] }
0x17fb   : > { %6917 = vmatpush.msra.mxu2 %v9282_v28  ;;  %6937 = vmatpush.msrb.mxu3 %v9283_v25  ;;  %v9319_v19 = vld [vmem:[#allocation21 + $0x148] sm:$0xff]  ;;  %v9320_v28 = vld [vmem:[#allocation21 + $0x30] sm:$0xff] }
0x17fc   : > { %6878 = vmatpush.msra.mxu0 %v9284_v52  ;;  %6898 = vmatpush.msrb.mxu1 %v9285_v14  ;;  %v9321_v25 = vld [vmem:[#allocation21 + $0x130] sm:$0xff]  ;;  %v9322_v52 = vld [vmem:[#allocation21 + $0x38] sm:$0xff] }
0x17fd   : > { %6918 = vmatpush.msra.mxu2 %v9286_v31  ;;  %6938 = vmatpush.msrb.mxu3 %v9287_v18  ;;  %v9323_v14 = vld [vmem:[#allocation21 + $0x138] sm:$0xff]  ;;  %v9324_v31 = vld [vmem:[#allocation21 + $0x20] sm:$0xff] }
0x17fe   : > { %6879 = vmatpush.msra.mxu0 %v9288_v41  ;;  %6899 = vmatpush.msrb.mxu1 %v9289_v17  ;;  %v9325_v18 = vld [vmem:[#allocation21 + $0x120] sm:$0xff]  ;;  %v9326_v41 = vld [vmem:[#allocation21 + $0x28] sm:$0xff] }
0x17ff   : > { %6919 = vmatpush.msra.mxu2 %v9290_v24  ;;  %6939 = vmatpush.msrb.mxu3 %v9291_v33  ;;  %v9327_v17 = vld [vmem:[#allocation21 + $0x128] sm:$0xff]  ;;  %v9328_v24 = vld [vmem:[#allocation21 + $0x10] sm:$0xff] }
0x1800   : > { %6880 = vmatpush.msra.mxu0 %v9292_v57  ;;  %6900 = vmatpush.msrb.mxu1 %v9293_v26  ;;  %v9329_v33 = vld [vmem:[#allocation21 + $0x110] sm:$0xff]  ;;  %v9330_v57 = vld [vmem:[#allocation21 + $0x18] sm:$0xff] }
0x1801   : > { %6920 = vmatpush.msra.mxu2 %v9294_v43  ;;  %6940 = vmatpush.msrb.mxu3 %v9295_v55  ;;  %v9331_v26 = vld [vmem:[#allocation21 + $0x118] sm:$0xff]  ;;  %v9332_v43 = vld [vmem:[#allocation21] sm:$0xff] }
0x1802   : > { %6881 = vmatpush.msra.mxu0 %v9296_v9  ;;  %6901 = vmatpush.msrb.mxu1 %v9297_v0  ;;  %v9333_v55 = vld [vmem:[#allocation21 + $0x100] sm:$0xff]  ;;  %v9334_v9 = vld [vmem:[#allocation21 + $0x8] sm:$0xff] }
0x1803   : > { %6921 = vmatpush.msra.mxu2 %v9298_v7  ;;  %6941 = vmatpush.msrb.mxu3 %v9299_v3  ;;  %v9335_v0 = vld [vmem:[#allocation21 + $0x108] sm:$0xff]  ;;  %v5727_v7 = vadd.f32 %v11204_v27, %v11202_v2  ;;  %v6395_v27 = vadd.f32 %v11281_v56, %v11279_v21  ;;  %v9337_v21 = vld [vmem:[#allocation21 + $0x5f0] sm:$0xff]  ;;  %v9338_v56 = vld [vmem:[#allocation21 + $0x4e0] sm:$0xff] }
0x1804   : > { %6882 = vmatpush.msra.mxu0 %v9300_v42  ;;  %6902 = vmatpush.msrb.mxu1 %v9301_v4  ;;  %v6508_v42 = vpop.f32.mrf.mxu0  ;;  %v6528_v4 = vpop.f32.mrf.mxu1 }
0x1805   : > { %6922 = vmatpush.msra.mxu2 %v9302_v6  ;;  %6942 = vmatpush.msrb.mxu3 %v9303_v12  ;;  %v5787_v3 = vadd.f32 %v11206_v37, %v5727_v7  ;;  %v5939_v6 = vadd.f32 %v11229_v22, %v11227_v23  ;;  %v6529_v22 = vadd.f32 %v6528_v4, %v6508_v42  ;;  %v9361_v7 = vld [vmem:[#allocation21 + $0x5c8] sm:$0xff]  ;;  %v9363_v42 = vld [vmem:[#allocation21 + $0x560] sm:$0xff]  ;;  %v9364_v4 = vld [vmem:[#allocation21 + $0x4b8] sm:$0xff] }
0x1806   : > { %6883 = vmatpush.msra.mxu0 %v9304_v49  ;;  %6903 = vmatpush.msrb.mxu1 %v9305_v46 }
0x1807   : > { %6923 = vmatpush.msra.mxu2 %v9306_v5  ;;  %6943 = vmatpush.msrb.mxu3 %v9307_v61  ;;  %v5807_v12 = vadd.f32 %v11208_v32, %v5787_v3  ;;  %v6261_v5 = vadd.f32 %v11261_v44, %v11259_v36  ;;  %v9362_v3 = vld [vmem:[#allocation21 + $0x460] sm:$0xff] }
0x1808   : > { %6884 = vmatpush.msra.mxu0 %v9308_v15  ;;  %6904 = vmatpush.msrb.mxu1 %v9309_v11 }
0x1809   : > { %6924 = vmatpush.msra.mxu2 %v9310_v40  ;;  %6944 = vmatpush.msrb.mxu3 %v9311_v53  ;;  %v5942_v49 = vadd.f32 %v5939_v6, %v5807_v12  ;;  %v9365_v6 = vld [vmem:[#allocation21 + $0x5b8] sm:$0xff]  ;;  %v9366_v12 = vld [vmem:[#allocation21 + $0x450] sm:$0xff] }
0x180a   : > { %6885 = vmatpush.msra.mxu0 %v9312_v54  ;;  %6905 = vmatpush.msrb.mxu1 %v9313_v30 }
0x180b   : > { %6925 = vmatpush.msra.mxu2 %v9314_v62  ;;  %6945 = vmatpush.msrb.mxu3 %v9315_v48  ;;  %v6076_v46 = vadd.f32 %v11231_v51, %v5942_v49  ;;  %v9367_v49 = vld [vmem:[#allocation21 + $0x550] sm:$0xff] }
0x180c   : > { %6886 = vmatpush.msra.mxu0 %v9316_v50  ;;  %6906 = vmatpush.msrb.mxu1 %v9317_v34  ;;  %v9340_v50 = vld [vmem:[#allocation21 + $0x4d0] sm:$0xff] }
0x180d   : > { %6926 = vmatpush.msra.mxu2 %v9318_v20  ;;  %6946 = vmatpush.msrb.mxu3 %v9319_v19  ;;  %v6130_v2 = vadd.f32 %v11245_v16, %v6076_v46  ;;  %v9336_v16 = vld [vmem:[#allocation21 + $0x4f0] sm:$0xff]  ;;  %v9343_v20 = vld [vmem:[#allocation21 + $0x5c0] sm:$0xff]  ;;  %v9368_v46 = vld [vmem:[#allocation21 + $0x4a8] sm:$0xff] }
0x180e   : > { %6887 = vmatpush.msra.mxu0 %v9320_v28  ;;  %6907 = vmatpush.msrb.mxu1 %v9321_v25  ;;  %v9341_v34 = vld [vmem:[#allocation21 + $0x5d0] sm:$0xff]  ;;  %v9346_v28 = vld [vmem:[#allocation21 + $0x4f8] sm:$0xff] }
0x180f   : > { %6927 = vmatpush.msra.mxu2 %v9322_v52  ;;  %6947 = vmatpush.msrb.mxu3 %v9323_v14  ;;  %v6264_v23 = vadd.f32 %v6261_v5, %v6130_v2  ;;  %v9345_v19 = vld [vmem:[#allocation21 + $0x5b0] sm:$0xff]  ;;  %v9347_v25 = vld [vmem:[#allocation21 + $0x5f8] sm:$0xff]  ;;  %v9348_v52 = vld [vmem:[#allocation21 + $0x4a0] sm:$0xff] }
0x1810   : > { %6888 = vmatpush.msra.mxu0 %v9324_v31  ;;  %6908 = vmatpush.msrb.mxu1 %v9325_v18  ;;  %v9349_v14 = vld [vmem:[#allocation21 + $0x5a0] sm:$0xff]  ;;  %v9350_v18 = vld [vmem:[#allocation21 + $0x4e8] sm:$0xff]  ;;  %v9373_v2 = vld [vmem:[#allocation21 + $0x598] sm:$0xff] }
0x1811   : > { %6928 = vmatpush.msra.mxu2 %v9326_v41  ;;  %6948 = vmatpush.msrb.mxu3 %v9327_v17  ;;  %v6398_v32 = vadd.f32 %v6395_v27, %v6264_v23  ;;  %v8430_v31 = vld [vmem:[%s11552_s23 + $0x16] sm:$0x3]  ;;  %v9351_v41 = vld [vmem:[#allocation21 + $0x5e8] sm:$0xff]  ;;  %v9352_v17 = vld [vmem:[#allocation21 + $0x490] sm:$0xff] }
0x1812   : > { %6889 = vmatpush.msra.mxu0 %v9328_v24  ;;  %6909 = vmatpush.msrb.mxu1 %v9329_v33  ;;  %v9353_v24 = vld [vmem:[#allocation21 + $0x590] sm:$0xff]  ;;  %v9354_v33 = vld [vmem:[#allocation21 + $0x480] sm:$0xff]  ;;  %v9369_v5 = vld [vmem:[#allocation21 + $0x5a8] sm:$0xff] }
0x1813   : > { %6929 = vmatpush.msra.mxu2 %v9330_v57  ;;  %6949 = vmatpush.msrb.mxu3 %v9331_v26  ;;  %v6532_v51 = vadd.f32 %v6529_v22, %v6398_v32  ;;  %v9355_v57 = vld [vmem:[#allocation21 + $0x580] sm:$0xff]  ;;  %v9356_v26 = vld [vmem:[#allocation21 + $0x4d8] sm:$0xff]  ;;  %v9374_v27 = vld [vmem:[#allocation21 + $0x430] sm:$0xff] }
0x1814   : > { %6890 = vmatpush.msra.mxu0 %v9332_v43  ;;  %6910 = vmatpush.msrb.mxu1 %v9333_v55  ;;  %v9357_v43 = vld [vmem:[#allocation21 + $0x5d8] sm:$0xff]  ;;  %v9358_v55 = vld [vmem:[#allocation21 + $0x470] sm:$0xff]  ;;  %v9376_v22 = vld [vmem:[#allocation21 + $0x488] sm:$0xff] }
0x1815   : > { %6930 = vmatpush.msra.mxu2 %v9334_v9  ;;  %6950 = vmatpush.msrb.mxu3 %v9335_v0  ;;  %v9359_v9 = vld [vmem:[#allocation21 + $0x570] sm:$0xff]  ;;  %v9360_v0 = vld [vmem:[#allocation21 + $0x4c8] sm:$0xff] }
0x1816   : > { %v9375_v23 = vld [vmem:[#allocation21 + $0x530] sm:$0xff]  ;;  %v9377_v32 = vld [vmem:[#allocation21 + $0x588] sm:$0xff] }
0x184f   : > { %v6602_v61 = vpop.f32.mrf.mxu0  ;;  %v6622_v15 = vpop.f32.mrf.mxu1 }
0x1850   : > { %v6623_v11 = vadd.f32 %v6622_v15, %v6602_v61  ;;  %v9370_v61 = vld [vmem:[#allocation21 + $0x440] sm:$0xff] }
0x1851   : > { %v9371_v15 = vld [vmem:[#allocation21 + $0x540] sm:$0xff] }
0x1852   : > { %v11309_v37 = vadd.f32 %v6623_v11, %v11284_v29  ;;  %v9339_v29 = vld [vmem:[#allocation21 + $0x5e0] sm:$0xff]  ;;  %v9372_v11 = vld [vmem:[#allocation21 + $0x498] sm:$0xff] }
0x1856   : > { %v6642_v40 = vpop.f32.mrf.mxu2  ;;  %v6662_v53 = vpop.f32.mrf.mxu3 }
0x1857   : > { %v6663_v54 = vadd.f32 %v6662_v53, %v6642_v40  ;;  %v6720_v62 = vpop.f32.mrf.mxu0  ;;  %v6740_v48 = vpop.f32.mrf.mxu1  ;;  %v9378_v40 = vld [vmem:[#allocation21 + $0x420] sm:$0xff] }
0x1858   : > { %v9379_v53 = vld [vmem:[#allocation21 + $0x520] sm:$0xff] }
0x1859   : > { %v11311_v30 = vadd.f32 %v6663_v54, %v6532_v51  ;;  %v9380_v51 = vld [vmem:[#allocation21 + $0x478] sm:$0xff] }
0x185a   : > { %v9381_v54 = vld [vmem:[#allocation21 + $0x578] sm:$0xff] }
0x185e   : > { %v6772_v36 = vpop.f32.mrf.mxu2  ;;  %v6792_v44 = vpop.f32.mrf.mxu3 }
0x185f   : > { %6811 = vmatmul.f32.vlgmr.msrb.gmra.mxu0 %v6772_v36  ;;  %6831 = vmatmul.f32.vlgmr.msra.gmra.mxu1 %v6792_v44 }
0x1860   : > { %6851 = vmatmul.f32.vlgmr.msrb.gmra.mxu2 %v6772_v36  ;;  %6871 = vmatmul.f32.vlgmr.msra.gmra.mxu3 %v6792_v44  ;;  %v9382_v36 = vld [vmem:[#allocation21 + $0x410] sm:$0xff] }
0x1861   : > { %8431 = vmatpush.msk.msrb.mxu0 %vm933_vm0, %v11144_v60  ;;  %8433 = vmatpush.msk.msra.mxu1 %vm933_vm0, %v11146_v45  ;;  %v9342_v60 = vld [vmem:[#allocation21 + $0x4c0] sm:$0xff]  ;;  %v9344_v45 = vld [vmem:[#allocation21 + $0x4b0] sm:$0xff] }
0x1862   : > { %7007 = vmatpush.msrb.mxu2 %v9336_v16  ;;  %7027 = vmatpush.msra.mxu3 %v9337_v21  ;;  %v9383_v44 = vld [vmem:[#allocation21 + $0x510] sm:$0xff]  ;;  %v9384_v16 = vld [vmem:[#allocation21 + $0x468] sm:$0xff] }
0x1863   : > { %v9385_v21 = vld [vmem:[#allocation21 + $0x568] sm:$0xff] }
0x1864   : > { %7008 = vmatpush.msrb.mxu2 %v9338_v56  ;;  %7028 = vmatpush.msra.mxu3 %v9339_v29  ;;  %v9386_v56 = vld [vmem:[#allocation21 + $0x400] sm:$0xff] }
0x1865   : > { %v9387_v29 = vld [vmem:[#allocation21 + $0x500] sm:$0xff] }
0x1866   : > { %7009 = vmatpush.msrb.mxu2 %v9340_v50  ;;  %7029 = vmatpush.msra.mxu3 %v9341_v34  ;;  %v9390_v50 = vld [vmem:[#allocation21 + $0x448] sm:$0xff] }
0x1867   : > { %6891 = vmatmul.f32.vlgmr.msra.gmra.mxu0 %v6720_v62  ;;  %6911 = vmatmul.f32.vlgmr.msrb.gmra.mxu1 %v6740_v48  ;;  %v9391_v34 = vld [vmem:[#allocation21 + $0x548] sm:$0xff] }
0x1868   : > { %7010 = vmatpush.msrb.mxu2 %v9342_v60  ;;  %7030 = vmatpush.msra.mxu3 %v9343_v20  ;;  %v9392_v60 = vld [vmem:[#allocation21 + $0x438] sm:$0xff] }
0x1869   : > { %6931 = vmatmul.f32.vlgmr.msra.gmra.mxu2 %v6720_v62  ;;  %6951 = vmatmul.f32.vlgmr.msrb.gmra.mxu3 %v6740_v48  ;;  %v9388_v62 = vld [vmem:[#allocation21 + $0x458] sm:$0xff] }
0x186a   : > { %7011 = vmatpush.msrb.mxu2 %v9344_v45  ;;  %7031 = vmatpush.msra.mxu3 %v9345_v19  ;;  %v9389_v48 = vld [vmem:[#allocation21 + $0x558] sm:$0xff]  ;;  %v9394_v45 = vld [vmem:[#allocation21 + $0x428] sm:$0xff] }
0x186b   : > { %7047 = vmatpush.msra.mxu0 %v9346_v28  ;;  %7067 = vmatpush.msrb.mxu1 %v9347_v25  ;;  %v9393_v20 = vld [vmem:[#allocation21 + $0x538] sm:$0xff]  ;;  %v9395_v19 = vld [vmem:[#allocation21 + $0x528] sm:$0xff] }
0x186c   : > { %7012 = vmatpush.msrb.mxu2 %v9348_v52  ;;  %7032 = vmatpush.msra.mxu3 %v9349_v14  ;;  %v9397_v28 = vld [vmem:[#allocation21 + $0x518] sm:$0xff]  ;;  %v9399_v25 = vld [vmem:[#allocation21 + $0x508] sm:$0xff]  ;;  %v9400_v52 = vld [vmem:[#allocation21 + $0x6f0] sm:$0xff] }
0x186d   : > { %7048 = vmatpush.msra.mxu0 %v9350_v18  ;;  %7068 = vmatpush.msrb.mxu1 %v9351_v41  ;;  %v9401_v14 = vld [vmem:[#allocation21 + $0x7f0] sm:$0xff]  ;;  %v9403_v18 = vld [vmem:[#allocation21 + $0x7e0] sm:$0xff] }
0x186e   : > { %7013 = vmatpush.msrb.mxu2 %v9352_v17  ;;  %7033 = vmatpush.msra.mxu3 %v9353_v24  ;;  %v9404_v41 = vld [vmem:[#allocation21 + $0x6d0] sm:$0xff]  ;;  %v9406_v24 = vld [vmem:[#allocation21 + $0x6c0] sm:$0xff] }
0x186f   : > { %8432 = vmatmul.msk.f32.vlgmr.msrb.gmra.mxu0 %vm929_vm1, %v8430_v31  ;;  %8434 = vmatmul.msk.f32.vlgmr.msra.gmra.mxu1 %vm929_vm1, %v8430_v31  ;;  %v9402_v31 = vld [vmem:[#allocation21 + $0x6e0] sm:$0xff]  ;;  %v9405_v17 = vld [vmem:[#allocation21 + $0x7d0] sm:$0xff] }
0x1870   : > { %7014 = vmatpush.msrb.mxu2 %v9354_v33  ;;  %7034 = vmatpush.msra.mxu3 %v9355_v57  ;;  %v9407_v33 = vld [vmem:[#allocation21 + $0x7c0] sm:$0xff]  ;;  %v9408_v57 = vld [vmem:[#allocation21 + $0x6b0] sm:$0xff] }
0x1871   : > { %7049 = vmatpush.msra.mxu0 %v9356_v26  ;;  %7069 = vmatpush.msrb.mxu1 %v9357_v43  ;;  %v9409_v26 = vld [vmem:[#allocation21 + $0x7b0] sm:$0xff]  ;;  %v9410_v43 = vld [vmem:[#allocation21 + $0x6a0] sm:$0xff] }
0x1872   : > { %7015 = vmatpush.msrb.mxu2 %v9358_v55  ;;  %7035 = vmatpush.msra.mxu3 %v9359_v9  ;;  %v9411_v55 = vld [vmem:[#allocation21 + $0x7a0] sm:$0xff]  ;;  %v9412_v9 = vld [vmem:[#allocation21 + $0x690] sm:$0xff] }
0x1873   : > { %7050 = vmatpush.msra.mxu0 %v9360_v0  ;;  %7070 = vmatpush.msrb.mxu1 %v9361_v7  ;;  %v9413_v0 = vld [vmem:[#allocation21 + $0x790] sm:$0xff]  ;;  %v9414_v7 = vld [vmem:[#allocation21 + $0x680] sm:$0xff] }
0x1874   : > { %7016 = vmatpush.msrb.mxu2 %v9362_v3  ;;  %7036 = vmatpush.msra.mxu3 %v9363_v42  ;;  %v9415_v3 = vld [vmem:[#allocation21 + $0x780] sm:$0xff]  ;;  %v9416_v42 = vld [vmem:[#allocation21 + $0x670] sm:$0xff] }
0x1875   : > { %7051 = vmatpush.msra.mxu0 %v9364_v4  ;;  %7071 = vmatpush.msrb.mxu1 %v9365_v6  ;;  %v9417_v4 = vld [vmem:[#allocation21 + $0x770] sm:$0xff]  ;;  %v9418_v6 = vld [vmem:[#allocation21 + $0x660] sm:$0xff] }
0x1876   : > { %7017 = vmatpush.msrb.mxu2 %v9366_v12  ;;  %7037 = vmatpush.msra.mxu3 %v9367_v49  ;;  %v9419_v12 = vld [vmem:[#allocation21 + $0x760] sm:$0xff]  ;;  %v9420_v49 = vld [vmem:[#allocation21 + $0x650] sm:$0xff] }
0x1877   : > { %7052 = vmatpush.msra.mxu0 %v9368_v46  ;;  %7072 = vmatpush.msrb.mxu1 %v9369_v5  ;;  %v9421_v46 = vld [vmem:[#allocation21 + $0x750] sm:$0xff]  ;;  %v9422_v5 = vld [vmem:[#allocation21 + $0x640] sm:$0xff] }
0x1878   : > { %7018 = vmatpush.msrb.mxu2 %v9370_v61  ;;  %7038 = vmatpush.msra.mxu3 %v9371_v15  ;;  %v9423_v61 = vld [vmem:[#allocation21 + $0x740] sm:$0xff]  ;;  %v9424_v15 = vld [vmem:[#allocation21 + $0x630] sm:$0xff] }
0x1879   : > { %7053 = vmatpush.msra.mxu0 %v9372_v11  ;;  %7073 = vmatpush.msrb.mxu1 %v9373_v2  ;;  %v9425_v11 = vld [vmem:[#allocation21 + $0x730] sm:$0xff]  ;;  %v9426_v2 = vld [vmem:[#allocation21 + $0x620] sm:$0xff] }
0x187a   : > { %7019 = vmatpush.msrb.mxu2 %v9374_v27  ;;  %7039 = vmatpush.msra.mxu3 %v9375_v23  ;;  %v9427_v27 = vld [vmem:[#allocation21 + $0x720] sm:$0xff]  ;;  %v9428_v23 = vld [vmem:[#allocation21 + $0x610] sm:$0xff] }
0x187b   : > { %7054 = vmatpush.msra.mxu0 %v9376_v22  ;;  %7074 = vmatpush.msrb.mxu1 %v9377_v32  ;;  %v9429_v22 = vld [vmem:[#allocation21 + $0x710] sm:$0xff]  ;;  %v9430_v32 = vld [vmem:[#allocation21 + $0x600] sm:$0xff] }
0x187c   : > { %7020 = vmatpush.msrb.mxu2 %v9378_v40  ;;  %7040 = vmatpush.msra.mxu3 %v9379_v53  ;;  %v9431_v40 = vld [vmem:[#allocation21 + $0x700] sm:$0xff] }
0x187d   : > { %7055 = vmatpush.msra.mxu0 %v9380_v51  ;;  %7075 = vmatpush.msrb.mxu1 %v9381_v54 }
0x187e   : > { %7021 = vmatpush.msrb.mxu2 %v9382_v36  ;;  %7041 = vmatpush.msra.mxu3 %v9383_v44 }
0x187f   : > { %7056 = vmatpush.msra.mxu0 %v9384_v16  ;;  %7076 = vmatpush.msrb.mxu1 %v9385_v21 }
0x1880   : > { %7022 = vmatpush.msrb.mxu2 %v9386_v56  ;;  %7042 = vmatpush.msra.mxu3 %v9387_v29 }
0x1881   : > { %7057 = vmatpush.msra.mxu0 %v9388_v62  ;;  %7077 = vmatpush.msrb.mxu1 %v9389_v48 }
0x1882   : > { %8436 = vmatpush.msk.msra.mxu2 %vm933_vm0, %v11149_v35  ;;  %8438 = vmatpush.msk.msrb.mxu3 %vm933_vm0, %v11151_v38  ;;  %v9396_v35 = vld [vmem:[#allocation21 + $0x418] sm:$0xff]  ;;  %v9398_v38 = vld [vmem:[#allocation21 + $0x408] sm:$0xff] }
0x1883   : > { %7058 = vmatpush.msra.mxu0 %v9390_v50  ;;  %7078 = vmatpush.msrb.mxu1 %v9391_v34  ;;  %v9432_v34 = vld [vmem:[#allocation21 + $0x6f8] sm:$0xff] }
0x1885   : > { %7059 = vmatpush.msra.mxu0 %v9392_v60  ;;  %7079 = vmatpush.msrb.mxu1 %v9393_v20  ;;  %v9433_v60 = vld [vmem:[#allocation21 + $0x7f8] sm:$0xff]  ;;  %v9434_v20 = vld [vmem:[#allocation21 + $0x6e8] sm:$0xff] }
0x1887   : > { %7060 = vmatpush.msra.mxu0 %v9394_v45  ;;  %7080 = vmatpush.msrb.mxu1 %v9395_v19  ;;  %v9435_v45 = vld [vmem:[#allocation21 + $0x7e8] sm:$0xff]  ;;  %v9436_v19 = vld [vmem:[#allocation21 + $0x6d8] sm:$0xff] }
0x1889   : > { %7061 = vmatpush.msra.mxu0 %v9396_v35  ;;  %7081 = vmatpush.msrb.mxu1 %v9397_v28  ;;  %v9437_v35 = vld [vmem:[#allocation21 + $0x7d8] sm:$0xff]  ;;  %v8435_v28 = vld [vmem:[%s11552_s23 + $0x18] sm:$0x3] }
0x188b   : > { %7062 = vmatpush.msra.mxu0 %v9398_v38  ;;  %7082 = vmatpush.msrb.mxu1 %v9399_v25  ;;  %v9438_v38 = vld [vmem:[#allocation21 + $0x6c8] sm:$0xff] }
0x188c   : > { %v9439_v25 = vld [vmem:[#allocation21 + $0x7c8] sm:$0xff] }
0x188d   : > { %7141 = vmatpush.msrb.mxu0 %v9400_v52  ;;  %7161 = vmatpush.msra.mxu1 %v9401_v14  ;;  %v9442_v52 = vld [vmem:[#allocation21 + $0x6a8] sm:$0xff] }
0x188e   : > { %v9443_v14 = vld [vmem:[#allocation21 + $0x7a8] sm:$0xff] }
0x188f   : > { %7142 = vmatpush.msrb.mxu0 %v9402_v31  ;;  %7162 = vmatpush.msra.mxu1 %v9403_v18  ;;  %v9444_v31 = vld [vmem:[#allocation21 + $0x698] sm:$0xff] }
0x1890   : > { %v9445_v18 = vld [vmem:[#allocation21 + $0x798] sm:$0xff] }
0x1891   : > { %7143 = vmatpush.msrb.mxu0 %v9404_v41  ;;  %7163 = vmatpush.msra.mxu1 %v9405_v17  ;;  %v9446_v41 = vld [vmem:[#allocation21 + $0x688] sm:$0xff] }
0x1892   : > { %v9447_v17 = vld [vmem:[#allocation21 + $0x788] sm:$0xff] }
0x1893   : > { %7144 = vmatpush.msrb.mxu0 %v9406_v24  ;;  %7164 = vmatpush.msra.mxu1 %v9407_v33  ;;  %v9448_v24 = vld [vmem:[#allocation21 + $0x678] sm:$0xff] }
0x1894   : > { %v9449_v33 = vld [vmem:[#allocation21 + $0x778] sm:$0xff] }
0x1895   : > { %7145 = vmatpush.msrb.mxu0 %v9408_v57  ;;  %7165 = vmatpush.msra.mxu1 %v9409_v26  ;;  %v9450_v57 = vld [vmem:[#allocation21 + $0x668] sm:$0xff] }
0x1896   : > { %v9451_v26 = vld [vmem:[#allocation21 + $0x768] sm:$0xff] }
0x1897   : > { %7146 = vmatpush.msrb.mxu0 %v9410_v43  ;;  %7166 = vmatpush.msra.mxu1 %v9411_v55  ;;  %v9452_v43 = vld [vmem:[#allocation21 + $0x658] sm:$0xff] }
0x1898   : > { %v9453_v55 = vld [vmem:[#allocation21 + $0x758] sm:$0xff] }
0x1899   : > { %7147 = vmatpush.msrb.mxu0 %v9412_v9  ;;  %7167 = vmatpush.msra.mxu1 %v9413_v0  ;;  %v9454_v9 = vld [vmem:[#allocation21 + $0x648] sm:$0xff] }
0x189a   : > { %v9455_v0 = vld [vmem:[#allocation21 + $0x748] sm:$0xff] }
0x189b   : > { %7148 = vmatpush.msrb.mxu0 %v9414_v7  ;;  %7168 = vmatpush.msra.mxu1 %v9415_v3  ;;  %v9456_v7 = vld [vmem:[#allocation21 + $0x638] sm:$0xff] }
0x189c   : > { %v9457_v3 = vld [vmem:[#allocation21 + $0x738] sm:$0xff] }
0x189d   : > { %7149 = vmatpush.msrb.mxu0 %v9416_v42  ;;  %7169 = vmatpush.msra.mxu1 %v9417_v4  ;;  %v9458_v42 = vld [vmem:[#allocation21 + $0x628] sm:$0xff] }
0x189e   : > { %v9459_v4 = vld [vmem:[#allocation21 + $0x728] sm:$0xff] }
0x189f   : > { %7150 = vmatpush.msrb.mxu0 %v9418_v6  ;;  %7170 = vmatpush.msra.mxu1 %v9419_v12  ;;  %v9460_v6 = vld [vmem:[#allocation21 + $0x618] sm:$0xff] }
0x18a0   : > { %v9461_v12 = vld [vmem:[#allocation21 + $0x718] sm:$0xff] }
0x18a1   : > { %7151 = vmatpush.msrb.mxu0 %v9420_v49  ;;  %7171 = vmatpush.msra.mxu1 %v9421_v46  ;;  %v9462_v49 = vld [vmem:[#allocation21 + $0x608] sm:$0xff] }
0x18a2   : > { %v9463_v46 = vld [vmem:[#allocation21 + $0x708] sm:$0xff] }
0x18a3   : > { %7152 = vmatpush.msrb.mxu0 %v9422_v5  ;;  %7172 = vmatpush.msra.mxu1 %v9423_v61 }
0x18a5   : > { %7153 = vmatpush.msrb.mxu0 %v9424_v15  ;;  %7173 = vmatpush.msra.mxu1 %v9425_v11 }
0x18a7   : > { %7154 = vmatpush.msrb.mxu0 %v9426_v2  ;;  %7174 = vmatpush.msra.mxu1 %v9427_v27 }
0x18a9   : > { %7155 = vmatpush.msrb.mxu0 %v9428_v23  ;;  %7175 = vmatpush.msra.mxu1 %v9429_v22 }
0x18ab   : > { %7156 = vmatpush.msrb.mxu0 %v9430_v32  ;;  %7176 = vmatpush.msra.mxu1 %v9431_v40  ;;  %v9465_v32 = vld [vmem:[#allocation21 + $0xbf0] sm:$0xff]  ;;  %v9467_v40 = vld [vmem:[#allocation21 + $0xbf8] sm:$0xff] }
0x18dc   : > { %v6812_v53 = vpop.f32.mrf.mxu0  ;;  %v6832_v51 = vpop.f32.mrf.mxu1 }
0x18dd   : > { %v6833_v54 = vadd.f32 %v6832_v51, %v6812_v53  ;;  %v9468_v53 = vld [vmem:[#allocation21 + $0xae0] sm:$0xff] }
0x18de   : > { %v9469_v51 = vld [vmem:[#allocation21 + $0xbe0] sm:$0xff] }
0x18e3   : > { %v6852_v36 = vpop.f32.mrf.mxu2  ;;  %v6872_v44 = vpop.f32.mrf.mxu3 }
0x18e4   : > { %v11326_v16 = vadd.f32 %v6872_v44, %v6852_v36  ;;  %v6892_v21 = vpop.f32.mrf.mxu0  ;;  %v6912_v56 = vpop.f32.mrf.mxu1  ;;  %v9471_v36 = vld [vmem:[#allocation21 + $0xbe8] sm:$0xff]  ;;  %v9472_v44 = vld [vmem:[#allocation21 + $0xad0] sm:$0xff] }
0x18e5   : > { %v6893_v29 = vadd.f32 %v6892_v21, %v6833_v54  ;;  %v9470_v54 = vld [vmem:[#allocation21 + $0xae8] sm:$0xff]  ;;  %v9473_v21 = vld [vmem:[#allocation21 + $0xbd0] sm:$0xff] }
0x18e7   : > { %v11328_v62 = vadd.f32 %v6912_v56, %v6893_v29  ;;  %v8440_v56 = vld [vmem:[%s11552_s23 + $0x1a] sm:$0x3]  ;;  %v8445_v29 = vld [vmem:[%s11552_s23 + $0x1c] sm:$0x3] }
0x18ec   : > { %v6984_v48 = vpop.f32.mrf.mxu0  ;;  %v7004_v50 = vpop.f32.mrf.mxu1 }
0x18ed   : > { %7023 = vmatmul.f32.vlgmr.msrb.gmra.mxu2 %v6984_v48  ;;  %7043 = vmatmul.f32.vlgmr.msra.gmra.mxu3 %v7004_v50  ;;  %v11343_v5 = vpop.f32.mrf.mxu2  ;;  %v11345_v61 = vpop.f32.mrf.mxu3 }
0x18ee   : > { %7063 = vmatmul.f32.vlgmr.msra.gmra.mxu0 %v6984_v48  ;;  %7083 = vmatmul.f32.vlgmr.msrb.gmra.mxu1 %v7004_v50  ;;  %v9475_v48 = vld [vmem:[#allocation21 + $0xbd8] sm:$0xff]  ;;  %v9476_v50 = vld [vmem:[#allocation21 + $0xac0] sm:$0xff] }
0x18ef   : > { %7181 = vmatpush.msrb.mxu2 %v9432_v34  ;;  %7201 = vmatpush.msra.mxu3 %v9433_v60  ;;  %v9477_v34 = vld [vmem:[#allocation21 + $0xbc0] sm:$0xff]  ;;  %v9478_v60 = vld [vmem:[#allocation21 + $0xab0] sm:$0xff] }
0x18f0   : > { %8441 = vmatpush.msk.msra.mxu0 %vm933_vm0, %v11154_v10  ;;  %8443 = vmatpush.msk.msrb.mxu1 %vm933_vm0, %v11156_v13  ;;  %v9440_v10 = vld [vmem:[#allocation21 + $0x6b8] sm:$0xff] }
0x18f1   : > { %7182 = vmatpush.msrb.mxu2 %v9434_v20  ;;  %7202 = vmatpush.msra.mxu3 %v9435_v45  ;;  %v9441_v13 = vld [vmem:[#allocation21 + $0x7b8] sm:$0xff]  ;;  %v9479_v20 = vld [vmem:[#allocation21 + $0xbb0] sm:$0xff]  ;;  %v9480_v45 = vld [vmem:[#allocation21 + $0xac8] sm:$0xff] }
0x18f3   : > { %7183 = vmatpush.msrb.mxu2 %v9436_v19  ;;  %7203 = vmatpush.msra.mxu3 %v9437_v35  ;;  %v9481_v19 = vld [vmem:[#allocation21 + $0xaa0] sm:$0xff] }
0x18f4   : > { %v9482_v35 = vld [vmem:[#allocation21 + $0xba0] sm:$0xff] }
0x18f5   : > { %7184 = vmatpush.msrb.mxu2 %v9438_v38  ;;  %7204 = vmatpush.msra.mxu3 %v9439_v25  ;;  %v9484_v38 = vld [vmem:[#allocation21 + $0xa90] sm:$0xff]  ;;  %v9485_v25 = vld [vmem:[#allocation21 + $0xab8] sm:$0xff] }
0x18f6   : > { %8437 = vmatmul.msk.f32.vlgmr.msra.gmra.mxu2 %vm929_vm1, %v8435_v28  ;;  %8439 = vmatmul.msk.f32.vlgmr.msrb.gmra.mxu3 %vm929_vm1, %v8435_v28  ;;  %v9483_v28 = vld [vmem:[#allocation21 + $0xbc8] sm:$0xff] }
0x18f7   : > { %7185 = vmatpush.msrb.mxu2 %v9440_v10  ;;  %7205 = vmatpush.msra.mxu3 %v9441_v13  ;;  %v9486_v10 = vld [vmem:[#allocation21 + $0xb90] sm:$0xff]  ;;  %v9487_v13 = vld [vmem:[#allocation21 + $0xbb8] sm:$0xff] }
0x18f9   : > { %7186 = vmatpush.msrb.mxu2 %v9442_v52  ;;  %7206 = vmatpush.msra.mxu3 %v9443_v14  ;;  %v9488_v52 = vld [vmem:[#allocation21 + $0xa80] sm:$0xff]  ;;  %v9489_v14 = vld [vmem:[#allocation21 + $0xaa8] sm:$0xff] }
0x18fb   : > { %7187 = vmatpush.msrb.mxu2 %v9444_v31  ;;  %7207 = vmatpush.msra.mxu3 %v9445_v18  ;;  %v9490_v31 = vld [vmem:[#allocation21 + $0xb80] sm:$0xff]  ;;  %v9491_v18 = vld [vmem:[#allocation21 + $0xba8] sm:$0xff] }
0x18fd   : > { %7188 = vmatpush.msrb.mxu2 %v9446_v41  ;;  %7208 = vmatpush.msra.mxu3 %v9447_v17  ;;  %v9492_v41 = vld [vmem:[#allocation21 + $0xa70] sm:$0xff]  ;;  %v9493_v17 = vld [vmem:[#allocation21 + $0xa98] sm:$0xff] }
0x18ff   : > { %7189 = vmatpush.msrb.mxu2 %v9448_v24  ;;  %7209 = vmatpush.msra.mxu3 %v9449_v33  ;;  %v9494_v24 = vld [vmem:[#allocation21 + $0xb70] sm:$0xff]  ;;  %v9495_v33 = vld [vmem:[#allocation21 + $0xb98] sm:$0xff] }
0x1901   : > { %7190 = vmatpush.msrb.mxu2 %v9450_v57  ;;  %7210 = vmatpush.msra.mxu3 %v9451_v26  ;;  %v9496_v57 = vld [vmem:[#allocation21 + $0xa60] sm:$0xff]  ;;  %v9497_v26 = vld [vmem:[#allocation21 + $0xa88] sm:$0xff] }
0x1903   : > { %7191 = vmatpush.msrb.mxu2 %v9452_v43  ;;  %7211 = vmatpush.msra.mxu3 %v9453_v55  ;;  %v9498_v43 = vld [vmem:[#allocation21 + $0xb60] sm:$0xff]  ;;  %v9499_v55 = vld [vmem:[#allocation21 + $0xb88] sm:$0xff] }
0x1905   : > { %7192 = vmatpush.msrb.mxu2 %v9454_v9  ;;  %7212 = vmatpush.msra.mxu3 %v9455_v0  ;;  %v9500_v9 = vld [vmem:[#allocation21 + $0xa50] sm:$0xff]  ;;  %v9501_v0 = vld [vmem:[#allocation21 + $0xa78] sm:$0xff] }
0x1907   : > { %7193 = vmatpush.msrb.mxu2 %v9456_v7  ;;  %7213 = vmatpush.msra.mxu3 %v9457_v3  ;;  %v9502_v7 = vld [vmem:[#allocation21 + $0xb50] sm:$0xff]  ;;  %v9503_v3 = vld [vmem:[#allocation21 + $0xb78] sm:$0xff] }
0x1909   : > { %7194 = vmatpush.msrb.mxu2 %v9458_v42  ;;  %7214 = vmatpush.msra.mxu3 %v9459_v4  ;;  %v9504_v42 = vld [vmem:[#allocation21 + $0xa40] sm:$0xff]  ;;  %v9505_v4 = vld [vmem:[#allocation21 + $0xa68] sm:$0xff] }
0x190b   : > { %7195 = vmatpush.msrb.mxu2 %v9460_v6  ;;  %7215 = vmatpush.msra.mxu3 %v9461_v12  ;;  %v9506_v6 = vld [vmem:[#allocation21 + $0xb40] sm:$0xff]  ;;  %v9507_v12 = vld [vmem:[#allocation21 + $0xb68] sm:$0xff] }
0x190d   : > { %7196 = vmatpush.msrb.mxu2 %v9462_v49  ;;  %7216 = vmatpush.msra.mxu3 %v9463_v46  ;;  %v9508_v49 = vld [vmem:[#allocation21 + $0xa30] sm:$0xff]  ;;  %v9509_v46 = vld [vmem:[#allocation21 + $0xa58] sm:$0xff] }
0x190f   : > { %8446 = vmatpush.msk.msra.mxu2 %vm933_vm0, %v11159_v47  ;;  %8448 = vmatpush.msk.msrb.mxu3 %vm933_vm0, %v11161_v63  ;;  %v9464_v47 = vld [vmem:[#allocation21 + $0xaf0] sm:$0xff]  ;;  %v9466_v63 = vld [vmem:[#allocation21 + $0xaf8] sm:$0xff] }
0x1970   : > { %v7024_v15 = vpop.f32.mrf.mxu2  ;;  %v7044_v11 = vpop.f32.mrf.mxu3 }
0x1971   : > { %v7045_v2 = vadd.f32 %v7044_v11, %v7024_v15  ;;  %v9510_v15 = vld [vmem:[#allocation21 + $0xb30] sm:$0xff]  ;;  %v9511_v11 = vld [vmem:[#allocation21 + $0xb58] sm:$0xff] }
0x1973   : > { %v11348_v27 = vadd.f32 %v7045_v2, %v11328_v62  ;;  %v9474_v62 = vld [vmem:[#allocation21 + $0xad8] sm:$0xff]  ;;  %v9512_v2 = vld [vmem:[#allocation21 + $0xa20] sm:$0xff] }
0x1979   : > { %v7118_v23 = vpop.f32.mrf.mxu2  ;;  %v7138_v22 = vpop.f32.mrf.mxu3 }
0x197a   : > { %7157 = vmatmul.f32.vlgmr.msrb.gmra.mxu0 %v7118_v23  ;;  %7177 = vmatmul.f32.vlgmr.msra.gmra.mxu1 %v7138_v22 }
0x197b   : > { %7197 = vmatmul.f32.vlgmr.msrb.gmra.mxu2 %v7118_v23  ;;  %7217 = vmatmul.f32.vlgmr.msra.gmra.mxu3 %v7138_v22  ;;  %v9513_v23 = vld [vmem:[#allocation21 + $0xa48] sm:$0xff]  ;;  %v9514_v22 = vld [vmem:[#allocation21 + $0xb20] sm:$0xff] }
0x197c   : > { %7329 = vmatpush.msrb.mxu0 %v9464_v47  ;;  %7349 = vmatpush.msra.mxu1 %v9465_v32  ;;  %v9515_v47 = vld [vmem:[#allocation21 + $0xb48] sm:$0xff]  ;;  %v9516_v32 = vld [vmem:[#allocation21 + $0xa10] sm:$0xff] }
0x197d   : > { %7369 = vmatpush.msrb.mxu2 %v9466_v63  ;;  %7389 = vmatpush.msra.mxu3 %v9467_v40  ;;  %v9517_v63 = vld [vmem:[#allocation21 + $0xa38] sm:$0xff]  ;;  %v9518_v40 = vld [vmem:[#allocation21 + $0xb10] sm:$0xff] }
0x197e   : > { %7330 = vmatpush.msrb.mxu0 %v9468_v53  ;;  %7350 = vmatpush.msra.mxu1 %v9469_v51  ;;  %v9519_v53 = vld [vmem:[#allocation21 + $0xb38] sm:$0xff]  ;;  %v9520_v51 = vld [vmem:[#allocation21 + $0xa00] sm:$0xff] }
0x197f   : > { %7370 = vmatpush.msrb.mxu2 %v9470_v54  ;;  %7390 = vmatpush.msra.mxu3 %v9471_v36  ;;  %v9521_v54 = vld [vmem:[#allocation21 + $0xa28] sm:$0xff]  ;;  %v9522_v36 = vld [vmem:[#allocation21 + $0xb00] sm:$0xff] }
0x1980   : > { %7331 = vmatpush.msrb.mxu0 %v9472_v44  ;;  %7351 = vmatpush.msra.mxu1 %v9473_v21  ;;  %v9523_v44 = vld [vmem:[#allocation21 + $0xb28] sm:$0xff]  ;;  %v9524_v21 = vld [vmem:[#allocation21 + $0xa18] sm:$0xff] }
0x1981   : > { %7371 = vmatpush.msrb.mxu2 %v9474_v62  ;;  %7391 = vmatpush.msra.mxu3 %v9475_v48  ;;  %v9527_v62 = vld [vmem:[#allocation21 + $0xb08] sm:$0xff]  ;;  %v9528_v48 = vld [vmem:[#allocation21 + $0xcf0] sm:$0xff] }
0x1982   : > { %7332 = vmatpush.msrb.mxu0 %v9476_v50  ;;  %7352 = vmatpush.msra.mxu1 %v9477_v34  ;;  %v9529_v50 = vld [vmem:[#allocation21 + $0xdf0] sm:$0xff]  ;;  %v9530_v34 = vld [vmem:[#allocation21 + $0xce0] sm:$0xff] }
0x1983   : > { %8442 = vmatmul.msk.f32.vlgmr.msra.gmra.mxu0 %vm929_vm1, %v8440_v56  ;;  %8447 = vmatmul.msk.f32.vlgmr.msra.gmra.mxu2 %vm929_vm1, %v8445_v29 }
0x1984   : > { %8449 = vmatmul.msk.f32.vlgmr.msrb.gmra.mxu3 %vm929_vm1, %v8445_v29  ;;  %7333 = vmatpush.msrb.mxu0 %v9478_v60  ;;  %v9526_v29 = vld [vmem:[#allocation21 + $0xa08] sm:$0xff]  ;;  %v9532_v60 = vld [vmem:[#allocation21 + $0xcd0] sm:$0xff] }
0x1985   : > { %7353 = vmatpush.msra.mxu1 %v9479_v20  ;;  %7372 = vmatpush.msrb.mxu2 %v9480_v45  ;;  %v9534_v20 = vld [vmem:[#allocation21 + $0xcc0] sm:$0xff] }
0x1986   : > { %8444 = vmatmul.msk.f32.vlgmr.msrb.gmra.mxu1 %vm929_vm1, %v8440_v56  ;;  %7334 = vmatpush.msrb.mxu0 %v9481_v19  ;;  %v9525_v56 = vld [vmem:[#allocation21 + $0xb18] sm:$0xff]  ;;  %v9535_v45 = vld [vmem:[#allocation21 + $0xdc0] sm:$0xff]  ;;  %v9536_v19 = vld [vmem:[#allocation21 + $0xcb0] sm:$0xff] }
0x1987   : > { %7354 = vmatpush.msra.mxu1 %v9482_v35  ;;  %7392 = vmatpush.msra.mxu3 %v9483_v28  ;;  %v9537_v35 = vld [vmem:[#allocation21 + $0xdb0] sm:$0xff]  ;;  %v9538_v28 = vld [vmem:[#allocation21 + $0xca0] sm:$0xff] }
0x1988   : > { %7335 = vmatpush.msrb.mxu0 %v9484_v38  ;;  %7373 = vmatpush.msrb.mxu2 %v9485_v25  ;;  %v9539_v38 = vld [vmem:[#allocation21 + $0xda0] sm:$0xff]  ;;  %v9540_v25 = vld [vmem:[#allocation21 + $0xc90] sm:$0xff] }
0x1989   : > { %7355 = vmatpush.msra.mxu1 %v9486_v10  ;;  %7393 = vmatpush.msra.mxu3 %v9487_v13  ;;  %v9541_v10 = vld [vmem:[#allocation21 + $0xd90] sm:$0xff]  ;;  %v9542_v13 = vld [vmem:[#allocation21 + $0xc80] sm:$0xff] }
0x198a   : > { %7336 = vmatpush.msrb.mxu0 %v9488_v52  ;;  %7374 = vmatpush.msrb.mxu2 %v9489_v14  ;;  %v9543_v52 = vld [vmem:[#allocation21 + $0xd80] sm:$0xff]  ;;  %v9544_v14 = vld [vmem:[#allocation21 + $0xc70] sm:$0xff] }
0x198b   : > { %7356 = vmatpush.msra.mxu1 %v9490_v31  ;;  %7394 = vmatpush.msra.mxu3 %v9491_v18  ;;  %v9545_v31 = vld [vmem:[#allocation21 + $0xd70] sm:$0xff]  ;;  %v9546_v18 = vld [vmem:[#allocation21 + $0xc60] sm:$0xff] }
0x198c   : > { %7337 = vmatpush.msrb.mxu0 %v9492_v41  ;;  %7375 = vmatpush.msrb.mxu2 %v9493_v17  ;;  %v9547_v41 = vld [vmem:[#allocation21 + $0xd60] sm:$0xff]  ;;  %v9548_v17 = vld [vmem:[#allocation21 + $0xc50] sm:$0xff] }
0x198d   : > { %7357 = vmatpush.msra.mxu1 %v9494_v24  ;;  %7395 = vmatpush.msra.mxu3 %v9495_v33  ;;  %v9549_v24 = vld [vmem:[#allocation21 + $0xd50] sm:$0xff]  ;;  %v9550_v33 = vld [vmem:[#allocation21 + $0xc40] sm:$0xff] }
0x198e   : > { %7338 = vmatpush.msrb.mxu0 %v9496_v57  ;;  %7376 = vmatpush.msrb.mxu2 %v9497_v26  ;;  %v9551_v57 = vld [vmem:[#allocation21 + $0xd40] sm:$0xff]  ;;  %v9552_v26 = vld [vmem:[#allocation21 + $0xc30] sm:$0xff] }
0x198f   : > { %7358 = vmatpush.msra.mxu1 %v9498_v43  ;;  %7396 = vmatpush.msra.mxu3 %v9499_v55  ;;  %v9553_v43 = vld [vmem:[#allocation21 + $0xd30] sm:$0xff]  ;;  %v9554_v55 = vld [vmem:[#allocation21 + $0xc20] sm:$0xff] }
0x1990   : > { %7339 = vmatpush.msrb.mxu0 %v9500_v9  ;;  %7377 = vmatpush.msrb.mxu2 %v9501_v0  ;;  %v9555_v9 = vld [vmem:[#allocation21 + $0xd20] sm:$0xff]  ;;  %v9556_v0 = vld [vmem:[#allocation21 + $0xc10] sm:$0xff] }
0x1991   : > { %7359 = vmatpush.msra.mxu1 %v9502_v7  ;;  %7397 = vmatpush.msra.mxu3 %v9503_v3  ;;  %v9557_v7 = vld [vmem:[#allocation21 + $0xd10] sm:$0xff]  ;;  %v9558_v3 = vld [vmem:[#allocation21 + $0xc00] sm:$0xff] }
0x1992   : > { %7340 = vmatpush.msrb.mxu0 %v9504_v42  ;;  %7378 = vmatpush.msrb.mxu2 %v9505_v4  ;;  %v9559_v42 = vld [vmem:[#allocation21 + $0xd00] sm:$0xff]  ;;  %v7064_v4 = vpop.f32.mrf.mxu0 }
0x1993   : > { %7360 = vmatpush.msra.mxu1 %v9506_v6  ;;  %7398 = vmatpush.msra.mxu3 %v9507_v12  ;;  %v7084_v6 = vpop.f32.mrf.mxu1 }
0x1994   : > { %7341 = vmatpush.msrb.mxu0 %v9508_v49  ;;  %7379 = vmatpush.msrb.mxu2 %v9509_v46 }
0x1995   : > { %7361 = vmatpush.msra.mxu1 %v9510_v15  ;;  %7399 = vmatpush.msra.mxu3 %v9511_v11  ;;  %v6933_v15 = vadd.f32 %v11343_v5, %v11326_v16  ;;  %v9560_v16 = vld [vmem:[#allocation21 + $0xcf8] sm:$0xff] }
0x1996   : > { %7342 = vmatpush.msrb.mxu0 %v9512_v2  ;;  %7380 = vmatpush.msrb.mxu2 %v9513_v23  ;;  %v7085_v2 = vadd.f32 %v7084_v6, %v7064_v4  ;;  %v9561_v5 = vld [vmem:[#allocation21 + $0xdf8] sm:$0xff]  ;;  %v9604_v4 = vld [vmem:[#allocation21 + $0xe90] sm:$0xff] }
0x1997   : > { %7362 = vmatpush.msra.mxu1 %v9514_v22  ;;  %7400 = vmatpush.msra.mxu3 %v9515_v47  ;;  %v6953_v23 = vadd.f32 %v11345_v61, %v6933_v15  ;;  %v8450_v61 = vld [vmem:[%s11552_s23 + $0x1e] sm:$0x3]  ;;  %v9605_v6 = vld [vmem:[#allocation21 + $0xf90] sm:$0xff] }
0x1998   : > { %7343 = vmatpush.msrb.mxu0 %v9516_v32  ;;  %7381 = vmatpush.msrb.mxu2 %v9517_v63  ;;  %v9609_v15 = vld [vmem:[#allocation21 + $0xf70] sm:$0xff] }
0x1999   : > { %7363 = vmatpush.msra.mxu1 %v9518_v40  ;;  %7401 = vmatpush.msra.mxu3 %v9519_v53  ;;  %v7088_v32 = vadd.f32 %v7085_v2, %v6953_v23  ;;  %v9610_v2 = vld [vmem:[#allocation21 + $0xe60] sm:$0xff] }
0x199a   : > { %7344 = vmatpush.msrb.mxu0 %v9520_v51  ;;  %7382 = vmatpush.msrb.mxu2 %v9521_v54  ;;  %v9563_v54 = vld [vmem:[#allocation21 + $0xde8] sm:$0xff]  ;;  %v9611_v23 = vld [vmem:[#allocation21 + $0xf60] sm:$0xff] }
0x199b   : > { %7364 = vmatpush.msra.mxu1 %v9522_v36  ;;  %7402 = vmatpush.msra.mxu3 %v9523_v44  ;;  %v9564_v36 = vld [vmem:[#allocation21 + $0xcd8] sm:$0xff] }
0x199c   : > { %8451 = vmatpush.msk.msra.mxu0 %vm933_vm0, %v11164_v8  ;;  %7383 = vmatpush.msrb.mxu2 %v9524_v21  ;;  %v9531_v8 = vld [vmem:[#allocation21 + $0xde0] sm:$0xff]  ;;  %v9565_v44 = vld [vmem:[#allocation21 + $0xdd8] sm:$0xff] }
0x199d   : > { %8453 = vmatpush.msk.msrb.mxu1 %vm933_vm0, %v11166_v58  ;;  %7403 = vmatpush.msra.mxu3 %v9525_v56  ;;  %v9533_v58 = vld [vmem:[#allocation21 + $0xdd0] sm:$0xff]  ;;  %v9568_v21 = vld [vmem:[#allocation21 + $0xcb8] sm:$0xff] }
0x199e   : > { %7384 = vmatpush.msrb.mxu2 %v9526_v29  ;;  %v9569_v56 = vld [vmem:[#allocation21 + $0xdb8] sm:$0xff]  ;;  %v9570_v29 = vld [vmem:[#allocation21 + $0xca8] sm:$0xff] }
0x199f   : > { %7404 = vmatpush.msra.mxu3 %v9527_v62  ;;  %v9571_v62 = vld [vmem:[#allocation21 + $0xda8] sm:$0xff] }
0x19a0   : > { %7463 = vmatpush.msra.mxu2 %v9528_v48  ;;  %v9572_v48 = vld [vmem:[#allocation21 + $0xc98] sm:$0xff] }
0x19a1   : > { %7483 = vmatpush.msrb.mxu3 %v9529_v50  ;;  %v9573_v50 = vld [vmem:[#allocation21 + $0xd98] sm:$0xff] }
0x19a2   : > { %7464 = vmatpush.msra.mxu2 %v9530_v34  ;;  %v9574_v34 = vld [vmem:[#allocation21 + $0xc88] sm:$0xff] }
0x19a3   : > { %7484 = vmatpush.msrb.mxu3 %v9531_v8  ;;  %v9575_v8 = vld [vmem:[#allocation21 + $0xd88] sm:$0xff] }
0x19a4   : > { %7465 = vmatpush.msra.mxu2 %v9532_v60  ;;  %v9576_v60 = vld [vmem:[#allocation21 + $0xc78] sm:$0xff] }
0x19a5   : > { %7485 = vmatpush.msrb.mxu3 %v9533_v58  ;;  %v9577_v58 = vld [vmem:[#allocation21 + $0xd78] sm:$0xff] }
0x19a6   : > { %7466 = vmatpush.msra.mxu2 %v9534_v20  ;;  %v9578_v20 = vld [vmem:[#allocation21 + $0xc68] sm:$0xff] }
0x19a7   : > { %7486 = vmatpush.msrb.mxu3 %v9535_v45  ;;  %v9579_v45 = vld [vmem:[#allocation21 + $0xd68] sm:$0xff] }
0x19a8   : > { %7467 = vmatpush.msra.mxu2 %v9536_v19  ;;  %v9580_v19 = vld [vmem:[#allocation21 + $0xc58] sm:$0xff] }
0x19a9   : > { %7487 = vmatpush.msrb.mxu3 %v9537_v35  ;;  %v9581_v35 = vld [vmem:[#allocation21 + $0xd58] sm:$0xff] }
0x19aa   : > { %7468 = vmatpush.msra.mxu2 %v9538_v28  ;;  %v9582_v28 = vld [vmem:[#allocation21 + $0xc48] sm:$0xff] }
0x19ab   : > { %7488 = vmatpush.msrb.mxu3 %v9539_v38  ;;  %v9583_v38 = vld [vmem:[#allocation21 + $0xd48] sm:$0xff] }
0x19ac   : > { %7469 = vmatpush.msra.mxu2 %v9540_v25  ;;  %v9584_v25 = vld [vmem:[#allocation21 + $0xc38] sm:$0xff] }
0x19ad   : > { %7489 = vmatpush.msrb.mxu3 %v9541_v10  ;;  %v9585_v10 = vld [vmem:[#allocation21 + $0xd38] sm:$0xff] }
0x19ae   : > { %7470 = vmatpush.msra.mxu2 %v9542_v13  ;;  %v9586_v13 = vld [vmem:[#allocation21 + $0xc28] sm:$0xff] }
0x19af   : > { %7490 = vmatpush.msrb.mxu3 %v9543_v52  ;;  %v9587_v52 = vld [vmem:[#allocation21 + $0xd28] sm:$0xff] }
0x19b0   : > { %7471 = vmatpush.msra.mxu2 %v9544_v14  ;;  %v9588_v14 = vld [vmem:[#allocation21 + $0xc18] sm:$0xff] }
0x19b1   : > { %7491 = vmatpush.msrb.mxu3 %v9545_v31  ;;  %v9589_v31 = vld [vmem:[#allocation21 + $0xd18] sm:$0xff] }
0x19b2   : > { %7472 = vmatpush.msra.mxu2 %v9546_v18  ;;  %v9590_v18 = vld [vmem:[#allocation21 + $0xc08] sm:$0xff] }
0x19b3   : > { %7492 = vmatpush.msrb.mxu3 %v9547_v41  ;;  %v9591_v41 = vld [vmem:[#allocation21 + $0xd08] sm:$0xff] }
0x19b4   : > { %7473 = vmatpush.msra.mxu2 %v9548_v17  ;;  %v9592_v17 = vld [vmem:[#allocation21 + $0xef0] sm:$0xff] }
0x19b5   : > { %7493 = vmatpush.msrb.mxu3 %v9549_v24  ;;  %v9593_v24 = vld [vmem:[#allocation21 + $0xff0] sm:$0xff] }
0x19b6   : > { %7474 = vmatpush.msra.mxu2 %v9550_v33  ;;  %v9594_v33 = vld [vmem:[#allocation21 + $0xee0] sm:$0xff] }
0x19b7   : > { %7494 = vmatpush.msrb.mxu3 %v9551_v57  ;;  %v9595_v57 = vld [vmem:[#allocation21 + $0xfe0] sm:$0xff] }
0x19b8   : > { %7475 = vmatpush.msra.mxu2 %v9552_v26  ;;  %v9596_v26 = vld [vmem:[#allocation21 + $0xed0] sm:$0xff] }
0x19b9   : > { %7495 = vmatpush.msrb.mxu3 %v9553_v43  ;;  %v9597_v43 = vld [vmem:[#allocation21 + $0xfd0] sm:$0xff] }
0x19ba   : > { %7476 = vmatpush.msra.mxu2 %v9554_v55  ;;  %v9598_v55 = vld [vmem:[#allocation21 + $0xec0] sm:$0xff] }
0x19bb   : > { %7496 = vmatpush.msrb.mxu3 %v9555_v9  ;;  %v9599_v9 = vld [vmem:[#allocation21 + $0xfc0] sm:$0xff] }
0x19bc   : > { %7477 = vmatpush.msra.mxu2 %v9556_v0  ;;  %v9600_v0 = vld [vmem:[#allocation21 + $0xeb0] sm:$0xff] }
0x19bd   : > { %7497 = vmatpush.msrb.mxu3 %v9557_v7  ;;  %v9601_v7 = vld [vmem:[#allocation21 + $0xfb0] sm:$0xff] }
0x19be   : > { %7478 = vmatpush.msra.mxu2 %v9558_v3  ;;  %v9602_v3 = vld [vmem:[#allocation21 + $0xea0] sm:$0xff] }
0x19bf   : > { %7498 = vmatpush.msrb.mxu3 %v9559_v42  ;;  %v9603_v42 = vld [vmem:[#allocation21 + $0xfa0] sm:$0xff] }
0x19f7   : > { %v7158_v12 = vpop.f32.mrf.mxu0  ;;  %v7178_v49 = vpop.f32.mrf.mxu1 }
0x19f8   : > { %v7179_v46 = vadd.f32 %v7178_v49, %v7158_v12  ;;  %v9606_v12 = vld [vmem:[#allocation21 + $0xe80] sm:$0xff] }
0x19f9   : > { %v9607_v49 = vld [vmem:[#allocation21 + $0xf80] sm:$0xff] }
0x19fa   : > { %v11367_v11 = vadd.f32 %v7179_v46, %v11348_v27  ;;  %v9562_v27 = vld [vmem:[#allocation21 + $0xce8] sm:$0xff]  ;;  %v9608_v46 = vld [vmem:[#allocation21 + $0xe70] sm:$0xff] }
0x19fe   : > { %v7198_v22 = vpop.f32.mrf.mxu2  ;;  %v7218_v47 = vpop.f32.mrf.mxu3 }
0x19ff   : > { %v7219_v63 = vadd.f32 %v7218_v47, %v7198_v22  ;;  %v9612_v22 = vld [vmem:[#allocation21 + $0xe50] sm:$0xff] }
0x1a00   : > { %v9613_v47 = vld [vmem:[#allocation21 + $0xf50] sm:$0xff] }
0x1a01   : > { %v11370_v40 = vadd.f32 %v7219_v63, %v7088_v32  ;;  %v9614_v32 = vld [vmem:[#allocation21 + $0xe40] sm:$0xff] }
0x1a02   : > { %v9615_v63 = vld [vmem:[#allocation21 + $0xf40] sm:$0xff] }
0x1a06   : > { %v7306_v53 = vpop.f32.mrf.mxu2 }
0x1a07   : > { %v7326_v51 = vpop.f32.mrf.mxu3  ;;  %7345 = vmatmul.f32.vlgmr.msrb.gmra.mxu0 %v7306_v53  ;;  %7385 = vmatmul.f32.vlgmr.msrb.gmra.mxu2 %v7306_v53  ;;  %v9616_v53 = vld [vmem:[#allocation21 + $0xe30] sm:$0xff] }
0x1a08   : > { %7365 = vmatmul.f32.vlgmr.msra.gmra.mxu1 %v7326_v51  ;;  %7405 = vmatmul.f32.vlgmr.msra.gmra.mxu3 %v7326_v51  ;;  %v9617_v51 = vld [vmem:[#allocation21 + $0xf30] sm:$0xff] }
0x1a09   : > { %8456 = vmatpush.msk.msrb.mxu2 %vm933_vm0, %v11169_v39  ;;  %8458 = vmatpush.msk.msra.mxu3 %vm933_vm0, %v11171_v1  ;;  %v9566_v39 = vld [vmem:[#allocation21 + $0xcc8] sm:$0xff] }
0x1a0a   : > { %7503 = vmatpush.msrb.mxu0 %v9560_v16  ;;  %7523 = vmatpush.msra.mxu1 %v9561_v5  ;;  %v9567_v1 = vld [vmem:[#allocation21 + $0xdc8] sm:$0xff]  ;;  %v9618_v16 = vld [vmem:[#allocation21 + $0xe20] sm:$0xff] }
0x1a0b   : > { %v9619_v5 = vld [vmem:[#allocation21 + $0xf20] sm:$0xff] }
0x1a0c   : > { %7504 = vmatpush.msrb.mxu0 %v9562_v27  ;;  %7524 = vmatpush.msra.mxu1 %v9563_v54  ;;  %v9621_v27 = vld [vmem:[#allocation21 + $0xf10] sm:$0xff]  ;;  %v9622_v54 = vld [vmem:[#allocation21 + $0xe00] sm:$0xff] }
0x1a0e   : > { %7505 = vmatpush.msrb.mxu0 %v9564_v36  ;;  %7525 = vmatpush.msra.mxu1 %v9565_v44  ;;  %v9623_v36 = vld [vmem:[#allocation21 + $0xf00] sm:$0xff]  ;;  %v7252_v44 = vpop.f32.mrf.mxu0 }
0x1a0f   : > { %8452 = vmatmul.msk.f32.vlgmr.msra.gmra.mxu0 %vm929_vm1, %v8450_v61 }
0x1a10   : > { %8454 = vmatmul.msk.f32.vlgmr.msrb.gmra.mxu1 %vm929_vm1, %v8450_v61  ;;  %7506 = vmatpush.msrb.mxu0 %v9566_v39  ;;  %v9620_v61 = vld [vmem:[#allocation21 + $0xe10] sm:$0xff]  ;;  %v11381_v39 = vpop.f32.mrf.mxu1 }
0x1a11   : > { %7526 = vmatpush.msra.mxu1 %v9567_v1 }
0x1a12   : > { %7507 = vmatpush.msrb.mxu0 %v9568_v21 }
0x1a13   : > { %7527 = vmatpush.msra.mxu1 %v9569_v56  ;;  %v7275_v56 = vadd.f32 %v7252_v44, %v11367_v11  ;;  %v8455_v11 = vld [vmem:[%s11552_s23 + $0x20] sm:$0x3] }
0x1a14   : > { %7508 = vmatpush.msrb.mxu0 %v9570_v29  ;;  %v9672_v44 = vld [vmem:[#allocation21 + $0x1070] sm:$0xff] }
0x1a15   : > { %7528 = vmatpush.msra.mxu1 %v9571_v62 }
0x1a16   : > { %7509 = vmatpush.msrb.mxu0 %v9572_v48 }
0x1a17   : > { %7529 = vmatpush.msra.mxu1 %v9573_v50 }
0x1a18   : > { %7510 = vmatpush.msrb.mxu0 %v9574_v34  ;;  %v7682_v34 = vld.sshfl [vmem:[#allocation1] sm:$0xff pattern:$0x75316420] }
0x1a19   : > { %7530 = vmatpush.msra.mxu1 %v9575_v8  ;;  %v7683_v8 = vld.sshfl [vmem:[#allocation1 + $0x8] sm:$0xff pattern:$0x75316420] }
0x1a1a   : > { %7511 = vmatpush.msrb.mxu0 %v9576_v60  ;;  %v9624_v60 = vld [vmem:[#allocation21 + $0xef8] sm:$0xff] }
0x1a1b   : > { %7531 = vmatpush.msra.mxu1 %v9577_v58  ;;  %v9625_v58 = vld [vmem:[#allocation21 + $0xff8] sm:$0xff] }
0x1a1c   : > { %7512 = vmatpush.msrb.mxu0 %v9578_v20  ;;  %v9626_v20 = vld [vmem:[#allocation21 + $0xee8] sm:$0xff] }
0x1a1d   : > { %7532 = vmatpush.msra.mxu1 %v9579_v45  ;;  %v9627_v45 = vld [vmem:[#allocation21 + $0xfe8] sm:$0xff] }
0x1a1e   : > { %7513 = vmatpush.msrb.mxu0 %v9580_v19  ;;  %v9628_v19 = vld [vmem:[#allocation21 + $0xed8] sm:$0xff] }
0x1a1f   : > { %7533 = vmatpush.msra.mxu1 %v9581_v35  ;;  %v9629_v35 = vld [vmem:[#allocation21 + $0xfd8] sm:$0xff] }
0x1a20   : > { %7514 = vmatpush.msrb.mxu0 %v9582_v28  ;;  %v9630_v28 = vld [vmem:[#allocation21 + $0xec8] sm:$0xff] }
0x1a21   : > { %7534 = vmatpush.msra.mxu1 %v9583_v38  ;;  %v9631_v38 = vld [vmem:[#allocation21 + $0xfc8] sm:$0xff] }
0x1a22   : > { %7515 = vmatpush.msrb.mxu0 %v9584_v25  ;;  %v9632_v25 = vld [vmem:[#allocation21 + $0xeb8] sm:$0xff] }
0x1a23   : > { %7535 = vmatpush.msra.mxu1 %v9585_v10  ;;  %v9633_v10 = vld [vmem:[#allocation21 + $0xfb8] sm:$0xff] }
0x1a24   : > { %7516 = vmatpush.msrb.mxu0 %v9586_v13  ;;  %v9634_v13 = vld [vmem:[#allocation21 + $0xea8] sm:$0xff] }
0x1a25   : > { %7536 = vmatpush.msra.mxu1 %v9587_v52  ;;  %v9635_v52 = vld [vmem:[#allocation21 + $0xfa8] sm:$0xff] }
0x1a26   : > { %7517 = vmatpush.msrb.mxu0 %v9588_v14  ;;  %v9636_v14 = vld [vmem:[#allocation21 + $0xe98] sm:$0xff] }
0x1a27   : > { %7537 = vmatpush.msra.mxu1 %v9589_v31  ;;  %v9637_v31 = vld [vmem:[#allocation21 + $0xf98] sm:$0xff] }
0x1a28   : > { %7518 = vmatpush.msrb.mxu0 %v9590_v18  ;;  %v9638_v18 = vld [vmem:[#allocation21 + $0xe88] sm:$0xff] }
0x1a29   : > { %7538 = vmatpush.msra.mxu1 %v9591_v41  ;;  %v9639_v41 = vld [vmem:[#allocation21 + $0xf88] sm:$0xff] }
0x1a2a   : > { %7597 = vmatpush.msra.mxu0 %v9592_v17  ;;  %v9640_v17 = vld [vmem:[#allocation21 + $0xe78] sm:$0xff] }
0x1a2b   : > { %7617 = vmatpush.msrb.mxu1 %v9593_v24  ;;  %v9641_v24 = vld [vmem:[#allocation21 + $0xf78] sm:$0xff] }
0x1a2c   : > { %7598 = vmatpush.msra.mxu0 %v9594_v33  ;;  %v9642_v33 = vld [vmem:[#allocation21 + $0xe68] sm:$0xff] }
0x1a2d   : > { %7618 = vmatpush.msrb.mxu1 %v9595_v57  ;;  %v9643_v57 = vld [vmem:[#allocation21 + $0xf68] sm:$0xff] }
0x1a2e   : > { %7599 = vmatpush.msra.mxu0 %v9596_v26  ;;  %v9644_v26 = vld [vmem:[#allocation21 + $0xe58] sm:$0xff] }
0x1a2f   : > { %7619 = vmatpush.msrb.mxu1 %v9597_v43  ;;  %v9645_v43 = vld [vmem:[#allocation21 + $0xf58] sm:$0xff] }
0x1a30   : > { %7600 = vmatpush.msra.mxu0 %v9598_v55  ;;  %v9646_v55 = vld [vmem:[#allocation21 + $0xe48] sm:$0xff] }
0x1a31   : > { %7620 = vmatpush.msrb.mxu1 %v9599_v9  ;;  %v9647_v9 = vld [vmem:[#allocation21 + $0xf48] sm:$0xff] }
0x1a32   : > { %7601 = vmatpush.msra.mxu0 %v9600_v0  ;;  %v9648_v0 = vld [vmem:[#allocation21 + $0xe38] sm:$0xff] }
0x1a33   : > { %7621 = vmatpush.msrb.mxu1 %v9601_v7  ;;  %v9649_v7 = vld [vmem:[#allocation21 + $0xf38] sm:$0xff] }
0x1a34   : > { %7602 = vmatpush.msra.mxu0 %v9602_v3  ;;  %v9650_v3 = vld [vmem:[#allocation21 + $0xe28] sm:$0xff] }
0x1a35   : > { %7622 = vmatpush.msrb.mxu1 %v9603_v42  ;;  %v9651_v42 = vld [vmem:[#allocation21 + $0xf28] sm:$0xff] }
0x1a36   : > { %7603 = vmatpush.msra.mxu0 %v9604_v4  ;;  %v9652_v4 = vld [vmem:[#allocation21 + $0xe18] sm:$0xff] }
0x1a37   : > { %7623 = vmatpush.msrb.mxu1 %v9605_v6  ;;  %v9653_v6 = vld [vmem:[#allocation21 + $0xf18] sm:$0xff] }
0x1a38   : > { %7604 = vmatpush.msra.mxu0 %v9606_v12  ;;  %v9654_v12 = vld [vmem:[#allocation21 + $0xe08] sm:$0xff] }
0x1a39   : > { %7624 = vmatpush.msrb.mxu1 %v9607_v49  ;;  %v9655_v49 = vld [vmem:[#allocation21 + $0xf08] sm:$0xff] }
0x1a3a   : > { %7605 = vmatpush.msra.mxu0 %v9608_v46  ;;  %v9656_v46 = vld [vmem:[#allocation21 + $0x10f0] sm:$0xff] }
0x1a3b   : > { %7625 = vmatpush.msrb.mxu1 %v9609_v15  ;;  %v9657_v15 = vld [vmem:[#allocation21 + $0x11f0] sm:$0xff] }
0x1a3c   : > { %7606 = vmatpush.msra.mxu0 %v9610_v2  ;;  %v9658_v2 = vld [vmem:[#allocation21 + $0x10e0] sm:$0xff] }
0x1a3d   : > { %7626 = vmatpush.msrb.mxu1 %v9611_v23  ;;  %v9659_v23 = vld [vmem:[#allocation21 + $0x11e0] sm:$0xff] }
0x1a3e   : > { %7607 = vmatpush.msra.mxu0 %v9612_v22  ;;  %v9660_v22 = vld [vmem:[#allocation21 + $0x10d0] sm:$0xff] }
0x1a3f   : > { %7627 = vmatpush.msrb.mxu1 %v9613_v47  ;;  %v9661_v47 = vld [vmem:[#allocation21 + $0x11d0] sm:$0xff] }
0x1a40   : > { %7608 = vmatpush.msra.mxu0 %v9614_v32  ;;  %v9662_v32 = vld [vmem:[#allocation21 + $0x10c0] sm:$0xff] }
0x1a41   : > { %7628 = vmatpush.msrb.mxu1 %v9615_v63  ;;  %v9663_v63 = vld [vmem:[#allocation21 + $0x11c0] sm:$0xff] }
0x1a42   : > { %7609 = vmatpush.msra.mxu0 %v9616_v53  ;;  %v9664_v53 = vld [vmem:[#allocation21 + $0x10b0] sm:$0xff] }
0x1a43   : > { %7629 = vmatpush.msrb.mxu1 %v9617_v51  ;;  %v9665_v51 = vld [vmem:[#allocation21 + $0x11b0] sm:$0xff] }
0x1a44   : > { %7610 = vmatpush.msra.mxu0 %v9618_v16  ;;  %v9666_v16 = vld [vmem:[#allocation21 + $0x10a0] sm:$0xff] }
0x1a45   : > { %7630 = vmatpush.msrb.mxu1 %v9619_v5  ;;  %v9667_v5 = vld [vmem:[#allocation21 + $0x11a0] sm:$0xff] }
0x1a46   : > { %7611 = vmatpush.msra.mxu0 %v9620_v61  ;;  %v9668_v61 = vld [vmem:[#allocation21 + $0x1090] sm:$0xff] }
0x1a47   : > { %7631 = vmatpush.msrb.mxu1 %v9621_v27  ;;  %v9669_v27 = vld [vmem:[#allocation21 + $0x1190] sm:$0xff] }
0x1a48   : > { %7612 = vmatpush.msra.mxu0 %v9622_v54  ;;  %v9670_v54 = vld [vmem:[#allocation21 + $0x1080] sm:$0xff] }
0x1a49   : > { %7632 = vmatpush.msrb.mxu1 %v9623_v36  ;;  %v9671_v36 = vld [vmem:[#allocation21 + $0x1180] sm:$0xff] }
0x1a84   : > { %v7346_v1 = vpop.f32.mrf.mxu0 }
0x1a85   : > { %v7366_v21 = vpop.f32.mrf.mxu1 }
0x1a86   : > { %v7367_v29 = vadd.f32 %v7366_v21, %v7346_v1  ;;  %v9673_v1 = vld [vmem:[#allocation21 + $0x1170] sm:$0xff]  ;;  %v9674_v21 = vld [vmem:[#allocation21 + $0x1060] sm:$0xff] }
0x1a88   : > { %v11384_v62 = vadd.f32 %v7367_v29, %v7275_v56  ;;  %v9675_v56 = vld [vmem:[#allocation21 + $0x1160] sm:$0xff]  ;;  %v9676_v29 = vld [vmem:[#allocation21 + $0x1050] sm:$0xff] }
0x1a8c   : > { %v7440_v48 = vpop.f32.mrf.mxu0 }
0x1a8d   : > { %v7460_v50 = vpop.f32.mrf.mxu1  ;;  %7479 = vmatmul.f32.vlgmr.msra.gmra.mxu2 %v7440_v48  ;;  %7519 = vmatmul.f32.vlgmr.msrb.gmra.mxu0 %v7440_v48  ;;  %v9677_v48 = vld [vmem:[#allocation21 + $0x1150] sm:$0xff] }
0x1a8e   : > { %7499 = vmatmul.f32.vlgmr.msrb.gmra.mxu3 %v7460_v50  ;;  %7539 = vmatmul.f32.vlgmr.msra.gmra.mxu1 %v7460_v50  ;;  %v9678_v50 = vld [vmem:[#allocation21 + $0x1040] sm:$0xff] }
0x1a8f   : > { %8461 = vmatpush.msk.msrb.mxu0 %vm933_vm0, %v7682_v34  ;;  %8463 = vmatpush.msk.msra.mxu1 %vm933_vm0, %v7683_v8  ;;  %v9679_v34 = vld [vmem:[#allocation21 + $0x1140] sm:$0xff]  ;;  %v9680_v8 = vld [vmem:[#allocation21 + $0x1030] sm:$0xff] }
0x1a90   : > { %7637 = vmatpush.msra.mxu2 %v9624_v60  ;;  %7657 = vmatpush.msrb.mxu3 %v9625_v58  ;;  %v9681_v60 = vld [vmem:[#allocation21 + $0x1130] sm:$0xff]  ;;  %v9682_v58 = vld [vmem:[#allocation21 + $0x1020] sm:$0xff] }
0x1a92   : > { %7638 = vmatpush.msra.mxu2 %v9626_v20  ;;  %7658 = vmatpush.msrb.mxu3 %v9627_v45  ;;  %v9684_v20 = vld [vmem:[#allocation21 + $0x1010] sm:$0xff] }
0x1a93   : > { %v9685_v45 = vld [vmem:[#allocation21 + $0x1110] sm:$0xff] }
0x1a94   : > { %7639 = vmatpush.msra.mxu2 %v9628_v19  ;;  %7659 = vmatpush.msrb.mxu3 %v9629_v35  ;;  %v9686_v19 = vld [vmem:[#allocation21 + $0x1000] sm:$0xff] }
0x1a95   : > { %8457 = vmatmul.msk.f32.vlgmr.msrb.gmra.mxu2 %vm929_vm1, %v8455_v11  ;;  %v9687_v35 = vld [vmem:[#allocation21 + $0x1100] sm:$0xff] }
0x1a96   : > { %8459 = vmatmul.msk.f32.vlgmr.msra.gmra.mxu3 %vm929_vm1, %v8455_v11  ;;  %7640 = vmatpush.msra.mxu2 %v9630_v28  ;;  %v9683_v11 = vld [vmem:[#allocation21 + $0x1120] sm:$0xff]  ;;  %v11393_v28 = vpop.f32.mrf.mxu2 }
0x1a97   : > { %7660 = vmatpush.msrb.mxu3 %v9631_v38  ;;  %v11395_v38 = vpop.f32.mrf.mxu3 }
0x1a98   : > { %7641 = vmatpush.msra.mxu2 %v9632_v25 }
0x1a99   : > { %7661 = vmatpush.msrb.mxu3 %v9633_v10 }
0x1a9a   : > { %7642 = vmatpush.msra.mxu2 %v9634_v13 }
0x1a9b   : > { %7662 = vmatpush.msrb.mxu3 %v9635_v52 }
0x1a9c   : > { %7643 = vmatpush.msra.mxu2 %v9636_v14  ;;  %v11400_v14 = vpop.permute.xlu2 %7817 }
0x1a9d   : > { %7663 = vmatpush.msrb.mxu3 %v9637_v31 }
0x1a9e   : > { %7644 = vmatpush.msra.mxu2 %v9638_v18 }
0x1a9f   : > { %7664 = vmatpush.msrb.mxu3 %v9639_v41  ;;  %v9688_v41 = vld [vmem:[#allocation21 + $0x10f8] sm:$0xff] }
0x1aa0   : > { %7645 = vmatpush.msra.mxu2 %v9640_v17  ;;  %v9689_v17 = vld [vmem:[#allocation21 + $0x11f8] sm:$0xff] }
0x1aa1   : > { %7665 = vmatpush.msrb.mxu3 %v9641_v24  ;;  %v9690_v24 = vld [vmem:[#allocation21 + $0x10e8] sm:$0xff] }
0x1aa2   : > { %7646 = vmatpush.msra.mxu2 %v9642_v33  ;;  %v9691_v33 = vld [vmem:[#allocation21 + $0x11e8] sm:$0xff] }
0x1aa3   : > { %7666 = vmatpush.msrb.mxu3 %v9643_v57 }
0x1aa4   : > { %7647 = vmatpush.msra.mxu2 %v9644_v26  ;;  %v11402_v57 = vpop.permute.xlu2 %7830  ;;  %v9693_v26 = vld [vmem:[#allocation21 + $0x11d8] sm:$0xff] }
0x1aa5   : > { %7667 = vmatpush.msrb.mxu3 %v9645_v43  ;;  %v8460_v43 = vld [vmem:[%s11552_s23 + $0x22] sm:$0x3] }
0x1aa6   : > { %7648 = vmatpush.msra.mxu2 %v9646_v55  ;;  %v9694_v55 = vld [vmem:[#allocation21 + $0x10c8] sm:$0xff] }
0x1aa7   : > { %7668 = vmatpush.msrb.mxu3 %v9647_v9  ;;  %v9695_v9 = vld [vmem:[#allocation21 + $0x11c8] sm:$0xff] }
0x1aa8   : > { %7649 = vmatpush.msra.mxu2 %v9648_v0  ;;  %v9696_v0 = vld [vmem:[#allocation21 + $0x10b8] sm:$0xff] }
0x1aa9   : > { %7669 = vmatpush.msrb.mxu3 %v9649_v7  ;;  %v9697_v7 = vld [vmem:[#allocation21 + $0x11b8] sm:$0xff] }
0x1aaa   : > { %7650 = vmatpush.msra.mxu2 %v9650_v3  ;;  %v9698_v3 = vld [vmem:[#allocation21 + $0x10a8] sm:$0xff] }
0x1aab   : > { %7670 = vmatpush.msrb.mxu3 %v9651_v42  ;;  %v9699_v42 = vld [vmem:[#allocation21 + $0x11a8] sm:$0xff] }
0x1aac   : > { %7651 = vmatpush.msra.mxu2 %v9652_v4  ;;  %v9700_v4 = vld [vmem:[#allocation21 + $0x1098] sm:$0xff] }
0x1aad   : > { %7671 = vmatpush.msrb.mxu3 %v9653_v6  ;;  %v9701_v6 = vld [vmem:[#allocation21 + $0x1198] sm:$0xff] }
0x1aae   : > { %7652 = vmatpush.msra.mxu2 %v9654_v12  ;;  %v11409_v12 = vpop.permute.xlu2 %7840 }
0x1aaf   : > { %7672 = vmatpush.msrb.mxu3 %v9655_v49  ;;  %v9702_v49 = vld [vmem:[#allocation21 + $0x1088] sm:$0xff] }
0x1ab0   : > { %7731 = vmatpush.msrb.mxu2 %v9656_v46  ;;  %v9703_v46 = vld [vmem:[#allocation21 + $0x1188] sm:$0xff] }
0x1ab1   : > { %7751 = vmatpush.msra.mxu3 %v9657_v15  ;;  %v6672_v15 = vpop.permute.xlu0 %6671 }
0x1ab2   : > { %7732 = vmatpush.msrb.mxu2 %v9658_v2  ;;  %v9704_v2 = vld [vmem:[#allocation21 + $0x1078] sm:$0xff] }
0x1ab3   : > { %7752 = vmatpush.msra.mxu3 %v9659_v23  ;;  %v9705_v23 = vld [vmem:[#allocation21 + $0x1178] sm:$0xff] }
0x1ab4   : > { %7733 = vmatpush.msrb.mxu2 %v9660_v22  ;;  %v6674_v22 = vadd.f32 %v6672_v15, %v11309_v37  ;;  %v9713_v37 = vld [vmem:[#allocation21 + $0x1138] sm:$0xff] }
0x1ab5   : > { %7753 = vmatpush.msra.mxu3 %v9661_v47  ;;  %v6675_v47 = vadd.f32 %v6672_v15, %v11311_v30 }
0x1ab6   : > { %7734 = vmatpush.msrb.mxu2 %v9662_v32  ;;  %v9706_v32 = vld [vmem:[#allocation21 + $0x1068] sm:$0xff] }
0x1ab7   : > { %7754 = vmatpush.msra.mxu3 %v9663_v63  ;;  %v9707_v63 = vld [vmem:[#allocation21 + $0x1168] sm:$0xff] }
0x1ab8   : > { %7735 = vmatpush.msrb.mxu2 %v9664_v53  ;;  %v9708_v53 = vld [vmem:[#allocation21 + $0x1058] sm:$0xff] }
0x1ab9   : > { %7755 = vmatpush.msra.mxu3 %v9665_v51  ;;  %v9709_v51 = vld [vmem:[#allocation21 + $0x1158] sm:$0xff] }
0x1aba   : > { %7736 = vmatpush.msrb.mxu2 %v9666_v16  ;;  %v6680_v16 = vmin.f32 %v6674_v22, 0.0 }
0x1abb   : > { %7756 = vmatpush.msra.mxu3 %v9667_v5  ;;  %v6681_v5 = vmin.f32 %v6675_v47, 0.0 }
0x1abc   : > { %7737 = vmatpush.msrb.mxu2 %v9668_v61  ;;  %v9710_v61 = vld [vmem:[#allocation21 + $0x1048] sm:$0xff] }
0x1abd   : > { %7757 = vmatpush.msra.mxu3 %v9669_v27  ;;  %v9711_v27 = vld [vmem:[#allocation21 + $0x1148] sm:$0xff] }
0x1abe   : > { %7738 = vmatpush.msrb.mxu2 %v9670_v54  ;;  %v6685_v54 = vpop.permute.xlu2 %6684 }
0x1abf   : > { %7758 = vmatpush.msra.mxu3 %v9671_v36  ;;  %v9712_v36 = vld [vmem:[#allocation21 + $0x1038] sm:$0xff]  ;;  %v6687_v30 = vmul.f32 %v6685_v54, %v6680_v16 }
0x1ac0   : > { %7739 = vmatpush.msrb.mxu2 %v9672_v44  ;;  %v6688_v44 = vmul.f32 %v6685_v54, %v6681_v5 }
0x1ac1   : > { %7759 = vmatpush.msra.mxu3 %v9673_v1  ;;  %v9714_v1 = vld [vmem:[#allocation21 + $0x1028] sm:$0xff] }
0x1ac2   : > { %7740 = vmatpush.msrb.mxu2 %v9674_v21  ;;  %v9715_v21 = vld [vmem:[#allocation21 + $0x1128] sm:$0xff] }
0x1ac3   : > { %7760 = vmatpush.msra.mxu3 %v9675_v56  ;;  %v6678_v56 = vmax.f32 %v6674_v22, 0.0 }
0x1ac4   : > { %7741 = vmatpush.msrb.mxu2 %v9676_v29  ;;  %v6679_v29 = vmax.f32 %v6675_v47, 0.0 }
0x1ac5   : > { %7761 = vmatpush.msra.mxu3 %v9677_v48  ;;  %v9716_v48 = vld [vmem:[#allocation21 + $0x1018] sm:$0xff] }
0x1ac6   : > { %7742 = vmatpush.msrb.mxu2 %v9678_v50  ;;  %v9717_v50 = vld [vmem:[#allocation21 + $0x1118] sm:$0xff] }
0x1ac7   : > { %7762 = vmatpush.msra.mxu3 %v9679_v34  ;;  %v6689_v34 = vadd.f32 %v6687_v30, %v6678_v56 }
0x1ac8   : > { %7743 = vmatpush.msrb.mxu2 %v9680_v8  ;;  %v6690_v8 = vadd.f32 %v6688_v44, %v6679_v29 }
0x1ac9   : > { %7763 = vmatpush.msra.mxu3 %v9681_v60  ;;  %v9718_v60 = vld [vmem:[#allocation21 + $0x1008] sm:$0xff] }
0x1aca   : > { %7744 = vmatpush.msrb.mxu2 %v9682_v58  ;;  %v9719_v58 = vld [vmem:[#allocation21 + $0x1108] sm:$0xff] }
0x1acb   : > { %7764 = vmatpush.msra.mxu3 %v9683_v11 }
0x1acc   : > { %7745 = vmatpush.msrb.mxu2 %v9684_v20 }
0x1acd   : > { %7765 = vmatpush.msra.mxu3 %v9685_v45 }
0x1ace   : > { %7746 = vmatpush.msrb.mxu2 %v9686_v19 }
0x1acf   : > { %7766 = vmatpush.msra.mxu3 %v9687_v35 }
0x1b0a   : > { %v7520_v11 = vpop.f32.mrf.mxu0 }
0x1b0b   : > { %v7540_v20 = vpop.f32.mrf.mxu1 }
0x1b10   : > { %v7480_v25 = vpop.f32.mrf.mxu2 }
0x1b11   : > { %v7500_v10 = vpop.f32.mrf.mxu3 }
0x1b12   : > { %v7501_v13 = vadd.f32 %v7500_v10, %v7480_v25 }
0x1b14   : > { %v11398_v52 = vadd.f32 %v7501_v13, %v11384_v62  ;;  %v9692_v62 = vld [vmem:[#allocation21 + $0x10d8] sm:$0xff] }
0x1b18   : > { %v7574_v31 = vpop.f32.mrf.mxu2 }
0x1b19   : > { %v7594_v18 = vpop.f32.mrf.mxu3  ;;  %7613 = vmatmul.f32.vlgmr.msra.gmra.mxu0 %v7574_v31  ;;  %7653 = vmatmul.f32.vlgmr.msra.gmra.mxu2 %v7574_v31  ;;  %v9720_v31 = vld [vmem:[#allocation16 + $0x4] sm:$0xf] }
0x1b1a   : > { %7633 = vmatmul.f32.vlgmr.msrb.gmra.mxu1 %v7594_v18  ;;  %7673 = vmatmul.f32.vlgmr.msrb.gmra.mxu3 %v7594_v18  ;;  %v7407_v18 = vadd.f32 %v11395_v38, %v11393_v28 }
0x1b1b   : > { %7771 = vmatpush.msra.mxu0 %v9688_v41  ;;  %7791 = vmatpush.msrb.mxu1 %v9689_v17 }
0x1b1d   : > { %7772 = vmatpush.msra.mxu0 %v9690_v24  ;;  %7792 = vmatpush.msrb.mxu1 %v9691_v33  ;;  %v7276_v24 = vadd.f32 %v11381_v39, %v11370_v40 }
0x1b1f   : > { %7773 = vmatpush.msra.mxu0 %v9692_v62  ;;  %7793 = vmatpush.msrb.mxu1 %v9693_v26  ;;  %v7410_v33 = vadd.f32 %v7407_v18, %v7276_v24 }
0x1b21   : > { %7774 = vmatpush.msra.mxu0 %v9694_v55  ;;  %7794 = vmatpush.msrb.mxu1 %v9695_v9 }
0x1b22   : > { %8462 = vmatmul.msk.f32.vlgmr.msrb.gmra.mxu0 %vm929_vm1, %v8460_v43  ;;  %8464 = vmatmul.msk.f32.vlgmr.msra.gmra.mxu1 %vm929_vm1, %v8460_v43 }
0x1b23   : > { %7775 = vmatpush.msra.mxu0 %v9696_v0  ;;  %7795 = vmatpush.msrb.mxu1 %v9697_v7 }
0x1b25   : > { %7776 = vmatpush.msra.mxu0 %v9698_v3  ;;  %7796 = vmatpush.msrb.mxu1 %v9699_v42 }
0x1b27   : > { %7777 = vmatpush.msra.mxu0 %v9700_v4  ;;  %7797 = vmatpush.msrb.mxu1 %v9701_v6 }
0x1b29   : > { %7778 = vmatpush.msra.mxu0 %v9702_v49  ;;  %7798 = vmatpush.msrb.mxu1 %v9703_v46 }
0x1b2b   : > { %7779 = vmatpush.msra.mxu0 %v9704_v2  ;;  %7799 = vmatpush.msrb.mxu1 %v9705_v23 }
0x1b2d   : > { %7780 = vmatpush.msra.mxu0 %v9706_v32  ;;  %7800 = vmatpush.msrb.mxu1 %v9707_v63 }
0x1b2f   : > { %7781 = vmatpush.msra.mxu0 %v9708_v53  ;;  %7801 = vmatpush.msrb.mxu1 %v9709_v51 }
0x1b31   : > { %7782 = vmatpush.msra.mxu0 %v9710_v61  ;;  %7802 = vmatpush.msrb.mxu1 %v9711_v27 }
0x1b33   : > { %7783 = vmatpush.msra.mxu0 %v9712_v36  ;;  %7803 = vmatpush.msrb.mxu1 %v9713_v37 }
0x1b35   : > { %7784 = vmatpush.msra.mxu0 %v9714_v1  ;;  %7804 = vmatpush.msrb.mxu1 %v9715_v21 }
0x1b37   : > { %7785 = vmatpush.msra.mxu0 %v9716_v48  ;;  %7805 = vmatpush.msrb.mxu1 %v9717_v50 }
0x1b39   : > { %7786 = vmatpush.msra.mxu0 %v9718_v60  ;;  %7806 = vmatpush.msrb.mxu1 %v9719_v58 }
0x1b3b   : > { %8471 = vmatpush.msk.msrb.mxu0 %vm4808_vm3, %v6689_v34  ;;  %8473 = vmatpush.msk.msra.mxu1 %vm4808_vm3, %v6690_v8 }
0x1b96   : > { %v7614_v45 = vpop.f32.mrf.mxu0 }
0x1b97   : > { %v7634_v19 = vpop.f32.mrf.mxu1 }
0x1b98   : > { %v7635_v35 = vadd.f32 %v7634_v19, %v7614_v45 }
0x1b9a   : > { %v7677_v25 = vadd.f32 %v7635_v35, %v11398_v52  ;;  %v7541_v52 = vadd.f32 %v7540_v20, %v7520_v11 }
0x1b9c   : > { %v7654_v41 = vpop.f32.mrf.mxu2  ;;  %v7544_v26 = vadd.f32 %v7541_v52, %v7410_v33 }
0x1b9d   : > { %v7674_v17 = vpop.f32.mrf.mxu3 }
0x1b9e   : > { %v7675_v62 = vadd.f32 %v7674_v17, %v7654_v41 }
0x1b9f   : > { %v7708_v10 = vpop.f32.mrf.mxu0  ;;  %v7728_v13 = vpop.f32.mrf.mxu1 }
0x1ba0   : > { %7747 = vmatmul.f32.vlgmr.msrb.gmra.mxu2 %v7708_v10  ;;  %7767 = vmatmul.f32.vlgmr.msra.gmra.mxu3 %v7728_v13  ;;  %v7678_v9 = vadd.f32 %v7675_v62, %v7544_v26 }
0x1ba1   : > { %7787 = vmatmul.f32.vlgmr.msra.gmra.mxu0 %v7708_v10  ;;  %7807 = vmatmul.f32.vlgmr.msrb.gmra.mxu1 %v7728_v13 }
0x1ba9   : > { %8474 = vmatmul.msk.f32.vlgmr.msra.gmra.mxu1 %vm4805_vm4, %v9720_v31  ;;  %8472 = vmatmul.msk.f32.vlgmr.msrb.gmra.mxu0 %vm4805_vm4, %v9720_v31 }
0x1c1e   : > { %v7788_v43 = vpop.f32.mrf.mxu0  ;;  %v7808_v55 = vpop.f32.mrf.mxu1 }
0x1c1f   : > { %v7809_v0 = vadd.f32 %v7808_v55, %v7788_v43 }
0x1c21   : > { %v7812_v7 = vadd.f32 %v7809_v0, %v7678_v9 }
0x1c23   : > { %v7821_v3 = vadd.f32 %v11400_v14, %v7812_v7  ;;  %v7748_v42 = vpop.f32.mrf.mxu2  ;;  %v7768_v4 = vpop.f32.mrf.mxu3 }
0x1c24   : > { %v7769_v6 = vadd.f32 %v7768_v4, %v7748_v42 }
0x1c25   : > { %v7827_v28 = vmin.f32 %v7821_v3, 0.0  ;;  %v7825_v49 = vmax.f32 %v7821_v3, 0.0 }
0x1c26   : > { %v7811_v38 = vadd.f32 %v7769_v6, %v7677_v25  ;;  %v7935_v47 = vpop.f32.mrf.mxu1  ;;  %v7915_v53 = vpop.f32.mrf.mxu0 }
0x1c27   : > { %v7834_v46 = vmul.f32 %v11402_v57, %v7827_v28 }
0x1c28   : > { %v7820_v40 = vadd.f32 %v11400_v14, %v7811_v38 }
0x1c29   : > { %v7836_v39 = vadd.f32 %v7834_v46, %v7825_v49 }
0x1c2a   : > { %v7826_v15 = vmin.f32 %v7820_v40, 0.0  ;;  %v7824_v2 = vmax.f32 %v7820_v40, 0.0 }
0x1c2b   : > { %8469 = vmatpush.msk.msrb.mxu3 %vm4808_vm3, %v7836_v39 }
0x1c2c   : > { %v7833_v23 = vmul.f32 %v11402_v57, %v7826_v15  ;;  %8470 = vmatmul.msk.f32.vlgmr.msrb.gmra.mxu3 %vm4805_vm4, %v11409_v12 }
0x1c2e   : > { %v7835_v22 = vadd.f32 %v7833_v23, %v7824_v2 }
0x1c30   : > { %8467 = vmatpush.msk.msra.mxu2 %vm4808_vm3, %v7835_v22 }
0x1c31   : > { %8468 = vmatmul.msk.f32.vlgmr.msra.gmra.mxu2 %vm4805_vm4, %v11409_v12 }
0x1caf   : > { %v7887_v32 = vpop.f32.mrf.mxu3 }
0x1cb0   : > { %v7936_v63 = vadd.f32 %v7935_v47, %v7887_v32 }
0x1cb2   : > { %v7939_v14 = vsub.f32 0.0, %v7936_v63 }
0x1cb4   : > { %v7942_v51 = vmul.f32 1.442695, %v7939_v14  ;;  %v7867_v16 = vpop.f32.mrf.mxu2 }
0x1cb5   : > { %v7916_v5 = vadd.f32 %v7915_v53, %v7867_v16 }
0x1cb6   : > { %8684 = vpow2.f32 %v7942_v51 }
0x1cb7   : > { %v7938_v61 = vsub.f32 0.0, %v7916_v5 }
0x1cb9   : > { %v7940_v57 = vmul.f32 1.442695, %v7938_v61 }
0x1cbb   : > { %8686 = vpow2.f32 %v7940_v57 }
0x1cbc   : > { %v8685_v27 = vpop.eup %8684 }
0x1cbd   : > { %v7945_v54 = vadd.f32 1.0, %v8685_v27 }
0x1cbf   : > { %8688 = vrcp.f32 %v7945_v54  ;;  %v7972_v56 = vand.u32 2147483648, %v7945_v54  ;;  %v7970_v48 = vand.u32 2147483647, %v7945_v54  ;;  %vm7966_vm14 = vweird.f32 %v7945_v54 }
0x1cc1   : > { %v8687_v36 = vpop.eup %8686  ;;  %v7973_v58 = vor.u32 1.1754944e-38, %v7972_v56  ;;  %vm7971_vm2 = vcmp.eq.f32.partialorder %v7970_v48, 8.507059e+37 }
0x1cc2   : > { %v7944_v37 = vadd.f32 1.0, %v8687_v36 }
0x1cc4   : > { %8690 = vrcp.f32 %v7944_v37  ;;  %v7957_v8 = vand.u32 2147483648, %v7944_v37  ;;  %v7955_v20 = vand.u32 2147483647, %v7944_v37  ;;  %vm7951_vm3 = vweird.f32 %v7944_v37 }
0x1cc5   : > { %v8689_v12 = vpop.eup %8688 }
0x1cc6   : > { %v7962_v30 = vmul.f32 %v8689_v12, %v7945_v54  ;;  %vm7967_vm13 = vweird.f32 %v8689_v12  ;;  %v7958_v35 = vor.u32 1.1754944e-38, %v7957_v8  ;;  %vm7956_vm5 = vcmp.eq.f32.partialorder %v7955_v20, 8.507059e+37 }
0x1cc7   : > { %vm7968_vm15 = vmor %vm7966_vm14, %vm7967_vm13 }
0x1cc8   : > { %v7963_v44 = vsub.f32 1.0, %v7962_v30 }
0x1cca   : > { %v8691_v1 = vpop.eup %8690  ;;  %v7964_v21 = vmul.f32 %v8689_v12, %v7963_v44 }
0x1ccb   : > { %v7947_v29 = vmul.f32 %v8691_v1, %v7944_v37  ;;  %vm7952_vm1 = vweird.f32 %v8691_v1 }
0x1ccc   : > { %v7965_v50 = vadd.f32 %v8689_v12, %v7964_v21  ;;  %vm7953_vm4 = vmor %vm7951_vm3, %vm7952_vm1 }
0x1ccd   : > { %v7948_v34 = vsub.f32 1.0, %v7947_v29 }
0x1cce   : > { %v7969_v60 = vsel %vm7968_vm15, %v8689_v12, %v7965_v50 }
0x1ccf   : > { %v7949_v11 = vmul.f32 %v8691_v1, %v7948_v34  ;;  %v7974_v45 = vsel %vm7971_vm2, %v7973_v58, %v7969_v60 }
0x1cd0   : > { %v7978_v10 = vrot.slane %v7974_v45, 4 }
0x1cd1   : > { %v7950_v19 = vadd.f32 %v8691_v1, %v7949_v11 }
0x1cd3   : > { %v7954_v25 = vsel %vm7953_vm4, %v8691_v1, %v7950_v19 }
0x1cd4   : > { %v7959_v13 = vsel %vm7956_vm5, %v7958_v35, %v7954_v25 }
0x1cd5   : > { %v7979_v31 = vsel %vm933_vm0, %v7959_v13, %v7978_v10 }
0x1cd6   : > { %v7981_v18 = vadd.f32 %v7979_v31, %v11080_v59 }
0x1cd8   : > { %7982 = vst [vmem:[%s880_s7] sm:$0xff] %v7981_v18 }
0x1cd9   : > { %10093 = shalt.err (!%p10090_p9)
}
0x1cda   : > { %8528 = dma.vmem_to_hbm [thread:$0]  (%p10439_p13), %s7998_s2, 128, %s8000_s4, %s7984_s17  }
0x1cdb PF: > { %s8011_s15 = sand.u32 1, %s10144_s3   ;;  %p11563_p10 = scmp.ge.s32.totalorder %s10156_s30, 2 }
0x1cdc   : > { %s8012_s7 = scalar_lea.sflag [#allocation4], %s8011_s15 }
0x1cdd   : > { %p8569_p11 = pnand %p11563_p10, %p10444_p4 }
0x1cdf   : > { %p8570_p0 = pneg %p8569_p11 }
0x1ce1   : > { %10139 = dma.done.wait (%p8570_p0), %s8012_s7, 128  }
0x1ce2   : > { %10141 = vsyncadd (%p8570_p0), %s8012_s7, 4294967168  ;;  %p41_p2 = scmp.ge.s32.totalorder %s10419_s27, 4   ;;  %s11564_s3 = smov %s10148_s28 }
0x1ce3   : > { %s11565_s28 = smov %s10152_s29  ;;  %s11566_s29 = smov %s10431_s26 }
0x1ce4   : > { %s11567_s30 = smov %s10419_s27  ;;  %43 = sbr.rel (!%p41_p2) target bundleno = 31 (0x1f), region = 261 }
0x1ce9   :  { %8018 = vsyncpa [#allocation3], 1 }
0x1cea   :  { %8020 = vsyncpa [#allocation3 + $0x1], 1 }
0x1ceb   :  { %8021 = vsyncpa [#allocation7], 1 }
0x1cec   :  { %8022 = vsyncpa [#allocation10], 1 }
0x1ced   :  { %8023 = vsyncpa [#allocation13], 1 }
0x1cee   :  { %8024 = vsyncpa [#allocation17], 1 }
0x1cef   :  { %8025 = vsyncpa [#allocation20], 1 }
0x1cf0   :  { %8026 = vsyncpa [#allocation4], 1 }
0x1cf1   :  { %8028 = vsyncpa [#allocation4 + $0x1], 1 }
0x1cf2   :  { %8029 = vsyncpa [#allocation5], 1 }
0x1cf3   :  { %8031 = vsyncpa [#allocation5 + $0x1], 1 }

</bundles_post_ra>
